<compile_context>
chip_gen: v5e
topology: v5e:2x2
jax: 0.10.0
libtpu: 0.0.40
codegen_flags: <defaults>
</compile_context>

<pallas_src>
import functools
import math

import jax
import jax.numpy as jnp
from jax.experimental import pallas as pl
from jax.experimental.pallas import tpu as pltpu

HID = 128          # hid_dim
NHEAD = 4
DH = HID // NHEAD
FEAT_V = 1024
FEAT_A = 128
PAD = 8            # sublane-aligned offset where "time 0" lives in scratch pads
LN_EPS = 1e-6
BN_EPS = 1e-5


def _layer_norm(v, g, b):
    mu = jnp.mean(v, axis=-1, keepdims=True)
    var = jnp.mean(jnp.square(v - mu), axis=-1, keepdims=True)
    return (v - mu) * jax.lax.rsqrt(var + LN_EPS) * g + b


def _model_kernel(x_ref,
                  wv_ref, bv_ref, wa_ref, ba_ref, w12_ref, b12_ref,
                  ln1g_ref, ln1b_ref, wqkv_ref, bqkv_ref, wo_ref, bo_ref,
                  ln2g_ref, ln2b_ref, ffw1_ref, ffb1_ref, ffw2_ref, ffb2_ref,
                  cw_ref, bns_ref, bnh_ref, wc_ref, bc_ref,
                  logit_ref, nv_ref, na_ref,
                  xp, cp, *, T):
    f32 = jnp.float32
    x = x_ref[0]                                               # [T, 1152]

    # --- front-end linears (Model.fc_v / Model.fc_a) ---
    nv = jnp.dot(x[:, :FEAT_V], wv_ref[...], preferred_element_type=f32) + bv_ref[...]
    na = jnp.dot(x[:, FEAT_V:], wa_ref[...], preferred_element_type=f32) + ba_ref[...]
    nv_ref[0] = nv
    na_ref[0] = na

    # --- TemporalConsensus.fc_v | fc_v2 fused into one [256, 256] matmul ---
    nf = jnp.concatenate([nv, na], axis=-1)                    # [T, 256]
    x12 = jnp.dot(nf, w12_ref[...], preferred_element_type=f32) + b12_ref[...]
    x1 = x12[:, :HID]                                          # transformer branch
    x2 = x12[:, HID:]                                          # conv branches

    # --- pre-LN transformer layer (self-attention + FFN), fused QKV ---
    xn = _layer_norm(x1, ln1g_ref[...], ln1b_ref[...])
    qkv = jnp.dot(xn, wqkv_ref[...], preferred_element_type=f32) + bqkv_ref[...]   # [T, 384]
    scale = 1.0 / math.sqrt(DH)
    attn = jnp.zeros((T, HID), f32)
    for h in range(NHEAD):                                     # statically unrolled
        q = qkv[:, h * DH:(h + 1) * DH]
        k = qkv[:, HID + h * DH:HID + (h + 1) * DH]
        v = qkv[:, 2 * HID + h * DH:2 * HID + (h + 1) * DH]
        s = jax.lax.dot_general(q, k, (((1,), (1,)), ((), ())),
                                preferred_element_type=f32) * scale        # [T, T]
        s = s - jnp.max(s, axis=-1, keepdims=True)
        p = jnp.exp(s)
        p = p * pl.reciprocal(jnp.sum(p, axis=-1, keepdims=True), approx=True)
        ho = jnp.dot(p, v, preferred_element_type=f32)                     # [T, DH]
        # head merge fused into the output projection: concat(heads)@Wo == sum_h ho@Wo[h]
        attn = attn + jnp.dot(ho, wo_ref[h * DH:(h + 1) * DH, :],
                              preferred_element_type=f32)
    xa = x1 + attn + bo_ref[...]
    xn = _layer_norm(xa, ln2g_ref[...], ln2b_ref[...])
    hdn = jnp.maximum(jnp.dot(xn, ffw1_ref[...], preferred_element_type=f32)
                      + ffb1_ref[...], 0.0)
    out_long = xa + jnp.dot(hdn, ffw2_ref[...], preferred_element_type=f32) + ffb2_ref[...]

    # --- three dilated conv branches (im2col matmuls) + BN(eval) + ReLU + residual ---
    xp[...] = jnp.zeros_like(xp)
    xp[PAD:PAD + T, :] = x2                                    # zero-padded-in-time x2
    cp[...] = jnp.zeros_like(cp)
    cp[PAD:PAD + T, 0:HID] = out_long                          # new_f[:, 0:128]
    for i, d in enumerate((1, 2, 3)):
        win = jnp.concatenate([xp[PAD - d:PAD - d + T, :],     # tap 0: x[t-d]
                               xp[PAD:PAD + T, :],             # tap 1: x[t]
                               xp[PAD + d:PAD + d + T, :]],    # tap 2: x[t+d]
                              axis=-1)                         # [T, 384]
        y = jnp.dot(win, cw_ref[i], preferred_element_type=f32)
        y = jnp.maximum(y * bns_ref[i] + bnh_ref[i], 0.0) + x2
        cp[PAD:PAD + T, HID * (i + 1):HID * (i + 2)] = y       # new_f[:, 128(i+1):...]

    # --- classifier: F.pad(.,(6,0)) + Conv1d(512->1, k=7) + sigmoid, as MXU dots ---
    acc = jnp.zeros((T, 1), f32)
    for k in range(7):
        acc = acc + jnp.dot(cp[PAD - 6 + k:PAD - 6 + k + T, :], wc_ref[:, k:k + 1],
                            preferred_element_type=f32)
    logit_ref[0] = jax.nn.sigmoid(acc + bc_ref[...])


PARAM_ORDER = ("fc_v_w", "fc_v_b", "fc_a_w", "fc_a_b", "tc_w12", "tc_b12",
               "ln1_g", "ln1_b", "wqkv", "bqkv", "wo", "bo",
               "ln2_g", "ln2_b", "ff_w1", "ff_b1", "ff_w2", "ff_b2",
               "conv_w", "bn_scale", "bn_shift", "cls_w", "cls_b")


def _whole_spec(shape):
    n = len(shape)
    return pl.BlockSpec(shape, lambda b: (0,) * n)


@jax.jit
def forward(x, p):
    """x: [B, T, 1152] -> (sigmoid logits [B, T], new_v [B, T, 128], new_a [B, T, 128])."""
    B, T, F = x.shape
    pad_rows = PAD + T + 8
    kern = functools.partial(_model_kernel, T=T)
    in_specs = [pl.BlockSpec((1, T, F), lambda b: (b, 0, 0))]
    in_specs += [_whole_spec(p[name].shape) for name in PARAM_ORDER]
    out_specs = [pl.BlockSpec((1, T, 1), lambda b: (b, 0, 0)),
                 pl.BlockSpec((1, T, HID), lambda b: (b, 0, 0)),
                 pl.BlockSpec((1, T, HID), lambda b: (b, 0, 0))]
    out_shape = (jax.ShapeDtypeStruct((B, T, 1), jnp.float32),
                 jax.ShapeDtypeStruct((B, T, HID), jnp.float32),
                 jax.ShapeDtypeStruct((B, T, HID), jnp.float32))
    logits3, new_v, new_a = pl.pallas_call(
        kern,
        out_shape=out_shape,
        grid=(B,),
        in_specs=in_specs,
        out_specs=out_specs,
        scratch_shapes=[pltpu.VMEM((pad_rows, HID), jnp.float32),
                        pltpu.VMEM((pad_rows, 4 * HID), jnp.float32)],
        compiler_params=pltpu.CompilerParams(
            dimension_semantics=("parallel",),
            vmem_limit_bytes=64 << 20),
    )(x, *[p[name] for name in PARAM_ORDER])
    return logits3.reshape(B, T), new_v, new_a


# ----------------------------- Parameter init -----------------------------

def _xavier(key, fan_in, fan_out, shape):
    limit = math.sqrt(6.0 / (fan_in + fan_out))
    return jax.random.uniform(key, shape, jnp.float32, -limit, limit)


def init_params(key):
    ks = iter(jax.random.split(key, 16))
    p = {}
    p["fc_v_w"] = _xavier(next(ks), FEAT_V, HID, (FEAT_V, HID))
    p["fc_v_b"] = jnp.zeros((1, HID), jnp.float32)
    p["fc_a_w"] = _xavier(next(ks), FEAT_A, HID, (FEAT_A, HID))
    p["fc_a_b"] = jnp.zeros((1, HID), jnp.float32)
    # TemporalConsensus.fc_v / fc_v2 (len_feature = 256) fused along output axis
    w1 = _xavier(next(ks), 2 * HID, HID, (2 * HID, HID))
    w2 = _xavier(next(ks), 2 * HID, HID, (2 * HID, HID))
    p["tc_w12"] = jnp.concatenate([w1, w2], axis=1)            # [256, 256]
    p["tc_b12"] = jnp.zeros((1, 2 * HID), jnp.float32)
    # transformer layer weights; Wq|Wk|Wv fused
    wq = _xavier(next(ks), HID, HID, (HID, HID))
    wk = _xavier(next(ks), HID, HID, (HID, HID))
    wv = _xavier(next(ks), HID, HID, (HID, HID))
    p["wqkv"] = jnp.concatenate([wq, wk, wv], axis=1)          # [128, 384]
    p["bqkv"] = jnp.zeros((1, 3 * HID), jnp.float32)
    p["wo"] = _xavier(next(ks), HID, HID, (HID, HID))
    p["bo"] = jnp.zeros((1, HID), jnp.float32)
    p["ln1_g"] = jnp.ones((1, HID), jnp.float32); p["ln1_b"] = jnp.zeros((1, HID), jnp.float32)
    p["ln2_g"] = jnp.ones((1, HID), jnp.float32); p["ln2_b"] = jnp.zeros((1, HID), jnp.float32)
    p["ff_w1"] = _xavier(next(ks), HID, HID, (HID, HID)); p["ff_b1"] = jnp.zeros((1, HID), jnp.float32)
    p["ff_w2"] = _xavier(next(ks), HID, HID, (HID, HID)); p["ff_b2"] = jnp.zeros((1, HID), jnp.float32)
    # dilated conv branches: per-tap [3, C_in, C_out] -> im2col [3*C_in, C_out]
    cw = [_xavier(next(ks), 3 * HID, 3 * HID, (3, HID, HID)).reshape(3 * HID, HID)
          for _ in range(3)]
    p["conv_w"] = jnp.stack(cw, axis=0)                        # [3, 384, 128]
    # BatchNorm1d eval (mean=0, var=1, gamma=1, beta=0), conv bias = 0, folded to affine
    scale = jnp.full((HID,), 1.0 / math.sqrt(1.0 + BN_EPS), jnp.float32)
    shift = jnp.zeros((HID,), jnp.float32)
    p["bn_scale"] = jnp.tile(scale.reshape(1, 1, HID), (3, 1, 1))
    p["bn_shift"] = jnp.tile(shift.reshape(1, 1, HID), (3, 1, 1))
    # classifier Conv1d(512 -> 1, kernel 7): weight stored as [512, 7]
    p["cls_w"] = _xavier(next(ks), 4 * HID * 7, 7, (4 * HID, 7))
    p["cls_b"] = jnp.zeros((1, 1), jnp.float32)
    return p


# ----------------------------- Main -----------------------------

if __name__ == "__main__":
    B, T = 2, 16
    key = jax.random.PRNGKey(0)
    kx, kp = jax.random.split(key)
    x = jax.random.normal(kx, (B, T, FEAT_V + FEAT_A), jnp.float32)   # [B, T, 1152]
    params = init_params(kp)

    logits, new_v, new_a = jax.block_until_ready(forward(x, params))

    assert logits.shape == (B, T) and logits.dtype == jnp.float32
    assert new_v.shape == (B, T, HID) and new_a.shape == (B, T, HID)
    assert bool(jnp.all(jnp.isfinite(logits)))
    assert bool(jnp.all((logits >= 0.0) & (logits <= 1.0)))
    print("KERNEL_OK")
</pallas_src>

<mosaic_0001>
module attributes {stable_mosaic.version = 11 : i64} {
  func.func @_model_kernel(%arg0: i32, %arg1: memref<1x16x1152xf32, #tpu.memory_space<vmem>>, %arg2: memref<1024x128xf32, #tpu.memory_space<vmem>>, %arg3: memref<1x128xf32, #tpu.memory_space<vmem>>, %arg4: memref<128x128xf32, #tpu.memory_space<vmem>>, %arg5: memref<1x128xf32, #tpu.memory_space<vmem>>, %arg6: memref<256x256xf32, #tpu.memory_space<vmem>>, %arg7: memref<1x256xf32, #tpu.memory_space<vmem>>, %arg8: memref<1x128xf32, #tpu.memory_space<vmem>>, %arg9: memref<1x128xf32, #tpu.memory_space<vmem>>, %arg10: memref<128x384xf32, #tpu.memory_space<vmem>>, %arg11: memref<1x384xf32, #tpu.memory_space<vmem>>, %arg12: memref<128x128xf32, #tpu.memory_space<vmem>>, %arg13: memref<1x128xf32, #tpu.memory_space<vmem>>, %arg14: memref<1x128xf32, #tpu.memory_space<vmem>>, %arg15: memref<1x128xf32, #tpu.memory_space<vmem>>, %arg16: memref<128x128xf32, #tpu.memory_space<vmem>>, %arg17: memref<1x128xf32, #tpu.memory_space<vmem>>, %arg18: memref<128x128xf32, #tpu.memory_space<vmem>>, %arg19: memref<1x128xf32, #tpu.memory_space<vmem>>, %arg20: memref<3x384x128xf32, #tpu.memory_space<vmem>>, %arg21: memref<3x1x128xf32, #tpu.memory_space<vmem>>, %arg22: memref<3x1x128xf32, #tpu.memory_space<vmem>>, %arg23: memref<512x7xf32, #tpu.memory_space<vmem>>, %arg24: memref<1x1xf32, #tpu.memory_space<vmem>>, %arg25: memref<1x16x1xf32, #tpu.memory_space<vmem>>, %arg26: memref<1x16x128xf32, #tpu.memory_space<vmem>>, %arg27: memref<1x16x128xf32, #tpu.memory_space<vmem>>, %arg28: memref<32x128xf32, #tpu.memory_space<vmem>>, %arg29: memref<32x512xf32, #tpu.memory_space<vmem>>) attributes {dimension_semantics = [#tpu.dimension_semantics<parallel>], iteration_bounds = array<i64: 2>, scalar_prefetch = 0 : i64, scratch_operands = 2 : i64, tpu.core_type = #tpu.core_type<tc>, window_params = [{transform_indices = @transform_0, window_bounds = array<i64: 1, 16, 1152>}, {pipeline_mode = #tpu.pipeline_mode<synchronous>, transform_indices = @transform_1, window_bounds = array<i64: 1024, 128>}, {pipeline_mode = #tpu.pipeline_mode<synchronous>, transform_indices = @transform_2, window_bounds = array<i64: 1, 128>}, {pipeline_mode = #tpu.pipeline_mode<synchronous>, transform_indices = @transform_3, window_bounds = array<i64: 128, 128>}, {pipeline_mode = #tpu.pipeline_mode<synchronous>, transform_indices = @transform_4, window_bounds = array<i64: 1, 128>}, {pipeline_mode = #tpu.pipeline_mode<synchronous>, transform_indices = @transform_5, window_bounds = array<i64: 256, 256>}, {pipeline_mode = #tpu.pipeline_mode<synchronous>, transform_indices = @transform_6, window_bounds = array<i64: 1, 256>}, {pipeline_mode = #tpu.pipeline_mode<synchronous>, transform_indices = @transform_7, window_bounds = array<i64: 1, 128>}, {pipeline_mode = #tpu.pipeline_mode<synchronous>, transform_indices = @transform_8, window_bounds = array<i64: 1, 128>}, {pipeline_mode = #tpu.pipeline_mode<synchronous>, transform_indices = @transform_9, window_bounds = array<i64: 128, 384>}, {pipeline_mode = #tpu.pipeline_mode<synchronous>, transform_indices = @transform_10, window_bounds = array<i64: 1, 384>}, {pipeline_mode = #tpu.pipeline_mode<synchronous>, transform_indices = @transform_11, window_bounds = array<i64: 128, 128>}, {pipeline_mode = #tpu.pipeline_mode<synchronous>, transform_indices = @transform_12, window_bounds = array<i64: 1, 128>}, {pipeline_mode = #tpu.pipeline_mode<synchronous>, transform_indices = @transform_13, window_bounds = array<i64: 1, 128>}, {pipeline_mode = #tpu.pipeline_mode<synchronous>, transform_indices = @transform_14, window_bounds = array<i64: 1, 128>}, {pipeline_mode = #tpu.pipeline_mode<synchronous>, transform_indices = @transform_15, window_bounds = array<i64: 128, 128>}, {pipeline_mode = #tpu.pipeline_mode<synchronous>, transform_indices = @transform_16, window_bounds = array<i64: 1, 128>}, {pipeline_mode = #tpu.pipeline_mode<synchronous>, transform_indices = @transform_17, window_bounds = array<i64: 128, 128>}, {pipeline_mode = #tpu.pipeline_mode<synchronous>, transform_indices = @transform_18, window_bounds = array<i64: 1, 128>}, {pipeline_mode = #tpu.pipeline_mode<synchronous>, transform_indices = @transform_19, window_bounds = array<i64: 3, 384, 128>}, {pipeline_mode = #tpu.pipeline_mode<synchronous>, transform_indices = @transform_20, window_bounds = array<i64: 3, 1, 128>}, {pipeline_mode = #tpu.pipeline_mode<synchronous>, transform_indices = @transform_21, window_bounds = array<i64: 3, 1, 128>}, {pipeline_mode = #tpu.pipeline_mode<synchronous>, transform_indices = @transform_22, window_bounds = array<i64: 512, 7>}, {pipeline_mode = #tpu.pipeline_mode<synchronous>, transform_indices = @transform_23, window_bounds = array<i64: 1, 1>}, {transform_indices = @transform_24, window_bounds = array<i64: 1, 16, 1>}, {transform_indices = @transform_25, window_bounds = array<i64: 1, 16, 128>}, {transform_indices = @transform_26, window_bounds = array<i64: 1, 16, 128>}]} {
    %c0 = arith.constant 0 : index
    %c0_0 = arith.constant 0 : index
    %c0_1 = arith.constant 0 : index
    %0 = vector.load %arg1[%c0, %c0_0, %c0_1] : memref<1x16x1152xf32, #tpu.memory_space<vmem>>, vector<1x16x1152xf32>
    %1 = vector.shape_cast %0 : vector<1x16x1152xf32> to vector<16x1152xf32>
    %2 = vector.extract_strided_slice %1 {offsets = [0, 0], sizes = [16, 1024], strides = [1, 1]} : vector<16x1152xf32> to vector<16x1024xf32>
    %c0_2 = arith.constant 0 : index
    %c0_3 = arith.constant 0 : index
    %3 = vector.load %arg2[%c0_2, %c0_3] : memref<1024x128xf32, #tpu.memory_space<vmem>>, vector<1024x128xf32>
    %cst = arith.constant dense<0.000000e+00> : vector<16x128xf32>
    %4 = tpu.matmul %2, %3, %cst {dimension_numbers = #tpu.dot_dimension_numbers<[1], [0], [0], [1], [0, 0, 1, 1], [], []>} : vector<16x1024xf32>, vector<1024x128xf32>, vector<16x128xf32> -> vector<16x128xf32>
    %c0_4 = arith.constant 0 : index
    %c0_5 = arith.constant 0 : index
    %5 = vector.load %arg3[%c0_4, %c0_5] : memref<1x128xf32, #tpu.memory_space<vmem>>, vector<1x128xf32>
    %6 = vector.broadcast %5 : vector<1x128xf32> to vector<16x128xf32>
    %7 = arith.addf %4, %6 : vector<16x128xf32>
    %8 = vector.extract_strided_slice %1 {offsets = [0, 1024], sizes = [16, 128], strides = [1, 1]} : vector<16x1152xf32> to vector<16x128xf32>
    %c0_6 = arith.constant 0 : index
    %c0_7 = arith.constant 0 : index
    %9 = vector.load %arg4[%c0_6, %c0_7] : memref<128x128xf32, #tpu.memory_space<vmem>>, vector<128x128xf32>
    %cst_8 = arith.constant dense<0.000000e+00> : vector<16x128xf32>
    %10 = tpu.matmul %8, %9, %cst_8 {dimension_numbers = #tpu.dot_dimension_numbers<[1], [0], [0], [1], [0, 0, 1, 1], [], []>} : vector<16x128xf32>, vector<128x128xf32>, vector<16x128xf32> -> vector<16x128xf32>
    %c0_9 = arith.constant 0 : index
    %c0_10 = arith.constant 0 : index
    %11 = vector.load %arg5[%c0_9, %c0_10] : memref<1x128xf32, #tpu.memory_space<vmem>>, vector<1x128xf32>
    %12 = vector.broadcast %11 : vector<1x128xf32> to vector<16x128xf32>
    %13 = arith.addf %10, %12 : vector<16x128xf32>
    %c0_11 = arith.constant 0 : index
    %c0_12 = arith.constant 0 : index
    %c0_13 = arith.constant 0 : index
    %14 = vector.load %arg26[%c0_11, %c0_12, %c0_13] : memref<1x16x128xf32, #tpu.memory_space<vmem>>, vector<1x16x128xf32>
    %15 = vector.shape_cast %14 : vector<1x16x128xf32> to vector<16x128xf32>
    %16 = vector.shape_cast %7 : vector<16x128xf32> to vector<1x16x128xf32>
    tpu.vector_store %arg26[%c0_11, %c0_12, %c0_13], %16 {strides = array<i32>} : memref<1x16x128xf32, #tpu.memory_space<vmem>>, vector<1x16x128xf32>,
    %c0_14 = arith.constant 0 : index
    %c0_15 = arith.constant 0 : index
    %c0_16 = arith.constant 0 : index
    %17 = vector.load %arg27[%c0_14, %c0_15, %c0_16] : memref<1x16x128xf32, #tpu.memory_space<vmem>>, vector<1x16x128xf32>
    %18 = vector.shape_cast %17 : vector<1x16x128xf32> to vector<16x128xf32>
    %19 = vector.shape_cast %13 : vector<16x128xf32> to vector<1x16x128xf32>
    tpu.vector_store %arg27[%c0_14, %c0_15, %c0_16], %19 {strides = array<i32>} : memref<1x16x128xf32, #tpu.memory_space<vmem>>, vector<1x16x128xf32>,
    %20 = tpu.concatenate %7, %13 in 1 : vector<16x128xf32>, vector<16x128xf32> -> vector<16x256xf32>
    %c0_17 = arith.constant 0 : index
    %c0_18 = arith.constant 0 : index
    %21 = vector.load %arg6[%c0_17, %c0_18] : memref<256x256xf32, #tpu.memory_space<vmem>>, vector<256x256xf32>
    %cst_19 = arith.constant dense<0.000000e+00> : vector<16x256xf32>
    %22 = tpu.matmul %20, %21, %cst_19 {dimension_numbers = #tpu.dot_dimension_numbers<[1], [0], [0], [1], [0, 0, 1, 1], [], []>} : vector<16x256xf32>, vector<256x256xf32>, vector<16x256xf32> -> vector<16x256xf32>
    %c0_20 = arith.constant 0 : index
    %c0_21 = arith.constant 0 : index
    %23 = vector.load %arg7[%c0_20, %c0_21] : memref<1x256xf32, #tpu.memory_space<vmem>>, vector<1x256xf32>
    %24 = vector.broadcast %23 : vector<1x256xf32> to vector<16x256xf32>
    %25 = arith.addf %22, %24 : vector<16x256xf32>
    %26 = vector.extract_strided_slice %25 {offsets = [0, 0], sizes = [16, 128], strides = [1, 1]} : vector<16x256xf32> to vector<16x128xf32>
    %27 = vector.extract_strided_slice %25 {offsets = [0, 128], sizes = [16, 128], strides = [1, 1]} : vector<16x256xf32> to vector<16x128xf32>
    %c0_22 = arith.constant 0 : index
    %c0_23 = arith.constant 0 : index
    %28 = vector.load %arg8[%c0_22, %c0_23] : memref<1x128xf32, #tpu.memory_space<vmem>>, vector<1x128xf32>
    %c0_24 = arith.constant 0 : index
    %c0_25 = arith.constant 0 : index
    %29 = vector.load %arg9[%c0_24, %c0_25] : memref<1x128xf32, #tpu.memory_space<vmem>>, vector<1x128xf32>
    %cst_26 = arith.constant dense<0.000000e+00> : vector<16xf32>
    %30 = vector.multi_reduction <add>, %26, %cst_26 [1] : vector<16x128xf32> to vector<16xf32>
    %31 = vector.shape_cast %30 : vector<16xf32> to vector<16x1xf32>
    %cst_27 = arith.constant 1.280000e+02 : f32
    %32 = vector.broadcast %cst_27 : f32 to vector<16x1xf32>
    %33 = arith.divf %31, %32 : vector<16x1xf32>
    %34 = vector.broadcast %33 : vector<16x1xf32> to vector<16x128xf32>
    %35 = arith.subf %26, %34 : vector<16x128xf32>
    %36 = arith.mulf %35, %35 : vector<16x128xf32>
    %cst_28 = arith.constant dense<0.000000e+00> : vector<16xf32>
    %37 = vector.multi_reduction <add>, %36, %cst_28 [1] : vector<16x128xf32> to vector<16xf32>
    %38 = vector.shape_cast %37 : vector<16xf32> to vector<16x1xf32>
    %cst_29 = arith.constant 1.280000e+02 : f32
    %39 = vector.broadcast %cst_29 : f32 to vector<16x1xf32>
    %40 = arith.divf %38, %39 : vector<16x1xf32>
    %41 = vector.broadcast %33 : vector<16x1xf32> to vector<16x128xf32>
    %42 = arith.subf %26, %41 : vector<16x128xf32>
    %cst_30 = arith.constant 9.99999997E-7 : f32
    %43 = vector.broadcast %cst_30 : f32 to vector<16x1xf32>
    %44 = arith.addf %40, %43 : vector<16x1xf32>
    %45 = math.rsqrt %44 : vector<16x1xf32>
    %46 = vector.broadcast %45 : vector<16x1xf32> to vector<16x128xf32>
    %47 = arith.mulf %42, %46 : vector<16x128xf32>
    %48 = vector.broadcast %28 : vector<1x128xf32> to vector<16x128xf32>
    %49 = arith.mulf %47, %48 : vector<16x128xf32>
    %50 = vector.broadcast %29 : vector<1x128xf32> to vector<16x128xf32>
    %51 = arith.addf %49, %50 : vector<16x128xf32>
    %c0_31 = arith.constant 0 : index
    %c0_32 = arith.constant 0 : index
    %52 = vector.load %arg10[%c0_31, %c0_32] : memref<128x384xf32, #tpu.memory_space<vmem>>, vector<128x384xf32>
    %cst_33 = arith.constant dense<0.000000e+00> : vector<16x384xf32>
    %53 = tpu.matmul %51, %52, %cst_33 {dimension_numbers = #tpu.dot_dimension_numbers<[1], [0], [0], [1], [0, 0, 1, 1], [], []>} : vector<16x128xf32>, vector<128x384xf32>, vector<16x384xf32> -> vector<16x384xf32>
    %c0_34 = arith.constant 0 : index
    %c0_35 = arith.constant 0 : index
    %54 = vector.load %arg11[%c0_34, %c0_35] : memref<1x384xf32, #tpu.memory_space<vmem>>, vector<1x384xf32>
    %55 = vector.broadcast %54 : vector<1x384xf32> to vector<16x384xf32>
    %56 = arith.addf %53, %55 : vector<16x384xf32>
    %cst_36 = arith.constant 0.000000e+00 : f32
    %57 = vector.broadcast %cst_36 : f32 to vector<16x128xf32>
    %58 = vector.extract_strided_slice %56 {offsets = [0, 0], sizes = [16, 32], strides = [1, 1]} : vector<16x384xf32> to vector<16x32xf32>
    %59 = vector.extract_strided_slice %56 {offsets = [0, 128], sizes = [16, 32], strides = [1, 1]} : vector<16x384xf32> to vector<16x32xf32>
    %60 = vector.extract_strided_slice %56 {offsets = [0, 256], sizes = [16, 32], strides = [1, 1]} : vector<16x384xf32> to vector<16x32xf32>
    %cst_37 = arith.constant dense<0.000000e+00> : vector<16x16xf32>
    %61 = tpu.matmul %58, %59, %cst_37 {dimension_numbers = #tpu.dot_dimension_numbers<[1], [1], [0], [0], [0, 0, 1, 0], [], []>} : vector<16x32xf32>, vector<16x32xf32>, vector<16x16xf32> -> vector<16x16xf32>
    %cst_38 = arith.constant 0.176776692 : f32
    %62 = vector.broadcast %cst_38 : f32 to vector<16x16xf32>
    %63 = arith.mulf %61, %62 : vector<16x16xf32>
    %cst_39 = arith.constant dense<0xFF800000> : vector<16xf32>
    %64 = vector.multi_reduction <maximumf>, %63, %cst_39 [1] : vector<16x16xf32> to vector<16xf32>
    %65 = vector.shape_cast %64 : vector<16xf32> to vector<16x1xf32>
    %66 = vector.broadcast %65 : vector<16x1xf32> to vector<16x16xf32>
    %67 = arith.subf %63, %66 : vector<16x16xf32>
    %68 = math.exp %67 : vector<16x16xf32>
    %cst_40 = arith.constant dense<0.000000e+00> : vector<16xf32>
    %69 = vector.multi_reduction <add>, %68, %cst_40 [1] : vector<16x16xf32> to vector<16xf32>
    %70 = vector.shape_cast %69 : vector<16xf32> to vector<16x1xf32>
    %71 = tpu.reciprocal %70 {approx = true} : vector<16x1xf32> -> vector<16x1xf32>
    %72 = vector.broadcast %71 : vector<16x1xf32> to vector<16x16xf32>
    %73 = arith.mulf %68, %72 : vector<16x16xf32>
    %cst_41 = arith.constant dense<0.000000e+00> : vector<16x32xf32>
    %74 = tpu.matmul %73, %60, %cst_41 {dimension_numbers = #tpu.dot_dimension_numbers<[1], [0], [0], [1], [0, 0, 1, 1], [], []>} : vector<16x16xf32>, vector<16x32xf32>, vector<16x32xf32> -> vector<16x32xf32>
    %c0_42 = arith.constant 0 : index
    %c0_43 = arith.constant 0 : index
    %75 = vector.load %arg12[%c0_42, %c0_43] : memref<128x128xf32, #tpu.memory_space<vmem>>, vector<32x128xf32>
    %cst_44 = arith.constant dense<0.000000e+00> : vector<16x128xf32>
    %76 = tpu.matmul %74, %75, %cst_44 {dimension_numbers = #tpu.dot_dimension_numbers<[1], [0], [0], [1], [0, 0, 1, 1], [], []>} : vector<16x32xf32>, vector<32x128xf32>, vector<16x128xf32> -> vector<16x128xf32>
    %77 = arith.addf %57, %76 : vector<16x128xf32>
    %78 = vector.extract_strided_slice %56 {offsets = [0, 32], sizes = [16, 32], strides = [1, 1]} : vector<16x384xf32> to vector<16x32xf32>
    %79 = vector.extract_strided_slice %56 {offsets = [0, 160], sizes = [16, 32], strides = [1, 1]} : vector<16x384xf32> to vector<16x32xf32>
    %80 = vector.extract_strided_slice %56 {offsets = [0, 288], sizes = [16, 32], strides = [1, 1]} : vector<16x384xf32> to vector<16x32xf32>
    %cst_45 = arith.constant dense<0.000000e+00> : vector<16x16xf32>
    %81 = tpu.matmul %78, %79, %cst_45 {dimension_numbers = #tpu.dot_dimension_numbers<[1], [1], [0], [0], [0, 0, 1, 0], [], []>} : vector<16x32xf32>, vector<16x32xf32>, vector<16x16xf32> -> vector<16x16xf32>
    %cst_46 = arith.constant 0.176776692 : f32
    %82 = vector.broadcast %cst_46 : f32 to vector<16x16xf32>
    %83 = arith.mulf %81, %82 : vector<16x16xf32>
    %cst_47 = arith.constant dense<0xFF800000> : vector<16xf32>
    %84 = vector.multi_reduction <maximumf>, %83, %cst_47 [1] : vector<16x16xf32> to vector<16xf32>
    %85 = vector.shape_cast %84 : vector<16xf32> to vector<16x1xf32>
    %86 = vector.broadcast %85 : vector<16x1xf32> to vector<16x16xf32>
    %87 = arith.subf %83, %86 : vector<16x16xf32>
    %88 = math.exp %87 : vector<16x16xf32>
    %cst_48 = arith.constant dense<0.000000e+00> : vector<16xf32>
    %89 = vector.multi_reduction <add>, %88, %cst_48 [1] : vector<16x16xf32> to vector<16xf32>
    %90 = vector.shape_cast %89 : vector<16xf32> to vector<16x1xf32>
    %91 = tpu.reciprocal %90 {approx = true} : vector<16x1xf32> -> vector<16x1xf32>
    %92 = vector.broadcast %91 : vector<16x1xf32> to vector<16x16xf32>
    %93 = arith.mulf %88, %92 : vector<16x16xf32>
    %cst_49 = arith.constant dense<0.000000e+00> : vector<16x32xf32>
    %94 = tpu.matmul %93, %80, %cst_49 {dimension_numbers = #tpu.dot_dimension_numbers<[1], [0], [0], [1], [0, 0, 1, 1], [], []>} : vector<16x16xf32>, vector<16x32xf32>, vector<16x32xf32> -> vector<16x32xf32>
    %c32 = arith.constant 32 : index
    %c0_50 = arith.constant 0 : index
    %95 = vector.load %arg12[%c32, %c0_50] : memref<128x128xf32, #tpu.memory_space<vmem>>, vector<32x128xf32>
    %cst_51 = arith.constant dense<0.000000e+00> : vector<16x128xf32>
    %96 = tpu.matmul %94, %95, %cst_51 {dimension_numbers = #tpu.dot_dimension_numbers<[1], [0], [0], [1], [0, 0, 1, 1], [], []>} : vector<16x32xf32>, vector<32x128xf32>, vector<16x128xf32> -> vector<16x128xf32>
    %97 = arith.addf %77, %96 : vector<16x128xf32>
    %98 = vector.extract_strided_slice %56 {offsets = [0, 64], sizes = [16, 32], strides = [1, 1]} : vector<16x384xf32> to vector<16x32xf32>
    %99 = vector.extract_strided_slice %56 {offsets = [0, 192], sizes = [16, 32], strides = [1, 1]} : vector<16x384xf32> to vector<16x32xf32>
    %100 = vector.extract_strided_slice %56 {offsets = [0, 320], sizes = [16, 32], strides = [1, 1]} : vector<16x384xf32> to vector<16x32xf32>
    %cst_52 = arith.constant dense<0.000000e+00> : vector<16x16xf32>
    %101 = tpu.matmul %98, %99, %cst_52 {dimension_numbers = #tpu.dot_dimension_numbers<[1], [1], [0], [0], [0, 0, 1, 0], [], []>} : vector<16x32xf32>, vector<16x32xf32>, vector<16x16xf32> -> vector<16x16xf32>
    %cst_53 = arith.constant 0.176776692 : f32
    %102 = vector.broadcast %cst_53 : f32 to vector<16x16xf32>
    %103 = arith.mulf %101, %102 : vector<16x16xf32>
    %cst_54 = arith.constant dense<0xFF800000> : vector<16xf32>
    %104 = vector.multi_reduction <maximumf>, %103, %cst_54 [1] : vector<16x16xf32> to vector<16xf32>
    %105 = vector.shape_cast %104 : vector<16xf32> to vector<16x1xf32>
    %106 = vector.broadcast %105 : vector<16x1xf32> to vector<16x16xf32>
    %107 = arith.subf %103, %106 : vector<16x16xf32>
    %108 = math.exp %107 : vector<16x16xf32>
    %cst_55 = arith.constant dense<0.000000e+00> : vector<16xf32>
    %109 = vector.multi_reduction <add>, %108, %cst_55 [1] : vector<16x16xf32> to vector<16xf32>
    %110 = vector.shape_cast %109 : vector<16xf32> to vector<16x1xf32>
    %111 = tpu.reciprocal %110 {approx = true} : vector<16x1xf32> -> vector<16x1xf32>
    %112 = vector.broadcast %111 : vector<16x1xf32> to vector<16x16xf32>
    %113 = arith.mulf %108, %112 : vector<16x16xf32>
    %cst_56 = arith.constant dense<0.000000e+00> : vector<16x32xf32>
    %114 = tpu.matmul %113, %100, %cst_56 {dimension_numbers = #tpu.dot_dimension_numbers<[1], [0], [0], [1], [0, 0, 1, 1], [], []>} : vector<16x16xf32>, vector<16x32xf32>, vector<16x32xf32> -> vector<16x32xf32>
    %c64 = arith.constant 64 : index
    %c0_57 = arith.constant 0 : index
    %115 = vector.load %arg12[%c64, %c0_57] : memref<128x128xf32, #tpu.memory_space<vmem>>, vector<32x128xf32>
    %cst_58 = arith.constant dense<0.000000e+00> : vector<16x128xf32>
    %116 = tpu.matmul %114, %115, %cst_58 {dimension_numbers = #tpu.dot_dimension_numbers<[1], [0], [0], [1], [0, 0, 1, 1], [], []>} : vector<16x32xf32>, vector<32x128xf32>, vector<16x128xf32> -> vector<16x128xf32>
    %117 = arith.addf %97, %116 : vector<16x128xf32>
    %118 = vector.extract_strided_slice %56 {offsets = [0, 96], sizes = [16, 32], strides = [1, 1]} : vector<16x384xf32> to vector<16x32xf32>
    %119 = vector.extract_strided_slice %56 {offsets = [0, 224], sizes = [16, 32], strides = [1, 1]} : vector<16x384xf32> to vector<16x32xf32>
    %120 = vector.extract_strided_slice %56 {offsets = [0, 352], sizes = [16, 32], strides = [1, 1]} : vector<16x384xf32> to vector<16x32xf32>
    %cst_59 = arith.constant dense<0.000000e+00> : vector<16x16xf32>
    %121 = tpu.matmul %118, %119, %cst_59 {dimension_numbers = #tpu.dot_dimension_numbers<[1], [1], [0], [0], [0, 0, 1, 0], [], []>} : vector<16x32xf32>, vector<16x32xf32>, vector<16x16xf32> -> vector<16x16xf32>
    %cst_60 = arith.constant 0.176776692 : f32
    %122 = vector.broadcast %cst_60 : f32 to vector<16x16xf32>
    %123 = arith.mulf %121, %122 : vector<16x16xf32>
    %cst_61 = arith.constant dense<0xFF800000> : vector<16xf32>
    %124 = vector.multi_reduction <maximumf>, %123, %cst_61 [1] : vector<16x16xf32> to vector<16xf32>
    %125 = vector.shape_cast %124 : vector<16xf32> to vector<16x1xf32>
    %126 = vector.broadcast %125 : vector<16x1xf32> to vector<16x16xf32>
    %127 = arith.subf %123, %126 : vector<16x16xf32>
    %128 = math.exp %127 : vector<16x16xf32>
    %cst_62 = arith.constant dense<0.000000e+00> : vector<16xf32>
    %129 = vector.multi_reduction <add>, %128, %cst_62 [1] : vector<16x16xf32> to vector<16xf32>
    %130 = vector.shape_cast %129 : vector<16xf32> to vector<16x1xf32>
    %131 = tpu.reciprocal %130 {approx = true} : vector<16x1xf32> -> vector<16x1xf32>
    %132 = vector.broadcast %131 : vector<16x1xf32> to vector<16x16xf32>
    %133 = arith.mulf %128, %132 : vector<16x16xf32>
    %cst_63 = arith.constant dense<0.000000e+00> : vector<16x32xf32>
    %134 = tpu.matmul %133, %120, %cst_63 {dimension_numbers = #tpu.dot_dimension_numbers<[1], [0], [0], [1], [0, 0, 1, 1], [], []>} : vector<16x16xf32>, vector<16x32xf32>, vector<16x32xf32> -> vector<16x32xf32>
    %c96 = arith.constant 96 : index
    %c0_64 = arith.constant 0 : index
    %135 = vector.load %arg12[%c96, %c0_64] : memref<128x128xf32, #tpu.memory_space<vmem>>, vector<32x128xf32>
    %cst_65 = arith.constant dense<0.000000e+00> : vector<16x128xf32>
    %136 = tpu.matmul %134, %135, %cst_65 {dimension_numbers = #tpu.dot_dimension_numbers<[1], [0], [0], [1], [0, 0, 1, 1], [], []>} : vector<16x32xf32>, vector<32x128xf32>, vector<16x128xf32> -> vector<16x128xf32>
    %137 = arith.addf %117, %136 : vector<16x128xf32>
    %138 = arith.addf %26, %137 : vector<16x128xf32>
    %c0_66 = arith.constant 0 : index
    %c0_67 = arith.constant 0 : index
    %139 = vector.load %arg13[%c0_66, %c0_67] : memref<1x128xf32, #tpu.memory_space<vmem>>, vector<1x128xf32>
    %140 = vector.broadcast %139 : vector<1x128xf32> to vector<16x128xf32>
    %141 = arith.addf %138, %140 : vector<16x128xf32>
    %c0_68 = arith.constant 0 : index
    %c0_69 = arith.constant 0 : index
    %142 = vector.load %arg14[%c0_68, %c0_69] : memref<1x128xf32, #tpu.memory_space<vmem>>, vector<1x128xf32>
    %c0_70 = arith.constant 0 : index
    %c0_71 = arith.constant 0 : index
    %143 = vector.load %arg15[%c0_70, %c0_71] : memref<1x128xf32, #tpu.memory_space<vmem>>, vector<1x128xf32>
    %cst_72 = arith.constant dense<0.000000e+00> : vector<16xf32>
    %144 = vector.multi_reduction <add>, %141, %cst_72 [1] : vector<16x128xf32> to vector<16xf32>
    %145 = vector.shape_cast %144 : vector<16xf32> to vector<16x1xf32>
    %cst_73 = arith.constant 1.280000e+02 : f32
    %146 = vector.broadcast %cst_73 : f32 to vector<16x1xf32>
    %147 = arith.divf %145, %146 : vector<16x1xf32>
    %148 = vector.broadcast %147 : vector<16x1xf32> to vector<16x128xf32>
    %149 = arith.subf %141, %148 : vector<16x128xf32>
    %150 = arith.mulf %149, %149 : vector<16x128xf32>
    %cst_74 = arith.constant dense<0.000000e+00> : vector<16xf32>
    %151 = vector.multi_reduction <add>, %150, %cst_74 [1] : vector<16x128xf32> to vector<16xf32>
    %152 = vector.shape_cast %151 : vector<16xf32> to vector<16x1xf32>
    %cst_75 = arith.constant 1.280000e+02 : f32
    %153 = vector.broadcast %cst_75 : f32 to vector<16x1xf32>
    %154 = arith.divf %152, %153 : vector<16x1xf32>
    %155 = vector.broadcast %147 : vector<16x1xf32> to vector<16x128xf32>
    %156 = arith.subf %141, %155 : vector<16x128xf32>
    %cst_76 = arith.constant 9.99999997E-7 : f32
    %157 = vector.broadcast %cst_76 : f32 to vector<16x1xf32>
    %158 = arith.addf %154, %157 : vector<16x1xf32>
    %159 = math.rsqrt %158 : vector<16x1xf32>
    %160 = vector.broadcast %159 : vector<16x1xf32> to vector<16x128xf32>
    %161 = arith.mulf %156, %160 : vector<16x128xf32>
    %162 = vector.broadcast %142 : vector<1x128xf32> to vector<16x128xf32>
    %163 = arith.mulf %161, %162 : vector<16x128xf32>
    %164 = vector.broadcast %143 : vector<1x128xf32> to vector<16x128xf32>
    %165 = arith.addf %163, %164 : vector<16x128xf32>
    %c0_77 = arith.constant 0 : index
    %c0_78 = arith.constant 0 : index
    %166 = vector.load %arg16[%c0_77, %c0_78] : memref<128x128xf32, #tpu.memory_space<vmem>>, vector<128x128xf32>
    %cst_79 = arith.constant dense<0.000000e+00> : vector<16x128xf32>
    %167 = tpu.matmul %165, %166, %cst_79 {dimension_numbers = #tpu.dot_dimension_numbers<[1], [0], [0], [1], [0, 0, 1, 1], [], []>} : vector<16x128xf32>, vector<128x128xf32>, vector<16x128xf32> -> vector<16x128xf32>
    %c0_80 = arith.constant 0 : index
    %c0_81 = arith.constant 0 : index
    %168 = vector.load %arg17[%c0_80, %c0_81] : memref<1x128xf32, #tpu.memory_space<vmem>>, vector<1x128xf32>
    %169 = vector.broadcast %168 : vector<1x128xf32> to vector<16x128xf32>
    %170 = arith.addf %167, %169 : vector<16x128xf32>
    %cst_82 = arith.constant 0.000000e+00 : f32
    %171 = vector.broadcast %cst_82 : f32 to vector<16x128xf32>
    %172 = arith.maximumf %170, %171 : vector<16x128xf32>
    %c0_83 = arith.constant 0 : index
    %c0_84 = arith.constant 0 : index
    %173 = vector.load %arg18[%c0_83, %c0_84] : memref<128x128xf32, #tpu.memory_space<vmem>>, vector<128x128xf32>
    %cst_85 = arith.constant dense<0.000000e+00> : vector<16x128xf32>
    %174 = tpu.matmul %172, %173, %cst_85 {dimension_numbers = #tpu.dot_dimension_numbers<[1], [0], [0], [1], [0, 0, 1, 1], [], []>} : vector<16x128xf32>, vector<128x128xf32>, vector<16x128xf32> -> vector<16x128xf32>
    %175 = arith.addf %141, %174 : vector<16x128xf32>
    %c0_86 = arith.constant 0 : index
    %c0_87 = arith.constant 0 : index
    %176 = vector.load %arg19[%c0_86, %c0_87] : memref<1x128xf32, #tpu.memory_space<vmem>>, vector<1x128xf32>
    %177 = vector.broadcast %176 : vector<1x128xf32> to vector<16x128xf32>
    %178 = arith.addf %175, %177 : vector<16x128xf32>
    %cst_88 = arith.constant 0.000000e+00 : f32
    %179 = vector.broadcast %cst_88 : f32 to vector<32x128xf32>
    %c0_89 = arith.constant 0 : index
    %c0_90 = arith.constant 0 : index
    %180 = vector.load %arg28[%c0_89, %c0_90] : memref<32x128xf32, #tpu.memory_space<vmem>>, vector<32x128xf32>
    tpu.vector_store %arg28[%c0_89, %c0_90], %179 {strides = array<i32>} : memref<32x128xf32, #tpu.memory_space<vmem>>, vector<32x128xf32>,
    %c8 = arith.constant 8 : index
    %c0_91 = arith.constant 0 : index
    %181 = vector.load %arg28[%c8, %c0_91] : memref<32x128xf32, #tpu.memory_space<vmem>>, vector<16x128xf32>
    tpu.vector_store %arg28[%c8, %c0_91], %27 {strides = array<i32>} : memref<32x128xf32, #tpu.memory_space<vmem>>, vector<16x128xf32>,
    %cst_92 = arith.constant 0.000000e+00 : f32
    %182 = vector.broadcast %cst_92 : f32 to vector<32x512xf32>
    %c0_93 = arith.constant 0 : index
    %c0_94 = arith.constant 0 : index
    %183 = vector.load %arg29[%c0_93, %c0_94] : memref<32x512xf32, #tpu.memory_space<vmem>>, vector<32x512xf32>
    tpu.vector_store %arg29[%c0_93, %c0_94], %182 {strides = array<i32>} : memref<32x512xf32, #tpu.memory_space<vmem>>, vector<32x512xf32>,
    %c8_95 = arith.constant 8 : index
    %c0_96 = arith.constant 0 : index
    %184 = vector.load %arg29[%c8_95, %c0_96] : memref<32x512xf32, #tpu.memory_space<vmem>>, vector<16x128xf32>
    tpu.vector_store %arg29[%c8_95, %c0_96], %178 {strides = array<i32>} : memref<32x512xf32, #tpu.memory_space<vmem>>, vector<16x128xf32>,
    %c7 = arith.constant 7 : index
    %c0_97 = arith.constant 0 : index
    %185 = vector.load %arg28[%c7, %c0_97] : memref<32x128xf32, #tpu.memory_space<vmem>>, vector<16x128xf32>
    %c8_98 = arith.constant 8 : index
    %c0_99 = arith.constant 0 : index
    %186 = vector.load %arg28[%c8_98, %c0_99] : memref<32x128xf32, #tpu.memory_space<vmem>>, vector<16x128xf32>
    %c9 = arith.constant 9 : index
    %c0_100 = arith.constant 0 : index
    %187 = vector.load %arg28[%c9, %c0_100] : memref<32x128xf32, #tpu.memory_space<vmem>>, vector<16x128xf32>
    %188 = tpu.concatenate %185, %186, %187 in 1 : vector<16x128xf32>, vector<16x128xf32>, vector<16x128xf32> -> vector<16x384xf32>
    %c0_101 = arith.constant 0 : index
    %c0_102 = arith.constant 0 : index
    %c0_103 = arith.constant 0 : index
    %189 = vector.load %arg20[%c0_101, %c0_102, %c0_103] : memref<3x384x128xf32, #tpu.memory_space<vmem>>, vector<1x384x128xf32>
    %190 = vector.shape_cast %189 : vector<1x384x128xf32> to vector<384x128xf32>
    %cst_104 = arith.constant dense<0.000000e+00> : vector<16x128xf32>
    %191 = tpu.matmul %188, %190, %cst_104 {dimension_numbers = #tpu.dot_dimension_numbers<[1], [0], [0], [1], [0, 0, 1, 1], [], []>} : vector<16x384xf32>, vector<384x128xf32>, vector<16x128xf32> -> vector<16x128xf32>
    %c0_105 = arith.constant 0 : index
    %c0_106 = arith.constant 0 : index
    %c0_107 = arith.constant 0 : index
    %192 = vector.load %arg21[%c0_105, %c0_106, %c0_107] : memref<3x1x128xf32, #tpu.memory_space<vmem>>, vector<1x1x128xf32>
    %193 = vector.shape_cast %192 : vector<1x1x128xf32> to vector<1x128xf32>
    %194 = vector.broadcast %193 : vector<1x128xf32> to vector<16x128xf32>
    %195 = arith.mulf %191, %194 : vector<16x128xf32>
    %c0_108 = arith.constant 0 : index
    %c0_109 = arith.constant 0 : index
    %c0_110 = arith.constant 0 : index
    %196 = vector.load %arg22[%c0_108, %c0_109, %c0_110] : memref<3x1x128xf32, #tpu.memory_space<vmem>>, vector<1x1x128xf32>
    %197 = vector.shape_cast %196 : vector<1x1x128xf32> to vector<1x128xf32>
    %198 = vector.broadcast %197 : vector<1x128xf32> to vector<16x128xf32>
    %199 = arith.addf %195, %198 : vector<16x128xf32>
    %cst_111 = arith.constant 0.000000e+00 : f32
    %200 = vector.broadcast %cst_111 : f32 to vector<16x128xf32>
    %201 = arith.maximumf %199, %200 : vector<16x128xf32>
    %202 = arith.addf %201, %27 : vector<16x128xf32>
    %c8_112 = arith.constant 8 : index
    %c128 = arith.constant 128 : index
    %203 = vector.load %arg29[%c8_112, %c128] : memref<32x512xf32, #tpu.memory_space<vmem>>, vector<16x128xf32>
    tpu.vector_store %arg29[%c8_112, %c128], %202 {strides = array<i32>} : memref<32x512xf32, #tpu.memory_space<vmem>>, vector<16x128xf32>,
    %c6 = arith.constant 6 : index
    %c0_113 = arith.constant 0 : index
    %204 = vector.load %arg28[%c6, %c0_113] : memref<32x128xf32, #tpu.memory_space<vmem>>, vector<16x128xf32>
    %c8_114 = arith.constant 8 : index
    %c0_115 = arith.constant 0 : index
    %205 = vector.load %arg28[%c8_114, %c0_115] : memref<32x128xf32, #tpu.memory_space<vmem>>, vector<16x128xf32>
    %c10 = arith.constant 10 : index
    %c0_116 = arith.constant 0 : index
    %206 = vector.load %arg28[%c10, %c0_116] : memref<32x128xf32, #tpu.memory_space<vmem>>, vector<16x128xf32>
    %207 = tpu.concatenate %204, %205, %206 in 1 : vector<16x128xf32>, vector<16x128xf32>, vector<16x128xf32> -> vector<16x384xf32>
    %c1 = arith.constant 1 : index
    %c0_117 = arith.constant 0 : index
    %c0_118 = arith.constant 0 : index
    %208 = vector.load %arg20[%c1, %c0_117, %c0_118] : memref<3x384x128xf32, #tpu.memory_space<vmem>>, vector<1x384x128xf32>
    %209 = vector.shape_cast %208 : vector<1x384x128xf32> to vector<384x128xf32>
    %cst_119 = arith.constant dense<0.000000e+00> : vector<16x128xf32>
    %210 = tpu.matmul %207, %209, %cst_119 {dimension_numbers = #tpu.dot_dimension_numbers<[1], [0], [0], [1], [0, 0, 1, 1], [], []>} : vector<16x384xf32>, vector<384x128xf32>, vector<16x128xf32> -> vector<16x128xf32>
    %c1_120 = arith.constant 1 : index
    %c0_121 = arith.constant 0 : index
    %c0_122 = arith.constant 0 : index
    %211 = vector.load %arg21[%c1_120, %c0_121, %c0_122] : memref<3x1x128xf32, #tpu.memory_space<vmem>>, vector<1x1x128xf32>
    %212 = vector.shape_cast %211 : vector<1x1x128xf32> to vector<1x128xf32>
    %213 = vector.broadcast %212 : vector<1x128xf32> to vector<16x128xf32>
    %214 = arith.mulf %210, %213 : vector<16x128xf32>
    %c1_123 = arith.constant 1 : index
    %c0_124 = arith.constant 0 : index
    %c0_125 = arith.constant 0 : index
    %215 = vector.load %arg22[%c1_123, %c0_124, %c0_125] : memref<3x1x128xf32, #tpu.memory_space<vmem>>, vector<1x1x128xf32>
    %216 = vector.shape_cast %215 : vector<1x1x128xf32> to vector<1x128xf32>
    %217 = vector.broadcast %216 : vector<1x128xf32> to vector<16x128xf32>
    %218 = arith.addf %214, %217 : vector<16x128xf32>
    %cst_126 = arith.constant 0.000000e+00 : f32
    %219 = vector.broadcast %cst_126 : f32 to vector<16x128xf32>
    %220 = arith.maximumf %218, %219 : vector<16x128xf32>
    %221 = arith.addf %220, %27 : vector<16x128xf32>
    %c8_127 = arith.constant 8 : index
    %c256 = arith.constant 256 : index
    %222 = vector.load %arg29[%c8_127, %c256] : memref<32x512xf32, #tpu.memory_space<vmem>>, vector<16x128xf32>
    tpu.vector_store %arg29[%c8_127, %c256], %221 {strides = array<i32>} : memref<32x512xf32, #tpu.memory_space<vmem>>, vector<16x128xf32>,
    %c5 = arith.constant 5 : index
    %c0_128 = arith.constant 0 : index
    %223 = vector.load %arg28[%c5, %c0_128] : memref<32x128xf32, #tpu.memory_space<vmem>>, vector<16x128xf32>
    %c8_129 = arith.constant 8 : index
    %c0_130 = arith.constant 0 : index
    %224 = vector.load %arg28[%c8_129, %c0_130] : memref<32x128xf32, #tpu.memory_space<vmem>>, vector<16x128xf32>
    %c11 = arith.constant 11 : index
    %c0_131 = arith.constant 0 : index
    %225 = vector.load %arg28[%c11, %c0_131] : memref<32x128xf32, #tpu.memory_space<vmem>>, vector<16x128xf32>
    %226 = tpu.concatenate %223, %224, %225 in 1 : vector<16x128xf32>, vector<16x128xf32>, vector<16x128xf32> -> vector<16x384xf32>
    %c2 = arith.constant 2 : index
    %c0_132 = arith.constant 0 : index
    %c0_133 = arith.constant 0 : index
    %227 = vector.load %arg20[%c2, %c0_132, %c0_133] : memref<3x384x128xf32, #tpu.memory_space<vmem>>, vector<1x384x128xf32>
    %228 = vector.shape_cast %227 : vector<1x384x128xf32> to vector<384x128xf32>
    %cst_134 = arith.constant dense<0.000000e+00> : vector<16x128xf32>
    %229 = tpu.matmul %226, %228, %cst_134 {dimension_numbers = #tpu.dot_dimension_numbers<[1], [0], [0], [1], [0, 0, 1, 1], [], []>} : vector<16x384xf32>, vector<384x128xf32>, vector<16x128xf32> -> vector<16x128xf32>
    %c2_135 = arith.constant 2 : index
    %c0_136 = arith.constant 0 : index
    %c0_137 = arith.constant 0 : index
    %230 = vector.load %arg21[%c2_135, %c0_136, %c0_137] : memref<3x1x128xf32, #tpu.memory_space<vmem>>, vector<1x1x128xf32>
    %231 = vector.shape_cast %230 : vector<1x1x128xf32> to vector<1x128xf32>
    %232 = vector.broadcast %231 : vector<1x128xf32> to vector<16x128xf32>
    %233 = arith.mulf %229, %232 : vector<16x128xf32>
    %c2_138 = arith.constant 2 : index
    %c0_139 = arith.constant 0 : index
    %c0_140 = arith.constant 0 : index
    %234 = vector.load %arg22[%c2_138, %c0_139, %c0_140] : memref<3x1x128xf32, #tpu.memory_space<vmem>>, vector<1x1x128xf32>
    %235 = vector.shape_cast %234 : vector<1x1x128xf32> to vector<1x128xf32>
    %236 = vector.broadcast %235 : vector<1x128xf32> to vector<16x128xf32>
    %237 = arith.addf %233, %236 : vector<16x128xf32>
    %cst_141 = arith.constant 0.000000e+00 : f32
    %238 = vector.broadcast %cst_141 : f32 to vector<16x128xf32>
    %239 = arith.maximumf %237, %238 : vector<16x128xf32>
    %240 = arith.addf %239, %27 : vector<16x128xf32>
    %c8_142 = arith.constant 8 : index
    %c384 = arith.constant 384 : index
    %241 = vector.load %arg29[%c8_142, %c384] : memref<32x512xf32, #tpu.memory_space<vmem>>, vector<16x128xf32>
    tpu.vector_store %arg29[%c8_142, %c384], %240 {strides = array<i32>} : memref<32x512xf32, #tpu.memory_space<vmem>>, vector<16x128xf32>,
    %cst_143 = arith.constant 0.000000e+00 : f32
    %242 = vector.broadcast %cst_143 : f32 to vector<16x1xf32>
    %c2_144 = arith.constant 2 : index
    %c0_145 = arith.constant 0 : index
    %243 = vector.load %arg29[%c2_144, %c0_145] : memref<32x512xf32, #tpu.memory_space<vmem>>, vector<16x512xf32>
    %c0_146 = arith.constant 0 : index
    %c0_147 = arith.constant 0 : index
    %244 = vector.load %arg23[%c0_146, %c0_147] : memref<512x7xf32, #tpu.memory_space<vmem>>, vector<512x1xf32>
    %cst_148 = arith.constant dense<0.000000e+00> : vector<16x1xf32>
    %245 = tpu.matmul %243, %244, %cst_148 {dimension_numbers = #tpu.dot_dimension_numbers<[1], [0], [0], [1], [0, 0, 1, 1], [], []>} : vector<16x512xf32>, vector<512x1xf32>, vector<16x1xf32> -> vector<16x1xf32>
    %246 = arith.addf %242, %245 : vector<16x1xf32>
    %c3 = arith.constant 3 : index
    %c0_149 = arith.constant 0 : index
    %247 = vector.load %arg29[%c3, %c0_149] : memref<32x512xf32, #tpu.memory_space<vmem>>, vector<16x512xf32>
    %c0_150 = arith.constant 0 : index
    %c1_151 = arith.constant 1 : index
    %248 = vector.load %arg23[%c0_150, %c1_151] : memref<512x7xf32, #tpu.memory_space<vmem>>, vector<512x1xf32>
    %cst_152 = arith.constant dense<0.000000e+00> : vector<16x1xf32>
    %249 = tpu.matmul %247, %248, %cst_152 {dimension_numbers = #tpu.dot_dimension_numbers<[1], [0], [0], [1], [0, 0, 1, 1], [], []>} : vector<16x512xf32>, vector<512x1xf32>, vector<16x1xf32> -> vector<16x1xf32>
    %250 = arith.addf %246, %249 : vector<16x1xf32>
    %c4 = arith.constant 4 : index
    %c0_153 = arith.constant 0 : index
    %251 = vector.load %arg29[%c4, %c0_153] : memref<32x512xf32, #tpu.memory_space<vmem>>, vector<16x512xf32>
    %c0_154 = arith.constant 0 : index
    %c2_155 = arith.constant 2 : index
    %252 = vector.load %arg23[%c0_154, %c2_155] : memref<512x7xf32, #tpu.memory_space<vmem>>, vector<512x1xf32>
    %cst_156 = arith.constant dense<0.000000e+00> : vector<16x1xf32>
    %253 = tpu.matmul %251, %252, %cst_156 {dimension_numbers = #tpu.dot_dimension_numbers<[1], [0], [0], [1], [0, 0, 1, 1], [], []>} : vector<16x512xf32>, vector<512x1xf32>, vector<16x1xf32> -> vector<16x1xf32>
    %254 = arith.addf %250, %253 : vector<16x1xf32>
    %c5_157 = arith.constant 5 : index
    %c0_158 = arith.constant 0 : index
    %255 = vector.load %arg29[%c5_157, %c0_158] : memref<32x512xf32, #tpu.memory_space<vmem>>, vector<16x512xf32>
    %c0_159 = arith.constant 0 : index
    %c3_160 = arith.constant 3 : index
    %256 = vector.load %arg23[%c0_159, %c3_160] : memref<512x7xf32, #tpu.memory_space<vmem>>, vector<512x1xf32>
    %cst_161 = arith.constant dense<0.000000e+00> : vector<16x1xf32>
    %257 = tpu.matmul %255, %256, %cst_161 {dimension_numbers = #tpu.dot_dimension_numbers<[1], [0], [0], [1], [0, 0, 1, 1], [], []>} : vector<16x512xf32>, vector<512x1xf32>, vector<16x1xf32> -> vector<16x1xf32>
    %258 = arith.addf %254, %257 : vector<16x1xf32>
    %c6_162 = arith.constant 6 : index
    %c0_163 = arith.constant 0 : index
    %259 = vector.load %arg29[%c6_162, %c0_163] : memref<32x512xf32, #tpu.memory_space<vmem>>, vector<16x512xf32>
    %c0_164 = arith.constant 0 : index
    %c4_165 = arith.constant 4 : index
    %260 = vector.load %arg23[%c0_164, %c4_165] : memref<512x7xf32, #tpu.memory_space<vmem>>, vector<512x1xf32>
    %cst_166 = arith.constant dense<0.000000e+00> : vector<16x1xf32>
    %261 = tpu.matmul %259, %260, %cst_166 {dimension_numbers = #tpu.dot_dimension_numbers<[1], [0], [0], [1], [0, 0, 1, 1], [], []>} : vector<16x512xf32>, vector<512x1xf32>, vector<16x1xf32> -> vector<16x1xf32>
    %262 = arith.addf %258, %261 : vector<16x1xf32>
    %c7_167 = arith.constant 7 : index
    %c0_168 = arith.constant 0 : index
    %263 = vector.load %arg29[%c7_167, %c0_168] : memref<32x512xf32, #tpu.memory_space<vmem>>, vector<16x512xf32>
    %c0_169 = arith.constant 0 : index
    %c5_170 = arith.constant 5 : index
    %264 = vector.load %arg23[%c0_169, %c5_170] : memref<512x7xf32, #tpu.memory_space<vmem>>, vector<512x1xf32>
    %cst_171 = arith.constant dense<0.000000e+00> : vector<16x1xf32>
    %265 = tpu.matmul %263, %264, %cst_171 {dimension_numbers = #tpu.dot_dimension_numbers<[1], [0], [0], [1], [0, 0, 1, 1], [], []>} : vector<16x512xf32>, vector<512x1xf32>, vector<16x1xf32> -> vector<16x1xf32>
    %266 = arith.addf %262, %265 : vector<16x1xf32>
    %c8_172 = arith.constant 8 : index
    %c0_173 = arith.constant 0 : index
    %267 = vector.load %arg29[%c8_172, %c0_173] : memref<32x512xf32, #tpu.memory_space<vmem>>, vector<16x512xf32>
    %c0_174 = arith.constant 0 : index
    %c6_175 = arith.constant 6 : index
    %268 = vector.load %arg23[%c0_174, %c6_175] : memref<512x7xf32, #tpu.memory_space<vmem>>, vector<512x1xf32>
    %cst_176 = arith.constant dense<0.000000e+00> : vector<16x1xf32>
    %269 = tpu.matmul %267, %268, %cst_176 {dimension_numbers = #tpu.dot_dimension_numbers<[1], [0], [0], [1], [0, 0, 1, 1], [], []>} : vector<16x512xf32>, vector<512x1xf32>, vector<16x1xf32> -> vector<16x1xf32>
    %270 = arith.addf %266, %269 : vector<16x1xf32>
    %c0_177 = arith.constant 0 : index
    %c0_178 = arith.constant 0 : index
    %271 = vector.load %arg24[%c0_177, %c0_178] : memref<1x1xf32, #tpu.memory_space<vmem>>, vector<1x1xf32>
    %272 = vector.broadcast %271 : vector<1x1xf32> to vector<16x1xf32>
    %273 = arith.addf %270, %272 : vector<16x1xf32>
    %274 = arith.negf %273 : vector<16x1xf32>
    %275 = math.exp %274 : vector<16x1xf32>
    %cst_179 = arith.constant 1.000000e+00 : f32
    %276 = vector.broadcast %cst_179 : f32 to vector<16x1xf32>
    %277 = arith.addf %276, %275 : vector<16x1xf32>
    %278 = arith.divf %276, %277 : vector<16x1xf32>
    %c0_180 = arith.constant 0 : index
    %c0_181 = arith.constant 0 : index
    %c0_182 = arith.constant 0 : index
    %279 = vector.load %arg25[%c0_180, %c0_181, %c0_182] : memref<1x16x1xf32, #tpu.memory_space<vmem>>, vector<1x16x1xf32>
    %280 = vector.shape_cast %279 : vector<1x16x1xf32> to vector<16x1xf32>
    %281 = vector.shape_cast %278 : vector<16x1xf32> to vector<1x16x1xf32>
    tpu.vector_store %arg25[%c0_180, %c0_181, %c0_182], %281 {strides = array<i32>} : memref<1x16x1xf32, #tpu.memory_space<vmem>>, vector<1x16x1xf32>,
    return
  }
  func.func @transform_0(%arg0: i32) -> (i32, i32, i32) {
    %c0_i32 = arith.constant 0 : i32
    %c0_i32_0 = arith.constant 0 : i32
    %c0_i32_1 = arith.constant 0 : i32
    return %arg0, %c0_i32, %c0_i32_0 : i32, i32, i32
  }
  func.func @transform_1(%arg0: i32) -> (i32, i32) {
    %c0_i32 = arith.constant 0 : i32
    %c0_i32_0 = arith.constant 0 : i32
    %c0_i32_1 = arith.constant 0 : i32
    return %c0_i32, %c0_i32_0 : i32, i32
  }
  func.func @transform_2(%arg0: i32) -> (i32, i32) {
    %c0_i32 = arith.constant 0 : i32
    %c0_i32_0 = arith.constant 0 : i32
    %c0_i32_1 = arith.constant 0 : i32
    return %c0_i32, %c0_i32_0 : i32, i32
  }
  func.func @transform_3(%arg0: i32) -> (i32, i32) {
    %c0_i32 = arith.constant 0 : i32
    %c0_i32_0 = arith.constant 0 : i32
    %c0_i32_1 = arith.constant 0 : i32
    return %c0_i32, %c0_i32_0 : i32, i32
  }
  func.func @transform_4(%arg0: i32) -> (i32, i32) {
    %c0_i32 = arith.constant 0 : i32
    %c0_i32_0 = arith.constant 0 : i32
    %c0_i32_1 = arith.constant 0 : i32
    return %c0_i32, %c0_i32_0 : i32, i32
  }
  func.func @transform_5(%arg0: i32) -> (i32, i32) {
    %c0_i32 = arith.constant 0 : i32
    %c0_i32_0 = arith.constant 0 : i32
    %c0_i32_1 = arith.constant 0 : i32
    return %c0_i32, %c0_i32_0 : i32, i32
  }
  func.func @transform_6(%arg0: i32) -> (i32, i32) {
    %c0_i32 = arith.constant 0 : i32
    %c0_i32_0 = arith.constant 0 : i32
    %c0_i32_1 = arith.constant 0 : i32
    return %c0_i32, %c0_i32_0 : i32, i32
  }
  func.func @transform_7(%arg0: i32) -> (i32, i32) {
    %c0_i32 = arith.constant 0 : i32
    %c0_i32_0 = arith.constant 0 : i32
    %c0_i32_1 = arith.constant 0 : i32
    return %c0_i32, %c0_i32_0 : i32, i32
  }
  func.func @transform_8(%arg0: i32) -> (i32, i32) {
    %c0_i32 = arith.constant 0 : i32
    %c0_i32_0 = arith.constant 0 : i32
    %c0_i32_1 = arith.constant 0 : i32
    return %c0_i32, %c0_i32_0 : i32, i32
  }
  func.func @transform_9(%arg0: i32) -> (i32, i32) {
    %c0_i32 = arith.constant 0 : i32
    %c0_i32_0 = arith.constant 0 : i32
    %c0_i32_1 = arith.constant 0 : i32
    return %c0_i32, %c0_i32_0 : i32, i32
  }
  func.func @transform_10(%arg0: i32) -> (i32, i32) {
    %c0_i32 = arith.constant 0 : i32
    %c0_i32_0 = arith.constant 0 : i32
    %c0_i32_1 = arith.constant 0 : i32
    return %c0_i32, %c0_i32_0 : i32, i32
  }
  func.func @transform_11(%arg0: i32) -> (i32, i32) {
    %c0_i32 = arith.constant 0 : i32
    %c0_i32_0 = arith.constant 0 : i32
    %c0_i32_1 = arith.constant 0 : i32
    return %c0_i32, %c0_i32_0 : i32, i32
  }
  func.func @transform_12(%arg0: i32) -> (i32, i32) {
    %c0_i32 = arith.constant 0 : i32
    %c0_i32_0 = arith.constant 0 : i32
    %c0_i32_1 = arith.constant 0 : i32
    return %c0_i32, %c0_i32_0 : i32, i32
  }
  func.func @transform_13(%arg0: i32) -> (i32, i32) {
    %c0_i32 = arith.constant 0 : i32
    %c0_i32_0 = arith.constant 0 : i32
    %c0_i32_1 = arith.constant 0 : i32
    return %c0_i32, %c0_i32_0 : i32, i32
  }
  func.func @transform_14(%arg0: i32) -> (i32, i32) {
    %c0_i32 = arith.constant 0 : i32
    %c0_i32_0 = arith.constant 0 : i32
    %c0_i32_1 = arith.constant 0 : i32
    return %c0_i32, %c0_i32_0 : i32, i32
  }
  func.func @transform_15(%arg0: i32) -> (i32, i32) {
    %c0_i32 = arith.constant 0 : i32
    %c0_i32_0 = arith.constant 0 : i32
    %c0_i32_1 = arith.constant 0 : i32
    return %c0_i32, %c0_i32_0 : i32, i32
  }
  func.func @transform_16(%arg0: i32) -> (i32, i32) {
    %c0_i32 = arith.constant 0 : i32
    %c0_i32_0 = arith.constant 0 : i32
    %c0_i32_1 = arith.constant 0 : i32
    return %c0_i32, %c0_i32_0 : i32, i32
  }
  func.func @transform_17(%arg0: i32) -> (i32, i32) {
    %c0_i32 = arith.constant 0 : i32
    %c0_i32_0 = arith.constant 0 : i32
    %c0_i32_1 = arith.constant 0 : i32
    return %c0_i32, %c0_i32_0 : i32, i32
  }
  func.func @transform_18(%arg0: i32) -> (i32, i32) {
    %c0_i32 = arith.constant 0 : i32
    %c0_i32_0 = arith.constant 0 : i32
    %c0_i32_1 = arith.constant 0 : i32
    return %c0_i32, %c0_i32_0 : i32, i32
  }
  func.func @transform_19(%arg0: i32) -> (i32, i32, i32) {
    %c0_i32 = arith.constant 0 : i32
    %c0_i32_0 = arith.constant 0 : i32
    %c0_i32_1 = arith.constant 0 : i32
    %c0_i32_2 = arith.constant 0 : i32
    return %c0_i32, %c0_i32_0, %c0_i32_1 : i32, i32, i32
  }
  func.func @transform_20(%arg0: i32) -> (i32, i32, i32) {
    %c0_i32 = arith.constant 0 : i32
    %c0_i32_0 = arith.constant 0 : i32
    %c0_i32_1 = arith.constant 0 : i32
    %c0_i32_2 = arith.constant 0 : i32
    return %c0_i32, %c0_i32_0, %c0_i32_1 : i32, i32, i32
  }
  func.func @transform_21(%arg0: i32) -> (i32, i32, i32) {
    %c0_i32 = arith.constant 0 : i32
    %c0_i32_0 = arith.constant 0 : i32
    %c0_i32_1 = arith.constant 0 : i32
    %c0_i32_2 = arith.constant 0 : i32
    return %c0_i32, %c0_i32_0, %c0_i32_1 : i32, i32, i32
  }
  func.func @transform_22(%arg0: i32) -> (i32, i32) {
    %c0_i32 = arith.constant 0 : i32
    %c0_i32_0 = arith.constant 0 : i32
    %c0_i32_1 = arith.constant 0 : i32
    return %c0_i32, %c0_i32_0 : i32, i32
  }
  func.func @transform_23(%arg0: i32) -> (i32, i32) {
    %c0_i32 = arith.constant 0 : i32
    %c0_i32_0 = arith.constant 0 : i32
    %c0_i32_1 = arith.constant 0 : i32
    return %c0_i32, %c0_i32_0 : i32, i32
  }
  func.func @transform_24(%arg0: i32) -> (i32, i32, i32) {
    %c0_i32 = arith.constant 0 : i32
    %c0_i32_0 = arith.constant 0 : i32
    %c0_i32_1 = arith.constant 0 : i32
    return %arg0, %c0_i32, %c0_i32_0 : i32, i32, i32
  }
  func.func @transform_25(%arg0: i32) -> (i32, i32, i32) {
    %c0_i32 = arith.constant 0 : i32
    %c0_i32_0 = arith.constant 0 : i32
    %c0_i32_1 = arith.constant 0 : i32
    return %arg0, %c0_i32, %c0_i32_0 : i32, i32, i32
  }
  func.func @transform_26(%arg0: i32) -> (i32, i32, i32) {
    %c0_i32 = arith.constant 0 : i32
    %c0_i32_0 = arith.constant 0 : i32
    %c0_i32_1 = arith.constant 0 : i32
    return %arg0, %c0_i32, %c0_i32_0 : i32, i32, i32
  }
}

</mosaic_0001>

<bundles_post_ra>
// kernel: forward.1
= control target key start
LH: loop header
LB: loop body
LE: loop exit
PB: predicated region body
PF: predicated region fallthrough
CT: control target
= control target key end

     0   :  { %s9970_s0 = inlined_call_operand.hbm [shape: f32[2,16,1152], index: 0, kind: input, shape index: {}]   ;;  %s9971_s1 = inlined_call_operand.hbm [shape: f32[1024,128], index: 1, kind: input, shape index: {}]   ;;  %s9972_s2 = inlined_call_operand.vmem [shape: f32[1,128], index: 2, kind: input, shape index: {}]   ;;  %s9973_s3 = inlined_call_operand.hbm [shape: f32[128,128], index: 3, kind: input, shape index: {}]   ;;  %s9974_s4 = inlined_call_operand.vmem [shape: f32[1,128], index: 4, kind: input, shape index: {}]   ;;  %s9975_s5 = inlined_call_operand.vmem [shape: f32[256,256], index: 5, kind: input, shape index: {}]   ;;  %s9976_s6 = inlined_call_operand.vmem [shape: f32[1,256], index: 6, kind: input, shape index: {}]   ;;  %s9977_s7 = inlined_call_operand.vmem [shape: f32[1,128], index: 7, kind: input, shape index: {}]   ;;  %s9978_s8 = inlined_call_operand.vmem [shape: f32[1,128], index: 8, kind: input, shape index: {}]   ;;  %s9979_s9 = inlined_call_operand.hbm [shape: f32[128,384], index: 9, kind: input, shape index: {}]   ;;  %s9980_s10 = inlined_call_operand.vmem [shape: f32[1,384], index: 10, kind: input, shape index: {}]   ;;  %s9981_s11 = inlined_call_operand.hbm [shape: f32[128,128], index: 11, kind: input, shape index: {}]   ;;  %s9982_s12 = inlined_call_operand.vmem [shape: f32[1,128], index: 12, kind: input, shape index: {}]   ;;  %s9983_s13 = inlined_call_operand.vmem [shape: f32[1,128], index: 13, kind: input, shape index: {}]   ;;  %s9984_s14 = inlined_call_operand.vmem [shape: f32[1,128], index: 14, kind: input, shape index: {}]   ;;  %s9985_s15 = inlined_call_operand.hbm [shape: f32[128,128], index: 15, kind: input, shape index: {}]   ;;  %s9986_s16 = inlined_call_operand.vmem [shape: f32[1,128], index: 16, kind: input, shape index: {}]   ;;  %s9987_s17 = inlined_call_operand.hbm [shape: f32[128,128], index: 17, kind: input, shape index: {}]   ;;  %s9988_s18 = inlined_call_operand.vmem [shape: f32[1,128], index: 18, kind: input, shape index: {}]   ;;  %s9989_s19 = inlined_call_operand.hbm [shape: f32[3,384,128], index: 19, kind: input, shape index: {}]   ;;  %s9990_s20 = inlined_call_operand.vmem [shape: f32[3,1,128], index: 20, kind: input, shape index: {}]   ;;  %s9991_s21 = inlined_call_operand.vmem [shape: f32[3,1,128], index: 21, kind: input, shape index: {}]   ;;  %s9992_s22 = inlined_call_operand.vmem [shape: f32[512,7], index: 22, kind: input, shape index: {}]   ;;  %s9993_s23 = inlined_call_operand.<no memory space> [shape: f32[1,1], index: 23, kind: input, shape index: {}]   ;;  %s9994_s24 = inlined_call_operand.vmem [shape: f32[2,16,1], index: 24, kind: output, shape index: {0}]   ;;  %s9995_s25 = inlined_call_operand.hbm [shape: f32[2,16,128], index: 25, kind: output, shape index: {1}]   ;;  %s9996_s26 = inlined_call_operand.hbm [shape: f32[2,16,128], index: 26, kind: output, shape index: {2}]  }
   0x1   :  { %10116 = sst [smem:[#allocation109_spill]] %s9970_s0  ;;  %v32_v0 = vstv %s9993_s23 }
   0x2   :  { %10117 = sst [smem:[#allocation110_spill]] %s9971_s1  ;;  %33 = vst [vmem:[#allocation4] sm:$0x1] %v32_v0 }
   0x3   :  { %10118 = sst [smem:[#allocation111_spill]] %s9972_s2 }
   0x4   :  { %10119 = sst [smem:[#allocation112_spill]] %s9973_s3 }
   0x5   :  { %10120 = sst [smem:[#allocation113_spill]] %s9974_s4 }
   0x6   :  { %10121 = sst [smem:[#allocation114_spill]] %s9975_s5 }
   0x7   :  { %10122 = sst [smem:[#allocation115_spill]] %s9976_s6 }
   0x8   :  { %10123 = sst [smem:[#allocation116_spill]] %s9977_s7 }
   0x9   :  { %10124 = sst [smem:[#allocation117_spill]] %s9978_s8 }
   0xa   :  { %10125 = sst [smem:[#allocation118_spill]] %s9979_s9 }
   0xb   :  { %10126 = sst [smem:[#allocation119_spill]] %s9980_s10 }
   0xc   :  { %10127 = sst [smem:[#allocation120_spill]] %s9981_s11 }
   0xd   :  { %10128 = sst [smem:[#allocation121_spill]] %s9982_s12 }
   0xe   :  { %10129 = sst [smem:[#allocation122_spill]] %s9983_s13 }
   0xf   :  { %10130 = sst [smem:[#allocation123_spill]] %s9984_s14 }
  0x10   :  { %10131 = sst [smem:[#allocation124_spill]] %s9985_s15 }
  0x11   :  { %10132 = sst [smem:[#allocation125_spill]] %s9986_s16 }
  0x12   :  { %10133 = sst [smem:[#allocation126_spill]] %s9987_s17 }
  0x13   :  { %10134 = sst [smem:[#allocation127_spill]] %s9988_s18 }
  0x14   :  { %10135 = sst [smem:[#allocation128_spill]] %s9989_s19 }
  0x15   :  { %10136 = sst [smem:[#allocation129_spill]] %s9990_s20 }
  0x16   :  { %10137 = sst [smem:[#allocation130_spill]] %s9991_s21 }
  0x17   :  { %10138 = sst [smem:[#allocation131_spill]] %s9992_s22 }
  0x18   :  { %10139 = sst [smem:[#allocation132_spill]] %s9994_s24 }
  0x19   :  { %10140 = sst [smem:[#allocation133_spill]] %s9995_s25 }
  0x1a   :  { %10141 = sst [smem:[#allocation134_spill]] %s9996_s26 }
  0x1b   :  { %34 = vsyncpa [#allocation6], 0 }
  0x1c   :  { %36 = vsyncpa [#allocation6 + $0x1], 0 }
  0x1d   :  { %37 = vsyncpa [#allocation9], 0 }
  0x1e   :  { %38 = vsyncpa [#allocation12], 0 }
  0x1f   :  { %39 = vsyncpa [#allocation15], 0 }
  0x20   :  { %40 = vsyncpa [#allocation18], 0 }
  0x21   :  { %41 = vsyncpa [#allocation7], 0 }
  0x22   :  { %43 = vsyncpa [#allocation7 + $0x1], 0 }
  0x23   :  { %44 = vsyncpa [#allocation21], 0 }
  0x24   :  { %46 = vsyncpa [#allocation21 + $0x1], 0  ;;  %s7192_s7 = smov 0   ;;  %s7194_s28 = smov 0  }
  0x25   :  { %s7196_s8 = smov 0   ;;  %s7198_s4 = smov 0  }
  0x26 LB: > { %s10142_s0 = sld [smem:[#allocation110_spill]]  ;;  %s7216_s30 = sadd.s32 4294967295, %s7026_s4   ;;  %s7026_s4 = sphi %s7198_s4, %s10384_s4   ;;  %s7022_s8 = sphi %s7196_s8, %s10383_s8   ;;  %s7018_s28 = sphi %s7194_s28, %s10382_s28   ;;  %s7014_s7 = sphi %s7192_s7, %s10381_s7  }
  0x27   : > { %p5315_p0 = scmp.ge.s32.totalorder %s7026_s4, 1  ;;  %p73_p1 = scmp.eq.s32.totalorder %s7216_s30, 0 }
  0x28   : > { %p644_p2 = scmp.lt.s32.totalorder %s7026_s4, 3  ;;  %s7028_s5 = smov [#allocation8]  }
  0x29   : > { %s657_s10 = sshll.u32 %s7028_s5, 4  ;;  %s10144_s27 = sld [smem:[#allocation118_spill]]  ;;  %s658_s10 = int_to_ptr.vmem [resolvable:$true] %s657_s10 }
  0x2a   : > { %p7221_p3 = pnand %p5315_p0, %p644_p2  ;;  %s7029_s29 = smov [#allocation11]  }
  0x2b   : > { %s7030_s5 = smov 128   ;;  %s7031_s24 = smov 8  }
  0x2c   : > { %s655_s9 = sshll.u32 %s10142_s0, 4  ;;  %p5427_p4 = pneg %p7221_p3  ;;  %s656_s9 = int_to_ptr.hbm [resolvable:$true] %s655_s9 }
  0x2d   : > { %s703_s0 = sshll.u32 %s7029_s29, 4  ;;  %s7032_s6 = smov 384   ;;  %s704_s0 = int_to_ptr.vmem [resolvable:$true] %s703_s0 }
  0x2e   : > { %p7233_p6 = pnand %p5427_p4, %p73_p1  ;;  %s7033_s1 = smov 24  }
  0x2f   : > { %s701_s3 = sshll.u32 %s10144_s27, 4  ;;  %s10146_s15 = sld [smem:[#allocation124_spill]]  ;;  %s702_s3 = int_to_ptr.hbm [resolvable:$true] %s701_s3 }
  0x30   : > { %5430 = dma.hbm_to_vmem [thread:$0]  (!%p7233_p6), %s656_s9, 16384, %s658_s10, [#allocation9], %s7030_s5, %s7030_s5, %s7031_s24  }
  0x31   : > { %5436 = dma.hbm_to_vmem [thread:$0]  (!%p7233_p6), %s702_s3, 6144, %s704_s0, [#allocation12], %s7032_s6, %s7032_s6, %s7033_s1  }
  0x32   : > { %s7034_s18 = smov [#allocation14]   ;;  %s10147_s16 = sld [smem:[#allocation112_spill]] }
  0x33   : > { %s743_s29 = sshll.u32 %s7034_s18, 4  ;;  %s7035_s9 = smov [#allocation10]   ;;  %s744_s29 = int_to_ptr.vmem [resolvable:$true] %s743_s29 }
  0x34   : > { %s674_s10 = sshll.u32 %s7035_s9, 4  ;;  %s10148_s11 = sld [smem:[#allocation120_spill]]  ;;  %s675_s10 = int_to_ptr.vmem [resolvable:$true] %s674_s10 }
  0x35   : > { %s741_s25 = sshll.u32 %s10146_s15, 4  ;;  %s10149_s17 = sld [smem:[#allocation126_spill]]  ;;  %s742_s25 = int_to_ptr.hbm [resolvable:$true] %s741_s25 }
  0x36   : > { %5442 = dma.hbm_to_vmem [thread:$0]  (!%p7233_p6), %s742_s25, 2048, %s744_s29, [#allocation15], %s7030_s5, %s7030_s5, %s7031_s24  }
  0x37   : > { %s7036_s21 = smov [#allocation13]   ;;  %s10150_s19 = sld [smem:[#allocation128_spill]] }
  0x38   : > { %s672_s14 = sshll.u32 %s10147_s16, 4  ;;  %s720_s25 = sshll.u32 %s7036_s21, 4  ;;  %s673_s14 = int_to_ptr.hbm [resolvable:$true] %s672_s14  ;;  %s721_s25 = int_to_ptr.vmem [resolvable:$true] %s720_s25 }
  0x39   : > { %5433 = dma.hbm_to_vmem [thread:$0]  (!%p7233_p6), %s673_s14, 2048, %s675_s10, [#allocation9], %s7030_s5, %s7030_s5, %s7031_s24  }
  0x3a   : > { %s718_s0 = sshll.u32 %s10148_s11, 4  ;;  %s7037_s14 = smov [#allocation16]   ;;  %s719_s0 = int_to_ptr.hbm [resolvable:$true] %s718_s0 }
  0x3b   : > { %s758_s20 = sshll.u32 %s10149_s17, 4  ;;  %s760_s6 = sshll.u32 %s7037_s14, 4  ;;  %s759_s20 = int_to_ptr.hbm [resolvable:$true] %s758_s20  ;;  %s761_s6 = int_to_ptr.vmem [resolvable:$true] %s760_s6 }
  0x3c   : > { %5439 = dma.hbm_to_vmem [thread:$0]  (!%p7233_p6), %s719_s0, 2048, %s721_s25, [#allocation12], %s7030_s5, %s7030_s5, %s7031_s24  }
  0x3d   : > { %s775_s29 = sshll.u32 %s10150_s19, 4  ;;  %s7038_s9 = smov [#allocation17]   ;;  %s776_s29 = int_to_ptr.hbm [resolvable:$true] %s775_s29 }
  0x3e   : > { %5445 = dma.hbm_to_vmem [thread:$0]  (!%p7233_p6), %s759_s20, 2048, %s761_s6, [#allocation15], %s7030_s5, %s7030_s5, %s7031_s24  }
  0x3f   : > { %s777_s10 = sshll.u32 %s7038_s9, 4  ;;  %s5314_s3 = sadd.s32 4294967294, %s7026_s4   ;;  %s778_s10 = int_to_ptr.vmem [resolvable:$true] %s777_s10 }
  0x40   : > { %5448 = dma.hbm_to_vmem [thread:$0]  (!%p7233_p6), %s776_s29, 18432, %s778_s10, [#allocation18], %s7030_s5, %s7030_s5, %s7031_s24  }
  0x41   : > { %s7286_s26 = sadd.s32 1, %s7026_s4   ;;  %s59_s0 = sadd.s32 1, %s7022_s8 }
  0x42   : > { %s56_s16 = ssub.s32 %s7026_s4, %s7286_s26  ;;  %p66_p7 = scmp.ne.s32.totalorder %s7022_s8, %s7018_s28 }
  0x43   : > { %p57_p8 = scmp.eq.s32.totalorder %s56_s16, 0  ;;  %p67_p9 = scmp.eq.s32.totalorder %s7026_s4, 0 }
  0x44   : > { %p72_p10 = scmp.ne.s32.totalorder %s7018_s28, %s7014_s7  ;;  %p605_p11 = scmp.eq.s32.totalorder %s7216_s30, 1 }
  0x45   : > { %s7298_s18 = scalar_select %p57_p8, %s7022_s8, %s59_s0  }
  0x46   : > { %p68_p12 = por %p67_p9, %p66_p7  ;;  %p7302_p13 = por %p73_p1, %p72_p10 }
  0x47   : > { %p7306_p0 = por %p605_p11, %p66_p7  ;;  %p611_p2 = scmp.eq.s32.totalorder %s5314_s3, 1 }
  0x48   : > { %p5467_p4 = scmp.lt.s32.totalorder %s7026_s4, 2  ;;  %s803_s5 = sand.u32 1, %s7022_s8  }
  0x49   : > { %p7312_p6 = por %p611_p2, %p72_p10  ;;  %s5390_s21 = smul.u32 144, %s803_s5 }
  0x4a   : > { %p7316_p8 = pnand %p5467_p4, %p68_p12  ;;  %s5391_s14 = smul.u32 144, %s7026_s4 }
  0x4b   : > { %s10155_s27 = sld [smem:[#allocation109_spill]]  ;;  %s807_s9 = scalar_lea.vmem [#allocation5], %s5390_s21 }
  0x4c   : > { %s815_s10 = sshll.u32 %s807_s9, 4  ;;  %s804_s0 = scalar_lea.sflag [#allocation6], %s803_s5  ;;  %s816_s10 = int_to_ptr.vmem [resolvable:$true] %s815_s10 }
  0x4d   : > { %p6886_p9 = pneg %p7316_p8 }
  0x51   : > { %s812_s29 = scalar_lea.hbm %s10155_s27, %s5391_s14  ;;  %s6889_s19 = scalar_lea.hbm %s10155_s27, 288 }
  0x52   : > { %s813_s3 = sshll.u32 %s812_s29, 4  ;;  %s814_s3 = int_to_ptr.hbm [resolvable:$true] %s813_s3 }
  0x53   : > { %s6882_s16 = sshra.s32 %s814_s3, 4  ;;  %s6883_s16 = int_to_ptr.hbm [resolvable:$true] %s6882_s16 }
  0x54   : > { %s6884_s11 = scalar_lea.hbm %s6883_s16, 144  ;;  %p6890_p12 = scmp.lt.s32.totalorder %s6883_s16, %s10155_s27 }
  0x55   : > { %p6885_p7 = scmp.ne.s32.totalorder %s6883_s16, %s6884_s11  ;;  %p6891_p2 = scmp.lt.s32.totalorder %s6889_s19, %s6884_s11 }
  0x57   : > { %p6887_p10 = pnand %p6886_p9, %p6885_p7  ;;  %p6892_p4 = por %p6891_p2, %p6890_p12 }
  0x59   : > { %p6888_p11 = pneg %p6887_p10 }
  0x5b   : > { %p6893_p5 = pnand %p6892_p4, %p6888_p11 }
  0x5d   : > { %6896 = shalt.err (!%p6893_p5)
}
  0x5e   : > { %s7039_s5 = smov 1152   ;;  %s7040_s21 = smov 72  }
  0x5f   : > { %5452 = dma.hbm_to_vmem [thread:$0]  (!%p7316_p8), %s814_s3, 2304, %s816_s10, %s804_s0, %s7039_s5, %s7039_s5, %s7040_s21  }
  0x60   : > { %827 = sbr.rel (%p7221_p3) target bundleno = 3439 (0xd6f), region = 116 }
  0x65   : > { %s7337_s15 = sand.u32 1, %s7018_s28  }
  0x66   : > { %s5392_s17 = smul.u32 144, %s7337_s15  ;;  %s830_s1 = scalar_lea.sflag [#allocation6], %s7337_s15 }
  0x68   : > { %s7341_s11 = scalar_lea.vmem [#allocation5], %s5392_s17 }
  0x69   : > { %6985 = dma.done.wait (%p7302_p13), %s830_s1, 2304  }
  0x6a   : > { %6987 = vsyncadd (%p7302_p13), %s830_s1, 4294964992 }
  0x6b   : > { %6989 = dma.done.wait (%p73_p1), [#allocation9], 18432  }
  0x6c   : > { %6991 = vsyncadd (%p73_p1), [#allocation9], 4294948864 }
  0x6d   : > { %6993 = dma.done.wait (%p73_p1), [#allocation12], 8192  }
  0x6e   : > { %6995 = vsyncadd (%p73_p1), [#allocation12], 4294959104 }
  0x6f   : > { %6997 = dma.done.wait (%p73_p1), [#allocation15], 4096  }
  0x70   : > { %6999 = vsyncadd (%p73_p1), [#allocation15], 4294963200 }
  0x71   : > { %7001 = dma.done.wait (%p73_p1), [#allocation18], 18432  }
  0x72   : > { %7003 = vsyncadd (%p73_p1), [#allocation18], 4294948864  ;;  %v986_v1 = vld [vmem:[#allocation8 + $0x78] sm:$0xff]  ;;  %v985_v2 = vld [vmem:[#allocation8 + $0x70] sm:$0xff]  ;;  %s10156_s23 = sld [smem:[#allocation114_spill]]  ;;  %s5333_s9 = sshll.u32 %s7337_s15, 4 }
  0x73   : > { %1103 = vmatpush.msra.mxu0 %v986_v1  ;;  %v1018_v3 = vld [vmem:[#allocation8 + $0x178] sm:$0xff]  ;;  %v1017_v4 = vld [vmem:[#allocation8 + $0x170] sm:$0xff]  ;;  %v984_v5 = vld [vmem:[#allocation8 + $0x68] sm:$0xff]  ;;  %s10157_s3 = sld [smem:[#allocation111_spill]]  ;;  %s7584_s16 = scalar_lea.vmem [#allocation20], %s5333_s9  ;;  %vm1680_vm7 = vcmask 261120  }
  0x74   : > { %1149 = vmatpush.msra.mxu2 %v1018_v3  ;;  %v1034_v6 = vld [vmem:[#allocation8 + $0x1f8] sm:$0xff]  ;;  %v1016_v8 = vld [vmem:[#allocation8 + $0x168] sm:$0xff]  ;;  %v1033_v9 = vld [vmem:[#allocation8 + $0x1f0] sm:$0xff]  ;;  %s10158_s0 = sld [smem:[#allocation113_spill]]  ;;  %vm1718_vm8 = vcmask 130048   ;;  %s7045_s6 = smov 32  }
  0x75   : > { %v1002_v7 = vld [vmem:[#allocation8 + $0xf8] sm:$0xff]  ;;  %1104 = vmatpush.msra.mxu0 %v985_v2  ;;  %1172 = vmatpush.msra.mxu3 %v1034_v6  ;;  %v983_v10 = vld [vmem:[#allocation8 + $0x60] sm:$0xff]  ;;  %v1001_v11 = vld [vmem:[#allocation8 + $0xf0] sm:$0xff]  ;;  %s10159_s5 = sld [smem:[#allocation115_spill]]  ;;  %s7049_s19 = smov 124   ;;  %vm2903_vm15 = vcmask 1044480  }
  0x76   : > { %1150 = vmatpush.msra.mxu2 %v1017_v4  ;;  %1126 = vmatpush.msra.mxu1 %v1002_v7  ;;  %v1032_v12 = vld [vmem:[#allocation8 + $0x1e8] sm:$0xff]  ;;  %v1015_v13 = vld [vmem:[#allocation8 + $0x160] sm:$0xff]  ;;  %v982_v15 = vld [vmem:[#allocation8 + $0x58] sm:$0xff]  ;;  %s10160_s1 = sld [smem:[#allocation116_spill]]  ;;  %s7050_s21 = smov 123  }
  0x77   : > { %1105 = vmatpush.msra.mxu0 %v984_v5  ;;  %1173 = vmatpush.msra.mxu3 %v1033_v9  ;;  %v1000_v14 = vld [vmem:[#allocation8 + $0xe8] sm:$0xff]  ;;  %v1031_v16 = vld [vmem:[#allocation8 + $0x1e0] sm:$0xff]  ;;  %v1014_v17 = vld [vmem:[#allocation8 + $0x158] sm:$0xff]  ;;  %s10161_s25 = sld [smem:[#allocation117_spill]] }
  0x78   : > { %1151 = vmatpush.msra.mxu2 %v1016_v8  ;;  %1127 = vmatpush.msra.mxu1 %v1001_v11  ;;  %v999_v18 = vld [vmem:[#allocation8 + $0xe0] sm:$0xff]  ;;  %v981_v19 = vld [vmem:[#allocation8 + $0x50] sm:$0xff]  ;;  %v1030_v20 = vld [vmem:[#allocation8 + $0x1d8] sm:$0xff]  ;;  %s10162_s10 = sld [smem:[#allocation119_spill]] }
  0x79   : > { %1106 = vmatpush.msra.mxu0 %v983_v10  ;;  %1174 = vmatpush.msra.mxu3 %v1032_v12  ;;  %v1013_v21 = vld [vmem:[#allocation8 + $0x150] sm:$0xff]  ;;  %v998_v22 = vld [vmem:[#allocation8 + $0xd8] sm:$0xff]  ;;  %v980_v23 = vld [vmem:[#allocation8 + $0x48] sm:$0xff]  ;;  %s10163_s22 = sld [smem:[#allocation131_spill]] }
  0x7a   : > { %1152 = vmatpush.msra.mxu2 %v1015_v13  ;;  %1128 = vmatpush.msra.mxu1 %v1000_v14  ;;  %v1029_v24 = vld [vmem:[#allocation8 + $0x1d0] sm:$0xff]  ;;  %v1012_v25 = vld [vmem:[#allocation8 + $0x148] sm:$0xff]  ;;  %v979_v27 = vld [vmem:[#allocation8 + $0x40] sm:$0xff]  ;;  %s10166_s12 = sld [smem:[#allocation121_spill]] }
  0x7b   : > { %1107 = vmatpush.msra.mxu0 %v982_v15  ;;  %1175 = vmatpush.msra.mxu3 %v1031_v16  ;;  %v997_v26 = vld [vmem:[#allocation8 + $0xd0] sm:$0xff]  ;;  %v1028_v28 = vld [vmem:[#allocation8 + $0x1c8] sm:$0xff]  ;;  %v1011_v29 = vld [vmem:[#allocation8 + $0x140] sm:$0xff]  ;;  %s10190_s13 = sld [smem:[#allocation122_spill]] }
  0x7c   : > { %1153 = vmatpush.msra.mxu2 %v1014_v17  ;;  %1129 = vmatpush.msra.mxu1 %v999_v18  ;;  %v996_v30 = vld [vmem:[#allocation8 + $0xc8] sm:$0xff]  ;;  %v978_v31 = vld [vmem:[#allocation8 + $0x38] sm:$0xff]  ;;  %v1027_v32 = vld [vmem:[#allocation8 + $0x1c0] sm:$0xff]  ;;  %s10191_s17 = sld [smem:[#allocation123_spill]] }
  0x7d   : > { %1108 = vmatpush.msra.mxu0 %v981_v19  ;;  %1176 = vmatpush.msra.mxu3 %v1030_v20  ;;  %v1010_v33 = vld [vmem:[#allocation8 + $0x138] sm:$0xff]  ;;  %v995_v34 = vld [vmem:[#allocation8 + $0xc0] sm:$0xff]  ;;  %v977_v35 = vld [vmem:[#allocation8 + $0x30] sm:$0xff]  ;;  %s10250_s2 = sld [smem:[#allocation125_spill]] }
  0x7e   : > { %1154 = vmatpush.msra.mxu2 %v1013_v21  ;;  %1130 = vmatpush.msra.mxu1 %v998_v22  ;;  %v1026_v36 = vld [vmem:[#allocation8 + $0x1b8] sm:$0xff]  ;;  %v1009_v37 = vld [vmem:[#allocation8 + $0x130] sm:$0xff]  ;;  %v976_v39 = vld [vmem:[#allocation8 + $0x28] sm:$0xff] }
  0x7f   : > { %1109 = vmatpush.msra.mxu0 %v980_v23  ;;  %1177 = vmatpush.msra.mxu3 %v1029_v24  ;;  %v994_v38 = vld [vmem:[#allocation8 + $0xb8] sm:$0xff]  ;;  %v1025_v40 = vld [vmem:[#allocation8 + $0x1b0] sm:$0xff]  ;;  %v1008_v41 = vld [vmem:[#allocation8 + $0x128] sm:$0xff] }
  0x80   : > { %1155 = vmatpush.msra.mxu2 %v1012_v25  ;;  %1131 = vmatpush.msra.mxu1 %v997_v26  ;;  %v993_v42 = vld [vmem:[#allocation8 + $0xb0] sm:$0xff]  ;;  %v975_v43 = vld [vmem:[#allocation8 + $0x20] sm:$0xff]  ;;  %v1024_v44 = vld [vmem:[#allocation8 + $0x1a8] sm:$0xff] }
  0x81   : > { %1110 = vmatpush.msra.mxu0 %v979_v27  ;;  %1178 = vmatpush.msra.mxu3 %v1028_v28  ;;  %v1007_v45 = vld [vmem:[#allocation8 + $0x120] sm:$0xff]  ;;  %v992_v46 = vld [vmem:[#allocation8 + $0xa8] sm:$0xff]  ;;  %v974_v47 = vld [vmem:[#allocation8 + $0x18] sm:$0xff] }
  0x82   : > { %1156 = vmatpush.msra.mxu2 %v1011_v29  ;;  %1132 = vmatpush.msra.mxu1 %v996_v30  ;;  %v1023_v48 = vld [vmem:[#allocation8 + $0x1a0] sm:$0xff]  ;;  %v1006_v49 = vld [vmem:[#allocation8 + $0x118] sm:$0xff]  ;;  %v973_v51 = vld [vmem:[#allocation8 + $0x10] sm:$0xff] }
  0x83   : > { %1111 = vmatpush.msra.mxu0 %v978_v31  ;;  %1179 = vmatpush.msra.mxu3 %v1027_v32  ;;  %v991_v50 = vld [vmem:[#allocation8 + $0xa0] sm:$0xff]  ;;  %v1022_v52 = vld [vmem:[#allocation8 + $0x198] sm:$0xff]  ;;  %v1005_v53 = vld [vmem:[#allocation8 + $0x110] sm:$0xff] }
  0x84   : > { %1157 = vmatpush.msra.mxu2 %v1010_v33  ;;  %1133 = vmatpush.msra.mxu1 %v995_v34  ;;  %v990_v54 = vld [vmem:[#allocation8 + $0x98] sm:$0xff]  ;;  %v972_v55 = vld [vmem:[#allocation8 + $0x8] sm:$0xff]  ;;  %v1021_v56 = vld [vmem:[#allocation8 + $0x190] sm:$0xff] }
  0x85   : > { %1112 = vmatpush.msra.mxu0 %v977_v35  ;;  %1180 = vmatpush.msra.mxu3 %v1026_v36  ;;  %v1004_v57 = vld [vmem:[#allocation8 + $0x108] sm:$0xff]  ;;  %v989_v58 = vld [vmem:[#allocation8 + $0x90] sm:$0xff]  ;;  %v971_v59 = vld [vmem:[#allocation8] sm:$0xff] }
  0x86   : > { %1158 = vmatpush.msra.mxu2 %v1009_v37  ;;  %1134 = vmatpush.msra.mxu1 %v994_v38  ;;  %v1020_v60 = vld [vmem:[#allocation8 + $0x188] sm:$0xff]  ;;  %v1050_v61 = vld [vmem:[#allocation8 + $0x278] sm:$0xff]  ;;  %v1003_v62 = vld [vmem:[#allocation8 + $0x100] sm:$0xff] }
  0x87   : > { %1113 = vmatpush.msra.mxu0 %v976_v39  ;;  %1181 = vmatpush.msra.mxu3 %v1025_v40  ;;  %v1082_v63 = vld [vmem:[#allocation8 + $0x378] sm:$0xff]  ;;  %v988_v0 = vld [vmem:[#allocation8 + $0x88] sm:$0xff]  ;;  %v1049_v1 = vld [vmem:[#allocation8 + $0x270] sm:$0xff] }
  0x88   : > { %1159 = vmatpush.msra.mxu2 %v1008_v41  ;;  %1135 = vmatpush.msra.mxu1 %v993_v42  ;;  %v1019_v2 = vld [vmem:[#allocation8 + $0x180] sm:$0xff]  ;;  %v1081_v3 = vld [vmem:[#allocation8 + $0x370] sm:$0xff]  ;;  %v1098_v4 = vld [vmem:[#allocation8 + $0x3f8] sm:$0xff] }
  0x89   : > { %1114 = vmatpush.msra.mxu0 %v975_v43  ;;  %1182 = vmatpush.msra.mxu3 %v1024_v44  ;;  %v1048_v5 = vld [vmem:[#allocation8 + $0x268] sm:$0xff]  ;;  %v987_v6 = vld [vmem:[#allocation8 + $0x80] sm:$0xff]  ;;  %v1066_v7 = vld [vmem:[#allocation8 + $0x2f8] sm:$0xff] }
  0x8a   : > { %1160 = vmatpush.msra.mxu2 %v1007_v45  ;;  %1136 = vmatpush.msra.mxu1 %v992_v46  ;;  %v1080_v8 = vld [vmem:[#allocation8 + $0x368] sm:$0xff]  ;;  %v1047_v9 = vld [vmem:[#allocation8 + $0x260] sm:$0xff]  ;;  %v1097_v10 = vld [vmem:[#allocation8 + $0x3f0] sm:$0xff] }
  0x8b   : > { %1115 = vmatpush.msra.mxu0 %v974_v47  ;;  %1183 = vmatpush.msra.mxu3 %v1023_v48  ;;  %v1065_v11 = vld [vmem:[#allocation8 + $0x2f0] sm:$0xff]  ;;  %v1079_v12 = vld [vmem:[#allocation8 + $0x360] sm:$0xff]  ;;  %v1046_v13 = vld [vmem:[#allocation8 + $0x258] sm:$0xff] }
  0x8c   : > { %1161 = vmatpush.msra.mxu2 %v1006_v49  ;;  %1137 = vmatpush.msra.mxu1 %v991_v50  ;;  %v1096_v14 = vld [vmem:[#allocation8 + $0x3e8] sm:$0xff]  ;;  %v1078_v16 = vld [vmem:[#allocation8 + $0x358] sm:$0xff]  ;;  %v1045_v17 = vld [vmem:[#allocation8 + $0x250] sm:$0xff] }
  0x8d   : > { %1116 = vmatpush.msra.mxu0 %v973_v51  ;;  %1184 = vmatpush.msra.mxu3 %v1022_v52  ;;  %v1064_v15 = vld [vmem:[#allocation8 + $0x2e8] sm:$0xff]  ;;  %v1095_v18 = vld [vmem:[#allocation8 + $0x3e0] sm:$0xff]  ;;  %v1077_v20 = vld [vmem:[#allocation8 + $0x350] sm:$0xff] }
  0x8e   : > { %1162 = vmatpush.msra.mxu2 %v1005_v53  ;;  %1138 = vmatpush.msra.mxu1 %v990_v54  ;;  %v1063_v19 = vld [vmem:[#allocation8 + $0x2e0] sm:$0xff]  ;;  %v1044_v21 = vld [vmem:[#allocation8 + $0x248] sm:$0xff]  ;;  %v1094_v22 = vld [vmem:[#allocation8 + $0x3d8] sm:$0xff] }
  0x8f   : > { %1117 = vmatpush.msra.mxu0 %v972_v55  ;;  %1185 = vmatpush.msra.mxu3 %v1021_v56  ;;  %v1062_v23 = vld [vmem:[#allocation8 + $0x2d8] sm:$0xff]  ;;  %v1076_v24 = vld [vmem:[#allocation8 + $0x348] sm:$0xff]  ;;  %v1043_v25 = vld [vmem:[#allocation8 + $0x240] sm:$0xff] }
  0x90   : > { %1163 = vmatpush.msra.mxu2 %v1004_v57  ;;  %1139 = vmatpush.msra.mxu1 %v989_v58  ;;  %v1093_v26 = vld [vmem:[#allocation8 + $0x3d0] sm:$0xff]  ;;  %v1075_v28 = vld [vmem:[#allocation8 + $0x340] sm:$0xff]  ;;  %v1042_v29 = vld [vmem:[#allocation8 + $0x238] sm:$0xff] }
  0x91   : > { %1118 = vmatpush.msra.mxu0 %v971_v59  ;;  %1186 = vmatpush.msra.mxu3 %v1020_v60  ;;  %v1061_v27 = vld [vmem:[#allocation8 + $0x2d0] sm:$0xff]  ;;  %v1092_v30 = vld [vmem:[#allocation8 + $0x3c8] sm:$0xff]  ;;  %v1074_v34 = vld [vmem:[#allocation8 + $0x338] sm:$0xff] }
  0x92   : > { %1164 = vmatpush.msra.mxu2 %v1003_v62  ;;  %1140 = vmatpush.msra.mxu1 %v988_v0  ;;  %v955_v31 = vld [vmem:[%s7341_s11 + $0x10] sm:$0xff]  ;;  %v1060_v32 = vld [vmem:[#allocation8 + $0x2c8] sm:$0xff]  ;;  %v953_v37 = vld [vmem:[%s7341_s11] sm:$0xff] }
  0x93   : > { %1195 = vmatpush.msrb.mxu0 %v1050_v61  ;;  %1187 = vmatpush.msra.mxu3 %v1019_v2  ;;  %v1041_v33 = vld [vmem:[#allocation8 + $0x230] sm:$0xff]  ;;  %v1040_v35 = vld [vmem:[#allocation8 + $0x228] sm:$0xff]  ;;  %v1091_v36 = vld [vmem:[#allocation8 + $0x3c0] sm:$0xff] }
  0x94   : > { %1241 = vmatpush.msrb.mxu2 %v1082_v63  ;;  %1141 = vmatpush.msra.mxu1 %v987_v6  ;;  %v956_v38 = vld [vmem:[%s7341_s11 + $0x18] sm:$0xff]  ;;  %v1039_v39 = vld [vmem:[#allocation8 + $0x220] sm:$0xff]  ;;  %v1073_v41 = vld [vmem:[#allocation8 + $0x330] sm:$0xff] }
  0x95   : > { %1196 = vmatpush.msrb.mxu0 %v1049_v1  ;;  %1264 = vmatpush.msrb.mxu3 %v1098_v4  ;;  %v1059_v40 = vld [vmem:[#allocation8 + $0x2c0] sm:$0xff]  ;;  %v1090_v42 = vld [vmem:[#allocation8 + $0x3b8] sm:$0xff]  ;;  %v1072_v46 = vld [vmem:[#allocation8 + $0x328] sm:$0xff] }
  0x96   : > { %1242 = vmatpush.msrb.mxu2 %v1081_v3  ;;  %1218 = vmatpush.msrb.mxu1 %v1066_v7  ;;  %v954_v43 = vld [vmem:[%s7341_s11 + $0x8] sm:$0xff]  ;;  %v1089_v47 = vld [vmem:[#allocation8 + $0x3b0] sm:$0xff]  ;;  %v1071_v50 = vld [vmem:[#allocation8 + $0x320] sm:$0xff] }
  0x97   : > { %1197 = vmatpush.msrb.mxu0 %v1048_v5  ;;  %1265 = vmatpush.msrb.mxu3 %v1097_v10  ;;  %v1038_v44 = vld [vmem:[#allocation8 + $0x218] sm:$0xff]  ;;  %v1037_v48 = vld [vmem:[#allocation8 + $0x210] sm:$0xff]  ;;  %v1088_v51 = vld [vmem:[#allocation8 + $0x3a8] sm:$0xff] }
  0x98   : > { %1243 = vmatpush.msrb.mxu2 %v1080_v8  ;;  %1219 = vmatpush.msrb.mxu1 %v1065_v11  ;;  %v1058_v45 = vld [vmem:[#allocation8 + $0x2b8] sm:$0xff]  ;;  %v1057_v49 = vld [vmem:[#allocation8 + $0x2b0] sm:$0xff]  ;;  %v1036_v53 = vld [vmem:[#allocation8 + $0x208] sm:$0xff] }
  0x99   : > { %1198 = vmatpush.msrb.mxu0 %v1047_v9  ;;  %1266 = vmatpush.msrb.mxu3 %v1096_v14  ;;  %v964_v52 = vld [vmem:[%s7341_s11 + $0x58] sm:$0xff]  ;;  %v1087_v56 = vld [vmem:[#allocation8 + $0x3a0] sm:$0xff]  ;;  %v962_v57 = vld [vmem:[%s7341_s11 + $0x48] sm:$0xff] }
  0x9a   : > { %1244 = vmatpush.msrb.mxu2 %v1079_v12  ;;  %1220 = vmatpush.msrb.mxu1 %v1064_v15  ;;  %v1056_v54 = vld [vmem:[#allocation8 + $0x2a8] sm:$0xff]  ;;  %v1070_v55 = vld [vmem:[#allocation8 + $0x318] sm:$0xff]  ;;  %v965_v58 = vld [vmem:[%s7341_s11 + $0x60] sm:$0xff] }
  0x9b   : > { %1199 = vmatpush.msrb.mxu0 %v1046_v13  ;;  %1267 = vmatpush.msrb.mxu3 %v1095_v18  ;;  %v1035_v59 = vld [vmem:[#allocation8 + $0x200] sm:$0xff]  ;;  %v1069_v61 = vld [vmem:[#allocation8 + $0x310] sm:$0xff]  ;;  %v1086_v62 = vld [vmem:[#allocation8 + $0x398] sm:$0xff] }
  0x9c   : > { %1245 = vmatpush.msrb.mxu2 %v1078_v16  ;;  %1221 = vmatpush.msrb.mxu1 %v1063_v19  ;;  %v1055_v60 = vld [vmem:[#allocation8 + $0x2a0] sm:$0xff]  ;;  %v1302_v63 = vld [vmem:[#allocation10 + $0x78] sm:$0xff]  ;;  %v1068_v2 = vld [vmem:[#allocation8 + $0x308] sm:$0xff] }
  0x9d   : > { %1200 = vmatpush.msrb.mxu0 %v1045_v17  ;;  %1268 = vmatpush.msrb.mxu3 %v1094_v22  ;;  %v963_v0 = vld [vmem:[%s7341_s11 + $0x50] sm:$0xff]  ;;  %v1054_v1 = vld [vmem:[#allocation8 + $0x298] sm:$0xff]  ;;  %v1084_v7 = vld [vmem:[#allocation8 + $0x388] sm:$0xff] }
  0x9e   : > { %1246 = vmatpush.msrb.mxu2 %v1077_v20  ;;  %1222 = vmatpush.msrb.mxu1 %v1062_v23  ;;  %v1085_v3 = vld [vmem:[#allocation8 + $0x390] sm:$0xff]  ;;  %v1067_v6 = vld [vmem:[#allocation8 + $0x300] sm:$0xff]  ;;  %v1300_v8 = vld [vmem:[#allocation10 + $0x68] sm:$0xff] }
  0x9f   : > { %1201 = vmatpush.msrb.mxu0 %v1044_v21  ;;  %1269 = vmatpush.msrb.mxu3 %v1093_v26  ;;  %v1301_v4 = vld [vmem:[#allocation10 + $0x70] sm:$0xff]  ;;  %v1052_v10 = vld [vmem:[#allocation8 + $0x288] sm:$0xff]  ;;  %v1083_v11 = vld [vmem:[#allocation8 + $0x380] sm:$0xff] }
  0xa0   : > { %1247 = vmatpush.msrb.mxu2 %v1076_v24  ;;  %1223 = vmatpush.msrb.mxu1 %v1061_v27  ;;  %v1053_v5 = vld [vmem:[#allocation8 + $0x290] sm:$0xff]  ;;  %v1299_v12 = vld [vmem:[#allocation10 + $0x60] sm:$0xff]  ;;  %v960_v14 = vld [vmem:[%s7341_s11 + $0x38] sm:$0xff] }
  0xa1   : > { %1202 = vmatpush.msrb.mxu0 %v1043_v25  ;;  %1270 = vmatpush.msrb.mxu3 %v1092_v30  ;;  %v959_v9 = vld [vmem:[%s7341_s11 + $0x30] sm:$0xff]  ;;  %v957_v13 = vld [vmem:[%s7341_s11 + $0x20] sm:$0xff]  ;;  %v1298_v16 = vld [vmem:[#allocation10 + $0x58] sm:$0xff] }
  0xa2   : > { %1248 = vmatpush.msrb.mxu2 %v1075_v28  ;;  %1224 = vmatpush.msrb.mxu1 %v1060_v32  ;;  %v1051_v15 = vld [vmem:[#allocation8 + $0x280] sm:$0xff]  ;;  %v958_v17 = vld [vmem:[%s7341_s11 + $0x28] sm:$0xff]  ;;  %v1297_v18 = vld [vmem:[#allocation10 + $0x50] sm:$0xff] }
  0xa3   : > { %1203 = vmatpush.msrb.mxu0 %v1042_v29  ;;  %1165 = vmatmul.f32.vlgmr.msra.gmra.mxu2 %v955_v31  ;;  %v1364_v19 = vld [vmem:[%s10156_s23 + $0xf0] sm:$0xff]  ;;  %v1365_v20 = vld [vmem:[%s10156_s23 + $0xf8] sm:$0xff]  ;;  %v1363_v21 = vld [vmem:[%s10156_s23 + $0xe8] sm:$0xff] }
  0xa4   : > { %1249 = vmatpush.msrb.mxu2 %v1074_v34  ;;  %1271 = vmatpush.msrb.mxu3 %v1091_v36  ;;  %v1296_v22 = vld [vmem:[#allocation10 + $0x48] sm:$0xff]  ;;  %v1362_v23 = vld [vmem:[%s10156_s23 + $0xe0] sm:$0xff]  ;;  %v1361_v25 = vld [vmem:[%s10156_s23 + $0xd8] sm:$0xff] }
  0xa5   : > { %1204 = vmatpush.msrb.mxu0 %v1041_v33  ;;  %1188 = vmatmul.f32.vlgmr.msra.gmra.mxu3 %v956_v38  ;;  %v968_v24 = vld [vmem:[%s7341_s11 + $0x78] sm:$0xff]  ;;  %v1295_v26 = vld [vmem:[#allocation10 + $0x40] sm:$0xff]  ;;  %v966_v28 = vld [vmem:[%s7341_s11 + $0x68] sm:$0xff] }
  0xa6   : > { %1119 = vmatmul.f32.vlgmr.msra.gmra.mxu0 %v953_v37  ;;  %1225 = vmatpush.msrb.mxu1 %v1059_v40  ;;  %v1360_v27 = vld [vmem:[%s10156_s23 + $0xd0] sm:$0xff]  ;;  %v1294_v30 = vld [vmem:[#allocation10 + $0x38] sm:$0xff]  ;;  %v1291_v34 = vld [vmem:[#allocation10 + $0x20] sm:$0xff] }
  0xa7   : > { %1205 = vmatpush.msrb.mxu0 %v1040_v35  ;;  %1250 = vmatpush.msrb.mxu2 %v1073_v41  ;;  %v969_v29 = vld [vmem:[%s7341_s11 + $0x80] sm:$0xff]  ;;  %v967_v31 = vld [vmem:[%s7341_s11 + $0x70] sm:$0xff]  ;;  %v1292_v33 = vld [vmem:[#allocation10 + $0x28] sm:$0xff] }
  0xa8   : > { %1272 = vmatpush.msrb.mxu3 %v1090_v42  ;;  %1142 = vmatmul.f32.vlgmr.msra.gmra.mxu1 %v954_v43  ;;  %v1293_v32 = vld [vmem:[#allocation10 + $0x30] sm:$0xff]  ;;  %v1290_v35 = vld [vmem:[#allocation10 + $0x18] sm:$0xff]  ;;  %v1288_v37 = vld [vmem:[#allocation10 + $0x8] sm:$0xff] }
  0xa9   : > { %1206 = vmatpush.msrb.mxu0 %v1039_v39  ;;  %1251 = vmatpush.msrb.mxu2 %v1072_v46  ;;  %v1289_v36 = vld [vmem:[#allocation10 + $0x10] sm:$0xff]  ;;  %v1287_v38 = vld [vmem:[#allocation10] sm:$0xff]  ;;  %v970_v40 = vld [vmem:[%s7341_s11 + $0x88] sm:$0xff] }
  0xaa   : > { %1226 = vmatpush.msrb.mxu1 %v1058_v45  ;;  %1273 = vmatpush.msrb.mxu3 %v1089_v47  ;;  %v961_v39 = vld [vmem:[%s7341_s11 + $0x40] sm:$0xff]  ;;  %s7577_s11 = scalar_lea.vmem [#allocation19], %s5333_s9  ;;  %s10259_s9 = sld [smem:[#allocation129_spill]] }
  0xab   : > { %1207 = vmatpush.msrb.mxu0 %v1038_v44  ;;  %1252 = vmatpush.msrb.mxu2 %v1071_v50  ;;  %v1358_v41 = vld [vmem:[%s10156_s23 + $0xc0] sm:$0xff]  ;;  %v1359_v42 = vld [vmem:[%s10156_s23 + $0xc8] sm:$0xff]  ;;  %v1356_v43 = vld [vmem:[%s10156_s23 + $0xb0] sm:$0xff] }
  0xac   : > { %1227 = vmatpush.msrb.mxu1 %v1057_v49  ;;  %1274 = vmatpush.msrb.mxu3 %v1088_v51  ;;  %v1357_v44 = vld [vmem:[%s10156_s23 + $0xb8] sm:$0xff]  ;;  %v1354_v45 = vld [vmem:[%s10156_s23 + $0xa0] sm:$0xff]  ;;  %v1355_v46 = vld [vmem:[%s10156_s23 + $0xa8] sm:$0xff] }
  0xad   : > { %1208 = vmatpush.msrb.mxu0 %v1037_v48  ;;  %1168 = vmatmul.f32.gmra.mxu2 %v964_v52  ;;  %v1352_v47 = vld [vmem:[%s10156_s23 + $0x90] sm:$0xff]  ;;  %v1353_v48 = vld [vmem:[%s10156_s23 + $0x98] sm:$0xff]  ;;  %v1350_v49 = vld [vmem:[%s10156_s23 + $0x80] sm:$0xff] }
  0xae   : > { %1228 = vmatpush.msrb.mxu1 %v1056_v54  ;;  %1253 = vmatpush.msrb.mxu2 %v1070_v55  ;;  %v1351_v50 = vld [vmem:[%s10156_s23 + $0x88] sm:$0xff]  ;;  %v1348_v51 = vld [vmem:[%s10156_s23 + $0x70] sm:$0xff]  ;;  %v1349_v52 = vld [vmem:[%s10156_s23 + $0x78] sm:$0xff] }
  0xaf   : > { %1209 = vmatpush.msrb.mxu0 %v1036_v53  ;;  %1275 = vmatpush.msrb.mxu3 %v1087_v56  ;;  %v1346_v53 = vld [vmem:[%s10156_s23 + $0x60] sm:$0xff]  ;;  %v1396_v54 = vld [vmem:[%s10156_s23 + $0x1f0] sm:$0xff]  ;;  %v1347_v55 = vld [vmem:[%s10156_s23 + $0x68] sm:$0xff] }
  0xb0   : > { %1122 = vmatmul.f32.gmra.mxu0 %v962_v57  ;;  %1191 = vmatmul.f32.gmra.mxu3 %v965_v58  ;;  %v1397_v56 = vld [vmem:[%s10156_s23 + $0x1f8] sm:$0xff]  ;;  %v1344_v57 = vld [vmem:[%s10156_s23 + $0x50] sm:$0xff]  ;;  %v1394_v58 = vld [vmem:[%s10156_s23 + $0x1e0] sm:$0xff] }
  0xb1   : > { %1210 = vmatpush.msrb.mxu0 %v1035_v59  ;;  %1229 = vmatpush.msrb.mxu1 %v1055_v60  ;;  %v1345_v59 = vld [vmem:[%s10156_s23 + $0x58] sm:$0xff]  ;;  %v1395_v60 = vld [vmem:[%s10156_s23 + $0x1e8] sm:$0xff] }
  0xb2   : > { %1254 = vmatpush.msrb.mxu2 %v1069_v61  ;;  %1276 = vmatpush.msrb.mxu3 %v1086_v62  ;;  %v1342_v61 = vld [vmem:[%s10156_s23 + $0x40] sm:$0xff]  ;;  %v1392_v62 = vld [vmem:[%s10156_s23 + $0x1d0] sm:$0xff] }
  0xb3   : > { %1307 = vmatpush.msra.mxu0 %v1302_v63  ;;  %1145 = vmatmul.f32.gmra.mxu1 %v963_v0  ;;  %v1343_v63 = vld [vmem:[%s10156_s23 + $0x48] sm:$0xff]  ;;  %v1393_v0 = vld [vmem:[%s10156_s23 + $0x1d8] sm:$0xff] }
  0xb4   : > { %1230 = vmatpush.msrb.mxu1 %v1054_v1  ;;  %1255 = vmatpush.msrb.mxu2 %v1068_v2  ;;  %v1340_v1 = vld [vmem:[%s10156_s23 + $0x30] sm:$0xff]  ;;  %v1390_v2 = vld [vmem:[%s10156_s23 + $0x1c0] sm:$0xff] }
  0xb5   : > { %1277 = vmatpush.msrb.mxu3 %v1085_v3  ;;  %1308 = vmatpush.msra.mxu0 %v1301_v4  ;;  %v1341_v3 = vld [vmem:[%s10156_s23 + $0x38] sm:$0xff]  ;;  %v1391_v4 = vld [vmem:[%s10156_s23 + $0x1c8] sm:$0xff] }
  0xb6   : > { %1231 = vmatpush.msrb.mxu1 %v1053_v5  ;;  %1256 = vmatpush.msrb.mxu2 %v1067_v6  ;;  %v1338_v5 = vld [vmem:[%s10156_s23 + $0x20] sm:$0xff]  ;;  %v1388_v6 = vld [vmem:[%s10156_s23 + $0x1b0] sm:$0xff] }
  0xb7   : > { %1278 = vmatpush.msrb.mxu3 %v1084_v7  ;;  %1309 = vmatpush.msra.mxu0 %v1300_v8  ;;  %v1339_v7 = vld [vmem:[%s10156_s23 + $0x28] sm:$0xff]  ;;  %v1389_v8 = vld [vmem:[%s10156_s23 + $0x1b8] sm:$0xff] }
  0xb8   : > { %1257 = vmatmul.f32.vlgmr.msrb.gmra.mxu2 %v959_v9  ;;  %1232 = vmatpush.msrb.mxu1 %v1052_v10  ;;  %v1336_v9 = vld [vmem:[%s10156_s23 + $0x10] sm:$0xff]  ;;  %v1386_v10 = vld [vmem:[%s10156_s23 + $0x1a0] sm:$0xff] }
  0xb9   : > { %1279 = vmatpush.msrb.mxu3 %v1083_v11  ;;  %1310 = vmatpush.msra.mxu0 %v1299_v12  ;;  %v1337_v11 = vld [vmem:[%s10156_s23 + $0x18] sm:$0xff]  ;;  %v1387_v12 = vld [vmem:[%s10156_s23 + $0x1a8] sm:$0xff] }
  0xba   : > { %1211 = vmatmul.f32.vlgmr.msrb.gmra.mxu0 %v957_v13  ;;  %1280 = vmatmul.f32.vlgmr.msrb.gmra.mxu3 %v960_v14  ;;  %v1334_v13 = vld [vmem:[%s10156_s23] sm:$0xff]  ;;  %v1384_v14 = vld [vmem:[%s10156_s23 + $0x190] sm:$0xff] }
  0xbb   : > { %1233 = vmatpush.msrb.mxu1 %v1051_v15  ;;  %1311 = vmatpush.msra.mxu0 %v1298_v16  ;;  %v1335_v15 = vld [vmem:[%s10156_s23 + $0x8] sm:$0xff]  ;;  %v1385_v16 = vld [vmem:[%s10156_s23 + $0x198] sm:$0xff] }
  0xbc   : > { %1234 = vmatmul.f32.vlgmr.msrb.gmra.mxu1 %v958_v17  ;;  %1450 = vmatpush.msra.mxu3 %v1365_v20  ;;  %v1382_v17 = vld [vmem:[%s10156_s23 + $0x180] sm:$0xff]  ;;  %v1381_v20 = vld [vmem:[%s10156_s23 + $0x178] sm:$0xff] }
  0xbd   : > { %1312 = vmatpush.msra.mxu0 %v1297_v18  ;;  %1404 = vmatpush.msra.mxu1 %v1364_v19  ;;  %v1383_v18 = vld [vmem:[%s10156_s23 + $0x188] sm:$0xff]  ;;  %v1380_v19 = vld [vmem:[%s10156_s23 + $0x170] sm:$0xff] }
  0xbe   : > { %1451 = vmatpush.msra.mxu3 %v1363_v21  ;;  %1427 = vmatpush.msra.mxu2 %v1396_v54 }
  0xbf   : > { %1313 = vmatpush.msra.mxu0 %v1296_v22  ;;  %1405 = vmatpush.msra.mxu1 %v1362_v23  ;;  %v6509_v22 = vld [vmem:[%s10157_s3] ss:$0 sm:$0xff]  ;;  %s7043_s3 = smov 96  }
  0xc0   : > { %1260 = vmatmul.f32.gmra.mxu2 %v968_v24  ;;  %1452 = vmatpush.msra.mxu3 %v1361_v25  ;;  %v1378_v23 = vld [vmem:[%s10156_s23 + $0x160] sm:$0xff]  ;;  %v1379_v24 = vld [vmem:[%s10156_s23 + $0x168] sm:$0xff] }
  0xc1   : > { %1314 = vmatpush.msra.mxu0 %v1295_v26  ;;  %1406 = vmatpush.msra.mxu1 %v1360_v27  ;;  %v1376_v26 = vld [vmem:[%s10156_s23 + $0x150] sm:$0xff]  ;;  %v1377_v27 = vld [vmem:[%s10156_s23 + $0x158] sm:$0xff] }
  0xc2   : > { %1214 = vmatmul.f32.gmra.mxu0 %v966_v28  ;;  %1283 = vmatmul.f32.gmra.mxu3 %v969_v29 }
  0xc3   : > { %1315 = vmatpush.msra.mxu0 %v1294_v30  ;;  %1407 = vmatpush.msra.mxu1 %v1358_v41  ;;  %v1374_v30 = vld [vmem:[%s10156_s23 + $0x140] sm:$0xff] }
  0xc4   : > { %1237 = vmatmul.f32.gmra.mxu1 %v967_v31  ;;  %1453 = vmatpush.msra.mxu3 %v1359_v42  ;;  %v1375_v31 = vld [vmem:[%s10156_s23 + $0x148] sm:$0xff] }
  0xc5   : > { %1316 = vmatpush.msra.mxu0 %v1293_v32  ;;  %1408 = vmatpush.msra.mxu1 %v1356_v43  ;;  %v1372_v32 = vld [vmem:[%s10156_s23 + $0x130] sm:$0xff] }
  0xc6   : > { %1454 = vmatpush.msra.mxu3 %v1357_v44  ;;  %1428 = vmatpush.msra.mxu2 %v1394_v58  ;;  %v1366_v44 = vld [vmem:[%s10156_s23 + $0x100] sm:$0xff] }
  0xc7   : > { %1317 = vmatpush.msra.mxu0 %v1292_v33  ;;  %1409 = vmatpush.msra.mxu1 %v1354_v45  ;;  %v1367_v45 = vld [vmem:[%s10156_s23 + $0x108] sm:$0xff] }
  0xc8   : > { %1455 = vmatpush.msra.mxu3 %v1355_v46  ;;  %1429 = vmatpush.msra.mxu2 %v1392_v62 }
  0xc9   : > { %1318 = vmatpush.msra.mxu0 %v1291_v34  ;;  %1410 = vmatpush.msra.mxu1 %v1352_v47  ;;  %v1373_v34 = vld [vmem:[%s10156_s23 + $0x138] sm:$0xff] }
  0xca   : > { %1456 = vmatpush.msra.mxu3 %v1353_v48  ;;  %1430 = vmatpush.msra.mxu2 %v1390_v2 }
  0xcb   : > { %1319 = vmatpush.msra.mxu0 %v1290_v35  ;;  %1411 = vmatpush.msra.mxu1 %v1350_v49  ;;  %v1370_v35 = vld [vmem:[%s10156_s23 + $0x120] sm:$0xff] }
  0xcc   : > { %1457 = vmatpush.msra.mxu3 %v1351_v50  ;;  %1431 = vmatpush.msra.mxu2 %v1388_v6 }
  0xcd   : > { %1320 = vmatpush.msra.mxu0 %v1289_v36  ;;  %1412 = vmatpush.msra.mxu1 %v1348_v51  ;;  %v1371_v36 = vld [vmem:[%s10156_s23 + $0x128] sm:$0xff] }
  0xce   : > { %1458 = vmatpush.msra.mxu3 %v1349_v52  ;;  %1432 = vmatpush.msra.mxu2 %v1386_v10  ;;  %v1398_v10 = vld [vmem:[%s10159_s5] sm:$0x3] }
  0xcf   : > { %1321 = vmatpush.msra.mxu0 %v1288_v37  ;;  %1413 = vmatpush.msra.mxu1 %v1346_v53 }
  0xd0   : > { %1459 = vmatpush.msra.mxu3 %v1347_v55  ;;  %1433 = vmatpush.msra.mxu2 %v1384_v14 }
  0xd1   : > { %1322 = vmatpush.msra.mxu0 %v1287_v38  ;;  %1414 = vmatpush.msra.mxu1 %v1344_v57 }
  0xd2   : > { %1323 = vmatmul.f32.vlgmr.msra.gmra.mxu0 %v961_v39  ;;  %1460 = vmatpush.msra.mxu3 %v1345_v59  ;;  %v1368_v39 = vld [vmem:[%s10156_s23 + $0x110] sm:$0xff] }
  0xd3   : > { %1473 = vmatpush.msrb.mxu0 %v1397_v56  ;;  %1415 = vmatpush.msra.mxu1 %v1342_v61 }
  0xd4   : > { %1461 = vmatpush.msra.mxu3 %v1343_v63  ;;  %1434 = vmatpush.msra.mxu2 %v1382_v17 }
  0xd5   : > { %1474 = vmatpush.msrb.mxu0 %v1395_v60  ;;  %1416 = vmatpush.msra.mxu1 %v1340_v1 }
  0xd6   : > { %1462 = vmatpush.msra.mxu3 %v1341_v3  ;;  %1435 = vmatpush.msra.mxu2 %v1380_v19 }
  0xd7   : > { %1475 = vmatpush.msrb.mxu0 %v1393_v0  ;;  %1417 = vmatpush.msra.mxu1 %v1338_v5 }
  0xd8   : > { %1463 = vmatpush.msra.mxu3 %v1339_v7  ;;  %1436 = vmatpush.msra.mxu2 %v1378_v23 }
  0xd9   : > { %1476 = vmatpush.msrb.mxu0 %v1391_v4  ;;  %1418 = vmatpush.msra.mxu1 %v1336_v9  ;;  %v6510_v4 = vld [vmem:[%s10158_s0] ss:$0 sm:$0xff]  ;;  %v7041_v9 = vmov 0.0   ;;  %s7044_s0 = smov 64  }
  0xda   : > { %1326 = vmatmul.f32.gmra.mxu0 %v970_v40  ;;  %1464 = vmatpush.msra.mxu3 %v1337_v11  ;;  %v1369_v40 = vld [vmem:[%s10156_s23 + $0x118] sm:$0xff]  ;;  %2354 = vst [vmem:[#allocation2] sm:$0xff] %v7041_v9 }
  0xdb   : > { %1477 = vmatpush.msrb.mxu0 %v1389_v8  ;;  %1419 = vmatpush.msra.mxu1 %v1334_v13  ;;  %2357 = vst [vmem:[#allocation2 + $0x18] sm:$0xff] %v7041_v9 }
  0xdc   : > { %1465 = vmatpush.msra.mxu3 %v1335_v15  ;;  %1437 = vmatpush.msra.mxu2 %v1376_v26  ;;  %2360 = vst [vmem:[#allocation3 + $0x30] sm:$0xff] %v7041_v9 }
  0xdd   : > { %1478 = vmatpush.msrb.mxu0 %v1387_v12  ;;  %2361 = vst [vmem:[#allocation3] sm:$0xff] %v7041_v9  ;;  %v1401_v12 = vperm.slane %v1398_v10, 1 }
  0xde   : > { %1438 = vmatpush.msra.mxu2 %v1374_v30  ;;  %2362 = vst [vmem:[#allocation3 + $0x58] sm:$0xff] %v7041_v9 }
  0xdf   : > { %1479 = vmatpush.msrb.mxu0 %v1385_v16  ;;  %2363 = vst [vmem:[#allocation3 + $0x18] sm:$0xff] %v7041_v9  ;;  %v1400_v16 = vperm.slane %v1398_v10, 0  ;;  %v1575_v9 = vld [vmem:[#allocation11 + $0xa0] sm:$0xff]  ;;  %v1570_v10 = vld [vmem:[#allocation11 + $0x78] sm:$0xff] }
  0xe0   : > { %1439 = vmatpush.msra.mxu2 %v1372_v32  ;;  %v1600_v32 = vld [vmem:[#allocation11 + $0x168] sm:$0xff] }
  0xe1   : > { %1480 = vmatpush.msrb.mxu0 %v1383_v18  ;;  %1611 = vmatpush.msrb.mxu1 %v1600_v32 }
  0xe2   : > { %1440 = vmatpush.msra.mxu2 %v1370_v35  ;;  %v1597_v35 = vld [vmem:[#allocation11 + $0x150] sm:$0xff] }
  0xe3   : > { %1481 = vmatpush.msrb.mxu0 %v1381_v20  ;;  %1612 = vmatpush.msrb.mxu1 %v1597_v35 }
  0xe4   : > { %1441 = vmatpush.msra.mxu2 %v1368_v39 }
  0xe5   : > { %1482 = vmatpush.msrb.mxu0 %v1379_v24 }
  0xe6   : > { %1442 = vmatpush.msra.mxu2 %v1366_v44 }
  0xe7   : > { %1483 = vmatpush.msrb.mxu0 %v1377_v27 }
  0xe9   : > { %1484 = vmatpush.msrb.mxu0 %v1375_v31 }
  0xeb   : > { %1485 = vmatpush.msrb.mxu0 %v1373_v34  ;;  %v1602_v34 = vld [vmem:[#allocation11 + $0x178] sm:$0xff] }
  0xec   : > { %1657 = vmatpush.msrb.mxu3 %v1602_v34 }
  0xed   : > { %1486 = vmatpush.msrb.mxu0 %v1371_v36  ;;  %v1598_v36 = vld [vmem:[#allocation11 + $0x158] sm:$0xff] }
  0xef   : > { %1487 = vmatpush.msrb.mxu0 %v1369_v40 }
  0xf1   : > { %1488 = vmatpush.msrb.mxu0 %v1367_v45 }
 0x123   : > { %v1120_v21 = vpop.f32.mrf.mxu0 }
 0x124   : > { %v1121_v29 = vadd.f32 %v6509_v22, %v1120_v21 }
 0x125   : > { %v1143_v25 = vpop.f32.mrf.mxu1 }
 0x126   : > { %v1166_v28 = vpop.f32.mrf.mxu2  ;;  %v1144_v37 = vadd.f32 %v1143_v25, %v1121_v29  ;;  %v7042_v29 = vmov 128.0  }
 0x127   : > { %6525 = vrcp.f32 %v7042_v29  ;;  %v1556_v29 = vld [vmem:[#allocation11 + $0x8] sm:$0xff] }
 0x128   : > { %v1189_v33 = vpop.f32.mrf.mxu3  ;;  %v1167_v41 = vadd.f32 %v1166_v28, %v1144_v37  ;;  %v1599_v37 = vld [vmem:[#allocation11 + $0x160] sm:$0xff] }
 0x129   : > { %1658 = vmatpush.msrb.mxu3 %v1599_v37 }
 0x12a   : > { %v1190_v48 = vadd.f32 %v1189_v33, %v1167_v41  ;;  %v1601_v33 = vld [vmem:[#allocation11 + $0x170] sm:$0xff] }
 0x12b   : > { %1634 = vmatpush.msrb.mxu2 %v1601_v33 }
 0x12d   : > { %v1123_v38 = vpop.f32.mrf.mxu0  ;;  %v6526_v30 = vpop.eup %6525  ;;  %1635 = vmatpush.msrb.mxu2 %v1598_v36 }
 0x12e   : > { %v1124_v42 = vadd.f32 %v6509_v22, %v1123_v38  ;;  %v1503_v31 = vmul.f32 128.0, %v6526_v30  ;;  %vm1507_vm0 = vweird.f32 %v6526_v30 }
 0x130   : > { %v1146_v43 = vpop.f32.mrf.mxu1  ;;  %v1169_v46 = vpop.f32.mrf.mxu2  ;;  %v1504_v38 = vsub.f32 1.0, %v1503_v31 }
 0x131   : > { %v1147_v49 = vadd.f32 %v1146_v43, %v1124_v42 }
 0x132   : > { %v1505_v39 = vmul.f32 %v6526_v30, %v1504_v38 }
 0x133   : > { %v1192_v47 = vpop.f32.mrf.mxu3  ;;  %v1170_v51 = vadd.f32 %v1169_v46, %v1147_v49 }
 0x134   : > { %v1506_v40 = vadd.f32 %v6526_v30, %v1505_v39 }
 0x135   : > { %v1193_v56 = vadd.f32 %v1192_v47, %v1170_v51  ;;  %v1595_v51 = vld [vmem:[#allocation11 + $0x140] sm:$0xff] }
 0x136   : > { %v7600_v41 = vsel %vm1507_vm0, %v6526_v30, %v1506_v40  ;;  %1636 = vmatpush.msrb.mxu2 %v1595_v51  ;;  %v1557_v30 = vld [vmem:[#allocation11 + $0x10] sm:$0xff]  ;;  %vm3288_vm0 = vcmask 1045504  }
 0x137   : > { %v1212_v50 = vpop.f32.mrf.mxu0 }
 0x138   : > { %v1213_v52 = vadd.f32 %v1212_v50, %v1190_v48  ;;  %v1594_v50 = vld [vmem:[#allocation11 + $0x138] sm:$0xff] }
 0x139   : > { %v1235_v53 = vpop.f32.mrf.mxu1  ;;  %1613 = vmatpush.msrb.mxu1 %v1594_v50 }
 0x13a   : > { %v1236_v54 = vadd.f32 %v1235_v53, %v1213_v52  ;;  %v1596_v52 = vld [vmem:[#allocation11 + $0x148] sm:$0xff]  ;;  %v1591_v53 = vld [vmem:[#allocation11 + $0x120] sm:$0xff] }
 0x13b   : > { %v1258_v55 = vpop.f32.mrf.mxu2  ;;  %1659 = vmatpush.msrb.mxu3 %v1596_v52  ;;  %1614 = vmatpush.msrb.mxu1 %v1591_v53  ;;  %v6512_v52 = vld [vmem:[%s10161_s25] ss:$0 sm:$0xff]  ;;  %s7047_s25 = smov 126  }
 0x13c   : > { %v1259_v57 = vadd.f32 %v1258_v55, %v1236_v54  ;;  %v1592_v54 = vld [vmem:[#allocation11 + $0x128] sm:$0xff]  ;;  %v1593_v55 = vld [vmem:[#allocation11 + $0x130] sm:$0xff] }
 0x13d   : > { %v1281_v58 = vpop.f32.mrf.mxu3  ;;  %1637 = vmatpush.msrb.mxu2 %v1592_v54  ;;  %1660 = vmatpush.msrb.mxu3 %v1593_v55 }
 0x13e   : > { %v1282_v59 = vadd.f32 %v1281_v58, %v1259_v57  ;;  %v1589_v57 = vld [vmem:[#allocation11 + $0x110] sm:$0xff]  ;;  %v1590_v58 = vld [vmem:[#allocation11 + $0x118] sm:$0xff] }
 0x13f   : > { %v1215_v60 = vpop.f32.mrf.mxu0  ;;  %1638 = vmatpush.msrb.mxu2 %v1589_v57  ;;  %1661 = vmatpush.msrb.mxu3 %v1590_v58 }
 0x140   : > { %1330 = vst [vmem:[%s7577_s11] sm:$0xff] %v1282_v59  ;;  %v1216_v61 = vadd.f32 %v1215_v60, %v1193_v56  ;;  %1420 = vmatmul.f32.vlgmr.msra.gmra.mxu1 %v1282_v59  ;;  %1466 = vmatmul.f32.vlgmr.msra.gmra.mxu3 %v1282_v59  ;;  %v1588_v56 = vld [vmem:[#allocation11 + $0x108] sm:$0xff]  ;;  %v1585_v59 = vld [vmem:[#allocation11 + $0xf0] sm:$0xff]  ;;  %v1586_v60 = vld [vmem:[#allocation11 + $0xf8] sm:$0xff] }
 0x141   : > { %v1238_v62 = vpop.f32.mrf.mxu1  ;;  %1615 = vmatpush.msrb.mxu1 %v1588_v56  ;;  %1639 = vmatpush.msrb.mxu2 %v1586_v60 }
 0x142   : > { %v1239_v63 = vadd.f32 %v1238_v62, %v1216_v61  ;;  %v1587_v61 = vld [vmem:[#allocation11 + $0x100] sm:$0xff]  ;;  %v1582_v62 = vld [vmem:[#allocation11 + $0xd8] sm:$0xff] }
 0x143   : > { %v1261_v0 = vpop.f32.mrf.mxu2  ;;  %1616 = vmatpush.msrb.mxu1 %v1585_v59  ;;  %1662 = vmatpush.msrb.mxu3 %v1587_v61 }
 0x144   : > { %v1262_v1 = vadd.f32 %v1261_v0, %v1239_v63  ;;  %v1583_v63 = vld [vmem:[#allocation11 + $0xe0] sm:$0xff]  ;;  %v1584_v0 = vld [vmem:[#allocation11 + $0xe8] sm:$0xff] }
 0x145   : > { %v1284_v2 = vpop.f32.mrf.mxu3  ;;  %1617 = vmatpush.msrb.mxu1 %v1582_v62  ;;  %1640 = vmatpush.msrb.mxu2 %v1583_v63  ;;  %v1603_v63 = vld [vmem:[%s10162_s10] sm:$0x7] }
 0x146   : > { %v1285_v3 = vadd.f32 %v1284_v2, %v1262_v1  ;;  %1663 = vmatpush.msrb.mxu3 %v1584_v0  ;;  %v1579_v1 = vld [vmem:[#allocation11 + $0xc0] sm:$0xff]  ;;  %v1580_v2 = vld [vmem:[#allocation11 + $0xc8] sm:$0xff]  ;;  %v1607_v0 = vperm.slane %v1603_v63, 2 }
 0x147   : > { %1618 = vmatpush.msrb.mxu1 %v1579_v1  ;;  %1641 = vmatpush.msrb.mxu2 %v1580_v2  ;;  %v1606_v1 = vperm.slane %v1603_v63, 1 }
 0x148   : > { %1331 = vst [vmem:[%s7577_s11 + $0x8] sm:$0xff] %v1285_v3  ;;  %1423 = vmatmul.f32.gmra.mxu1 %v1285_v3  ;;  %1469 = vmatmul.f32.gmra.mxu3 %v1285_v3  ;;  %v1581_v3 = vld [vmem:[#allocation11 + $0xd0] sm:$0xff] }
 0x149   : > { %1664 = vmatpush.msrb.mxu3 %v1581_v3 }
 0x14f   : > { %v1324_v5 = vpop.f32.mrf.mxu0 }
 0x150   : > { %v1325_v6 = vadd.f32 %v6510_v4, %v1324_v5  ;;  %v1577_v5 = vld [vmem:[#allocation11 + $0xb0] sm:$0xff] }
 0x151   : > { %1642 = vmatpush.msrb.mxu2 %v1577_v5 }
 0x152   : > { %1332 = vst [vmem:[%s7584_s16] sm:$0xff] %v1325_v6  ;;  %1443 = vmatmul.f32.vlgmr.msra.gmra.mxu2 %v1325_v6  ;;  %1489 = vmatmul.f32.vlgmr.msrb.gmra.mxu0 %v1325_v6  ;;  %v1578_v6 = vld [vmem:[#allocation11 + $0xb8] sm:$0xff] }
 0x153   : > { %1665 = vmatpush.msrb.mxu3 %v1578_v6 }
 0x155   : > { %1666 = vmatpush.msrb.mxu3 %v1575_v9 }
 0x157   : > { %v1327_v7 = vpop.f32.mrf.mxu0 }
 0x158   : > { %v1328_v8 = vadd.f32 %v6510_v4, %v1327_v7  ;;  %v1576_v4 = vld [vmem:[#allocation11 + $0xa8] sm:$0xff]  ;;  %v1573_v7 = vld [vmem:[#allocation11 + $0x90] sm:$0xff] }
 0x159   : > { %1619 = vmatpush.msrb.mxu1 %v1576_v4 }
 0x15a   : > { %1333 = vst [vmem:[%s7584_s16 + $0x8] sm:$0xff] %v1328_v8  ;;  %1446 = vmatmul.f32.gmra.mxu2 %v1328_v8  ;;  %1492 = vmatmul.f32.gmra.mxu0 %v1328_v8  ;;  %v1574_v8 = vld [vmem:[#allocation11 + $0x98] sm:$0xff] }
 0x15b   : > { %1620 = vmatpush.msrb.mxu1 %v1573_v7  ;;  %1643 = vmatpush.msrb.mxu2 %v1574_v8  ;;  %v1605_v7 = vperm.slane %v1603_v63, 0 }
 0x15d   : > { %1621 = vmatpush.msrb.mxu1 %v1570_v10 }
 0x1bd   : > { %v1421_v14 = vpop.f32.mrf.mxu1 }
 0x1be   : > { %v1422_v19 = vadd.f32 %v1421_v14, %v1400_v16  ;;  %v1568_v14 = vld [vmem:[#allocation11 + $0x68] sm:$0xff] }
 0x1c3   : > { %v1467_v11 = vpop.f32.mrf.mxu3 }
 0x1c4   : > { %v1468_v13 = vadd.f32 %v1467_v11, %v1401_v12  ;;  %v1571_v11 = vld [vmem:[#allocation11 + $0x80] sm:$0xff] }
 0x1c5   : > { %v1424_v25 = vpop.f32.mrf.mxu1  ;;  %1644 = vmatpush.msrb.mxu2 %v1571_v11 }
 0x1c6   : > { %v1425_v26 = vadd.f32 %v1424_v25, %v1400_v16  ;;  %v1564_v16 = vld [vmem:[#allocation11 + $0x48] sm:$0xff]  ;;  %v1559_v25 = vld [vmem:[#allocation11 + $0x20] sm:$0xff] }
 0x1c7   : > { %1645 = vmatpush.msrb.mxu2 %v1568_v14 }
 0x1cb   : > { %v1470_v18 = vpop.f32.mrf.mxu3 }
 0x1cc   : > { %v1471_v21 = vadd.f32 %v1470_v18, %v1401_v12  ;;  %v1572_v12 = vld [vmem:[#allocation11 + $0x88] sm:$0xff]  ;;  %v1565_v18 = vld [vmem:[#allocation11 + $0x50] sm:$0xff] }
 0x1cd   : > { %1667 = vmatpush.msrb.mxu3 %v1572_v12  ;;  %1646 = vmatpush.msrb.mxu2 %v1565_v18 }
 0x1cf   : > { %v1490_v15 = vpop.f32.mrf.mxu0 }
 0x1d0   : > { %v7591_v17 = vadd.f32 %v1490_v15, %v1468_v13  ;;  %v1567_v13 = vld [vmem:[#allocation11 + $0x60] sm:$0xff]  ;;  %v1569_v15 = vld [vmem:[#allocation11 + $0x70] sm:$0xff] }
 0x1d1   : > { %1622 = vmatpush.msrb.mxu1 %v1567_v13  ;;  %1668 = vmatpush.msrb.mxu3 %v1569_v15 }
 0x1d2   : > { %2358 = vst [vmem:[#allocation2 + $0x8] sm:$0xff] %v7591_v17 }
 0x1d3   : > { %1623 = vmatpush.msrb.mxu1 %v1564_v16 }
 0x1d5   : > { %v1444_v20 = vpop.f32.mrf.mxu2 }
 0x1d6   : > { %v7594_v22 = vadd.f32 %v1444_v20, %v1422_v19  ;;  %v1566_v19 = vld [vmem:[#allocation11 + $0x58] sm:$0xff]  ;;  %v1561_v20 = vld [vmem:[#allocation11 + $0x30] sm:$0xff] }
 0x1d7   : > { %v1493_v23 = vpop.f32.mrf.mxu0  ;;  %1669 = vmatpush.msrb.mxu3 %v1566_v19  ;;  %1624 = vmatpush.msrb.mxu1 %v1561_v20 }
 0x1d8   : > { %v1494_v24 = vadd.f32 %v1493_v23, %v1471_v21  ;;  %1498 = vadd.xlane.f32.xlu0 %v7594_v22  ;;  %v1562_v21 = vld [vmem:[#allocation11 + $0x38] sm:$0xff]  ;;  %v1563_v23 = vld [vmem:[#allocation11 + $0x40] sm:$0xff] }
 0x1d9   : > { %1647 = vmatpush.msrb.mxu2 %v1562_v21  ;;  %1670 = vmatpush.msrb.mxu3 %v1563_v23 }
 0x1da   : > { %2359 = vst [vmem:[#allocation2 + $0x10] sm:$0xff] %v1494_v24  ;;  %v1558_v24 = vld [vmem:[#allocation11 + $0x18] sm:$0xff] }
 0x1db   : > { %1625 = vmatpush.msrb.mxu1 %v1558_v24  ;;  %1648 = vmatpush.msrb.mxu2 %v1559_v25 }
 0x1dd   : > { %v1447_v27 = vpop.f32.mrf.mxu2  ;;  %1649 = vmatpush.msrb.mxu2 %v1556_v29 }
 0x1de   : > { %v7597_v28 = vadd.f32 %v1447_v27, %v1425_v26  ;;  %v1560_v26 = vld [vmem:[#allocation11 + $0x28] sm:$0xff]  ;;  %v1555_v27 = vld [vmem:[#allocation11] sm:$0xff] }
 0x1df   : > { %1671 = vmatpush.msrb.mxu3 %v1560_v26  ;;  %1626 = vmatpush.msrb.mxu1 %v1555_v27 }
 0x1e0   : > { %1500 = vadd.xlane.f32.xlu0 %v7597_v28 }
 0x1e1   : > { %1672 = vmatpush.msrb.mxu3 %v1557_v30 }
 0x24b   : > { %v1499_v42 = vpop.xlane.xlu0 %1498 }
 0x24c   : > { %v1509_v43 = vmul.f32 %v7600_v41, %v1499_v42 }
 0x24e   : > { %v7604_v44 = vsub.f32 %v7594_v22, %v1509_v43 }
 0x250   : > { %v1513_v45 = vmul.f32 %v7604_v44, %v7604_v44 }
 0x252   : > { %1515 = vadd.xlane.f32.xlu1 %v1513_v45 }
 0x253   : > { %v1501_v46 = vpop.xlane.xlu0 %1500 }
 0x254   : > { %v1510_v47 = vmul.f32 %v7600_v41, %v1501_v46 }
 0x256   : > { %v7610_v48 = vsub.f32 %v7597_v28, %v1510_v47  ;;  %v6511_v47 = vld [vmem:[%s10160_s1] ss:$0 sm:$0xff]  ;;  %s7046_s1 = smov 127  }
 0x258   : > { %v1514_v49 = vmul.f32 %v7610_v48, %v7610_v48 }
 0x25a   : > { %1517 = vadd.xlane.f32.xlu1 %v1514_v49 }
 0x2c5   : > { %v1516_v31 = vpop.xlane.xlu1 %1515 }
 0x2c6   : > { %v1519_v32 = vmul.f32 %v1516_v31, %v7600_v41 }
 0x2c8   : > { %v1521_v33 = vadd.f32 1e-06, %v1519_v32 }
 0x2ca   : > { %6527 = vrsqrt.f32 %v1521_v33  ;;  %vm1529_vm2 = vweird.f32 %v1521_v33 }
 0x2cd   : > { %v1518_v34 = vpop.xlane.xlu1 %1517 }
 0x2ce   : > { %v1520_v35 = vmul.f32 %v1518_v34, %v7600_v41 }
 0x2d0   : > { %v6528_v36 = vpop.eup %6527  ;;  %v1522_v37 = vadd.f32 1e-06, %v1520_v35 }
 0x2d1   : > { %v1524_v38 = vmul.f32 %v6528_v36, %v1521_v33  ;;  %vm1530_vm1 = vweird.f32 %v6528_v36 }
 0x2d2   : > { %6529 = vrsqrt.f32 %v1522_v37  ;;  %vm1531_vm3 = vmor %vm1529_vm2, %vm1530_vm1  ;;  %vm1539_vm5 = vweird.f32 %v1522_v37  ;;  %vm3425_vm1 = vcmask 1043456   ;;  %vm3756_vm2 = vcmask 1042432  }
 0x2d3   : > { %v1525_v39 = vmul.f32 %v6528_v36, %v1524_v38  ;;  %v1773_v38 = vld [vmem:[#allocation13 + $0x18] sm:$0xff] }
 0x2d5   : > { %v1526_v40 = vmul.f32 0.5, %v1525_v39  ;;  %v1772_v39 = vld [vmem:[#allocation13 + $0x10] sm:$0xff] }
 0x2d7   : > { %v1527_v42 = vsub.f32 1.5, %v1526_v40  ;;  %v1771_v40 = vld [vmem:[#allocation13 + $0x8] sm:$0xff] }
 0x2d8   : > { %v6530_v43 = vpop.eup %6529 }
 0x2d9   : > { %v1528_v45 = vmul.f32 %v6528_v36, %v1527_v42  ;;  %v1534_v46 = vmul.f32 %v6530_v43, %v1522_v37  ;;  %vm1540_vm4 = vweird.f32 %v6530_v43 }
 0x2da   : > { %vm1541_vm6 = vmor %vm1539_vm5, %vm1540_vm4  ;;  %vm4418_vm4 = vcmask 1040384  }
 0x2db   : > { %v1532_v49 = vsel %vm1531_vm3, %v6528_v36, %v1528_v45  ;;  %v1535_v50 = vmul.f32 %v6530_v43, %v1534_v46  ;;  %vm4087_vm3 = vcmask 1041408  }
 0x2dc   : > { %v1543_v51 = vmul.f32 %v1532_v49, %v7604_v44 }
 0x2dd   : > { %v1536_v53 = vmul.f32 0.5, %v1535_v50 }
 0x2de   : > { %v1548_v54 = vmul.f32 %v6511_v47, %v1543_v51 }
 0x2df   : > { %v1537_v55 = vsub.f32 1.5, %v1536_v53 }
 0x2e0   : > { %v1553_v56 = vadd.f32 %v6512_v52, %v1548_v54 }
 0x2e1   : > { %v1538_v57 = vmul.f32 %v6530_v43, %v1537_v55 }
 0x2e2   : > { %1627 = vmatmul.f32.vlgmr.msrb.gmra.mxu1 %v1553_v56  ;;  %1650 = vmatmul.f32.vlgmr.msrb.gmra.mxu2 %v1553_v56 }
 0x2e3   : > { %1673 = vmatmul.f32.vlgmr.msrb.gmra.mxu3 %v1553_v56  ;;  %v1542_v58 = vsel %vm1541_vm6, %v6530_v43, %v1538_v57 }
 0x2e4   : > { %v1544_v59 = vmul.f32 %v1542_v58, %v7610_v48 }
 0x2e6   : > { %v1549_v60 = vmul.f32 %v6511_v47, %v1544_v59  ;;  %v1770_v47 = vld [vmem:[#allocation13] sm:$0xff] }
 0x2e8   : > { %v1554_v44 = vadd.f32 %v6512_v52, %v1549_v60 }
 0x2ea   : > { %1630 = vmatmul.f32.gmra.mxu1 %v1554_v44  ;;  %1653 = vmatmul.f32.gmra.mxu2 %v1554_v44 }
 0x2eb   : > { %1676 = vmatmul.f32.gmra.mxu3 %v1554_v44 }
 0x35f   : > { %v1628_v6 = vpop.f32.mrf.mxu1 }
 0x360   : > { %v7637_v10 = vadd.f32 %v1628_v6, %v1605_v7 }
 0x365   : > { %v1651_v61 = vpop.f32.mrf.mxu2 }
 0x366   : > { %v1674_v62 = vpop.f32.mrf.mxu3  ;;  %v7633_v9 = vadd.f32 %v1651_v61, %v1606_v1 }
 0x367   : > { %v1675_v5 = vadd.f32 %v1674_v62, %v1607_v0  ;;  %v1631_v11 = vpop.f32.mrf.mxu1 }
 0x368   : > { %v7641_v12 = vadd.f32 %v1631_v11, %v1605_v7 }
 0x36d   : > { %v1654_v2 = vpop.f32.mrf.mxu2 }
 0x36e   : > { %v7627_v3 = vadd.f32 %v1654_v2, %v1606_v1  ;;  %v1677_v4 = vpop.f32.mrf.mxu3 }
 0x36f   : > { %v1678_v48 = vadd.f32 %v1677_v4, %v1607_v0 }
 0x370   : > { %5337 = vmatpush.xpose.msk.msra.mxu3 %vm1680_vm7, %v7627_v3 }
 0x371   : > { %1761 = vmatpush.msra.mxu0 %v1678_v48  ;;  %5386 = vmatpush.msra.mxu1 %v1678_v48  ;;  %v7631_v8 = vpack.i.bf16 %v1678_v48, %v1675_v5 }
 0x373   : > { %1762 = vmatpush.msra.mxu0 %v1675_v5  ;;  %5387 = vmatpush.msra.mxu1 %v1675_v5 }
 0x374   : > { %5338 = vmatpush.xpose.msk.msra.mxu3 %vm1680_vm7, %v7633_v9 }
 0x375   : > { %1925 = vmatpush.msrb.mxu1 %v1773_v38 }
 0x377   : > { %5339 = vmatmul.msk.f32.vlgmr.msra.gmra.mxu3 %vm1680_vm7, %v7637_v10  ;;  %1926 = vmatpush.msrb.mxu1 %v1772_v39 }
 0x379   : > { %1927 = vmatpush.msrb.mxu1 %v1771_v40 }
 0x37b   : > { %1928 = vmatpush.msrb.mxu1 %v1770_v47 }
 0x37f   : > { %5340 = vmatmul.msk.f32.gmra.mxu3 %vm1680_vm7, %v7641_v12 }
 0x3fa   : > { %v1710_v13 = vpop.f32.mrf.mxu3 }
 0x3fb   : > { %v1716_v14 = vmul.f32 0.17677669, %v1710_v13 }
 0x3fd   : > { %v1719_v15 = vsel %vm1718_vm8, %v1716_v14, -inf }
 0x3fe   : > { %1720 = vmax.xlane.f32.xlu2 %v1719_v15 }
 0x402   : > { %v1713_v16 = vpop.f32.mrf.mxu3 }
 0x403   : > { %v1717_v18 = vmul.f32 0.17677669, %v1713_v16 }
 0x405   : > { %v1722_v19 = vsel %vm1718_vm8, %v1717_v18, -inf }
 0x406   : > { %1723 = vmax.xlane.f32.xlu2 %v1722_v19 }
 0x41e   : > { %1774 = vrot.lane.b32.xlu2 %v7637_v10, %s7043_s3 }
 0x426   : > { %1780 = vrot.lane.b32.xlu2 %v7627_v3, %s7043_s3 }
 0x471   : > { %v1721_v20 = vpop.xlane.xlu2 %1720 }
 0x472   : > { %v1725_v21 = vsub.f32 %v1716_v14, %v1721_v20 }
 0x474   : > { %v1727_v23 = vmul.f32 1.442695, %v1725_v21 }
 0x476   : > { %6531 = vpow2.f32 %v1727_v23 }
 0x479   : > { %v1724_v24 = vpop.xlane.xlu2 %1723 }
 0x47a   : > { %v1726_v25 = vsub.f32 %v1717_v18, %v1724_v24 }
 0x47c   : > { %v6532_v26 = vpop.eup %6531  ;;  %v1729_v27 = vmul.f32 1.442695, %v1726_v25 }
 0x47d   : > { %v1731_v29 = vsel %vm1718_vm8, %v6532_v26, 0.0 }
 0x47e   : > { %6533 = vpow2.f32 %v1729_v27  ;;  %1732 = vadd.xlane.f32.xlu0 %v1731_v29 }
 0x481   : > { %v1775_v30 = vpop.permute.xlu2 %1774 }
 0x484   : > { %v6534_v31 = vpop.eup %6533 }
 0x485   : > { %v1734_v32 = vsel %vm1718_vm8, %v6534_v31, 0.0 }
 0x486   : > { %1735 = vadd.xlane.f32.xlu1 %v1734_v32 }
 0x489   : > { %v1781_v33 = vpop.permute.xlu2 %1780 }
 0x48a   : > { %5343 = vmatpush.xpose.msk.msra.mxu2 %vm1680_vm7, %v1781_v33  ;;  %5388 = vmatpush.xpose.msk.msrb.mxu3 %vm1680_vm7, %v1781_v33 }
 0x492   : > { %1776 = vrot.lane.b32.xlu0 %v7641_v12, %s7043_s3 }
 0x49f   : > { %1778 = vrot.lane.b32.xlu1 %v7633_v9, %s7043_s3 }
 0x4a7   : > { %1936 = vrot.lane.b32.xlu1 %v7637_v10, %s7044_s0 }
 0x4f1   : > { %v1733_v34 = vpop.xlane.xlu0 %1732 }
 0x4f2   : > { %6535 = vrcp.f32 %v1733_v34 }
 0x4f8   : > { %v6536_v35 = vpop.eup %6535 }
 0x4f9   : > { %v1739_v36 = vmul.f32 %v6536_v35, %v6532_v26  ;;  %v1736_v37 = vpop.xlane.xlu1 %1735 }
 0x4fa   : > { %6537 = vrcp.f32 %v1736_v37 }
 0x4fb   : > { %5341 = vmatmul.msk.f32.vlgmr.msra.gmra.mxu0 %vm1718_vm8, %v1739_v36 }
 0x500   : > { %v6538_v42 = vpop.eup %6537 }
 0x501   : > { %v1740_v43 = vmul.f32 %v6538_v42, %v6534_v31 }
 0x503   : > { %5342 = vmatmul.msk.f32.vlgmr.msra.gmra.mxu1 %vm1718_vm8, %v1740_v43 }
 0x504   : > { %v1777_v46 = vpop.permute.xlu0 %1776 }
 0x511   : > { %v1779_v45 = vpop.permute.xlu1 %1778 }
 0x512   : > { %5344 = vmatpush.xpose.msk.msra.mxu2 %vm1680_vm7, %v1779_v45  ;;  %5389 = vmatpush.xpose.msk.msrb.mxu3 %vm1680_vm7, %v1779_v45 }
 0x515   : > { %5345 = vmatmul.msk.f32.vlgmr.msra.gmra.mxu2 %vm1680_vm7, %v1775_v30  ;;  %5346 = vmatmul.msk.f32.vlgmr.msrb.gmra.mxu3 %vm1680_vm7, %v1777_v46 }
 0x519   : > { %v1937_v4 = vpop.permute.xlu1 %1936 }
 0x578   : > { %v1764_v49 = vpop.f32.mrf.mxu0 }
 0x579   : > { %5351 = vmatmul.msk.f32.vlgmr.msrb.gmra.mxu1 %vm1680_vm7, %v1764_v49 }
 0x580   : > { %v1767_v50 = vpop.f32.mrf.mxu1 }
 0x581   : > { %5352 = vmatmul.msk.f32.gmra.mxu1 %vm1680_vm7, %v1767_v50 }
 0x598   : > { %v1807_v51 = vpop.f32.mrf.mxu2  ;;  %v1810_v52 = vpop.f32.mrf.mxu3 }
 0x599   : > { %v1813_v53 = vmul.f32 0.17677669, %v1807_v51  ;;  %v1814_v54 = vmul.f32 0.17677669, %v1810_v52 }
 0x59b   : > { %v1818_v55 = vsel %vm1718_vm8, %v1814_v54, -inf  ;;  %v1815_v56 = vsel %vm1718_vm8, %v1813_v53, -inf }
 0x59c   : > { %1819 = vmax.xlane.f32.xlu2 %v1818_v55  ;;  %1816 = vmax.xlane.f32.xlu0 %v1815_v56 }
 0x5b0   : > { %1938 = vrot.lane.b32.xlu0 %v7641_v12, %s7044_s0 }
 0x5b4   : > { %5535 = vrot.lane.b32.xlu2 %v7631_v8, %s7043_s3  ;;  %s10260_s3 = sld [smem:[#allocation130_spill]] }
 0x5b8   : > { %1942 = vrot.lane.b32.xlu0 %v7627_v3, %s7044_s0 }
 0x5bc   : > { %1940 = vrot.lane.b32.xlu2 %v7633_v9, %s7044_s0 }
 0x5c0   : > { %2075 = vrot.lane.b32.xlu0 %v7627_v3, %s7045_s6 }
 0x5c8   : > { %2073 = vrot.lane.b32.xlu0 %v7633_v9, %s7045_s6 }
 0x5d0   : > { %2069 = vrot.lane.b32.xlu0 %v7637_v10, %s7045_s6 }
 0x5f6   : > { %v7702_v15 = vpop.f32.mrf.mxu1 }
 0x5fe   : > { %v7704_v19 = vpop.f32.mrf.mxu1 }
 0x60f   : > { %v1820_v57 = vpop.xlane.xlu2 %1819  ;;  %v1817_v62 = vpop.xlane.xlu0 %1816 }
 0x610   : > { %v1822_v58 = vsub.f32 %v1814_v54, %v1820_v57  ;;  %v1821_v16 = vsub.f32 %v1813_v53, %v1817_v62  ;;  %v1877_v54 = vld [vmem:[#allocation13 + $0x38] sm:$0xff] }
 0x611   : > { %1896 = vmatpush.msrb.mxu0 %v1877_v54  ;;  %v2552_v54 = vld [vmem:[#allocation17 + $0x250] sm:$0xff] }
 0x612   : > { %v1825_v59 = vmul.f32 1.442695, %v1822_v58  ;;  %v1823_v18 = vmul.f32 1.442695, %v1821_v16 }
 0x614   : > { %6539 = vpow2.f32 %v1825_v59 }
 0x615   : > { %6541 = vpow2.f32 %v1823_v18 }
 0x617   : > { %v5536_v60 = vpop.permute.xlu2 %5535 }
 0x618   : > { %v5538_v44 = vunpack.i.h.bf16 %v5536_v60  ;;  %v5537_v63 = vunpack.i.l.bf16 %v5536_v60 }
 0x61a   : > { %v7685_v61 = vpop.eup %6539  ;;  %1865 = vmatpush.msra.mxu3 %v5538_v44 }
 0x61b   : > { %v1830_v0 = vsel %vm1718_vm8, %v7685_v61, 0.0  ;;  %v6542_v20 = vpop.eup %6541 }
 0x61c   : > { %1866 = vmatpush.msra.mxu3 %v5537_v63  ;;  %1831 = vadd.xlane.f32.xlu0 %v1830_v0  ;;  %v1827_v21 = vsel %vm1718_vm8, %v6542_v20, 0.0  ;;  %v1876_v63 = vld [vmem:[#allocation13 + $0x30] sm:$0xff]  ;;  %v1875_v0 = vld [vmem:[#allocation13 + $0x28] sm:$0xff] }
 0x61d   : > { %1897 = vmatpush.msrb.mxu0 %v1876_v63 }
 0x61f   : > { %v1941_v3 = vpop.permute.xlu2 %1940  ;;  %1898 = vmatpush.msrb.mxu0 %v1875_v0  ;;  %v2544_v0 = vld [vmem:[#allocation17 + $0x210] sm:$0xff] }
 0x622   : > { %v1939_v1 = vpop.permute.xlu0 %1938 }
 0x62a   : > { %v1943_v2 = vpop.permute.xlu0 %1942 }
 0x62b   : > { %5353 = vmatpush.xpose.msk.msrb.mxu2 %vm1680_vm7, %v1943_v2  ;;  %v2037_v2 = vld [vmem:[#allocation13 + $0x58] sm:$0xff] }
 0x62f   : > { %5354 = vmatpush.xpose.msk.msrb.mxu2 %vm1680_vm7, %v1941_v3  ;;  %v2036_v3 = vld [vmem:[#allocation13 + $0x50] sm:$0xff] }
 0x632   : > { %5355 = vmatmul.msk.f32.vlgmr.msrb.gmra.mxu2 %vm1680_vm7, %v1937_v4  ;;  %v2076_v5 = vpop.permute.xlu0 %2075  ;;  %v2035_v4 = vld [vmem:[#allocation13 + $0x48] sm:$0xff] }
 0x633   : > { %5361 = vmatpush.xpose.msk.msra.mxu1 %vm1680_vm7, %v2076_v5 }
 0x63a   : > { %5356 = vmatmul.msk.f32.gmra.mxu2 %vm1680_vm7, %v1939_v1  ;;  %v2074_v48 = vpop.permute.xlu0 %2073  ;;  %v1874_v1 = vld [vmem:[#allocation13 + $0x20] sm:$0xff] }
 0x63b   : > { %5362 = vmatpush.xpose.msk.msra.mxu1 %vm1680_vm7, %v2074_v48  ;;  %1899 = vmatpush.msrb.mxu0 %v1874_v1  ;;  %v2543_v1 = vld [vmem:[#allocation17 + $0x208] sm:$0xff] }
 0x63d   : > { %2056 = vmatpush.msra.mxu0 %v2037_v2  ;;  %v2542_v2 = vld [vmem:[#allocation17 + $0x200] sm:$0xff] }
 0x63f   : > { %2057 = vmatpush.msra.mxu0 %v2036_v3  ;;  %v2717_v3 = vld [vmem:[#allocation17 + $0x478] sm:$0xff] }
 0x641   : > { %2058 = vmatpush.msra.mxu0 %v2035_v4  ;;  %v7746_v4 = vld [vmem:[%s10163_s22 + $0x30] sm:$0xff] }
 0x642   : > { %v2070_v6 = vpop.permute.xlu0 %2069 }
 0x643   : > { %5363 = vmatmul.msk.f32.vlgmr.msra.gmra.mxu1 %vm1680_vm7, %v2070_v6  ;;  %v2034_v6 = vld [vmem:[#allocation13 + $0x40] sm:$0xff] }
 0x644   : > { %2059 = vmatpush.msra.mxu0 %v2034_v6  ;;  %v2716_v6 = vld [vmem:[#allocation17 + $0x470] sm:$0xff] }
 0x68f   : > { %v1832_v42 = vpop.xlane.xlu0 %1831 }
 0x6b5   : > { %v1969_v7 = vpop.f32.mrf.mxu2 }
 0x6b6   : > { %v1975_v9 = vmul.f32 0.17677669, %v1969_v7 }
 0x6b8   : > { %v1977_v10 = vsel %vm1718_vm8, %v1975_v9, -inf }
 0x6b9   : > { %1978 = vmax.xlane.f32.xlu1 %v1977_v10 }
 0x6bd   : > { %v1972_v11 = vpop.f32.mrf.mxu2 }
 0x6be   : > { %v1976_v13 = vmul.f32 0.17677669, %v1972_v11 }
 0x6c0   : > { %v1980_v14 = vsel %vm1718_vm8, %v1976_v13, -inf  ;;  %v2102_v23 = vpop.f32.mrf.mxu1 }
 0x6c1   : > { %1981 = vmax.xlane.f32.xlu2 %v1980_v14  ;;  %v2108_v24 = vmul.f32 0.17677669, %v2102_v23 }
 0x6c3   : > { %v2110_v25 = vsel %vm1718_vm8, %v2108_v24, -inf }
 0x6d2   : > { %2071 = vrot.lane.b32.xlu1 %v7641_v12, %s7045_s6 }
 0x6d9   : > { %5540 = vrot.lane.b32.xlu2 %v7631_v8, %s7044_s0  ;;  %s7051_s0 = smov 122  }
 0x6fc   : > { %1828 = vadd.xlane.f32.xlu1 %v1827_v21 }
 0x704   : > { %2111 = vmax.xlane.f32.xlu1 %v2110_v25 }
 0x72c   : > { %v1979_v12 = vpop.xlane.xlu1 %1978 }
 0x72d   : > { %v1983_v26 = vsub.f32 %v1975_v9, %v1979_v12 }
 0x72f   : > { %v1985_v27 = vmul.f32 1.442695, %v1983_v26  ;;  %v2399_v26 = vld [vmem:[#allocation17 + $0x78] sm:$0xff] }
 0x731   : > { %6543 = vpow2.f32 %v1985_v27  ;;  %v2398_v27 = vld [vmem:[#allocation17 + $0x70] sm:$0xff] }
 0x734   : > { %v1982_v29 = vpop.xlane.xlu2 %1981 }
 0x735   : > { %v1984_v30 = vsub.f32 %v1976_v13, %v1982_v29  ;;  %v2397_v29 = vld [vmem:[#allocation17 + $0x68] sm:$0xff] }
 0x737   : > { %v6544_v31 = vpop.eup %6543  ;;  %v1987_v32 = vmul.f32 1.442695, %v1984_v30 }
 0x738   : > { %v1989_v33 = vsel %vm1718_vm8, %v6544_v31, 0.0 }
 0x739   : > { %6545 = vpow2.f32 %v1987_v32  ;;  %1990 = vadd.xlane.f32.xlu0 %v1989_v33  ;;  %v2395_v32 = vld [vmem:[#allocation17 + $0x58] sm:$0xff]  ;;  %v2394_v33 = vld [vmem:[#allocation17 + $0x50] sm:$0xff] }
 0x73c   : > { %v5541_v34 = vpop.permute.xlu2 %5540 }
 0x73d   : > { %v5543_v35 = vunpack.i.h.bf16 %v5541_v34  ;;  %v5542_v37 = vunpack.i.l.bf16 %v5541_v34  ;;  %v2393_v34 = vld [vmem:[#allocation17 + $0x48] sm:$0xff] }
 0x73f   : > { %v6546_v36 = vpop.eup %6545  ;;  %2025 = vmatpush.msrb.mxu3 %v5543_v35  ;;  %v2392_v35 = vld [vmem:[#allocation17 + $0x40] sm:$0xff] }
 0x740   : > { %v1992_v38 = vsel %vm1718_vm8, %v6546_v36, 0.0 }
 0x741   : > { %1993 = vadd.xlane.f32.xlu2 %v1992_v38  ;;  %2026 = vmatpush.msrb.mxu3 %v5542_v37  ;;  %v2390_v37 = vld [vmem:[#allocation17 + $0x30] sm:$0xff]  ;;  %v2389_v38 = vld [vmem:[#allocation17 + $0x28] sm:$0xff] }
 0x744   : > { %v2072_v39 = vpop.permute.xlu1 %2071 }
 0x745   : > { %5364 = vmatmul.msk.f32.gmra.mxu1 %vm1680_vm7, %v2072_v39  ;;  %v2388_v39 = vld [vmem:[#allocation17 + $0x20] sm:$0xff] }
 0x76f   : > { %v1829_v40 = vpop.xlane.xlu1 %1828 }
 0x770   : > { %6547 = vrcp.f32 %v1829_v40  ;;  %v2387_v40 = vld [vmem:[#allocation17 + $0x18] sm:$0xff] }
 0x771   : > { %6549 = vrcp.f32 %v1832_v42  ;;  %v2386_v42 = vld [vmem:[#allocation17 + $0x10] sm:$0xff] }
 0x776   : > { %v6548_v43 = vpop.eup %6547 }
 0x777   : > { %v1835_v45 = vmul.f32 %v6548_v43, %v6542_v20  ;;  %v2112_v46 = vpop.xlane.xlu1 %2111  ;;  %v6550_v50 = vpop.eup %6549  ;;  %v2385_v43 = vld [vmem:[#allocation17 + $0x8] sm:$0xff] }
 0x778   : > { %v2116_v47 = vsub.f32 %v2108_v24, %v2112_v46  ;;  %v1836_v51 = vmul.f32 %v6550_v50, %v7685_v61  ;;  %v2557_v46 = vld [vmem:[#allocation17 + $0x278] sm:$0xff]  ;;  %v2555_v50 = vld [vmem:[#allocation17 + $0x268] sm:$0xff] }
 0x779   : > { %5347 = vmatmul.msk.f32.vlgmr.msra.gmra.mxu3 %vm1718_vm8, %v1835_v45  ;;  %v2384_v45 = vld [vmem:[#allocation17] sm:$0xff] }
 0x77a   : > { %v2118_v49 = vmul.f32 1.442695, %v2116_v47  ;;  %v2378_v47 = vld [vmem:[#allocation2 + $0x7] sm:$0xff] }
 0x77c   : > { %6551 = vpow2.f32 %v2118_v49  ;;  %v2556_v49 = vld [vmem:[#allocation17 + $0x270] sm:$0xff] }
 0x781   : > { %5348 = vmatmul.msk.f32.gmra.mxu3 %vm1718_vm8, %v1836_v51  ;;  %v2554_v51 = vld [vmem:[#allocation17 + $0x260] sm:$0xff] }
 0x782   : > { %v6552_v52 = vpop.eup %6551 }
 0x783   : > { %v2122_v53 = vsel %vm1718_vm8, %v6552_v52, 0.0 }
 0x784   : > { %2123 = vadd.xlane.f32.xlu2 %v2122_v53  ;;  %v2379_v53 = vld [vmem:[#allocation2 + $0xf] sm:$0xff] }
 0x7ac   : > { %v1991_v55 = vpop.xlane.xlu0 %1990 }
 0x7ad   : > { %6553 = vrcp.f32 %v1991_v55  ;;  %v2551_v55 = vld [vmem:[#allocation17 + $0x248] sm:$0xff] }
 0x7b3   : > { %v6554_v56 = vpop.eup %6553 }
 0x7b4   : > { %v1997_v57 = vmul.f32 %v6554_v56, %v6544_v31  ;;  %v1994_v58 = vpop.xlane.xlu2 %1993  ;;  %v2550_v56 = vld [vmem:[#allocation17 + $0x240] sm:$0xff] }
 0x7b5   : > { %6555 = vrcp.f32 %v1994_v58  ;;  %v2548_v58 = vld [vmem:[#allocation17 + $0x230] sm:$0xff] }
 0x7b6   : > { %5357 = vmatmul.msk.f32.vlgmr.msrb.gmra.mxu3 %vm1718_vm8, %v1997_v57  ;;  %v2549_v57 = vld [vmem:[#allocation17 + $0x238] sm:$0xff] }
 0x7bb   : > { %v6556_v59 = vpop.eup %6555 }
 0x7bc   : > { %v1998_v60 = vmul.f32 %v6556_v59, %v6546_v36  ;;  %v2391_v36 = vld [vmem:[#allocation17 + $0x38] sm:$0xff]  ;;  %v2547_v59 = vld [vmem:[#allocation17 + $0x228] sm:$0xff] }
 0x7be   : > { %5358 = vmatmul.msk.f32.gmra.mxu3 %vm1718_vm8, %v1998_v60  ;;  %v2546_v60 = vld [vmem:[#allocation17 + $0x220] sm:$0xff] }
 0x7c2   : > { %v2105_v44 = vpop.f32.mrf.mxu1 }
 0x7c3   : > { %v2109_v61 = vmul.f32 0.17677669, %v2105_v44  ;;  %v2545_v44 = vld [vmem:[#allocation17 + $0x218] sm:$0xff] }
 0x7c5   : > { %v2113_v62 = vsel %vm1718_vm8, %v2109_v61, -inf }
 0x7c6   : > { %2114 = vmax.xlane.f32.xlu0 %v2113_v62  ;;  %v7735_v62 = vld [vmem:[%s10163_s22 + $0x8] sm:$0xff] }
 0x7f7   : > { %v2124_v18 = vpop.xlane.xlu2 %2123 }
 0x7fc   : > { %v1868_v5 = vpop.f32.mrf.mxu3 }
 0x7fd   : > { %5349 = vmatmul.msk.f32.vlgmr.msrb.gmra.mxu0 %vm1680_vm7, %v1868_v5  ;;  %v7751_v5 = vld [vmem:[%s10163_s22 + $0x38] sm:$0xff] }
 0x804   : > { %v1871_v48 = vpop.f32.mrf.mxu3 }
 0x805   : > { %5350 = vmatmul.msk.f32.gmra.mxu0 %vm1680_vm7, %v1871_v48  ;;  %v7755_v48 = vpack.i.bf16 %v7751_v5, %v7746_v4 }
 0x839   : > { %v2028_v7 = vpop.f32.mrf.mxu3  ;;  %v2115_v9 = vpop.xlane.xlu0 %2114 }
 0x83a   : > { %v2117_v10 = vsub.f32 %v2109_v61, %v2115_v9  ;;  %5359 = vmatmul.msk.f32.vlgmr.msra.gmra.mxu0 %vm1680_vm7, %v2028_v7  ;;  %v7730_v61 = vld [vmem:[%s10163_s22] sm:$0xff]  ;;  %v2169_v9 = vld [vmem:[#allocation13 + $0x70] sm:$0xff] }
 0x83b   : > { %v7739_v63 = vpack.i.bf16 %v7735_v62, %v7730_v61  ;;  %v2170_v7 = vld [vmem:[#allocation13 + $0x78] sm:$0xff] }
 0x83c   : > { %v2120_v11 = vmul.f32 1.442695, %v2117_v10  ;;  %v2715_v10 = vld [vmem:[#allocation17 + $0x468] sm:$0xff]  ;;  %2189 = vmatpush.msra.mxu3 %v2170_v7 }
 0x83d   : > { %5550 = vrot.lane.b32.xlu1 %v7739_v63, %s7046_s1  ;;  %v7848_v7 = vld [vmem:[%s10163_s22 + $0x68] sm:$0xff] }
 0x83e   : > { %6557 = vpow2.f32 %v2120_v11  ;;  %v2168_v11 = vld [vmem:[#allocation13 + $0x68] sm:$0xff]  ;;  %2190 = vmatpush.msra.mxu3 %v2169_v9 }
 0x83f   : > { %6559 = vrcp.f32 %v2124_v18  ;;  %v7768_v18 = vld [vmem:[%s10163_s22 + $0x58] sm:$0xff] }
 0x840   : > { %2191 = vmatpush.msra.mxu3 %v2168_v11 }
 0x841   : > { %v2031_v13 = vpop.f32.mrf.mxu3 }
 0x842   : > { %5360 = vmatmul.msk.f32.gmra.mxu0 %vm1680_vm7, %v2031_v13  ;;  %v2714_v13 = vld [vmem:[#allocation17 + $0x460] sm:$0xff] }
 0x844   : > { %v6558_v14 = vpop.eup %6557 }
 0x845   : > { %v2125_v16 = vsel %vm1718_vm8, %v6558_v14, 0.0  ;;  %v6560_v23 = vpop.eup %6559  ;;  %5565 = vrot.lane.b32.xlu1 %v7755_v48, %s7046_s1 }
 0x846   : > { %2126 = vadd.xlane.f32.xlu0 %v2125_v16  ;;  %v2130_v12 = vmul.f32 %v6560_v23, %v6552_v52  ;;  %v2553_v52 = vld [vmem:[#allocation17 + $0x258] sm:$0xff]  ;;  %v2712_v23 = vld [vmem:[#allocation17 + $0x450] sm:$0xff] }
 0x847   : > { %v2713_v16 = vld [vmem:[#allocation17 + $0x458] sm:$0xff] }
 0x85a   : > { %5545 = vrot.lane.b32.xlu0 %v7631_v8, %s7045_s6  ;;  %v2396_v8 = vld [vmem:[#allocation17 + $0x60] sm:$0xff]  ;;  %s10378_s6 = sld [smem:[#allocation134_spill]] }
 0x8b9   : > { %v2127_v20 = vpop.xlane.xlu0 %2126 }
 0x8ba   : > { %6561 = vrcp.f32 %v2127_v20 }
 0x8c0   : > { %v6562_v30 = vpop.eup %6561 }
 0x8c1   : > { %v2131_v31 = vmul.f32 %v6562_v30, %v6558_v14  ;;  %v2167_v14 = vld [vmem:[#allocation13 + $0x60] sm:$0xff] }
 0x8c2   : > { %2192 = vmatpush.msra.mxu3 %v2167_v14  ;;  %v2710_v30 = vld [vmem:[#allocation17 + $0x440] sm:$0xff] }
 0x8c3   : > { %v2839_v14 = vld [vmem:[%s10163_s22 + $0xa0] sm:$0xff] }
 0x8cc   : > { %v5546_v21 = vpop.permute.xlu0 %5545 }
 0x8cd   : > { %v5548_v24 = vunpack.i.h.bf16 %v5546_v21  ;;  %v5547_v25 = vunpack.i.l.bf16 %v5546_v21  ;;  %v6575_v21 = vld [vmem:[#allocation2 + $0x10] sm:$0xff] }
 0x8cf   : > { %2158 = vmatpush.msra.mxu2 %v5548_v24  ;;  %v2415_v24 = vld [vmem:[#allocation17 + $0xf8] sm:$0xff] }
 0x8d0   : > { %2455 = vmatpush.msrb.mxu3 %v2415_v24  ;;  %v2570_v24 = vld [vmem:[#allocation17 + $0x2e0] sm:$0xff] }
 0x8d1   : > { %2159 = vmatpush.msra.mxu2 %v5547_v25  ;;  %v2414_v25 = vld [vmem:[#allocation17 + $0xf0] sm:$0xff] }
 0x8d2   : > { %5365 = vmatmul.msk.f32.vlgmr.msra.gmra.mxu2 %vm1718_vm8, %v2130_v12  ;;  %v2711_v12 = vld [vmem:[#allocation17 + $0x448] sm:$0xff]  ;;  %2456 = vmatpush.msrb.mxu3 %v2414_v25  ;;  %v2569_v25 = vld [vmem:[#allocation17 + $0x2d8] sm:$0xff] }
 0x8d3   : > { %2432 = vmatpush.msrb.mxu2 %v2399_v26  ;;  %v7779_v26 = vld [vmem:[%s10163_s22 + $0x70] sm:$0xff] }
 0x8d5   : > { %2433 = vmatpush.msrb.mxu2 %v2398_v27  ;;  %v7784_v27 = vld [vmem:[%s10163_s22 + $0x78] sm:$0xff] }
 0x8d7   : > { %2434 = vmatpush.msrb.mxu2 %v2397_v29  ;;  %v2413_v29 = vld [vmem:[#allocation17 + $0xe8] sm:$0xff] }
 0x8d8   : > { %2457 = vmatpush.msrb.mxu3 %v2413_v29  ;;  %v2568_v29 = vld [vmem:[#allocation17 + $0x2d0] sm:$0xff] }
 0x8d9   : > { %2435 = vmatpush.msrb.mxu2 %v2396_v8  ;;  %v7789_v8 = vld [vmem:[%s10163_s22 + $0x10] sm:$0xff] }
 0x8da   : > { %5366 = vmatmul.msk.f32.gmra.mxu2 %vm1718_vm8, %v2131_v31  ;;  %v7794_v31 = vld [vmem:[%s10163_s22 + $0x18] sm:$0xff] }
 0x8db   : > { %2436 = vmatpush.msrb.mxu2 %v2395_v32  ;;  %v2412_v32 = vld [vmem:[#allocation17 + $0xe0] sm:$0xff] }
 0x8dc   : > { %2458 = vmatpush.msrb.mxu3 %v2412_v32  ;;  %v2846_v32 = vld [vmem:[%s10163_s22 + $0xd8] sm:$0xff] }
 0x8dd   : > { %2437 = vmatpush.msrb.mxu2 %v2394_v33  ;;  %v7798_v33 = vpack.i.bf16 %v7784_v27, %v7779_v26 }
 0x8df   : > { %2438 = vmatpush.msrb.mxu2 %v2393_v34  ;;  %v7802_v34 = vpack.i.bf16 %v7794_v31, %v7789_v8 }
 0x8e1   : > { %2439 = vmatpush.msrb.mxu2 %v2392_v35  ;;  %v2709_v35 = vld [vmem:[#allocation17 + $0x438] sm:$0xff]  ;;  %5555 = vrot.lane.b32.xlu2 %v7802_v34, %s7046_s1 }
 0x8e3   : > { %2440 = vmatpush.msrb.mxu2 %v2391_v36  ;;  %v2411_v36 = vld [vmem:[#allocation17 + $0xd8] sm:$0xff] }
 0x8e4   : > { %2459 = vmatpush.msrb.mxu3 %v2411_v36  ;;  %v2567_v36 = vld [vmem:[#allocation17 + $0x2c8] sm:$0xff] }
 0x8e5   : > { %2441 = vmatpush.msrb.mxu2 %v2390_v37  ;;  %v7809_v37 = vld [vmem:[%s10163_s22 + $0x20] sm:$0xff] }
 0x8e7   : > { %2442 = vmatpush.msrb.mxu2 %v2389_v38  ;;  %v7814_v38 = vld [vmem:[%s10163_s22 + $0x28] sm:$0xff] }
 0x8e9   : > { %2443 = vmatpush.msrb.mxu2 %v2388_v39  ;;  %v2708_v39 = vld [vmem:[#allocation17 + $0x430] sm:$0xff] }
 0x8eb   : > { %2444 = vmatpush.msrb.mxu2 %v2387_v40  ;;  %v7819_v40 = vld [vmem:[%s10163_s22 + $0x40] sm:$0xff] }
 0x8ed   : > { %2445 = vmatpush.msrb.mxu2 %v2386_v42  ;;  %v7824_v42 = vld [vmem:[%s10163_s22 + $0x48] sm:$0xff] }
 0x8ef   : > { %2446 = vmatpush.msrb.mxu2 %v2385_v43  ;;  %v7828_v43 = vpack.i.bf16 %v7814_v38, %v7809_v37 }
 0x8f1   : > { %2447 = vmatpush.msrb.mxu2 %v2384_v45  ;;  %v2410_v45 = vld [vmem:[#allocation17 + $0xd0] sm:$0xff]  ;;  %5560 = vrot.lane.b32.xlu0 %v7828_v43, %s7046_s1 }
 0x8f2   : > { %2448 = vmatmul.f32.vlgmr.msrb.gmra.mxu2 %v2378_v47  ;;  %v2409_v47 = vld [vmem:[#allocation17 + $0xc8] sm:$0xff]  ;;  %2460 = vmatpush.msrb.mxu3 %v2410_v45  ;;  %v2851_v45 = vld [vmem:[%s10163_s22 + $0x100] sm:$0xff] }
 0x8f3   : > { %2597 = vmatpush.msra.mxu2 %v2557_v46  ;;  %v2707_v46 = vld [vmem:[#allocation17 + $0x428] sm:$0xff] }
 0x8f4   : > { %2461 = vmatpush.msrb.mxu3 %v2409_v47  ;;  %v2565_v47 = vld [vmem:[#allocation17 + $0x2b8] sm:$0xff] }
 0x8f5   : > { %2598 = vmatpush.msra.mxu2 %v2556_v49  ;;  %v7836_v49 = vpack.i.bf16 %v7824_v42, %v7819_v40 }
 0x8f7   : > { %2599 = vmatpush.msra.mxu2 %v2555_v50  ;;  %v2706_v50 = vld [vmem:[#allocation17 + $0x420] sm:$0xff]  ;;  %5570 = vrot.lane.b32.xlu2 %v7836_v49, %s7046_s1 }
 0x8f9   : > { %2600 = vmatpush.msra.mxu2 %v2554_v51  ;;  %v2408_v51 = vld [vmem:[#allocation17 + $0xc0] sm:$0xff] }
 0x8fa   : > { %2451 = vmatmul.f32.gmra.mxu2 %v2379_v53  ;;  %v2407_v53 = vld [vmem:[#allocation17 + $0xb8] sm:$0xff]  ;;  %2462 = vmatpush.msrb.mxu3 %v2408_v51 }
 0x8fb   : > { %2601 = vmatpush.msra.mxu2 %v2553_v52  ;;  %v2705_v52 = vld [vmem:[#allocation17 + $0x418] sm:$0xff] }
 0x8fc   : > { %2463 = vmatpush.msrb.mxu3 %v2407_v53  ;;  %v2563_v53 = vld [vmem:[#allocation17 + $0x2a8] sm:$0xff] }
 0x8fd   : > { %2602 = vmatpush.msra.mxu2 %v2552_v54  ;;  %v2704_v54 = vld [vmem:[#allocation17 + $0x410] sm:$0xff] }
 0x8ff   : > { %2603 = vmatpush.msra.mxu2 %v2551_v55  ;;  %v2406_v55 = vld [vmem:[#allocation17 + $0xb0] sm:$0xff] }
 0x900   : > { %2464 = vmatpush.msrb.mxu3 %v2406_v55  ;;  %v2561_v55 = vld [vmem:[#allocation17 + $0x298] sm:$0xff] }
 0x901   : > { %2604 = vmatpush.msra.mxu2 %v2550_v56  ;;  %v2703_v56 = vld [vmem:[#allocation17 + $0x408] sm:$0xff] }
 0x903   : > { %2605 = vmatpush.msra.mxu2 %v2549_v57  ;;  %v2405_v57 = vld [vmem:[#allocation17 + $0xa8] sm:$0xff] }
 0x904   : > { %2465 = vmatpush.msrb.mxu3 %v2405_v57  ;;  %v2560_v57 = vld [vmem:[#allocation17 + $0x290] sm:$0xff] }
 0x905   : > { %2606 = vmatpush.msra.mxu2 %v2548_v58  ;;  %v2702_v58 = vld [vmem:[#allocation17 + $0x400] sm:$0xff] }
 0x907   : > { %2607 = vmatpush.msra.mxu2 %v2547_v59  ;;  %v2404_v59 = vld [vmem:[#allocation17 + $0xa0] sm:$0xff] }
 0x908   : > { %2466 = vmatpush.msrb.mxu3 %v2404_v59  ;;  %v2558_v59 = vld [vmem:[#allocation17 + $0x280] sm:$0xff] }
 0x909   : > { %2608 = vmatpush.msra.mxu2 %v2546_v60  ;;  %v2667_v60 = vld [vmem:[#allocation2 + $0xb] sm:$0xff] }
 0x90b   : > { %2609 = vmatpush.msra.mxu2 %v2545_v44  ;;  %v2403_v44 = vld [vmem:[#allocation17 + $0x98] sm:$0xff] }
 0x90c   : > { %2467 = vmatpush.msrb.mxu3 %v2403_v44  ;;  %v2858_v44 = vld [vmem:[%s10163_s22 + $0x138] sm:$0xff] }
 0x90d   : > { %2610 = vmatpush.msra.mxu2 %v2544_v0  ;;  %v2402_v0 = vld [vmem:[#allocation17 + $0x90] sm:$0xff] }
 0x90e   : > { %2468 = vmatpush.msrb.mxu3 %v2402_v0  ;;  %v2523_v0 = vld [vmem:[#allocation2 + $0xa] sm:$0xff] }
 0x90f   : > { %2611 = vmatpush.msra.mxu2 %v2543_v1  ;;  %v2401_v1 = vld [vmem:[#allocation17 + $0x88] sm:$0xff] }
 0x910   : > { %2469 = vmatpush.msrb.mxu3 %v2401_v1 }
 0x911   : > { %2612 = vmatpush.msra.mxu2 %v2542_v2  ;;  %v2400_v2 = vld [vmem:[#allocation17 + $0x80] sm:$0xff] }
 0x912   : > { %2613 = vmatmul.f32.vlgmr.msra.gmra.mxu2 %v7591_v17  ;;  %v7763_v17 = vld [vmem:[%s10163_s22 + $0x50] sm:$0xff]  ;;  %2470 = vmatpush.msrb.mxu3 %v2400_v2 }
 0x913   : > { %2764 = vmatpush.msrb.mxu2 %v2717_v3  ;;  %v7772_v20 = vpack.i.bf16 %v7768_v18, %v7763_v17  ;;  %v2668_v3 = vld [vmem:[#allocation2 + $0x13] sm:$0xff] }
 0x914   : > { %v2837_v2 = vld [vmem:[%s10163_s22 + $0x90] sm:$0xff] }
 0x915   : > { %2765 = vmatpush.msrb.mxu2 %v2716_v6  ;;  %5575 = vrot.lane.b32.xlu1 %v7772_v20, %s7046_s1  ;;  %v7843_v6 = vld [vmem:[%s10163_s22 + $0x60] sm:$0xff] }
 0x916   : > { %v7852_v9 = vpack.i.bf16 %v7848_v7, %v7843_v6 }
 0x917   : > { %2766 = vmatpush.msrb.mxu2 %v2715_v10  ;;  %v2573_v10 = vld [vmem:[#allocation17 + $0x2f8] sm:$0xff] }
 0x918   : > { %5580 = vrot.lane.b32.xlu2 %v7852_v9, %s7046_s1 }
 0x919   : > { %2767 = vmatpush.msrb.mxu2 %v2714_v13  ;;  %v2572_v13 = vld [vmem:[#allocation17 + $0x2f0] sm:$0xff] }
 0x91a   : > { %2616 = vmatmul.f32.gmra.mxu2 %v6575_v21 }
 0x91b   : > { %2768 = vmatpush.msrb.mxu2 %v2713_v16  ;;  %v2840_v16 = vld [vmem:[%s10163_s22 + $0xa8] sm:$0xff] }
 0x91c   : > { %v7863_v21 = vpack.i.bf16 %v2840_v16, %v2839_v14  ;;  %v2524_v14 = vld [vmem:[#allocation2 + $0x12] sm:$0xff]  ;;  %v7914_v16 = vpop.permute.xlu1 %5550 }
 0x91d   : > { %2769 = vmatpush.msrb.mxu2 %v2712_v23  ;;  %5585 = vrot.lane.b32.xlu1 %v7798_v33, %s7046_s1  ;;  %v2571_v23 = vld [vmem:[#allocation17 + $0x2e8] sm:$0xff] }
 0x91f   : > { %2770 = vmatpush.msrb.mxu2 %v2711_v12 }
 0x921   : > { %2771 = vmatpush.msrb.mxu2 %v2710_v30  ;;  %v2845_v30 = vld [vmem:[%s10163_s22 + $0xd0] sm:$0xff] }
 0x923   : > { %2772 = vmatpush.msrb.mxu2 %v2709_v35  ;;  %v7874_v35 = vpack.i.bf16 %v2846_v32, %v2845_v30  ;;  %v7938_v30 = vld [vmem:[%s10163_s22 + $0x198] sm:$0xff]  ;;  %v2849_v32 = vld [vmem:[%s10163_s22 + $0xf0] sm:$0xff] }
 0x925   : > { %2773 = vmatpush.msrb.mxu2 %v2708_v39  ;;  %5600 = vrot.lane.b32.xlu1 %v7863_v21, %s7046_s1  ;;  %v2566_v39 = vld [vmem:[#allocation17 + $0x2c0] sm:$0xff] }
 0x927   : > { %2774 = vmatpush.msrb.mxu2 %v2707_v46  ;;  %v2852_v46 = vld [vmem:[%s10163_s22 + $0x108] sm:$0xff] }
 0x928   : > { %v7884_v51 = vpack.i.bf16 %v2852_v46, %v2851_v45 }
 0x929   : > { %2775 = vmatpush.msrb.mxu2 %v2706_v50  ;;  %v2380_v50 = vld [vmem:[#allocation2 + $0x8] sm:$0xff] }
 0x92b   : > { %2776 = vmatpush.msrb.mxu2 %v2705_v52  ;;  %v2564_v52 = vld [vmem:[#allocation17 + $0x2b0] sm:$0xff] }
 0x92d   : > { %2777 = vmatpush.msrb.mxu2 %v2704_v54  ;;  %5615 = vrot.lane.b32.xlu1 %v7874_v35, %s7046_s1  ;;  %v2562_v54 = vld [vmem:[#allocation17 + $0x2a0] sm:$0xff] }
 0x92f   : > { %2778 = vmatpush.msrb.mxu2 %v2703_v56  ;;  %v2381_v56 = vld [vmem:[#allocation2 + $0x10] sm:$0xff] }
 0x931   : > { %2779 = vmatpush.msrb.mxu2 %v2702_v58  ;;  %v2559_v58 = vld [vmem:[#allocation17 + $0x288] sm:$0xff] }
 0x932   : > { %2780 = vmatmul.f32.vlgmr.msrb.gmra.mxu2 %v2667_v60  ;;  %v2857_v60 = vld [vmem:[%s10163_s22 + $0x130] sm:$0xff] }
 0x933   : > { %v7894_v1 = vpack.i.bf16 %v2858_v44, %v2857_v60  ;;  %v7990_v60 = vld [vmem:[%s10163_s22 + $0x1f8] sm:$0xff] }
 0x935   : > { %5630 = vrot.lane.b32.xlu1 %v7884_v51, %s7046_s1 }
 0x93a   : > { %2783 = vmatmul.f32.gmra.mxu2 %v2668_v3  ;;  %v2838_v3 = vld [vmem:[%s10163_s22 + $0x98] sm:$0xff] }
 0x93b   : > { %v5556_v45 = vpop.permute.xlu2 %5555 }
 0x93d   : > { %5645 = vrot.lane.b32.xlu1 %v7894_v1, %s7046_s1 }
 0x955   : > { %v2161_v11 = vpop.f32.mrf.mxu2 }
 0x956   : > { %5367 = vmatmul.msk.f32.vlgmr.msra.gmra.mxu3 %vm1680_vm7, %v2161_v11  ;;  %v2863_v11 = vld [vmem:[%s10163_s22 + $0x160] sm:$0xff] }
 0x957   : > { %2620 = vmatpush.msra.mxu3 %v2573_v10  ;;  %v7902_v10 = vpack.i.bf16 %v2838_v3, %v2837_v2  ;;  %v2861_v2 = vld [vmem:[%s10163_s22 + $0x150] sm:$0xff]  ;;  %v2862_v3 = vld [vmem:[%s10163_s22 + $0x158] sm:$0xff] }
 0x959   : > { %2621 = vmatpush.msra.mxu3 %v2572_v13  ;;  %5595 = vrot.lane.b32.xlu0 %v7902_v10, %s7046_s1  ;;  %v2864_v13 = vld [vmem:[%s10163_s22 + $0x168] sm:$0xff] }
 0x95b   : > { %2622 = vmatpush.msra.mxu3 %v2571_v23  ;;  %v7916_v23 = vpack.i.bf16 %v2864_v13, %v2863_v11 }
 0x95d   : > { %v2164_v12 = vpop.f32.mrf.mxu2  ;;  %2623 = vmatpush.msra.mxu3 %v2570_v24  ;;  %v2843_v24 = vld [vmem:[%s10163_s22 + $0xc0] sm:$0xff]  ;;  %5660 = vrot.lane.b32.xlu1 %v7916_v23, %s7046_s1 }
 0x95e   : > { %5368 = vmatmul.msk.f32.gmra.mxu3 %vm1680_vm7, %v2164_v12 }
 0x95f   : > { %2624 = vmatpush.msra.mxu3 %v2569_v25  ;;  %v2844_v25 = vld [vmem:[%s10163_s22 + $0xc8] sm:$0xff] }
 0x960   : > { %v7924_v12 = vpack.i.bf16 %v2844_v25, %v2843_v24 }
 0x961   : > { %2625 = vmatpush.msra.mxu3 %v2568_v29  ;;  %v7933_v29 = vld [vmem:[%s10163_s22 + $0x190] sm:$0xff] }
 0x962   : > { %5610 = vrot.lane.b32.xlu0 %v7924_v12, %s7046_s1 }
 0x963   : > { %2626 = vmatpush.msra.mxu3 %v2567_v36  ;;  %v2850_v36 = vld [vmem:[%s10163_s22 + $0xf8] sm:$0xff] }
 0x964   : > { %v7950_v46 = vpack.i.bf16 %v2850_v36, %v2849_v32 }
 0x965   : > { %2627 = vmatpush.msra.mxu3 %v2566_v39  ;;  %v7948_v39 = vpack.i.bf16 %v7938_v30, %v7933_v29 }
 0x966   : > { %2471 = vmatmul.f32.vlgmr.msrb.gmra.mxu3 %v2380_v50  ;;  %v7959_v50 = vld [vmem:[%s10163_s22 + $0x1c0] sm:$0xff] }
 0x967   : > { %2628 = vmatpush.msra.mxu3 %v2565_v47  ;;  %v5566_v47 = vpop.permute.xlu1 %5565  ;;  %5675 = vrot.lane.b32.xlu1 %v7948_v39, %s7046_s1 }
 0x969   : > { %2629 = vmatpush.msra.mxu3 %v2564_v52  ;;  %v7964_v52 = vld [vmem:[%s10163_s22 + $0x1c8] sm:$0xff] }
 0x96a   : > { %5625 = vrot.lane.b32.xlu0 %v7950_v46, %s7046_s1 }
 0x96b   : > { %2630 = vmatpush.msra.mxu3 %v2563_v53  ;;  %v2855_v53 = vld [vmem:[%s10163_s22 + $0x120] sm:$0xff] }
 0x96d   : > { %2631 = vmatpush.msra.mxu3 %v2562_v54  ;;  %v2856_v54 = vld [vmem:[%s10163_s22 + $0x128] sm:$0xff] }
 0x96e   : > { %2474 = vmatmul.f32.gmra.mxu3 %v2381_v56  ;;  %v7976_v56 = vpack.i.bf16 %v2856_v54, %v2855_v53 }
 0x96f   : > { %2632 = vmatpush.msra.mxu3 %v2561_v55  ;;  %v7974_v55 = vpack.i.bf16 %v7964_v52, %v7959_v50 }
 0x971   : > { %2633 = vmatpush.msra.mxu3 %v2560_v57  ;;  %5690 = vrot.lane.b32.xlu1 %v7974_v55, %s7046_s1 }
 0x972   : > { %5640 = vrot.lane.b32.xlu0 %v7976_v56, %s7046_s1 }
 0x973   : > { %2634 = vmatpush.msra.mxu3 %v2559_v58  ;;  %v5571_v58 = vpop.permute.xlu2 %5570 }
 0x974   : > { %v5573_v54 = vunpack.i.h.bf16 %v5571_v58 }
 0x975   : > { %2635 = vmatpush.msra.mxu3 %v2558_v59  ;;  %v7985_v59 = vld [vmem:[%s10163_s22 + $0x1f0] sm:$0xff] }
 0x976   : > { %2636 = vmatmul.f32.vlgmr.msra.gmra.mxu3 %v2523_v0  ;;  %v7994_v0 = vpack.i.bf16 %v7990_v60, %v7985_v59 }
 0x979   : > { %5705 = vrot.lane.b32.xlu1 %v7994_v0, %s7046_s1 }
 0x97b   : > { %v5581_v24 = vpop.permute.xlu2 %5580 }
 0x97c   : > { %v5583_v25 = vunpack.i.h.bf16 %v5581_v24  ;;  %v5582_v32 = vunpack.i.l.bf16 %v5581_v24 }
 0x97e   : > { %2639 = vmatmul.f32.gmra.mxu3 %v2524_v14  ;;  %v8002_v14 = vpack.i.bf16 %v2862_v3, %v2861_v2  ;;  %v5568_v2 = vunpack.i.h.bf16 %v5566_v47  ;;  %v5561_v3 = vpop.permute.xlu0 %5560 }
 0x97f   : > { %v5563_v24 = vunpack.i.h.bf16 %v5561_v3 }
 0x980   : > { %5655 = vrot.lane.b32.xlu0 %v8002_v14, %s7046_s1 }
 0x981   : > { %5720 = vrot.lane.b32.xlu1 %v7828_v43, %s7047_s25 }
 0x987   : > { %v5576_v57 = vpop.permute.xlu1 %5575 }
 0x988   : > { %v5578_v36 = vunpack.i.h.bf16 %v5576_v57  ;;  %v5577_v53 = vunpack.i.l.bf16 %v5576_v57  ;;  %v5557_v57 = vunpack.i.l.bf16 %v5556_v45 }
 0x98f   : > { %v5586_v44 = vpop.permute.xlu1 %5585 }
 0x990   : > { %v5588_v11 = vunpack.i.h.bf16 %v5586_v44  ;;  %v5587_v13 = vunpack.i.l.bf16 %v5586_v44  ;;  %v5572_v44 = vunpack.i.l.bf16 %v5571_v58 }
 0x992   : > { %3188 = vmatpush.msrb.mxu3 %v5588_v11  ;;  %v5567_v11 = vunpack.i.l.bf16 %v5566_v47  ;;  %v1901_v47 = vpop.f32.mrf.mxu0 }
 0x994   : > { %3189 = vmatpush.msrb.mxu3 %v5587_v13  ;;  %v5562_v13 = vunpack.i.l.bf16 %v5561_v3 }
 0x996   : > { %3190 = vmatpush.msrb.mxu3 %v5583_v25  ;;  %v5558_v25 = vunpack.i.h.bf16 %v5556_v45  ;;  %v2835_v45 = vld [vmem:[%s10163_s22 + $0x80] sm:$0xff] }
 0x998   : > { %3191 = vmatpush.msrb.mxu3 %v5582_v32  ;;  %v5553_v32 = vunpack.i.h.bf16 %v7914_v16 }
 0x99a   : > { %3192 = vmatpush.msrb.mxu3 %v5578_v36  ;;  %v5552_v36 = vunpack.i.l.bf16 %v7914_v16  ;;  %v2836_v16 = vld [vmem:[%s10163_s22 + $0x88] sm:$0xff] }
 0x99b   : > { %v8023_v58 = vpack.i.bf16 %v2836_v16, %v2835_v45  ;;  %v2866_v45 = vld [vmem:[%s10163_s22 + $0x178] sm:$0xff] }
 0x99c   : > { %3193 = vmatpush.msrb.mxu3 %v5577_v53 }
 0x99d   : > { %5590 = vrot.lane.b32.xlu2 %v8023_v58, %s7046_s1 }
 0x99e   : > { %3194 = vmatpush.msrb.mxu3 %v5573_v54 }
 0x9a0   : > { %3195 = vmatpush.msrb.mxu3 %v5572_v44 }
 0x9a2   : > { %3196 = vmatpush.msrb.mxu3 %v5568_v2 }
 0x9a4   : > { %3197 = vmatpush.msrb.mxu3 %v5567_v11 }
 0x9a6   : > { %3198 = vmatpush.msrb.mxu3 %v5563_v24 }
 0x9a8   : > { %3199 = vmatpush.msrb.mxu3 %v5562_v13 }
 0x9aa   : > { %3200 = vmatpush.msrb.mxu3 %v5558_v25 }
 0x9ac   : > { %3201 = vmatpush.msrb.mxu3 %v5557_v57 }
 0x9ae   : > { %3202 = vmatpush.msrb.mxu3 %v5553_v32 }
 0x9b0   : > { %3203 = vmatpush.msrb.mxu3 %v5552_v36 }
 0x9b2   : > { %3317 = vmatpush.msra.mxu3 %v7784_v27 }
 0x9b4   : > { %3318 = vmatpush.msra.mxu3 %v7779_v26  ;;  %v2842_v26 = vld [vmem:[%s10163_s22 + $0xb8] sm:$0xff] }
 0x9b6   : > { %3319 = vmatpush.msra.mxu3 %v7848_v7 }
 0x9b8   : > { %3320 = vmatpush.msra.mxu3 %v7843_v6 }
 0x9ba   : > { %3321 = vmatpush.msra.mxu3 %v7768_v18  ;;  %v2841_v18 = vld [vmem:[%s10163_s22 + $0xb0] sm:$0xff] }
 0x9bb   : > { %v8037_v27 = vpack.i.bf16 %v2842_v26, %v2841_v18  ;;  %v8117_v26 = vld [vmem:[%s10163_s22 + $0x1a8] sm:$0xff] }
 0x9bc   : > { %3322 = vmatpush.msra.mxu3 %v7763_v17  ;;  %v1904_v17 = vpop.f32.mrf.mxu0 }
 0x9bd   : > { %5605 = vrot.lane.b32.xlu2 %v8037_v27, %s7046_s1  ;;  %v1934_v11 = vadd.f32 %v7704_v19, %v1904_v17  ;;  %v2865_v19 = vld [vmem:[%s10163_s22 + $0x170] sm:$0xff]  ;;  %v8122_v17 = vld [vmem:[%s10163_s22 + $0x180] sm:$0xff] }
 0x9be   : > { %3323 = vmatpush.msra.mxu3 %v7824_v42  ;;  %v8042_v42 = vpop.permute.xlu1 %5600 }
 0x9bf   : > { %10164 = vst [vmem:[#allocation29_spill] sm:$0xff] %v8042_v42 }
 0x9c0   : > { %3324 = vmatpush.msra.mxu3 %v7819_v40  ;;  %v2848_v40 = vld [vmem:[%s10163_s22 + $0xe8] sm:$0xff] }
 0x9c2   : > { %3325 = vmatpush.msra.mxu3 %v7751_v5  ;;  %v2847_v5 = vld [vmem:[%s10163_s22 + $0xe0] sm:$0xff] }
 0x9c3   : > { %v8052_v6 = vpack.i.bf16 %v2848_v40, %v2847_v5  ;;  %v8127_v5 = vld [vmem:[%s10163_s22 + $0x188] sm:$0xff] }
 0x9c4   : > { %3326 = vmatpush.msra.mxu3 %v7746_v4  ;;  %v2061_v4 = vpop.f32.mrf.mxu0 }
 0x9c5   : > { %5620 = vrot.lane.b32.xlu2 %v8052_v6, %s7046_s1 }
 0x9c6   : > { %3327 = vmatpush.msra.mxu3 %v7814_v38  ;;  %v2853_v38 = vld [vmem:[%s10163_s22 + $0x110] sm:$0xff]  ;;  %v8065_v7 = vpop.permute.xlu1 %5615 }
 0x9c7   : > { %10165 = vst [vmem:[#allocation30_spill] sm:$0xff] %v8065_v7 }
 0x9c8   : > { %3328 = vmatpush.msra.mxu3 %v7809_v37  ;;  %v2854_v37 = vld [vmem:[%s10163_s22 + $0x118] sm:$0xff] }
 0x9ca   : > { %3329 = vmatpush.msra.mxu3 %v7794_v31  ;;  %v8069_v31 = vpack.i.bf16 %v2854_v37, %v2853_v38  ;;  %v8146_v37 = vld [vmem:[%s10163_s22 + $0x1d0] sm:$0xff] }
 0x9cc   : > { %3330 = vmatpush.msra.mxu3 %v7789_v8  ;;  %v1931_v8 = vadd.f32 %v7702_v15, %v1901_v47  ;;  %v2860_v15 = vld [vmem:[%s10163_s22 + $0x148] sm:$0xff]  ;;  %v2064_v3 = vpop.f32.mrf.mxu0  ;;  %v8102_v47 = vpack.i.bf16 %v2866_v45, %v2865_v19 }
 0x9cd   : > { %5635 = vrot.lane.b32.xlu2 %v8069_v31, %s7046_s1  ;;  %v2068_v57 = vadd.f32 %v2064_v3, %v1934_v11 }
 0x9ce   : > { %3331 = vmatpush.msra.mxu3 %v7735_v62  ;;  %v2067_v53 = vadd.f32 %v2061_v4, %v1931_v8  ;;  %v6513_v62 = vld [vmem:[%s10166_s12] ss:$0 sm:$0xff]  ;;  %v8086_v13 = vpop.permute.xlu1 %5630  ;;  %v8135_v4 = vpack.i.bf16 %v8127_v5, %v8122_v17  ;;  %v8151_v8 = vld [vmem:[%s10163_s22 + $0x1d8] sm:$0xff] }
 0x9cf   : > { %10168 = vst [vmem:[#allocation32_spill] sm:$0xff] %v8086_v13 }
 0x9d0   : > { %3332 = vmatpush.msra.mxu3 %v7730_v61  ;;  %v2859_v61 = vld [vmem:[%s10163_s22 + $0x140] sm:$0xff] }
 0x9d1   : > { %v8088_v25 = vpack.i.bf16 %v2860_v15, %v2859_v61  ;;  %v8180_v61 = vld [vmem:[%s10163_s22 + $0x1e0] sm:$0xff]  ;;  %v8185_v15 = vld [vmem:[%s10163_s22 + $0x1e8] sm:$0xff] }
 0x9d2   : > { %v8189_v3 = vpack.i.bf16 %v8185_v15, %v8180_v61 }
 0x9d5   : > { %5650 = vrot.lane.b32.xlu2 %v8088_v25, %s7046_s1 }
 0x9d6   : > { %v8105_v18 = vpop.permute.xlu1 %5645 }
 0x9d7   : > { %10170 = vst [vmem:[#allocation34_spill] sm:$0xff] %v8105_v18 }
 0x9d9   : > { %v2194_v54 = vpop.f32.mrf.mxu3 }
 0x9da   : > { %v2200_v44 = vadd.f32 %v2194_v54, %v2067_v53  ;;  %v8156_v53 = vld [vmem:[%s10163_s22 + $0x1b0] sm:$0xff]  ;;  %v8161_v54 = vld [vmem:[%s10163_s22 + $0x1b8] sm:$0xff] }
 0x9dc   : > { %v2202_v2 = vadd.f32 %v2200_v44, %v7594_v22  ;;  %v8165_v44 = vpack.i.bf16 %v8151_v8, %v8146_v37 }
 0x9dd   : > { %5665 = vrot.lane.b32.xlu2 %v8102_v47, %s7046_s1 }
 0x9de   : > { %v8084_v24 = vadd.f32 %v6513_v62, %v2202_v2  ;;  %v8137_v38 = vpop.permute.xlu1 %5660 }
 0x9df   : > { %10171 = vst [vmem:[#allocation35_spill] sm:$0xff] %v8137_v38 }
 0x9e0   : > { %10167 = vst [vmem:[#allocation31_spill] sm:$0xff] %v8084_v24  ;;  %2212 = vadd.xlane.f32.xlu0 %v8084_v24 }
 0x9e1   : > { %v2197_v22 = vpop.f32.mrf.mxu3 }
 0x9e2   : > { %v2201_v32 = vadd.f32 %v2197_v22, %v2068_v57 }
 0x9e4   : > { %v2203_v36 = vadd.f32 %v2201_v32, %v7597_v28  ;;  %v8112_v28 = vld [vmem:[%s10163_s22 + $0x1a0] sm:$0xff] }
 0x9e5   : > { %v8131_v40 = vpack.i.bf16 %v8117_v26, %v8112_v28 }
 0x9e6   : > { %v8100_v16 = vadd.f32 %v6513_v62, %v2203_v36  ;;  %v8169_v62 = vpack.i.bf16 %v8161_v54, %v8156_v53  ;;  %v8171_v2 = vpop.permute.xlu1 %5675  ;;  %v8205_v36 = vpop.permute.xlu0 %5595 }
 0x9e7   : > { %5680 = vrot.lane.b32.xlu2 %v8131_v40, %s7046_s1  ;;  %10172 = vst [vmem:[#allocation36_spill] sm:$0xff] %v8205_v36 }
 0x9e8   : > { %10169 = vst [vmem:[#allocation33_spill] sm:$0xff] %v8100_v16  ;;  %2214 = vadd.xlane.f32.xlu1 %v8100_v16 }
 0x9ee   : > { %v8191_v11 = vpop.permute.xlu1 %5690 }
 0x9ef   : > { %5695 = vrot.lane.b32.xlu2 %v8165_v44, %s7046_s1 }
 0x9f4   : > { %5670 = vrot.lane.b32.xlu0 %v8135_v4, %s7046_s1 }
 0x9f6   : > { %v5706_v57 = vpop.permute.xlu1 %5705 }
 0x9f7   : > { %5710 = vrot.lane.b32.xlu2 %v7739_v63, %s7047_s25  ;;  %v5708_v22 = vunpack.i.h.bf16 %v5706_v57  ;;  %v5707_v32 = vunpack.i.l.bf16 %v5706_v57  ;;  %v8207_v63 = vpop.permute.xlu0 %5610  ;;  %v8209_v19 = vpop.permute.xlu2 %5590 }
 0x9f8   : > { %10173 = vst [vmem:[#allocation37_spill] sm:$0xff] %v8207_v63  ;;  %v5693_v63 = vunpack.i.h.bf16 %v8191_v11 }
 0x9f9   : > { %3257 = vmatpush.msra.mxu2 %v5708_v22  ;;  %10174 = vst [vmem:[#allocation38_spill] sm:$0xff] %v8209_v19 }
 0x9fb   : > { %3258 = vmatpush.msra.mxu2 %v5707_v32 }
 0x9fc   : > { %5685 = vrot.lane.b32.xlu0 %v8169_v62, %s7046_s1 }
 0x9fe   : > { %v8229_v18 = vpop.permute.xlu1 %5720 }
 0x9ff   : > { %5725 = vrot.lane.b32.xlu2 %v7755_v48, %s7047_s25  ;;  %v8211_v45 = vpop.permute.xlu0 %5625  ;;  %10179 = vst [vmem:[#allocation43_spill] sm:$0xff] %v8229_v18 }
 0xa01   : > { %5735 = vrot.lane.b32.xlu1 %v7772_v20, %s7047_s25 }
 0xa04   : > { %5700 = vrot.lane.b32.xlu0 %v8189_v3, %s7046_s1  ;;  %s7048_s1 = smov 125  }
 0xa07   : > { %5740 = vrot.lane.b32.xlu2 %v7852_v9, %s7047_s25  ;;  %v8217_v48 = vpop.permute.xlu0 %5640 }
 0xa08   : > { %10176 = vst [vmem:[#allocation40_spill] sm:$0xff] %v8217_v48 }
 0xa0c   : > { %5715 = vrot.lane.b32.xlu0 %v7802_v34, %s7047_s25 }
 0xa0f   : > { %5755 = vrot.lane.b32.xlu2 %v7902_v10, %s7047_s25  ;;  %v8223_v32 = vpop.permute.xlu0 %5655 }
 0xa10   : > { %10177 = vst [vmem:[#allocation41_spill] sm:$0xff] %v8223_v32 }
 0xa14   : > { %5730 = vrot.lane.b32.xlu0 %v7836_v49, %s7047_s25 }
 0xa17   : > { %v8213_v57 = vpop.permute.xlu2 %5605 }
 0xa18   : > { %10175 = vst [vmem:[#allocation39_spill] sm:$0xff] %v8213_v57 }
 0xa1c   : > { %5745 = vrot.lane.b32.xlu0 %v7798_v33, %s7047_s25 }
 0xa1f   : > { %v8219_v22 = vpop.permute.xlu2 %5620 }
 0xa24   : > { %5760 = vrot.lane.b32.xlu0 %v7863_v21, %s7047_s25 }
 0xa27   : > { %v8225_v13 = vpop.permute.xlu2 %5635 }
 0xa28   : > { %10178 = vst [vmem:[#allocation42_spill] sm:$0xff] %v8225_v13 }
 0xa2c   : > { %5775 = vrot.lane.b32.xlu0 %v7874_v35, %s7047_s25 }
 0xa2f   : > { %v8239_v32 = vpop.permute.xlu2 %5650 }
 0xa30   : > { %10180 = vst [vmem:[#allocation44_spill] sm:$0xff] %v8239_v32 }
 0xa34   : > { %5790 = vrot.lane.b32.xlu0 %v7884_v51, %s7047_s25 }
 0xa3c   : > { %5805 = vrot.lane.b32.xlu0 %v7894_v1, %s7047_s25 }
 0xa44   : > { %5820 = vrot.lane.b32.xlu0 %v7916_v23, %s7047_s25 }
 0xa4c   : > { %5835 = vrot.lane.b32.xlu0 %v7948_v39, %s7047_s25 }
 0xa53   : > { %v2213_v38 = vpop.xlane.xlu0 %2212 }
 0xa54   : > { %v2216_v19 = vmul.f32 %v2213_v38, %v7600_v41  ;;  %5850 = vrot.lane.b32.xlu0 %v7974_v55, %s7047_s25 }
 0xa56   : > { %v8233_v36 = vsub.f32 %v8084_v24, %v2216_v19  ;;  %v8249_v19 = vpop.permute.xlu2 %5665 }
 0xa57   : > { %10181 = vst [vmem:[#allocation45_spill] sm:$0xff] %v8249_v19 }
 0xa58   : > { %v2220_v48 = vmul.f32 %v8233_v36, %v8233_v36 }
 0xa5a   : > { %2222 = vadd.xlane.f32.xlu1 %v2220_v48 }
 0xa5b   : > { %v2215_v13 = vpop.xlane.xlu1 %2214 }
 0xa5c   : > { %v2217_v42 = vmul.f32 %v2215_v13, %v7600_v41  ;;  %5865 = vrot.lane.b32.xlu0 %v7994_v0, %s7047_s25 }
 0xa5e   : > { %v8243_v18 = vsub.f32 %v8100_v16, %v2217_v42  ;;  %v5681_v48 = vpop.permute.xlu2 %5680 }
 0xa60   : > { %v2221_v38 = vmul.f32 %v8243_v18, %v8243_v18 }
 0xa62   : > { %2224 = vadd.xlane.f32.xlu2 %v2221_v38 }
 0xa64   : > { %5880 = vrot.lane.b32.xlu0 %v7828_v43, %s7048_s1  ;;  %v2265_v43 = vld [vmem:[#allocation14 + $0x18] sm:$0xff] }
 0xa66   : > { %v5671_v24 = vpop.permute.xlu0 %5670  ;;  %v5696_v57 = vpop.permute.xlu2 %5695 }
 0xa67   : > { %v5698_v38 = vunpack.i.h.bf16 %v5696_v57  ;;  %v5697_v19 = vunpack.i.l.bf16 %v5696_v57  ;;  %v5682_v57 = vunpack.i.l.bf16 %v5681_v48 }
 0xa6c   : > { %5895 = vrot.lane.b32.xlu0 %v7772_v20, %s7048_s1  ;;  %v2431_v20 = vld [vmem:[#allocation17 + $0x178] sm:$0xff] }
 0xa6e   : > { %v5686_v32 = vpop.permute.xlu0 %5685 }
 0xa6f   : > { %v5688_v7 = vunpack.i.h.bf16 %v5686_v32 }
 0xa73   : > { %5750 = vrot.lane.b32.xlu1 %v8023_v58, %s7047_s25 }
 0xa74   : > { %5910 = vrot.lane.b32.xlu0 %v8023_v58, %s7048_s1 }
 0xa76   : > { %v5701_v42 = vpop.permute.xlu0 %5700 }
 0xa77   : > { %v5703_v13 = vunpack.i.h.bf16 %v5701_v42  ;;  %v5702_v16 = vunpack.i.l.bf16 %v5701_v42  ;;  %v5692_v42 = vunpack.i.l.bf16 %v8191_v11  ;;  %v5678_v11 = vunpack.i.h.bf16 %v8171_v2 }
 0xa79   : > { %3259 = vmatpush.msra.mxu2 %v5703_v13  ;;  %v5687_v13 = vunpack.i.l.bf16 %v5686_v32  ;;  %v2276_v32 = vld [vmem:[#allocation14 + $0x70] sm:$0xff] }
 0xa7a   : > { %5770 = vrot.lane.b32.xlu2 %v7924_v12, %s7047_s25 }
 0xa7b   : > { %3260 = vmatpush.msra.mxu2 %v5702_v16  ;;  %5765 = vrot.lane.b32.xlu1 %v8037_v27, %s7047_s25  ;;  %v5683_v16 = vunpack.i.h.bf16 %v5681_v48  ;;  %v2275_v48 = vld [vmem:[#allocation14 + $0x68] sm:$0xff] }
 0xa7c   : > { %5925 = vrot.lane.b32.xlu0 %v8037_v27, %s7048_s1  ;;  %v2425_v27 = vld [vmem:[#allocation17 + $0x148] sm:$0xff] }
 0xa7d   : > { %3261 = vmatpush.msra.mxu2 %v5698_v38  ;;  %v5672_v38 = vunpack.i.l.bf16 %v5671_v24 }
 0xa7f   : > { %3262 = vmatpush.msra.mxu2 %v5697_v19  ;;  %v5673_v19 = vunpack.i.h.bf16 %v5671_v24  ;;  %v2271_v24 = vld [vmem:[#allocation14 + $0x48] sm:$0xff] }
 0xa81   : > { %3263 = vmatpush.msra.mxu2 %v5693_v63  ;;  %v2277_v63 = vld [vmem:[#allocation14 + $0x78] sm:$0xff] }
 0xa82   : > { %5785 = vrot.lane.b32.xlu2 %v7950_v46, %s7047_s25  ;;  %2282 = vmatpush.msrb.mxu0 %v2277_v63  ;;  %v6579_v63 = vld [vmem:[%s10163_s22 + $0x38] sm:$0xff] }
 0xa83   : > { %3264 = vmatpush.msra.mxu2 %v5692_v42  ;;  %5780 = vrot.lane.b32.xlu1 %v8052_v6, %s7047_s25  ;;  %v2274_v42 = vld [vmem:[#allocation14 + $0x60] sm:$0xff] }
 0xa84   : > { %2283 = vmatpush.msrb.mxu0 %v2276_v32  ;;  %5940 = vrot.lane.b32.xlu0 %v8052_v6, %s7048_s1  ;;  %v8363_v6 = vpop.permute.xlu1 %5735 }
 0xa85   : > { %3265 = vmatpush.msra.mxu2 %v5688_v7  ;;  %v5677_v7 = vunpack.i.l.bf16 %v8171_v2  ;;  %v2273_v2 = vld [vmem:[#allocation14 + $0x58] sm:$0xff]  ;;  %10187 = vst [vmem:[#allocation51_spill] sm:$0xff] %v8363_v6 }
 0xa86   : > { %2284 = vmatpush.msrb.mxu0 %v2275_v48 }
 0xa87   : > { %3266 = vmatpush.msra.mxu2 %v5687_v13  ;;  %v2272_v13 = vld [vmem:[#allocation14 + $0x50] sm:$0xff] }
 0xa88   : > { %2285 = vmatpush.msrb.mxu0 %v2274_v42  ;;  %v2421_v42 = vld [vmem:[#allocation17 + $0x128] sm:$0xff] }
 0xa89   : > { %3267 = vmatpush.msra.mxu2 %v5683_v16  ;;  %v2270_v16 = vld [vmem:[#allocation14 + $0x40] sm:$0xff] }
 0xa8a   : > { %5800 = vrot.lane.b32.xlu2 %v7976_v56, %s7047_s25  ;;  %2286 = vmatpush.msrb.mxu0 %v2273_v2  ;;  %v2420_v2 = vld [vmem:[#allocation17 + $0x120] sm:$0xff] }
 0xa8b   : > { %3268 = vmatpush.msra.mxu2 %v5682_v57  ;;  %5795 = vrot.lane.b32.xlu1 %v8069_v31, %s7047_s25  ;;  %v2268_v57 = vld [vmem:[#allocation14 + $0x30] sm:$0xff] }
 0xa8c   : > { %2287 = vmatpush.msrb.mxu0 %v2272_v13  ;;  %5955 = vrot.lane.b32.xlu0 %v8069_v31, %s7048_s1  ;;  %v2419_v13 = vld [vmem:[#allocation17 + $0x118] sm:$0xff] }
 0xa8d   : > { %3269 = vmatpush.msra.mxu2 %v5678_v11  ;;  %v2429_v11 = vld [vmem:[#allocation17 + $0x168] sm:$0xff] }
 0xa8e   : > { %2288 = vmatpush.msrb.mxu0 %v2271_v24 }
 0xa8f   : > { %3270 = vmatpush.msra.mxu2 %v5677_v7 }
 0xa90   : > { %2289 = vmatpush.msrb.mxu0 %v2270_v16  ;;  %v2418_v16 = vld [vmem:[#allocation17 + $0x110] sm:$0xff] }
 0xa91   : > { %3271 = vmatpush.msra.mxu2 %v5673_v19  ;;  %v2423_v19 = vld [vmem:[#allocation17 + $0x138] sm:$0xff] }
 0xa92   : > { %5815 = vrot.lane.b32.xlu2 %v8002_v14, %s7047_s25 }
 0xa93   : > { %5810 = vrot.lane.b32.xlu1 %v8088_v25, %s7047_s25  ;;  %3272 = vmatpush.msra.mxu2 %v5672_v38  ;;  %v2422_v38 = vld [vmem:[#allocation17 + $0x130] sm:$0xff] }
 0xa94   : > { %5970 = vrot.lane.b32.xlu0 %v8088_v25, %s7048_s1 }
 0xa95   : > { %3386 = vmatpush.msrb.mxu2 %v7990_v60  ;;  %v2269_v60 = vld [vmem:[#allocation14 + $0x38] sm:$0xff] }
 0xa96   : > { %2290 = vmatpush.msrb.mxu0 %v2269_v60  ;;  %v2417_v60 = vld [vmem:[#allocation17 + $0x108] sm:$0xff] }
 0xa97   : > { %3387 = vmatpush.msrb.mxu2 %v7985_v59  ;;  %v2267_v59 = vld [vmem:[#allocation14 + $0x28] sm:$0xff] }
 0xa98   : > { %2291 = vmatpush.msrb.mxu0 %v2268_v57 }
 0xa99   : > { %3388 = vmatpush.msrb.mxu2 %v8185_v15  ;;  %v2266_v15 = vld [vmem:[#allocation14 + $0x20] sm:$0xff] }
 0xa9a   : > { %5830 = vrot.lane.b32.xlu2 %v8135_v4, %s7047_s25  ;;  %2292 = vmatpush.msrb.mxu0 %v2267_v59 }
 0xa9b   : > { %5825 = vrot.lane.b32.xlu1 %v8102_v47, %s7047_s25  ;;  %3389 = vmatpush.msrb.mxu2 %v8180_v61  ;;  %v2264_v61 = vld [vmem:[#allocation14 + $0x10] sm:$0xff] }
 0xa9c   : > { %2293 = vmatpush.msrb.mxu0 %v2266_v15  ;;  %5985 = vrot.lane.b32.xlu0 %v8102_v47, %s7048_s1 }
 0xa9d   : > { %3390 = vmatpush.msrb.mxu2 %v8151_v8  ;;  %v2263_v8 = vld [vmem:[#allocation14 + $0x8] sm:$0xff] }
 0xa9e   : > { %2294 = vmatpush.msrb.mxu0 %v2265_v43 }
 0xa9f   : > { %3391 = vmatpush.msrb.mxu2 %v8146_v37  ;;  %v2262_v37 = vld [vmem:[#allocation14] sm:$0xff] }
 0xaa0   : > { %2295 = vmatpush.msrb.mxu0 %v2264_v61 }
 0xaa1   : > { %3392 = vmatpush.msrb.mxu2 %v7964_v52  ;;  %v8316_v52 = vpop.permute.xlu2 %5710 }
 0xaa2   : > { %5845 = vrot.lane.b32.xlu2 %v8169_v62, %s7047_s25  ;;  %2296 = vmatpush.msrb.mxu0 %v2263_v8  ;;  %10182 = vst [vmem:[#allocation46_spill] sm:$0xff] %v8316_v52 }
 0xaa3   : > { %5840 = vrot.lane.b32.xlu1 %v8131_v40, %s7047_s25  ;;  %3393 = vmatpush.msrb.mxu2 %v7959_v50  ;;  %v2430_v50 = vld [vmem:[#allocation17 + $0x170] sm:$0xff] }
 0xaa4   : > { %2297 = vmatpush.msrb.mxu0 %v2262_v37  ;;  %6000 = vrot.lane.b32.xlu0 %v8131_v40, %s7048_s1 }
 0xaa5   : > { %3394 = vmatpush.msrb.mxu2 %v8161_v54 }
 0xaa6   : > { %2478 = vmatpush.msra.mxu0 %v2431_v20 }
 0xaa7   : > { %3395 = vmatpush.msrb.mxu2 %v8156_v53  ;;  %v6577_v53 = vld [vmem:[%s10163_s22 + $0x8] sm:$0xff] }
 0xaa8   : > { %2479 = vmatpush.msra.mxu0 %v2430_v50 }
 0xaa9   : > { %3396 = vmatpush.msrb.mxu2 %v8117_v26  ;;  %v6576_v26 = vld [vmem:[%s10163_s22] sm:$0xff]  ;;  %v8345_v7 = vpop.permute.xlu2 %5725 }
 0xaaa   : > { %5860 = vrot.lane.b32.xlu2 %v8189_v3, %s7047_s25  ;;  %v8324_v54 = vpack.i.bf16 %v6577_v53, %v6576_v26  ;;  %2480 = vmatpush.msra.mxu0 %v2429_v11  ;;  %10184 = vst [vmem:[#allocation48_spill] sm:$0xff] %v8345_v7  ;;  %v6515_v11 = vld [vmem:[%s10191_s17] ss:$0 sm:$0xff]  ;;  %v8736_v7 = vld [vmem:[%s10163_s22 + $0x110] sm:$0xff]  ;;  %s10288_s17 = sld [smem:[#allocation127_spill]] }
 0xaab   : > { %5855 = vrot.lane.b32.xlu1 %v8165_v44, %s7047_s25  ;;  %3397 = vmatpush.msrb.mxu2 %v8112_v28  ;;  %v2427_v28 = vld [vmem:[#allocation17 + $0x158] sm:$0xff]  ;;  %10229 = vst [vmem:[#allocation79_spill] sm:$0xff] %v8736_v7 }
 0xaac   : > { %6015 = vrot.lane.b32.xlu0 %v8165_v44, %s7048_s1 }
 0xaad   : > { %3398 = vmatpush.msrb.mxu2 %v7938_v30  ;;  %v2428_v30 = vld [vmem:[#allocation17 + $0x160] sm:$0xff] }
 0xaae   : > { %2481 = vmatpush.msra.mxu0 %v2428_v30 }
 0xaaf   : > { %3399 = vmatpush.msrb.mxu2 %v7933_v29  ;;  %v8335_v29 = vpop.permute.xlu0 %5715 }
 0xab0   : > { %2482 = vmatpush.msra.mxu0 %v2427_v28  ;;  %10183 = vst [vmem:[#allocation47_spill] sm:$0xff] %v8335_v29  ;;  %v2307_v29 = vld [vmem:[#allocation16] sm:$0xff] }
 0xab1   : > { %3400 = vmatpush.msrb.mxu2 %v8127_v5  ;;  %v2426_v5 = vld [vmem:[#allocation17 + $0x150] sm:$0xff] }
 0xab2   : > { %5875 = vrot.lane.b32.xlu2 %v7802_v34, %s7048_s1  ;;  %v6578_v34 = vld [vmem:[%s10163_s22 + $0x30] sm:$0xff]  ;;  %2483 = vmatpush.msra.mxu0 %v2426_v5 }
 0xab3   : > { %5870 = vrot.lane.b32.xlu1 %v8324_v54, %s7048_s1  ;;  %3401 = vmatpush.msrb.mxu2 %v8122_v17  ;;  %v8343_v32 = vpack.i.bf16 %v6579_v63, %v6578_v34  ;;  %v2424_v17 = vld [vmem:[#allocation17 + $0x140] sm:$0xff] }
 0xab4   : > { %2484 = vmatpush.msra.mxu0 %v2425_v27  ;;  %v2685_v27 = vld [vmem:[#allocation17 + $0x378] sm:$0xff]  ;;  %6030 = vrot.lane.b32.xlu0 %v8324_v54, %s7049_s19 }
 0xab6   : > { %2485 = vmatpush.msra.mxu0 %v2424_v17  ;;  %v2684_v17 = vld [vmem:[#allocation17 + $0x370] sm:$0xff] }
 0xab7   : > { %v8353_v48 = vpop.permute.xlu0 %5730 }
 0xab8   : > { %2486 = vmatpush.msra.mxu0 %v2423_v19  ;;  %10185 = vst [vmem:[#allocation49_spill] sm:$0xff] %v8353_v48  ;;  %v2683_v19 = vld [vmem:[#allocation17 + $0x368] sm:$0xff] }
 0xaba   : > { %5890 = vrot.lane.b32.xlu2 %v7836_v49, %s7048_s1  ;;  %2487 = vmatpush.msra.mxu0 %v2422_v38  ;;  %v8357_v49 = vpop.permute.xlu2 %5740 }
 0xabb   : > { %5885 = vrot.lane.b32.xlu1 %v8343_v32, %s7048_s1  ;;  %10186 = vst [vmem:[#allocation50_spill] sm:$0xff] %v8357_v49  ;;  %v2540_v49 = vld [vmem:[#allocation17 + $0x1f0] sm:$0xff] }
 0xabc   : > { %2488 = vmatpush.msra.mxu0 %v2421_v42  ;;  %6045 = vrot.lane.b32.xlu0 %v8343_v32, %s7049_s19 }
 0xabe   : > { %2489 = vmatpush.msra.mxu0 %v2420_v2 }
 0xabf   : > { %v8365_v24 = vpop.permute.xlu0 %5745 }
 0xac0   : > { %2490 = vmatpush.msra.mxu0 %v2419_v13  ;;  %10188 = vst [vmem:[#allocation52_spill] sm:$0xff] %v8365_v24  ;;  %v2682_v13 = vld [vmem:[#allocation17 + $0x360] sm:$0xff]  ;;  %v2539_v24 = vld [vmem:[#allocation17 + $0x1e8] sm:$0xff] }
 0xac2   : > { %5905 = vrot.lane.b32.xlu2 %v7798_v33, %s7048_s1  ;;  %2491 = vmatpush.msra.mxu0 %v2418_v16  ;;  %v2416_v33 = vld [vmem:[#allocation17 + $0x100] sm:$0xff] }
 0xac3   : > { %5900 = vrot.lane.b32.xlu1 %v7852_v9, %s7048_s1  ;;  %v8373_v9 = vpop.permute.xlu2 %5755 }
 0xac4   : > { %2492 = vmatpush.msra.mxu0 %v2417_v60 }
 0xac6   : > { %2493 = vmatpush.msra.mxu0 %v2416_v33  ;;  %v2680_v33 = vld [vmem:[#allocation17 + $0x350] sm:$0xff] }
 0xac7   : > { %v8376_v59 = vpop.permute.xlu0 %5760 }
 0xaca   : > { %5920 = vrot.lane.b32.xlu2 %v7863_v21, %s7048_s1 }
 0xacb   : > { %5915 = vrot.lane.b32.xlu1 %v7902_v10, %s7048_s1 }
 0xacd   : > { %v2223_v31 = vpop.xlane.xlu1 %2222 }
 0xace   : > { %v2226_v57 = vmul.f32 %v2223_v31, %v7600_v41 }
 0xacf   : > { %v8385_v25 = vpop.permute.xlu0 %5775 }
 0xad0   : > { %v2228_v15 = vadd.f32 1e-06, %v2226_v57 }
 0xad2   : > { %6563 = vrsqrt.f32 %v2228_v15  ;;  %5935 = vrot.lane.b32.xlu2 %v7874_v35, %s7048_s1  ;;  %vm2236_vm10 = vweird.f32 %v2228_v15 }
 0xad3   : > { %5930 = vrot.lane.b32.xlu1 %v7924_v12, %s7048_s1 }
 0xad5   : > { %v2225_v21 = vpop.xlane.xlu2 %2224 }
 0xad6   : > { %v2227_v10 = vmul.f32 %v2225_v21, %v7600_v41 }
 0xad7   : > { %v8395_v41 = vpop.permute.xlu0 %5790 }
 0xad8   : > { %v6564_v43 = vpop.eup %6563  ;;  %v2229_v61 = vadd.f32 1e-06, %v2227_v10  ;;  %10189 = vst [vmem:[#allocation53_spill] sm:$0xff] %v8395_v41  ;;  %v2677_v10 = vld [vmem:[#allocation17 + $0x338] sm:$0xff] }
 0xad9   : > { %v2231_v8 = vmul.f32 %v6564_v43, %v2228_v15  ;;  %vm2237_vm9 = vweird.f32 %v6564_v43  ;;  %v2678_v15 = vld [vmem:[#allocation17 + $0x340] sm:$0xff] }
 0xada   : > { %6565 = vrsqrt.f32 %v2229_v61  ;;  %5950 = vrot.lane.b32.xlu2 %v7884_v51, %s7048_s1  ;;  %vm2238_vm11 = vmor %vm2236_vm10, %vm2237_vm9  ;;  %v6514_v51 = vld [vmem:[%s10190_s13] ss:$0 sm:$0xff]  ;;  %vm2246_vm13 = vweird.f32 %v2229_v61 }
 0xadb   : > { %v2232_v37 = vmul.f32 %v6564_v43, %v2231_v8  ;;  %5945 = vrot.lane.b32.xlu1 %v7950_v46, %s7048_s1  ;;  %v2382_v8 = vld [vmem:[#allocation2 + $0x9] sm:$0xff] }
 0xadd   : > { %v2233_v35 = vmul.f32 0.5, %v2232_v37  ;;  %v8393_v12 = vpop.permute.xlu2 %5770  ;;  %v2676_v37 = vld [vmem:[#allocation17 + $0x330] sm:$0xff] }
 0xadf   : > { %v2234_v47 = vsub.f32 1.5, %v2233_v35  ;;  %v8414_v63 = vpop.permute.xlu0 %5805  ;;  %v2675_v35 = vld [vmem:[#allocation17 + $0x328] sm:$0xff] }
 0xae0   : > { %v6566_v20 = vpop.eup %6565  ;;  %10192 = vst [vmem:[#allocation54_spill] sm:$0xff] %v8414_v63  ;;  %v8675_v63 = vld [vmem:[%s10163_s22 + $0x158] sm:$0xff] }
 0xae1   : > { %v2235_v50 = vmul.f32 %v6564_v43, %v2234_v47  ;;  %v2241_v26 = vmul.f32 %v6566_v20, %v2229_v61  ;;  %vm2247_vm12 = vweird.f32 %v6566_v20 }
 0xae2   : > { %5965 = vrot.lane.b32.xlu2 %v7894_v1, %s7048_s1  ;;  %vm2248_vm14 = vmor %vm2246_vm13, %vm2247_vm12 }
 0xae3   : > { %v2239_v46 = vsel %vm2238_vm11, %v6564_v43, %v2235_v50  ;;  %v2242_v40 = vmul.f32 %v6566_v20, %v2241_v26  ;;  %5960 = vrot.lane.b32.xlu1 %v7976_v56, %s7048_s1  ;;  %v8449_v43 = vld [vmem:[%s10163_s22 + $0x68] sm:$0xff] }
 0xae4   : > { %v2250_v53 = vmul.f32 %v2239_v46, %v8233_v36  ;;  %v2674_v50 = vld [vmem:[#allocation17 + $0x320] sm:$0xff]  ;;  %v8475_v46 = vld [vmem:[%s10163_s22 + $0x98] sm:$0xff] }
 0xae5   : > { %v2243_v30 = vmul.f32 0.5, %v2242_v40  ;;  %v8410_v28 = vpop.permute.xlu1 %5750  ;;  %v8412_v34 = vpop.permute.xlu2 %5785 }
 0xae6   : > { %v2255_v1 = vmul.f32 %v6514_v51, %v2250_v53  ;;  %v2383_v53 = vld [vmem:[#allocation2 + $0x11] sm:$0xff] }
 0xae7   : > { %v2244_v5 = vsub.f32 1.5, %v2243_v30  ;;  %v2671_v30 = vld [vmem:[#allocation17 + $0x308] sm:$0xff] }
 0xae8   : > { %v2260_v56 = vadd.f32 %v6515_v11, %v2255_v1 }
 0xae9   : > { %v2245_v36 = vmul.f32 %v6566_v20, %v2244_v5 }
 0xaea   : > { %2298 = vmatmul.f32.vlgmr.msrb.gmra.mxu0 %v2260_v56  ;;  %5980 = vrot.lane.b32.xlu2 %v7916_v23, %s7048_s1  ;;  %v8427_v23 = vpop.permute.xlu0 %5820  ;;  %v2670_v56 = vld [vmem:[#allocation17 + $0x300] sm:$0xff] }
 0xaeb   : > { %2718 = vmatpush.msrb.mxu0 %v2685_v27  ;;  %5975 = vrot.lane.b32.xlu1 %v8002_v14, %s7048_s1  ;;  %v2249_v44 = vsel %vm2248_vm14, %v6566_v20, %v2245_v36  ;;  %10194 = vst [vmem:[#allocation56_spill] sm:$0xff] %v8427_v23  ;;  %v2681_v14 = vld [vmem:[#allocation17 + $0x358] sm:$0xff]  ;;  %v2311_v23 = vld [vmem:[#allocation16 + $0x20] sm:$0xff] }
 0xaec   : > { %v2251_v38 = vmul.f32 %v2249_v44, %v8243_v18  ;;  %v2679_v18 = vld [vmem:[#allocation17 + $0x348] sm:$0xff]  ;;  %v6584_v27 = vld [vmem:[%s10163_s22 + $0x20] sm:$0xff]  ;;  %v6587_v44 = vld [vmem:[%s10163_s22 + $0x18] sm:$0xff] }
 0xaed   : > { %2719 = vmatpush.msrb.mxu0 %v2684_v17  ;;  %v8423_v42 = vpop.permute.xlu1 %5765  ;;  %v8425_v2 = vpop.permute.xlu2 %5800  ;;  %v6586_v17 = vld [vmem:[%s10163_s22 + $0x10] sm:$0xff] }
 0xaee   : > { %10193 = vst [vmem:[#allocation55_spill] sm:$0xff] %v8425_v2  ;;  %v2256_v16 = vmul.f32 %v6514_v51, %v2251_v38  ;;  %v2673_v51 = vld [vmem:[#allocation17 + $0x318] sm:$0xff]  ;;  %v5628_v38 = vunpack.i.h.bf16 %v8211_v45 }
 0xaef   : > { %2720 = vmatpush.msrb.mxu0 %v2683_v19  ;;  %v8507_v19 = vpack.i.bf16 %v6587_v44, %v6586_v17  ;;  %v8576_v17 = vld [vmem:[%s10163_s22 + $0xf8] sm:$0xff] }
 0xaf0   : > { %v2261_v60 = vadd.f32 %v6515_v11, %v2256_v16  ;;  %v2672_v11 = vld [vmem:[#allocation17 + $0x310] sm:$0xff]  ;;  %v8518_v16 = vld [vmem:[%s10163_s22 + $0xc8] sm:$0xff] }
 0xaf1   : > { %2721 = vmatpush.msrb.mxu0 %v2682_v13  ;;  %v8513_v13 = vld [vmem:[%s10163_s22 + $0xc0] sm:$0xff] }
 0xaf2   : > { %2301 = vmatmul.f32.gmra.mxu0 %v2261_v60  ;;  %5995 = vrot.lane.b32.xlu2 %v7948_v39, %s7048_s1  ;;  %v8439_v21 = vpop.permute.xlu0 %5835  ;;  %v8444_v39 = vld [vmem:[%s10163_s22 + $0x60] sm:$0xff]  ;;  %v8522_v60 = vpack.i.bf16 %v8518_v16, %v8513_v13 }
 0xaf3   : > { %2722 = vmatpush.msrb.mxu0 %v2681_v14  ;;  %5990 = vrot.lane.b32.xlu1 %v8135_v4, %s7048_s1  ;;  %10196 = vst [vmem:[#allocation58_spill] sm:$0xff] %v8439_v21  ;;  %v8453_v61 = vpack.i.bf16 %v8449_v43, %v8444_v39  ;;  %v5627_v14 = vunpack.i.l.bf16 %v8211_v45  ;;  %v5622_v45 = vunpack.i.l.bf16 %v8219_v22  ;;  %v8600_v21 = vld [vmem:[%s10163_s22 + $0x70] sm:$0xff] }
 0xaf5   : > { %2723 = vmatpush.msrb.mxu0 %v2680_v33  ;;  %v8435_v31 = vpop.permute.xlu1 %5780  ;;  %v8437_v57 = vpop.permute.xlu2 %5815  ;;  %6060 = vrot.lane.b32.xlu0 %v8453_v61, %s7049_s19  ;;  %v2663_v33 = vld [vmem:[#allocation2 + $0x5] sm:$0xff] }
 0xaf6   : > { %10195 = vst [vmem:[#allocation57_spill] sm:$0xff] %v8437_v57 }
 0xaf7   : > { %2724 = vmatpush.msrb.mxu0 %v2679_v18  ;;  %v5623_v18 = vunpack.i.h.bf16 %v8219_v22  ;;  %v8556_v22 = vld [vmem:[%s10163_s22 + $0x40] sm:$0xff] }
 0xaf9   : > { %2725 = vmatpush.msrb.mxu0 %v2678_v15 }
 0xafa   : > { %2494 = vmatmul.f32.vlgmr.msra.gmra.mxu0 %v2382_v8  ;;  %6010 = vrot.lane.b32.xlu2 %v7974_v55, %s7048_s1  ;;  %v8465_v26 = vpop.permute.xlu0 %5850  ;;  %v8470_v55 = vld [vmem:[%s10163_s22 + $0x90] sm:$0xff] }
 0xafb   : > { %2726 = vmatpush.msrb.mxu0 %v2677_v10  ;;  %6005 = vrot.lane.b32.xlu1 %v8169_v62, %s7048_s1  ;;  %10199 = vst [vmem:[#allocation61_spill] sm:$0xff] %v8465_v26  ;;  %v8479_v40 = vpack.i.bf16 %v8475_v46, %v8470_v55  ;;  %v8540_v8 = vld [vmem:[%s10163_s22 + $0x50] sm:$0xff] }
 0xafd   : > { %2727 = vmatpush.msrb.mxu0 %v2676_v37  ;;  %v8461_v47 = vpop.permute.xlu1 %5795  ;;  %v8463_v20 = vpop.permute.xlu2 %5830  ;;  %6075 = vrot.lane.b32.xlu0 %v8479_v40, %s7049_s19  ;;  %v8545_v37 = vld [vmem:[%s10163_s22 + $0x58] sm:$0xff] }
 0xafe   : > { %10197 = vst [vmem:[#allocation59_spill] sm:$0xff] %v8461_v47  ;;  %v2315_v47 = vld [vmem:[#allocation16 + $0x40] sm:$0xff] }
 0xaff   : > { %10198 = vst [vmem:[#allocation60_spill] sm:$0xff] %v8463_v20  ;;  %2728 = vmatpush.msrb.mxu0 %v2675_v35  ;;  %v8549_v35 = vpack.i.bf16 %v8545_v37, %v8540_v8 }
 0xb01   : > { %2729 = vmatpush.msrb.mxu0 %v2674_v50 }
 0xb02   : > { %2497 = vmatmul.f32.gmra.mxu0 %v2383_v53  ;;  %6025 = vrot.lane.b32.xlu2 %v7994_v0, %s7048_s1  ;;  %v6585_v0 = vld [vmem:[%s10163_s22 + $0x28] sm:$0xff]  ;;  %v2321_v53 = vld [vmem:[#allocation16 + $0x70] sm:$0xff] }
 0xb03   : > { %2730 = vmatpush.msrb.mxu0 %v2673_v51  ;;  %6020 = vrot.lane.b32.xlu1 %v8189_v3, %s7048_s1  ;;  %v8497_v36 = vpack.i.bf16 %v6585_v0, %v6584_v27  ;;  %v8499_v3 = vpop.permute.xlu0 %5865  ;;  %v2322_v51 = vld [vmem:[#allocation16 + $0x78] sm:$0xff]  ;;  %v8571_v0 = vld [vmem:[%s10163_s22 + $0xf0] sm:$0xff]  ;;  %s5384_s1 = sshll.u32 %s7216_s30, 4 }
 0xb04   : > { %10202 = vst [vmem:[#allocation64_spill] sm:$0xff] %v8499_v3  ;;  %2323 = vmatpush.msrb.mxu1 %v2322_v51  ;;  %v8580_v44 = vpack.i.bf16 %v8576_v17, %v8571_v0  ;;  %v2319_v51 = vld [vmem:[#allocation16 + $0x60] sm:$0xff]  ;;  %v8670_v3 = vld [vmem:[%s10163_s22 + $0x150] sm:$0xff]  ;;  %s5112_s14 = scalar_lea.hbm %s10378_s6, %s5384_s1 }
 0xb05   : > { %2731 = vmatpush.msrb.mxu0 %v2672_v11  ;;  %v8487_v1 = vpop.permute.xlu1 %5810  ;;  %v8489_v5 = vpop.permute.xlu2 %5845  ;;  %6090 = vrot.lane.b32.xlu0 %v8522_v60, %s7049_s19  ;;  %v8561_v11 = vld [vmem:[%s10163_s22 + $0x48] sm:$0xff] }
 0xb06   : > { %10200 = vst [vmem:[#allocation62_spill] sm:$0xff] %v8487_v1  ;;  %2324 = vmatpush.msrb.mxu1 %v2321_v53  ;;  %v10220_v1 = vld [vmem:[#allocation38_spill] sm:$0xff] }
 0xb07   : > { %10201 = vst [vmem:[#allocation63_spill] sm:$0xff] %v8489_v5  ;;  %2732 = vmatpush.msrb.mxu0 %v2671_v30  ;;  %v8565_v30 = vpack.i.bf16 %v8561_v11, %v8556_v22  ;;  %v8615_v5 = vld [vmem:[%s10163_s22 + $0x120] sm:$0xff]  ;;  %v5593_v57 = vunpack.i.h.bf16 %v10220_v1 }
 0xb09   : > { %2733 = vmatpush.msrb.mxu0 %v2670_v56  ;;  %v10206_v56 = vld [vmem:[#allocation30_spill] sm:$0xff] }
 0xb0a   : > { %6040 = vrot.lane.b32.xlu2 %v8497_v36, %s7049_s19  ;;  %2734 = vmatmul.f32.vlgmr.msrb.gmra.mxu0 %v2663_v33  ;;  %v5618_v27 = vunpack.i.h.bf16 %v10206_v56  ;;  %v2320_v33 = vld [vmem:[#allocation16 + $0x68] sm:$0xff] }
 0xb0b   : > { %3211 = vmatpush.msra.mxu0 %v5628_v38  ;;  %6035 = vrot.lane.b32.xlu1 %v8507_v19, %s7049_s19  ;;  %v8551_v50 = vpop.permute.xlu0 %5880  ;;  %v5617_v38 = vunpack.i.l.bf16 %v10206_v56 }
 0xb0c   : > { %10205 = vst [vmem:[#allocation67_spill] sm:$0xff] %v8551_v50  ;;  %2325 = vmatpush.msrb.mxu1 %v2320_v33  ;;  %v10211_v33 = vld [vmem:[#allocation39_spill] sm:$0xff]  ;;  %v10214_v50 = vld [vmem:[#allocation29_spill] sm:$0xff] }
 0xb0d   : > { %3212 = vmatpush.msra.mxu0 %v5627_v14  ;;  %v8532_v15 = vpop.permute.xlu1 %5825  ;;  %v8534_v10 = vpop.permute.xlu2 %5860  ;;  %v2664_v14 = vld [vmem:[#allocation2 + $0xd] sm:$0xff]  ;;  %6105 = vrot.lane.b32.xlu0 %v8580_v44, %s7049_s19  ;;  %10212 = vst [vmem:[#allocation39_spill] sm:$0xff] %v8615_v5  ;;  %v5603_v41 = vunpack.i.h.bf16 %v10214_v50 }
 0xb0e   : > { %10203 = vst [vmem:[#allocation65_spill] sm:$0xff] %v8532_v15  ;;  %2326 = vmatpush.msrb.mxu1 %v2319_v51  ;;  %v5607_v51 = vunpack.i.l.bf16 %v10211_v33  ;;  %v2308_v15 = vld [vmem:[#allocation16 + $0x8] sm:$0xff] }
 0xb0f   : > { %10204 = vst [vmem:[#allocation66_spill] sm:$0xff] %v8534_v10  ;;  %3213 = vmatpush.msra.mxu0 %v5623_v18  ;;  %v10207_v18 = vld [vmem:[#allocation37_spill] sm:$0xff] }
 0xb11   : > { %3214 = vmatpush.msra.mxu0 %v5622_v45  ;;  %v5613_v45 = vunpack.i.h.bf16 %v10207_v18 }
 0xb12   : > { %6055 = vrot.lane.b32.xlu2 %v8549_v35, %s7049_s19  ;;  %2737 = vmatmul.f32.gmra.mxu0 %v2664_v14  ;;  %v2318_v14 = vld [vmem:[#allocation16 + $0x58] sm:$0xff] }
 0xb13   : > { %3215 = vmatpush.msra.mxu0 %v5618_v27  ;;  %6050 = vrot.lane.b32.xlu1 %v8565_v30, %s7049_s19  ;;  %v5612_v27 = vunpack.i.l.bf16 %v10207_v18  ;;  %v8595_v20 = vpop.permute.xlu0 %5895  ;;  %v5608_v18 = vunpack.i.h.bf16 %v10211_v33  ;;  %v5602_v33 = vunpack.i.l.bf16 %v10214_v50  ;;  %v8660_v50 = vld [vmem:[%s10163_s22 + $0xa8] sm:$0xff] }
 0xb14   : > { %10210 = vst [vmem:[#allocation68_spill] sm:$0xff] %v8595_v20  ;;  %2327 = vmatpush.msrb.mxu1 %v2318_v14  ;;  %v6134_v20 = vpack.i.bf16 %v8675_v63, %v8670_v3 }
 0xb15   : > { %3216 = vmatpush.msra.mxu0 %v5617_v38  ;;  %v8590_v53 = vpop.permute.xlu1 %5840  ;;  %v8592_v56 = vpop.permute.xlu2 %5875  ;;  %v8605_v38 = vld [vmem:[%s10163_s22 + $0x78] sm:$0xff] }
 0xb16   : > { %10208 = vst [vmem:[#allocation30_spill] sm:$0xff] %v8590_v53  ;;  %v8609_v53 = vpack.i.bf16 %v8605_v38, %v8600_v21 }
 0xb17   : > { %10209 = vst [vmem:[#allocation37_spill] sm:$0xff] %v8592_v56  ;;  %3217 = vmatpush.msra.mxu0 %v5613_v45  ;;  %v2317_v45 = vld [vmem:[#allocation16 + $0x50] sm:$0xff]  ;;  %v8620_v56 = vld [vmem:[%s10163_s22 + $0x128] sm:$0xff] }
 0xb18   : > { %10213 = vst [vmem:[#allocation69_spill] sm:$0xff] %v8620_v56  ;;  %v6119_v26 = vpack.i.bf16 %v8620_v56, %v8615_v5  ;;  %2328 = vmatpush.msrb.mxu1 %v2317_v45  ;;  %v2698_v56 = vld [vmem:[#allocation17 + $0x3e0] sm:$0xff] }
 0xb19   : > { %3218 = vmatpush.msra.mxu0 %v5612_v27  ;;  %v2316_v27 = vld [vmem:[#allocation16 + $0x48] sm:$0xff] }
 0xb1a   : > { %6070 = vrot.lane.b32.xlu2 %v8023_v58, %s7049_s19  ;;  %6120 = vrot.lane.b32.xlu0 %v6119_v26, %s7049_s19  ;;  %v8639_v58 = vld [vmem:[%s10163_s22 + $0xb0] sm:$0xff] }
 0xb1b   : > { %3219 = vmatpush.msra.mxu0 %v5608_v18  ;;  %6065 = vrot.lane.b32.xlu1 %v8609_v53, %s7049_s19  ;;  %10217 = vst [vmem:[#allocation71_spill] sm:$0xff] %v8639_v58  ;;  %v8644_v18 = vld [vmem:[%s10163_s22 + $0xb8] sm:$0xff]  ;;  %v8650_v45 = vpop.permute.xlu0 %5910 }
 0xb1c   : > { %2329 = vmatpush.msrb.mxu1 %v2316_v27  ;;  %v8648_v26 = vpack.i.bf16 %v8644_v18, %v8639_v58  ;;  %10218 = vst [vmem:[#allocation72_spill] sm:$0xff] %v8650_v45 }
 0xb1d   : > { %3220 = vmatpush.msra.mxu0 %v5607_v51  ;;  %v8631_v10 = vpop.permute.xlu1 %5855  ;;  %v8633_v14 = vpop.permute.xlu2 %5890  ;;  %v2314_v51 = vld [vmem:[#allocation16 + $0x38] sm:$0xff] }
 0xb1e   : > { %10215 = vst [vmem:[#allocation29_spill] sm:$0xff] %v8631_v10  ;;  %2330 = vmatpush.msrb.mxu1 %v2315_v47  ;;  %v10219_v10 = vld [vmem:[#allocation36_spill] sm:$0xff] }
 0xb1f   : > { %10216 = vst [vmem:[#allocation70_spill] sm:$0xff] %v8633_v14  ;;  %3221 = vmatpush.msra.mxu0 %v5603_v41  ;;  %v8655_v41 = vld [vmem:[%s10163_s22 + $0xa0] sm:$0xff]  ;;  %v5598_v2 = vunpack.i.h.bf16 %v10219_v10  ;;  %v2313_v14 = vld [vmem:[#allocation16 + $0x30] sm:$0xff]  ;;  %v5597_v47 = vunpack.i.l.bf16 %v10219_v10 }
 0xb20   : > { %v8664_v27 = vpack.i.bf16 %v8660_v50, %v8655_v41  ;;  %2331 = vmatpush.msrb.mxu1 %v2314_v51  ;;  %v8694_v10 = vld [vmem:[%s10163_s22 + $0xe0] sm:$0xff] }
 0xb21   : > { %3222 = vmatpush.msra.mxu0 %v5602_v33  ;;  %v2312_v33 = vld [vmem:[#allocation16 + $0x28] sm:$0xff]  ;;  %10223 = vst [vmem:[#allocation73_spill] sm:$0xff] %v8694_v10 }
 0xb22   : > { %6085 = vrot.lane.b32.xlu2 %v8648_v26, %s7049_s19  ;;  %2332 = vmatpush.msrb.mxu1 %v2313_v14  ;;  %v8699_v14 = vld [vmem:[%s10163_s22 + $0xe8] sm:$0xff] }
 0xb23   : > { %3223 = vmatpush.msra.mxu0 %v5598_v2  ;;  %6080 = vrot.lane.b32.xlu1 %v8664_v27, %s7049_s19  ;;  %v5592_v2 = vunpack.i.l.bf16 %v10220_v1  ;;  %10224 = vst [vmem:[#allocation74_spill] sm:$0xff] %v8699_v14  ;;  %v8715_v1 = vld [vmem:[%s10163_s22 + $0xd8] sm:$0xff] }
 0xb24   : > { %6135 = vrot.lane.b32.xlu0 %v6134_v20, %s7049_s19  ;;  %2333 = vmatpush.msrb.mxu1 %v2312_v33  ;;  %v8703_v20 = vpack.i.bf16 %v8699_v14, %v8694_v10  ;;  %v2310_v33 = vld [vmem:[#allocation16 + $0x18] sm:$0xff]  ;;  %10226 = vst [vmem:[#allocation76_spill] sm:$0xff] %v8715_v1 }
 0xb25   : > { %3224 = vmatpush.msra.mxu0 %v5597_v47  ;;  %v8686_v52 = vpop.permute.xlu1 %5870  ;;  %v8688_v51 = vpop.permute.xlu2 %5905 }
 0xb26   : > { %10221 = vst [vmem:[#allocation36_spill] sm:$0xff] %v8686_v52  ;;  %v8705_v47 = vpop.permute.xlu0 %5925  ;;  %2334 = vmatpush.msrb.mxu1 %v2311_v23 }
 0xb27   : > { %10222 = vst [vmem:[#allocation38_spill] sm:$0xff] %v8688_v51  ;;  %3225 = vmatpush.msra.mxu0 %v5593_v57  ;;  %v8710_v57 = vld [vmem:[%s10163_s22 + $0xd0] sm:$0xff] }
 0xb28   : > { %10225 = vst [vmem:[#allocation75_spill] sm:$0xff] %v8710_v57  ;;  %v8719_v52 = vpack.i.bf16 %v8715_v1, %v8710_v57  ;;  %v2309_v51 = vld [vmem:[#allocation16 + $0x10] sm:$0xff]  ;;  %2335 = vmatpush.msrb.mxu1 %v2310_v33  ;;  %v2541_v33 = vld [vmem:[#allocation17 + $0x1f8] sm:$0xff] }
 0xb29   : > { %3226 = vmatpush.msra.mxu0 %v5592_v2 }
 0xb2a   : > { %6100 = vrot.lane.b32.xlu2 %v8703_v20, %s7049_s19  ;;  %2336 = vmatpush.msrb.mxu1 %v2309_v51  ;;  %v8741_v51 = vld [vmem:[%s10163_s22 + $0x118] sm:$0xff] }
 0xb2b   : > { %3340 = vmatpush.msrb.mxu0 %v8576_v17  ;;  %6095 = vrot.lane.b32.xlu1 %v8719_v52, %s7049_s19  ;;  %10230 = vst [vmem:[#allocation80_spill] sm:$0xff] %v8741_v51 }
 0xb2c   : > { %6150 = vrot.lane.b32.xlu0 %v8135_v4, %s7049_s19  ;;  %2337 = vmatpush.msrb.mxu1 %v2308_v15  ;;  %v6114_v4 = vpack.i.bf16 %v8741_v51, %v8736_v7  ;;  %v8751_v15 = vld [vmem:[%s10163_s22 + $0x100] sm:$0xff] }
 0xb2d   : > { %3341 = vmatpush.msrb.mxu0 %v8571_v0  ;;  %v8729_v23 = vpop.permute.xlu1 %5885  ;;  %v8731_v2 = vpop.permute.xlu2 %5920  ;;  %10231 = vst [vmem:[#allocation81_spill] sm:$0xff] %v8751_v15  ;;  %v2538_v7 = vld [vmem:[#allocation17 + $0x1e0] sm:$0xff] }
 0xb2e   : > { %10227 = vst [vmem:[#allocation77_spill] sm:$0xff] %v8729_v23  ;;  %v8745_v48 = vpop.permute.xlu0 %5940  ;;  %v8756_v23 = vld [vmem:[%s10163_s22 + $0x108] sm:$0xff]  ;;  %2338 = vmatpush.msrb.mxu1 %v2307_v29 }
 0xb2f   : > { %10228 = vst [vmem:[#allocation78_spill] sm:$0xff] %v8731_v2  ;;  %3342 = vmatpush.msrb.mxu0 %v8699_v14  ;;  %v6109_v6 = vpack.i.bf16 %v8756_v23, %v8751_v15  ;;  %v2536_v15 = vld [vmem:[#allocation17 + $0x1d0] sm:$0xff] }
 0xb30   : > { %10232 = vst [vmem:[#allocation82_spill] sm:$0xff] %v8756_v23  ;;  %2574 = vmatpush.msra.mxu1 %v2541_v33  ;;  %v2537_v33 = vld [vmem:[#allocation17 + $0x1d8] sm:$0xff]  ;;  %v8943_v14 = vld [vmem:[%s10163_s22 + $0x1f0] sm:$0xff] }
 0xb31   : > { %3343 = vmatpush.msrb.mxu0 %v8694_v10  ;;  %v2533_v10 = vld [vmem:[#allocation17 + $0x1b8] sm:$0xff] }
 0xb32   : > { %6115 = vrot.lane.b32.xlu2 %v6114_v4, %s7049_s19  ;;  %2575 = vmatpush.msra.mxu1 %v2540_v49  ;;  %v8774_v49 = vld [vmem:[%s10163_s22 + $0x140] sm:$0xff]  ;;  %v8788_v4 = vld [vmem:[%s10163_s22 + $0x130] sm:$0xff] }
 0xb33   : > { %6110 = vrot.lane.b32.xlu1 %v6109_v6, %s7049_s19  ;;  %3344 = vmatpush.msrb.mxu0 %v8715_v1  ;;  %v8779_v6 = vld [vmem:[%s10163_s22 + $0x148] sm:$0xff] }
 0xb34   : > { %2576 = vmatpush.msra.mxu1 %v2539_v24  ;;  %6165 = vrot.lane.b32.xlu0 %v8169_v62, %s7049_s19  ;;  %v6129_v62 = vpack.i.bf16 %v8779_v6, %v8774_v49  ;;  %v2535_v1 = vld [vmem:[#allocation17 + $0x1c8] sm:$0xff] }
 0xb35   : > { %v8766_v51 = vpop.permute.xlu1 %5900  ;;  %v8768_v29 = vpop.permute.xlu2 %5935  ;;  %3345 = vmatpush.msrb.mxu0 %v8710_v57 }
 0xb36   : > { %10233 = vst [vmem:[#allocation83_spill] sm:$0xff] %v8766_v51  ;;  %2577 = vmatpush.msra.mxu1 %v2538_v7  ;;  %v8783_v24 = vpop.permute.xlu0 %5955  ;;  %v8793_v51 = vld [vmem:[%s10163_s22 + $0x138] sm:$0xff]  ;;  %v8801_v7 = vld [vmem:[%s10163_s22 + $0x1e0] sm:$0xff] }
 0xb37   : > { %10234 = vst [vmem:[#allocation84_spill] sm:$0xff] %v8783_v24  ;;  %v6124_v57 = vpack.i.bf16 %v8793_v51, %v8788_v4  ;;  %3346 = vmatpush.msrb.mxu0 %v8518_v16  ;;  %v8806_v24 = vld [vmem:[%s10163_s22 + $0x1e8] sm:$0xff] }
 0xb38   : > { %2578 = vmatpush.msra.mxu1 %v2537_v33  ;;  %v6179_v23 = vpack.i.bf16 %v8806_v24, %v8801_v7  ;;  %v2534_v16 = vld [vmem:[#allocation17 + $0x1c0] sm:$0xff] }
 0xb39   : > { %3347 = vmatpush.msrb.mxu0 %v8513_v13  ;;  %v8823_v13 = vld [vmem:[%s10163_s22 + $0x170] sm:$0xff] }
 0xb3a   : > { %6130 = vrot.lane.b32.xlu2 %v6129_v62, %s7049_s19  ;;  %2579 = vmatpush.msra.mxu1 %v2536_v15  ;;  %v8842_v15 = vld [vmem:[%s10163_s22 + $0x168] sm:$0xff] }
 0xb3b   : > { %6125 = vrot.lane.b32.xlu1 %v6124_v57, %s7049_s19  ;;  %3348 = vmatpush.msrb.mxu0 %v8644_v18  ;;  %v8828_v57 = vld [vmem:[%s10163_s22 + $0x178] sm:$0xff] }
 0xb3c   : > { %2580 = vmatpush.msra.mxu1 %v2535_v1  ;;  %6180 = vrot.lane.b32.xlu0 %v6179_v23, %s7049_s19  ;;  %v6144_v18 = vpack.i.bf16 %v8828_v57, %v8823_v13  ;;  %v8837_v23 = vld [vmem:[%s10163_s22 + $0x160] sm:$0xff] }
 0xb3d   : > { %v8815_v33 = vpop.permute.xlu1 %5915  ;;  %v8817_v45 = vpop.permute.xlu2 %5950  ;;  %3349 = vmatpush.msrb.mxu0 %v8639_v58  ;;  %v6139_v62 = vpack.i.bf16 %v8842_v15, %v8837_v23 }
 0xb3e   : > { %10235 = vst [vmem:[#allocation85_spill] sm:$0xff] %v8815_v33  ;;  %2581 = vmatpush.msra.mxu1 %v2534_v16  ;;  %v8832_v1 = vpop.permute.xlu0 %5970  ;;  %v2531_v16 = vld [vmem:[#allocation17 + $0x1a8] sm:$0xff] }
 0xb3f   : > { %10236 = vst [vmem:[#allocation86_spill] sm:$0xff] %v8817_v45  ;;  %v2532_v45 = vld [vmem:[#allocation17 + $0x1b0] sm:$0xff]  ;;  %3350 = vmatpush.msrb.mxu0 %v8660_v50 }
 0xb40   : > { %10237 = vst [vmem:[#allocation87_spill] sm:$0xff] %v8832_v1  ;;  %2582 = vmatpush.msra.mxu1 %v2533_v10  ;;  %v2530_v1 = vld [vmem:[#allocation17 + $0x1a0] sm:$0xff]  ;;  %v2529_v10 = vld [vmem:[#allocation17 + $0x198] sm:$0xff]  ;;  %v8907_v33 = vld [vmem:[%s10163_s22 + $0x1d0] sm:$0xff] }
 0xb41   : > { %3351 = vmatpush.msrb.mxu0 %v8655_v41 }
 0xb42   : > { %6145 = vrot.lane.b32.xlu2 %v6144_v18, %s7049_s19  ;;  %2583 = vmatpush.msra.mxu1 %v2532_v45  ;;  %v8861_v45 = vld [vmem:[%s10163_s22 + $0x1a0] sm:$0xff]  ;;  %v8880_v18 = vld [vmem:[%s10163_s22 + $0x198] sm:$0xff] }
 0xb43   : > { %6140 = vrot.lane.b32.xlu1 %v6139_v62, %s7049_s19  ;;  %3352 = vmatpush.msrb.mxu0 %v8475_v46  ;;  %v8866_v46 = vld [vmem:[%s10163_s22 + $0x1a8] sm:$0xff]  ;;  %10241 = vst [vmem:[#allocation91_spill] sm:$0xff] %v8880_v18 }
 0xb44   : > { %2584 = vmatpush.msra.mxu1 %v2531_v16  ;;  %6195 = vrot.lane.b32.xlu0 %v8507_v19, %s7050_s21  ;;  %v6159_v19 = vpack.i.bf16 %v8866_v46, %v8861_v45  ;;  %v2528_v16 = vld [vmem:[#allocation17 + $0x190] sm:$0xff] }
 0xb45   : > { %v8853_v58 = vpop.permute.xlu1 %5930  ;;  %v8855_v50 = vpop.permute.xlu2 %5965  ;;  %3353 = vmatpush.msrb.mxu0 %v8470_v55  ;;  %v8875_v55 = vld [vmem:[%s10163_s22 + $0x190] sm:$0xff] }
 0xb46   : > { %10238 = vst [vmem:[#allocation88_spill] sm:$0xff] %v8855_v50  ;;  %2585 = vmatpush.msra.mxu1 %v2530_v1  ;;  %v8870_v41 = vpop.permute.xlu0 %5985  ;;  %v6154_v62 = vpack.i.bf16 %v8880_v18, %v8875_v55  ;;  %v8887_v1 = vld [vmem:[%s10163_s22 + $0x88] sm:$0xff]  ;;  %v8893_v50 = vld [vmem:[%s10163_s22 + $0x80] sm:$0xff] }
 0xb47   : > { %10239 = vst [vmem:[#allocation89_spill] sm:$0xff] %v8870_v41  ;;  %3354 = vmatpush.msrb.mxu0 %v8887_v1  ;;  %v2527_v41 = vld [vmem:[#allocation17 + $0x188] sm:$0xff] }
 0xb48   : > { %10240 = vst [vmem:[#allocation90_spill] sm:$0xff] %v8875_v55  ;;  %2586 = vmatpush.msra.mxu1 %v2529_v10  ;;  %v2526_v55 = vld [vmem:[#allocation17 + $0x180] sm:$0xff] }
 0xb49   : > { %3355 = vmatpush.msrb.mxu0 %v8893_v50 }
 0xb4a   : > { %6160 = vrot.lane.b32.xlu2 %v6159_v19, %s7049_s19  ;;  %2587 = vmatpush.msra.mxu1 %v2528_v16  ;;  %v8912_v19 = vld [vmem:[%s10163_s22 + $0x1d8] sm:$0xff]  ;;  %v8926_v16 = vld [vmem:[%s10163_s22 + $0x1c8] sm:$0xff] }
 0xb4b   : > { %6155 = vrot.lane.b32.xlu1 %v6154_v62, %s7049_s19 }
 0xb4c   : > { %2588 = vmatpush.msra.mxu1 %v2527_v41  ;;  %6210 = vrot.lane.b32.xlu0 %v8565_v30, %s7050_s21  ;;  %v6174_v41 = vpack.i.bf16 %v8912_v19, %v8907_v33  ;;  %v8921_v30 = vld [vmem:[%s10163_s22 + $0x1c0] sm:$0xff] }
 0xb4d   : > { %v8900_v5 = vpop.permute.xlu1 %5945  ;;  %v8902_v10 = vpop.permute.xlu2 %5980 }
 0xb4e   : > { %10242 = vst [vmem:[#allocation92_spill] sm:$0xff] %v8902_v10  ;;  %2589 = vmatpush.msra.mxu1 %v2526_v55  ;;  %v8916_v62 = vpop.permute.xlu0 %6000  ;;  %v6169_v10 = vpack.i.bf16 %v8926_v16, %v8921_v30 }
 0xb4f   : > { %10243 = vst [vmem:[#allocation93_spill] sm:$0xff] %v8916_v62 }
 0xb52   : > { %6175 = vrot.lane.b32.xlu2 %v6174_v41, %s7049_s19  ;;  %v8948_v41 = vld [vmem:[%s10163_s22 + $0x1f8] sm:$0xff] }
 0xb53   : > { %6170 = vrot.lane.b32.xlu1 %v6169_v10, %s7049_s19  ;;  %v6184_v10 = vpack.i.bf16 %v8948_v41, %v8943_v14 }
 0xb54   : > { %6225 = vrot.lane.b32.xlu0 %v8609_v53, %s7050_s21 }
 0xb55   : > { %v8934_v55 = vpop.permute.xlu1 %5960  ;;  %v8936_v62 = vpop.permute.xlu2 %5995 }
 0xb56   : > { %10244 = vst [vmem:[#allocation94_spill] sm:$0xff] %v8934_v55  ;;  %v8938_v2 = vpop.permute.xlu0 %6015 }
 0xb57   : > { %10245 = vst [vmem:[#allocation95_spill] sm:$0xff] %v8936_v62 }
 0xb58   : > { %10246 = vst [vmem:[#allocation96_spill] sm:$0xff] %v8938_v2 }
 0xb5a   : > { %6190 = vrot.lane.b32.xlu2 %v8324_v54, %s7050_s21  ;;  %v6516_v54 = vld [vmem:[%s10250_s2] ss:$0 sm:$0xff] }
 0xb5b   : > { %6185 = vrot.lane.b32.xlu1 %v6184_v10, %s7049_s19  ;;  %s10377_s19 = sld [smem:[#allocation133_spill]] }
 0xb5c   : > { %6240 = vrot.lane.b32.xlu0 %v8664_v27, %s7050_s21 }
 0xb5d   : > { %v8957_v53 = vpop.permute.xlu1 %5975  ;;  %v8959_v62 = vpop.permute.xlu2 %6010 }
 0xb5e   : > { %10247 = vst [vmem:[#allocation97_spill] sm:$0xff] %v8957_v53  ;;  %v8961_v2 = vpop.permute.xlu0 %6030 }
 0xb5f   : > { %10248 = vst [vmem:[#allocation98_spill] sm:$0xff] %v8959_v62 }
 0xb60   : > { %10249 = vst [vmem:[#allocation99_spill] sm:$0xff] %v8961_v2 }
 0xb61   : > { %s5095_s29 = scalar_lea.hbm %s10377_s19, %s5384_s1  ;;  %s6932_s2 = scalar_lea.hbm %s10377_s19, 32 }
 0xb62   : > { %6205 = vrot.lane.b32.xlu2 %v8343_v32, %s7050_s21  ;;  %v2701_v32 = vld [vmem:[#allocation17 + $0x3f8] sm:$0xff]  ;;  %s5098_s5 = sshll.u32 %s5095_s29, 4  ;;  %s5099_s5 = int_to_ptr.hbm [resolvable:$true] %s5098_s5 }
 0xb63   : > { %6200 = vrot.lane.b32.xlu1 %v8497_v36, %s7050_s21  ;;  %v6269_v36 = vpack.i.bf16 %v8943_v14, %v8948_v41  ;;  %s6926_s12 = sshra.s32 %s5099_s5, 4  ;;  %s6927_s12 = int_to_ptr.hbm [resolvable:$true] %s6926_s12 }
 0xb64   : > { %6255 = vrot.lane.b32.xlu0 %v8719_v52, %s7050_s21  ;;  %v2700_v52 = vld [vmem:[#allocation17 + $0x3f0] sm:$0xff]  ;;  %p6933_p13 = scmp.lt.s32.totalorder %s6927_s12, %s10377_s19 }
 0xb65   : > { %v8972_v27 = vpop.permute.xlu1 %5990  ;;  %v8974_v10 = vpop.permute.xlu2 %6025 }
 0xb66   : > { %10251 = vst [vmem:[#allocation100_spill] sm:$0xff] %v8972_v27  ;;  %v8976_v62 = vpop.permute.xlu0 %6045 }
 0xb67   : > { %10252 = vst [vmem:[#allocation101_spill] sm:$0xff] %v8974_v10  ;;  %v2299_v2 = vpop.f32.mrf.mxu0  ;;  %v6229_v10 = vpack.i.bf16 %v8887_v1, %v8893_v50 }
 0xb68   : > { %10253 = vst [vmem:[#allocation102_spill] sm:$0xff] %v8976_v62  ;;  %v2300_v55 = vadd.f32 %v6516_v54, %v2299_v2  ;;  %v2699_v2 = vld [vmem:[#allocation17 + $0x3e8] sm:$0xff] }
 0xb6a   : > { %v2305_v53 = vmax.f32 %v2300_v55, 0.0  ;;  %6220 = vrot.lane.b32.xlu2 %v8453_v61, %s7050_s21 }
 0xb6b   : > { %6215 = vrot.lane.b32.xlu1 %v8549_v35, %s7050_s21  ;;  %v6284_v35 = vpack.i.bf16 %v8912_v19, %v8842_v15 }
 0xb6c   : > { %2339 = vmatmul.f32.vlgmr.msrb.gmra.mxu1 %v2305_v53  ;;  %6270 = vrot.lane.b32.xlu0 %v6269_v36, %s7050_s21  ;;  %v2472_v53 = vpop.f32.mrf.mxu3 }
 0xb6d   : > { %2741 = vmatpush.msrb.mxu1 %v2701_v32  ;;  %v8985_v27 = vpop.permute.xlu1 %6005  ;;  %v8987_v62 = vpop.permute.xlu2 %6040 }
 0xb6e   : > { %10254 = vst [vmem:[#allocation103_spill] sm:$0xff] %v8985_v27  ;;  %v8989_v55 = vpop.permute.xlu0 %6060  ;;  %v2449_v32 = vpop.f32.mrf.mxu2  ;;  %v2697_v27 = vld [vmem:[#allocation17 + $0x3d8] sm:$0xff] }
 0xb6f   : > { %10255 = vst [vmem:[#allocation104_spill] sm:$0xff] %v8987_v62  ;;  %2742 = vmatpush.msrb.mxu1 %v2700_v52  ;;  %v2302_v61 = vpop.f32.mrf.mxu0  ;;  %v2696_v52 = vld [vmem:[#allocation17 + $0x3d0] sm:$0xff] }
 0xb70   : > { %10256 = vst [vmem:[#allocation105_spill] sm:$0xff] %v8989_v55  ;;  %v2303_v18 = vadd.f32 %v6516_v54, %v2302_v61  ;;  %v2473_v61 = vadd.f32 %v2472_v53, %v2449_v32  ;;  %v2693_v32 = vld [vmem:[#allocation17 + $0x3b8] sm:$0xff]  ;;  %v9024_v55 = vld [vmem:[#allocation2 + $0x8] sm:$0xff] }
 0xb71   : > { %2743 = vmatpush.msrb.mxu1 %v2699_v2  ;;  %v2695_v2 = vld [vmem:[#allocation17 + $0x3c8] sm:$0xff] }
 0xb72   : > { %v2306_v36 = vmax.f32 %v2303_v18, 0.0  ;;  %6235 = vrot.lane.b32.xlu2 %v8479_v40, %s7050_s21  ;;  %v6517_v18 = vld [vmem:[%s10259_s9] ss:$0 sm:$0xff] }
 0xb73   : > { %2744 = vmatpush.msrb.mxu1 %v2698_v56  ;;  %6230 = vrot.lane.b32.xlu1 %v6229_v10, %s7050_s21  ;;  %v6518_v10 = vld [vmem:[%s10260_s3] ss:$0 sm:$0xff] }
 0xb74   : > { %2342 = vmatmul.f32.gmra.mxu1 %v2306_v36  ;;  %6285 = vrot.lane.b32.xlu0 %v6284_v35, %s7050_s21  ;;  %v6299_v35 = vpack.i.bf16 %v8600_v21, %v8605_v38  ;;  %v2475_v36 = vpop.f32.mrf.mxu3 }
 0xb75   : > { %2745 = vmatpush.msrb.mxu1 %v2697_v27  ;;  %v8999_v50 = vpop.permute.xlu1 %6020  ;;  %v9001_v54 = vpop.permute.xlu2 %6055  ;;  %v2694_v27 = vld [vmem:[#allocation17 + $0x3c0] sm:$0xff] }
 0xb76   : > { %10257 = vst [vmem:[#allocation106_spill] sm:$0xff] %v8999_v50  ;;  %v9006_v62 = vpop.permute.xlu0 %6075  ;;  %v2692_v50 = vld [vmem:[#allocation17 + $0x3b0] sm:$0xff] }
 0xb77   : > { %10258 = vst [vmem:[#allocation107_spill] sm:$0xff] %v9001_v54  ;;  %2746 = vmatpush.msrb.mxu1 %v2696_v52  ;;  %v2495_v40 = vpop.f32.mrf.mxu0  ;;  %v2519_v52 = vld [vmem:[#allocation2 + $0x6] sm:$0xff] }
 0xb78   : > { %v2496_v56 = vadd.f32 %v2495_v40, %v2473_v61  ;;  %v2452_v61 = vpop.f32.mrf.mxu2 }
 0xb79   : > { %2747 = vmatpush.msrb.mxu1 %v2695_v2  ;;  %v2884_v2 = vld [vmem:[#allocation3] sm:$0xf8] }
 0xb7a   : > { %v2505_v53 = vmul.f32 %v6517_v18, %v2496_v56  ;;  %6250 = vrot.lane.b32.xlu2 %v8522_v60, %s7050_s21  ;;  %v2476_v60 = vadd.f32 %v2475_v36, %v2452_v61  ;;  %v2689_v61 = vld [vmem:[#allocation17 + $0x398] sm:$0xff] }
 0xb7b   : > { %2748 = vmatpush.msrb.mxu1 %v2694_v27  ;;  %6245 = vrot.lane.b32.xlu1 %v8648_v26, %s7050_s21  ;;  %v2691_v27 = vld [vmem:[#allocation17 + $0x3a8] sm:$0xff] }
 0xb7c   : > { %v2511_v40 = vadd.f32 %v6518_v10, %v2505_v53  ;;  %2590 = vmatmul.f32.vlgmr.msra.gmra.mxu1 %v2519_v52  ;;  %6300 = vrot.lane.b32.xlu0 %v6299_v35, %s7051_s0  ;;  %v2690_v35 = vld [vmem:[#allocation17 + $0x3a0] sm:$0xff] }
 0xb7d   : > { %2749 = vmatpush.msrb.mxu1 %v2693_v32  ;;  %v9018_v21 = vpop.permute.xlu1 %6035  ;;  %v9020_v38 = vpop.permute.xlu2 %6070  ;;  %v2907_v32 = vrot.slane %v2884_v2, 3  ;;  %v5788_v2 = vunpack.i.h.bf16 %v8412_v34 }
 0xb7e   : > { %10261 = vst [vmem:[#allocation108_spill] sm:$0xff] %v9018_v21  ;;  %v2513_v56 = vmax.f32 %v2511_v40, 0.0  ;;  %v9022_v54 = vpop.permute.xlu0 %6090  ;;  %v6314_v21 = vpack.i.bf16 %v8948_v41, %v8449_v43  ;;  %v2520_v40 = vld [vmem:[#allocation2 + $0xe] sm:$0xff] }
 0xb7f   : > { %2750 = vmatpush.msrb.mxu1 %v2692_v50  ;;  %v2498_v26 = vpop.f32.mrf.mxu0  ;;  %v2688_v43 = vld [vmem:[#allocation17 + $0x390] sm:$0xff] }
 0xb80   : > { %v9027_v53 = vadd.f32 %v9024_v55, %v2513_v56  ;;  %v2499_v52 = vadd.f32 %v2498_v26, %v2476_v60  ;;  %v6274_v26 = vpack.i.bf16 %v8806_v24, %v8828_v57 }
 0xb81   : > { %2751 = vmatpush.msrb.mxu1 %v2691_v27  ;;  %v2687_v27 = vld [vmem:[#allocation17 + $0x388] sm:$0xff] }
 0xb82   : > { %2517 = vst [vmem:[#allocation3 + $0x68] sm:$0xff] %v9027_v53  ;;  %v2506_v36 = vmul.f32 %v6517_v18, %v2499_v52  ;;  %v2908_v50 = vrot.slane %v9027_v53, 3  ;;  %6265 = vrot.lane.b32.xlu2 %v8580_v44, %s7050_s21  ;;  %v5783_v52 = vunpack.i.h.bf16 %v8435_v31 }
 0xb83   : > { %2752 = vmatpush.msrb.mxu1 %v2690_v35  ;;  %6260 = vrot.lane.b32.xlu1 %v8703_v20, %s7050_s21  ;;  %v5787_v20 = vunpack.i.l.bf16 %v8412_v34  ;;  %v6329_v34 = vpack.i.bf16 %v8545_v37, %v8943_v14 }
 0xb84   : > { %v2512_v60 = vadd.f32 %v6518_v10, %v2506_v36  ;;  %2593 = vmatmul.f32.gmra.mxu1 %v2520_v40  ;;  %v2909_v41 = vsel %vm2903_vm15, %v2907_v32, %v2908_v50  ;;  %6315 = vrot.lane.b32.xlu0 %v6314_v21, %s7051_s0  ;;  %v9052_v21 = vld [vmem:[#allocation2 + $0x10] sm:$0xff]  ;;  %v2686_v32 = vld [vmem:[#allocation17 + $0x380] sm:$0xff]  ;;  %v5782_v40 = vunpack.i.l.bf16 %v8435_v31 }
 0xb85   : > { %2753 = vmatpush.msrb.mxu1 %v2689_v61  ;;  %v9042_v18 = vpop.permute.xlu1 %6050  ;;  %3227 = vmatmul.f32.vlgmr.msra.gmra.mxu0 %v2909_v41  ;;  %v9044_v44 = vpop.permute.xlu2 %6085  ;;  %v10262_v36 = vld [vmem:[#allocation45_spill] sm:$0xff]  ;;  %v10263_v31 = vld [vmem:[#allocation35_spill] sm:$0xff] }
 0xb86   : > { %v2514_v56 = vmax.f32 %v2512_v60, 0.0  ;;  %3669 = vmatpush.msra.mxu0 %v5788_v2  ;;  %v9047_v10 = vpop.permute.xlu0 %6105  ;;  %v5668_v61 = vunpack.i.h.bf16 %v10262_v36  ;;  %v5667_v2 = vunpack.i.l.bf16 %v10262_v36  ;;  %v5778_v60 = vunpack.i.h.bf16 %v8385_v25 }
 0xb87   : > { %2754 = vmatpush.msrb.mxu1 %v2688_v43  ;;  %v2665_v43 = vld [vmem:[#allocation2 + $0x8] sm:$0xff]  ;;  %v5663_v14 = vunpack.i.h.bf16 %v10263_v31  ;;  %v5772_v36 = vunpack.i.l.bf16 %v8393_v12 }
 0xb88   : > { %v2516_v35 = vadd.f32 %v9052_v21, %v2514_v56  ;;  %3670 = vmatpush.msra.mxu0 %v5787_v20  ;;  %v5777_v20 = vunpack.i.l.bf16 %v8385_v25  ;;  %v10264_v25 = vld [vmem:[#allocation41_spill] sm:$0xff] }
 0xb89   : > { %2755 = vmatpush.msrb.mxu1 %v2687_v27  ;;  %v6289_v27 = vpack.i.bf16 %v8907_v33, %v8837_v23 }
 0xb8a   : > { %2518 = vst [vmem:[#allocation3 + $0x20] sm:$0xff] %v2516_v35  ;;  %3671 = vmatpush.msra.mxu0 %v5783_v52  ;;  %v5662_v52 = vunpack.i.l.bf16 %v10263_v31  ;;  %v5773_v35 = vunpack.i.h.bf16 %v8393_v12 }
 0xb8b   : > { %2756 = vmatpush.msrb.mxu1 %v2686_v32  ;;  %6275 = vrot.lane.b32.xlu1 %v6274_v26, %s7050_s21  ;;  %v6279_v26 = vpack.i.bf16 %v8801_v7, %v8823_v13 }
 0xb8c   : > { %3672 = vmatpush.msra.mxu0 %v5782_v40  ;;  %2757 = vmatmul.f32.vlgmr.msrb.gmra.mxu1 %v2665_v43  ;;  %v6344_v40 = vpack.i.bf16 %v8540_v8, %v8806_v24  ;;  %v2666_v43 = vld [vmem:[#allocation2 + $0x10] sm:$0xff]  ;;  %v5767_v24 = vunpack.i.l.bf16 %v8423_v42 }
 0xb8d   : > { %3234 = vmatpush.msra.mxu1 %v5668_v61  ;;  %v9062_v41 = vpop.permute.xlu1 %6065  ;;  %v9064_v37 = vpop.permute.xlu2 %6100  ;;  %6330 = vrot.lane.b32.xlu0 %v6329_v34, %s7051_s0  ;;  %v5658_v34 = vunpack.i.h.bf16 %v10264_v25 }
 0xb8e   : > { %3673 = vmatpush.msra.mxu0 %v5778_v60  ;;  %v9069_v56 = vpop.permute.xlu0 %6120  ;;  %6280 = vrot.lane.b32.xlu2 %v6279_v26, %s7050_s21  ;;  %v5768_v60 = vunpack.i.h.bf16 %v8423_v42  ;;  %v3293_v42 = vrot.slane %v9027_v53, 2 }
 0xb8f   : > { %3235 = vmatpush.msra.mxu1 %v5667_v2  ;;  %v5657_v2 = vunpack.i.l.bf16 %v10264_v25 }
 0xb90   : > { %3674 = vmatpush.msra.mxu0 %v5777_v20 }
 0xb91   : > { %3236 = vmatpush.msra.mxu1 %v5663_v14  ;;  %v2888_v32 = vld [vmem:[#allocation3 + $0x20] sm:$0x7] }
 0xb92   : > { %v2918_v61 = vrot.slane %v2888_v32, 3  ;;  %3675 = vmatpush.msra.mxu0 %v5773_v35  ;;  %v2808_v14 = vld [vmem:[#allocation3] sm:$0xfc]  ;;  %v5763_v32 = vunpack.i.h.bf16 %v8376_v59 }
 0xb93   : > { %3237 = vmatpush.msra.mxu1 %v5662_v52  ;;  %6290 = vrot.lane.b32.xlu1 %v6289_v27, %s7050_s21  ;;  %v10265_v27 = vld [vmem:[#allocation44_spill] sm:$0xff]  ;;  %v6304_v52 = vpack.i.bf16 %v8921_v30, %v8670_v3  ;;  %v3292_v25 = vrot.slane %v2808_v14, 2 }
 0xb94   : > { %v2919_v31 = vsel %vm2903_vm15, %v2908_v50, %v2918_v61  ;;  %3676 = vmatpush.msra.mxu0 %v5772_v36  ;;  %2760 = vmatmul.f32.gmra.mxu1 %v2666_v43  ;;  %v5653_v8 = vunpack.i.h.bf16 %v10265_v27  ;;  %v6294_v50 = vpack.i.bf16 %v8926_v16, %v8675_v63  ;;  %v5652_v35 = vunpack.i.l.bf16 %v10265_v27  ;;  %v2816_v14 = vld [vmem:[#allocation3 + $0x20] sm:$0x3] }
 0xb95   : > { %3238 = vmatpush.msra.mxu1 %v5658_v34  ;;  %3230 = vmatmul.f32.gmra.mxu0 %v2919_v31  ;;  %v9088_v12 = vpop.permute.xlu1 %6080  ;;  %v9090_v20 = vpop.permute.xlu2 %6115  ;;  %v10266_v34 = vld [vmem:[#allocation34_spill] sm:$0xff]  ;;  %v5762_v61 = vunpack.i.l.bf16 %v8376_v59  ;;  %v3294_v43 = vsel %vm3288_vm0, %v3292_v25, %v3293_v42  ;;  %v10267_v27 = vld [vmem:[#allocation40_spill] sm:$0xff]  ;;  %v3303_v25 = vrot.slane %v2816_v14, 2 }
 0xb96   : > { %3677 = vmatpush.msra.mxu0 %v5768_v60  ;;  %v9094_v26 = vpop.permute.xlu0 %6135  ;;  %6345 = vrot.lane.b32.xlu0 %v6344_v40, %s7051_s0  ;;  %v5648_v36 = vunpack.i.h.bf16 %v10266_v34  ;;  %v6359_v40 = vpack.i.bf16 %v8561_v11, %v8801_v7  ;;  %v5758_v60 = vunpack.i.h.bf16 %v8373_v9  ;;  %v9124_v7 = vld [vmem:[%s10163_s22 + $0x1b0] sm:$0xff] }
 0xb97   : > { %3239 = vmatpush.msra.mxu1 %v5657_v2  ;;  %6295 = vrot.lane.b32.xlu2 %v6294_v50, %s7050_s21  ;;  %v5647_v2 = vunpack.i.l.bf16 %v10266_v34  ;;  %v9132_v50 = vld [vmem:[%s10163_s22 + $0x1b8] sm:$0xff]  ;;  %v10269_v34 = vld [vmem:[#allocation42_spill] sm:$0xff] }
 0xb98   : > { %3678 = vmatpush.msra.mxu0 %v5767_v24  ;;  %v5757_v24 = vunpack.i.l.bf16 %v8373_v9  ;;  %v6309_v9 = vpack.i.bf16 %v9132_v50, %v8779_v6 }
 0xb99   : > { %3240 = vmatpush.msra.mxu1 %v5653_v8  ;;  %v5643_v8 = vunpack.i.h.bf16 %v10267_v27 }
 0xb9a   : > { %3679 = vmatpush.msra.mxu0 %v5763_v32  ;;  %v5753_v32 = vunpack.i.h.bf16 %v8410_v28 }
 0xb9b   : > { %3241 = vmatpush.msra.mxu1 %v5652_v35  ;;  %6305 = vrot.lane.b32.xlu1 %v6304_v52, %s7050_s21  ;;  %v6319_v52 = vpack.i.bf16 %v9124_v7, %v8774_v49  ;;  %v5642_v35 = vunpack.i.l.bf16 %v10267_v27  ;;  %v3410_v27 = vld [vmem:[#allocation3] sm:$0xf0] }
 0xb9c   : > { %3680 = vmatpush.msra.mxu0 %v5762_v61  ;;  %v5752_v61 = vunpack.i.l.bf16 %v8410_v28 }
 0xb9d   : > { %3242 = vmatpush.msra.mxu1 %v5648_v36  ;;  %3356 = vmatmul.f32.vlgmr.msrb.gmra.mxu0 %v3294_v43  ;;  %v9113_v31 = vpop.permute.xlu1 %6095  ;;  %v9115_v59 = vpop.permute.xlu2 %6130  ;;  %v5638_v36 = vunpack.i.h.bf16 %v10269_v34  ;;  %v3304_v43 = vsel %vm3288_vm0, %v3293_v42, %v3303_v25  ;;  %v6324_v42 = vpack.i.bf16 %v8576_v17, %v8444_v39  ;;  %v5942_v25 = vunpack.i.l.bf16 %v8745_v48  ;;  %v6640_v39 = vld [vmem:[%s10163_s22 + $0x38] sm:$0xff] }
 0xb9e   : > { %3681 = vmatpush.msra.mxu0 %v5758_v60  ;;  %v9119_v11 = vpop.permute.xlu0 %6150  ;;  %6360 = vrot.lane.b32.xlu0 %v6359_v40, %s7051_s0  ;;  %v6374_v40 = vpack.i.bf16 %v8556_v22, %v8912_v19  ;;  %v5948_v60 = vunpack.i.h.bf16 %v8900_v5  ;;  %v6334_v19 = vpack.i.bf16 %v8866_v46, %v8793_v51  ;;  %v6389_v17 = vpack.i.bf16 %v6640_v39, %v8907_v33  ;;  %v10274_v39 = vld [vmem:[#allocation78_spill] sm:$0xff] }
 0xb9f   : > { %3243 = vmatpush.msra.mxu1 %v5647_v2  ;;  %10268 = vst [vmem:[#allocation45_spill] sm:$0xff] %v9119_v11  ;;  %6310 = vrot.lane.b32.xlu2 %v6309_v9, %s7050_s21  ;;  %v5637_v2 = vunpack.i.l.bf16 %v10269_v34  ;;  %v5938_v34 = vunpack.i.h.bf16 %v8768_v29  ;;  %v6349_v33 = vpack.i.bf16 %v8861_v45, %v8788_v4 }
 0xba0   : > { %3682 = vmatpush.msra.mxu0 %v5757_v24 }
 0xba1   : > { %3244 = vmatpush.msra.mxu1 %v5643_v8  ;;  %v10270_v8 = vld [vmem:[#allocation32_spill] sm:$0xff] }
 0xba2   : > { %3683 = vmatpush.msra.mxu0 %v5753_v32  ;;  %v5633_v24 = vunpack.i.h.bf16 %v10270_v8  ;;  %v5632_v9 = vunpack.i.l.bf16 %v10270_v8  ;;  %v3429_v32 = vrot.slane %v3410_v27, 4  ;;  %v5933_v27 = vunpack.i.h.bf16 %v8853_v58 }
 0xba3   : > { %3245 = vmatpush.msra.mxu1 %v5642_v35  ;;  %6320 = vrot.lane.b32.xlu1 %v6319_v52, %s7050_s21  ;;  %v5947_v52 = vunpack.i.l.bf16 %v8900_v5  ;;  %v5943_v35 = vunpack.i.h.bf16 %v8745_v48  ;;  %v3430_v5 = vrot.slane %v9027_v53, 4  ;;  %v3414_v48 = vld [vmem:[#allocation3 + $0x20] sm:$0xf] }
 0xba4   : > { %3684 = vmatpush.msra.mxu0 %v5752_v61  ;;  %v3440_v8 = vrot.slane %v3414_v48, 4 }
 0xba5   : > { %3246 = vmatpush.msra.mxu1 %v5638_v36  ;;  %3359 = vmatmul.f32.gmra.mxu0 %v3304_v43  ;;  %v9147_v14 = vpop.permute.xlu1 %6110  ;;  %v9149_v28 = vpop.permute.xlu2 %6145  ;;  %v3431_v36 = vsel %vm3425_vm1, %v3429_v32, %v3430_v5  ;;  %v6339_v43 = vpack.i.bf16 %v8828_v57, %v8571_v0 }
 0xba6   : > { %4000 = vmatpush.msrb.mxu0 %v5948_v60  ;;  %v9153_v22 = vpop.permute.xlu0 %6165  ;;  %6375 = vrot.lane.b32.xlu0 %v6374_v40, %s7051_s0 }
 0xba7   : > { %3247 = vmatpush.msra.mxu1 %v5637_v2  ;;  %6325 = vrot.lane.b32.xlu2 %v6324_v42, %s7051_s0  ;;  %v5937_v2 = vunpack.i.l.bf16 %v8768_v29  ;;  %v5932_v29 = vunpack.i.l.bf16 %v8853_v58  ;;  %v5927_v42 = vunpack.i.l.bf16 %v8705_v47 }
 0xba8   : > { %4001 = vmatpush.msrb.mxu0 %v5947_v52  ;;  %v3441_v52 = vsel %vm3425_vm1, %v3430_v5, %v3440_v8  ;;  %v10276_v8 = vld [vmem:[#allocation39_spill] sm:$0xff] }
 0xba9   : > { %3248 = vmatpush.msra.mxu1 %v5633_v24  ;;  %v6641_v24 = vld [vmem:[%s10163_s22 + $0x30] sm:$0xff] }
 0xbaa   : > { %4002 = vmatpush.msrb.mxu0 %v5943_v35  ;;  %v6404_v0 = vpack.i.bf16 %v6641_v24, %v8926_v16  ;;  %v10271_v16 = vld [vmem:[#allocation69_spill] sm:$0xff]  ;;  %v10272_v35 = vld [vmem:[#allocation91_spill] sm:$0xff] }
 0xbab   : > { %3249 = vmatpush.msra.mxu1 %v5632_v9  ;;  %6335 = vrot.lane.b32.xlu1 %v6334_v19, %s7050_s21  ;;  %v6364_v32 = vpack.i.bf16 %v10272_v35, %v10271_v16  ;;  %v10278_v24 = vld [vmem:[#allocation73_spill] sm:$0xff] }
 0xbac   : > { %4003 = vmatpush.msrb.mxu0 %v5942_v25  ;;  %v10273_v25 = vld [vmem:[#allocation74_spill] sm:$0xff] }
 0xbad   : > { %3363 = vmatpush.msrb.mxu1 %v8828_v57  ;;  %v9173_v61 = vpop.permute.xlu1 %6125  ;;  %3685 = vmatmul.f32.vlgmr.msra.gmra.mxu0 %v3431_v36  ;;  %v9175_v40 = vpop.permute.xlu2 %6160  ;;  %v5928_v57 = vunpack.i.h.bf16 %v8705_v47  ;;  %v6354_v5 = vpack.i.bf16 %v8823_v13, %v10273_v25  ;;  %v6642_v47 = vld [vmem:[%s10163_s22 + $0x28] sm:$0xff]  ;;  %v10280_v25 = vld [vmem:[#allocation80_spill] sm:$0xff] }
 0xbae   : > { %4004 = vmatpush.msrb.mxu0 %v5938_v34  ;;  %v9179_v60 = vpop.permute.xlu0 %6180  ;;  %6390 = vrot.lane.b32.xlu0 %v6389_v17, %s7051_s0  ;;  %v5923_v17 = vunpack.i.h.bf16 %v10274_v39  ;;  %v10275_v34 = vld [vmem:[#allocation85_spill] sm:$0xff] }
 0xbaf   : > { %3364 = vmatpush.msrb.mxu1 %v8823_v13  ;;  %6340 = vrot.lane.b32.xlu2 %v6339_v43, %s7051_s0  ;;  %v6419_v13 = vpack.i.bf16 %v6642_v47, %v8921_v30  ;;  %v5918_v36 = vunpack.i.h.bf16 %v10275_v34  ;;  %v5917_v43 = vunpack.i.l.bf16 %v10275_v34  ;;  %v3745_v47 = vld [vmem:[#allocation3 + $0x20] sm:$0x1f]  ;;  %v6103_v34 = vunpack.i.h.bf16 %v9064_v37 }
 0xbb0   : > { %4005 = vmatpush.msrb.mxu0 %v5937_v2 }
 0xbb1   : > { %3365 = vmatpush.msrb.mxu1 %v8842_v15 }
 0xbb2   : > { %4006 = vmatpush.msrb.mxu0 %v5933_v27 }
 0xbb3   : > { %3366 = vmatpush.msrb.mxu1 %v8837_v23  ;;  %6350 = vrot.lane.b32.xlu1 %v6349_v33, %s7050_s21  ;;  %v3741_v33 = vld [vmem:[#allocation3] sm:$0xe0] }
 0xbb4   : > { %4007 = vmatpush.msrb.mxu0 %v5932_v29  ;;  %v10277_v29 = vld [vmem:[#allocation90_spill] sm:$0xff] }
 0xbb5   : > { %3367 = vmatpush.msrb.mxu1 %v8675_v63  ;;  %v9199_v19 = vpop.permute.xlu1 %6140  ;;  %3688 = vmatmul.f32.gmra.mxu0 %v3441_v52  ;;  %v9201_v58 = vpop.permute.xlu2 %6175  ;;  %v6379_v30 = vpack.i.bf16 %v10277_v29, %v10276_v8 }
 0xbb6   : > { %4008 = vmatpush.msrb.mxu0 %v5928_v57  ;;  %v9205_v9 = vpop.permute.xlu0 %6195  ;;  %6405 = vrot.lane.b32.xlu0 %v6404_v0, %s7051_s0  ;;  %v6369_v0 = vpack.i.bf16 %v8842_v15, %v10278_v24  ;;  %v10279_v57 = vld [vmem:[#allocation72_spill] sm:$0xff]  ;;  %v3771_v24 = vrot.slane %v3745_v47, 5  ;;  %v6646_v47 = vld [vmem:[%s10163_s22 + $0x8] sm:$0xff] }
 0xbb7   : > { %3368 = vmatpush.msrb.mxu1 %v8670_v3  ;;  %6355 = vrot.lane.b32.xlu2 %v6354_v5, %s7051_s0  ;;  %v5922_v3 = vunpack.i.l.bf16 %v10274_v39  ;;  %v5913_v52 = vunpack.i.h.bf16 %v10279_v57  ;;  %v5912_v35 = vunpack.i.l.bf16 %v10279_v57  ;;  %v6643_v15 = vld [vmem:[%s10163_s22 + $0x20] sm:$0xff]  ;;  %v6107_v5 = vunpack.i.l.bf16 %v9047_v10 }
 0xbb8   : > { %4009 = vmatpush.msrb.mxu0 %v5927_v42  ;;  %v3760_v42 = vrot.slane %v3741_v33, 5  ;;  %v10282_v33 = vld [vmem:[#allocation76_spill] sm:$0xff]  ;;  %v6098_v57 = vunpack.i.h.bf16 %v9113_v31 }
 0xbb9   : > { %3369 = vmatpush.msrb.mxu1 %v8779_v6 }
 0xbba   : > { %4010 = vmatpush.msrb.mxu0 %v5923_v17 }
 0xbbb   : > { %3370 = vmatpush.msrb.mxu1 %v8774_v49  ;;  %6365 = vrot.lane.b32.xlu1 %v6364_v32, %s7050_s21  ;;  %v6108_v32 = vunpack.i.h.bf16 %v9047_v10  ;;  %v9263_v10 = vld [vmem:[%s10163_s22 + $0x188] sm:$0xff] }
 0xbbc   : > { %4011 = vmatpush.msrb.mxu0 %v5922_v3 }
 0xbbd   : > { %3371 = vmatpush.msrb.mxu1 %v8793_v51  ;;  %v9224_v48 = vpop.permute.xlu1 %6155  ;;  %v9226_v2 = vpop.permute.xlu2 %6190 }
 0xbbe   : > { %4012 = vmatpush.msrb.mxu0 %v5918_v36  ;;  %v9230_v27 = vpop.permute.xlu0 %6210  ;;  %6420 = vrot.lane.b32.xlu0 %v6419_v13, %s7051_s0  ;;  %v10281_v13 = vld [vmem:[#allocation79_spill] sm:$0xff] }
 0xbbf   : > { %3372 = vmatpush.msrb.mxu1 %v8788_v4  ;;  %v3761_v4 = vrot.slane %v9027_v53, 5  ;;  %6370 = vrot.lane.b32.xlu2 %v6369_v0, %s7051_s0  ;;  %v10284_v0 = vld [vmem:[#allocation81_spill] sm:$0xff] }
 0xbc0   : > { %4013 = vmatpush.msrb.mxu0 %v5917_v43  ;;  %v6384_v43 = vpack.i.bf16 %v8837_v23, %v10282_v33  ;;  %v6097_v23 = vunpack.i.l.bf16 %v9113_v31  ;;  %v10286_v31 = vld [vmem:[#allocation75_spill] sm:$0xff] }
 0xbc1   : > { %3373 = vmatpush.msrb.mxu1 %v10271_v16  ;;  %v6434_v16 = vpack.i.bf16 %v6643_v15, %v9132_v50  ;;  %v3762_v39 = vsel %vm3756_vm2, %v3760_v42, %v3761_v4  ;;  %v6394_v50 = vpack.i.bf16 %v9263_v10, %v10280_v25  ;;  %v6093_v15 = vunpack.i.h.bf16 %v9022_v54 }
 0xbc2   : > { %4014 = vmatpush.msrb.mxu0 %v5913_v52  ;;  %v10285_v52 = vld [vmem:[#allocation71_spill] sm:$0xff] }
 0xbc3   : > { %3374 = vmatpush.msrb.mxu1 %v10276_v8  ;;  %6380 = vrot.lane.b32.xlu1 %v6379_v30, %s7050_s21  ;;  %v10283_v8 = vld [vmem:[#allocation82_spill] sm:$0xff]  ;;  %v6102_v30 = vunpack.i.l.bf16 %v9064_v37  ;;  %v6449_v42 = vpack.i.bf16 %v8793_v51, %v10285_v52 }
 0xbc4   : > { %4015 = vmatpush.msrb.mxu0 %v5912_v35  ;;  %v3772_v35 = vsel %vm3756_vm2, %v3761_v4, %v3771_v24  ;;  %v6399_v4 = vpack.i.bf16 %v8675_v63, %v10286_v31 }
 0xbc5   : > { %3375 = vmatpush.msrb.mxu1 %v10280_v25  ;;  %v9252_v17 = vpop.permute.xlu1 %6170  ;;  %4016 = vmatmul.f32.vlgmr.msrb.gmra.mxu0 %v3762_v39  ;;  %v9254_v3 = vpop.permute.xlu2 %6205  ;;  %v9290_v25 = vld [vmem:[%s10163_s22 + $0x180] sm:$0xff]  ;;  %v6088_v39 = vunpack.i.h.bf16 %v9044_v44 }
 0xbc6   : > { %4331 = vmatpush.msra.mxu0 %v6108_v32  ;;  %v9258_v36 = vpop.permute.xlu0 %6225  ;;  %6435 = vrot.lane.b32.xlu0 %v6434_v16, %s7051_s0  ;;  %v6409_v51 = vpack.i.bf16 %v9290_v25, %v10281_v13 }
 0xbc7   : > { %3376 = vmatpush.msrb.mxu1 %v10281_v13  ;;  %6385 = vrot.lane.b32.xlu2 %v6384_v43, %s7051_s0  ;;  %v6424_v43 = vpack.i.bf16 %v10284_v0, %v10283_v8 }
 0xbc8   : > { %4332 = vmatpush.msra.mxu0 %v6107_v5  ;;  %v6092_v5 = vunpack.i.l.bf16 %v9022_v54 }
 0xbc9   : > { %3377 = vmatpush.msrb.mxu1 %v10283_v8  ;;  %v6649_v8 = vld [vmem:[%s10163_s22 + $0x98] sm:$0xff] }
 0xbca   : > { %4333 = vmatpush.msra.mxu0 %v6103_v34  ;;  %v6464_v34 = vpack.i.bf16 %v6646_v47, %v8861_v45  ;;  %v6647_v45 = vld [vmem:[%s10163_s22 + $0xc8] sm:$0xff]  ;;  %v4092_v47 = vrot.slane %v9027_v53, 6 }
 0xbcb   : > { %3378 = vmatpush.msrb.mxu1 %v10284_v0  ;;  %6395 = vrot.lane.b32.xlu1 %v6394_v50, %s7050_s21  ;;  %v6087_v50 = vunpack.i.l.bf16 %v9044_v44  ;;  %v6648_v44 = vld [vmem:[%s10163_s22 + $0x150] sm:$0xff]  ;;  %v6650_v0 = vld [vmem:[%s10163_s22 + $0x120] sm:$0xff] }
 0xbcc   : > { %4334 = vmatpush.msra.mxu0 %v6102_v30  ;;  %v6083_v30 = vunpack.i.h.bf16 %v9088_v12  ;;  %v6414_v24 = vpack.i.bf16 %v6648_v44, %v6647_v45  ;;  %v6479_v52 = vpack.i.bf16 %v6650_v0, %v6649_v8 }
 0xbcd   : > { %v9280_v37 = vpop.permute.xlu1 %6185  ;;  %4019 = vmatmul.f32.gmra.mxu0 %v3772_v35  ;;  %v9282_v32 = vpop.permute.xlu2 %6220  ;;  %v4072_v35 = vld [vmem:[#allocation3] sm:$0xc0] }
 0xbce   : > { %4335 = vmatpush.msra.mxu0 %v6098_v57  ;;  %v9285_v16 = vpop.permute.xlu0 %6240  ;;  %6450 = vrot.lane.b32.xlu0 %v6449_v42, %s7051_s0  ;;  %v6082_v57 = vunpack.i.l.bf16 %v9088_v12  ;;  %v6078_v42 = vunpack.i.h.bf16 %v9006_v62 }
 0xbcf   : > { %6400 = vrot.lane.b32.xlu2 %v6399_v4, %s7051_s0 }
 0xbd0   : > { %4336 = vmatpush.msra.mxu0 %v6097_v23 }
 0xbd2   : > { %4337 = vmatpush.msra.mxu0 %v6093_v15  ;;  %v6077_v15 = vunpack.i.l.bf16 %v9006_v62  ;;  %v6072_v62 = vunpack.i.l.bf16 %v9020_v38 }
 0xbd3   : > { %6410 = vrot.lane.b32.xlu1 %v6409_v51, %s7050_s21  ;;  %v6651_v51 = vld [vmem:[%s10163_s22 + $0xb8] sm:$0xff] }
 0xbd4   : > { %4338 = vmatpush.msra.mxu0 %v6092_v5  ;;  %v6439_v31 = vpack.i.bf16 %v8774_v49, %v6651_v51  ;;  %v6073_v5 = vunpack.i.h.bf16 %v9020_v38  ;;  %v6652_v49 = vld [vmem:[%s10163_s22 + $0xc0] sm:$0xff] }
 0xbd5   : > { %v9306_v63 = vpop.permute.xlu1 %6200  ;;  %v9308_v54 = vpop.permute.xlu2 %6235  ;;  %v4076_v38 = vld [vmem:[#allocation3 + $0x20] sm:$0x3f] }
 0xbd6   : > { %4339 = vmatpush.msra.mxu0 %v6088_v39  ;;  %v9310_v33 = vpop.permute.xlu0 %6255  ;;  %6465 = vrot.lane.b32.xlu0 %v6464_v34, %s7051_s0  ;;  %v4091_v39 = vrot.slane %v4072_v35, 6  ;;  %v6494_v34 = vpack.i.bf16 %v10281_v13, %v8887_v1  ;;  %v6653_v1 = vld [vmem:[%s10163_s22 + $0x10] sm:$0xff]  ;;  %v4102_v8 = vrot.slane %v4076_v38, 6 }
 0xbd7   : > { %6415 = vrot.lane.b32.xlu2 %v6414_v24, %s7051_s0  ;;  %v6454_v13 = vpack.i.bf16 %v6653_v1, %v8866_v46  ;;  %v6654_v46 = vld [vmem:[%s10163_s22 + $0x18] sm:$0xff]  ;;  %v10291_v1 = vld [vmem:[#allocation33_spill] sm:$0xff] }
 0xbd8   : > { %4340 = vmatpush.msra.mxu0 %v6087_v50  ;;  %v6429_v50 = vpack.i.bf16 %v8779_v6, %v6652_v49 }
 0xbda   : > { %4341 = vmatpush.msra.mxu0 %v6083_v30 }
 0xbdb   : > { %6425 = vrot.lane.b32.xlu1 %v6424_v43, %s7050_s21  ;;  %v4093_v43 = vsel %vm4087_vm3, %v4091_v39, %v4092_v47 }
 0xbdc   : > { %4342 = vmatpush.msra.mxu0 %v6082_v57  ;;  %v6519_v57 = vld [vmem:[%s10288_s17] ss:$0 sm:$0xff]  ;;  %s5113_s17 = sshll.u32 %s7584_s16, 4  ;;  %s9911_s17 = int_to_ptr.vmem [resolvable:$true] %s5113_s17 }
 0xbdd   : > { %v9332_v23 = vpop.permute.xlu1 %6215  ;;  %v9334_v12 = vpop.permute.xlu2 %6250 }
 0xbde   : > { %4343 = vmatpush.msra.mxu0 %v6078_v42  ;;  %6480 = vrot.lane.b32.xlu0 %v6479_v52, %s7051_s0  ;;  %v9342_v4 = vpop.permute.xlu0 %6270  ;;  %v2883_v52 = vld [vmem:[#allocation3 + $0x30] sm:$0xf8] }
 0xbdf   : > { %10287 = vst [vmem:[#allocation35_spill] sm:$0xff] %v9342_v4  ;;  %6430 = vrot.lane.b32.xlu2 %v6429_v50, %s7051_s0  ;;  %v10289_v42 = vld [vmem:[#allocation31_spill] sm:$0xff] }
 0xbe0   : > { %4344 = vmatpush.msra.mxu0 %v6077_v15  ;;  %v6444_v15 = vpack.i.bf16 %v6654_v46, %v9124_v7  ;;  %v6656_v7 = vld [vmem:[%s10163_s22 + $0x128] sm:$0xff] }
 0xbe2   : > { %4345 = vmatpush.msra.mxu0 %v6073_v5  ;;  %v2904_v5 = vrot.slane %v2883_v52, 3 }
 0xbe3   : > { %6440 = vrot.lane.b32.xlu1 %v6439_v31, %s7051_s0  ;;  %v4103_v31 = vsel %vm4087_vm3, %v4092_v47, %v4102_v8  ;;  %v6657_v8 = vld [vmem:[%s10163_s22 + $0xa8] sm:$0xff] }
 0xbe4   : > { %4346 = vmatpush.msra.mxu0 %v6072_v62 }
 0xbe5   : > { %v9355_v30 = vpop.permute.xlu1 %6230  ;;  %4347 = vmatmul.f32.vlgmr.msra.gmra.mxu0 %v4093_v43  ;;  %v6266_v45 = vpop.permute.xlu2 %6265  ;;  %v10290_v43 = vld [vmem:[#allocation52_spill] sm:$0xff] }
 0xbe6   : > { %v6268_v44 = vunpack.i.h.bf16 %v6266_v45  ;;  %v6267_v24 = vunpack.i.l.bf16 %v6266_v45  ;;  %6495 = vrot.lane.b32.xlu0 %v6494_v34, %s7051_s0  ;;  %v9363_v6 = vpop.permute.xlu0 %6285  ;;  %v6655_v34 = vld [vmem:[%s10163_s22 + $0xa0] sm:$0xff]  ;;  %v5748_v45 = vunpack.i.h.bf16 %v10290_v43 }
 0xbe7   : > { %6445 = vrot.lane.b32.xlu2 %v6444_v15, %s7051_s0  ;;  %v6469_v49 = vpack.i.bf16 %v6656_v7, %v6655_v34 }
 0xbe8   : > { %4662 = vmatpush.msrb.mxu0 %v6268_v44 }
 0xbe9   : > { %v2340_v0 = vpop.f32.mrf.mxu1 }
 0xbea   : > { %v2346_v35 = vadd.f32 %v2340_v0, %v10289_v42  ;;  %4663 = vmatpush.msrb.mxu0 %v6267_v24  ;;  %v5747_v24 = vunpack.i.l.bf16 %v10290_v43  ;;  %v6658_v0 = vld [vmem:[%s10163_s22 + $0x130] sm:$0xff] }
 0xbeb   : > { %6455 = vrot.lane.b32.xlu1 %v6454_v13, %s7051_s0  ;;  %v6459_v52 = vpack.i.bf16 %v6658_v0, %v6657_v8  ;;  %v10292_v42 = vld [vmem:[#allocation50_spill] sm:$0xff]  ;;  %v6257_v0 = vunpack.i.l.bf16 %v9310_v33 }
 0xbec   : > { %v9374_v51 = vadd.f32 %v6519_v57, %v2346_v35  ;;  %v5743_v35 = vunpack.i.h.bf16 %v10292_v42 }
 0xbed   : > { %v9377_v39 = vpop.permute.xlu1 %6245  ;;  %4350 = vmatmul.f32.gmra.mxu0 %v4103_v31  ;;  %v9390_v50 = vpop.permute.xlu2 %6280 }
 0xbee   : > { %2376 = vst [vmem:[#allocation3 + $0x50] sm:$0xff] %v9374_v51  ;;  %v2905_v62 = vrot.slane %v9374_v51, 3  ;;  %v9388_v47 = vpop.permute.xlu0 %6300  ;;  %v2614_v31 = vpop.f32.mrf.mxu2 }
 0xbef   : > { %6460 = vrot.lane.b32.xlu2 %v6459_v52, %s7051_s0 }
 0xbf0   : > { %v2906_v38 = vsel %vm2903_vm15, %v2904_v5, %v2905_v62  ;;  %v5742_v5 = vunpack.i.l.bf16 %v10292_v42  ;;  %v10295_v42 = vld [vmem:[#allocation49_spill] sm:$0xff] }
 0xbf1   : > { %v2343_v44 = vpop.f32.mrf.mxu1  ;;  %3204 = vmatmul.f32.vlgmr.msrb.gmra.mxu3 %v2906_v38  ;;  %v10294_v38 = vld [vmem:[#allocation51_spill] sm:$0xff] }
 0xbf2   : > { %v2347_v13 = vadd.f32 %v2343_v44, %v10291_v1  ;;  %3646 = vmatpush.msrb.mxu3 %v5748_v45  ;;  %v5738_v44 = vunpack.i.h.bf16 %v10294_v38  ;;  %v2637_v1 = vpop.f32.mrf.mxu3  ;;  %v5737_v8 = vunpack.i.l.bf16 %v10294_v38  ;;  %v6660_v38 = vld [vmem:[%s10163_s22 + $0x80] sm:$0xff] }
 0xbf3   : > { %6470 = vrot.lane.b32.xlu1 %v6469_v49, %s7051_s0  ;;  %v6659_v49 = vld [vmem:[%s10163_s22 + $0x90] sm:$0xff] }
 0xbf4   : > { %v2353_v46 = vadd.f32 %v6519_v57, %v2347_v13  ;;  %3647 = vmatpush.msrb.mxu3 %v5747_v24  ;;  %v6484_v43 = vpack.i.bf16 %v6659_v49, %v10277_v29  ;;  %v6258_v24 = vunpack.i.h.bf16 %v9310_v33  ;;  %v6520_v29 = vld [vmem:[%s10259_s9 + $0x1] ss:$0 sm:$0xff] }
 0xbf5   : > { %v6261_v15 = vpop.permute.xlu1 %6260  ;;  %v9414_v57 = vpop.permute.xlu2 %6295 }
 0xbf6   : > { %2377 = vst [vmem:[#allocation3 + $0x40] sm:$0xff] %v2353_v46  ;;  %v6263_v34 = vunpack.i.h.bf16 %v6261_v15  ;;  %v6262_v7 = vunpack.i.l.bf16 %v6261_v15  ;;  %3648 = vmatpush.msrb.mxu3 %v5743_v35  ;;  %v9412_v45 = vpop.permute.xlu0 %6315  ;;  %v5733_v35 = vunpack.i.h.bf16 %v10295_v42  ;;  %v6253_v46 = vunpack.i.h.bf16 %v9334_v12 }
 0xbf7   : > { %10293 = vst [vmem:[#allocation41_spill] sm:$0xff] %v9412_v45  ;;  %v3427_v45 = vrot.slane %v9374_v51, 4 }
 0xbf8   : > { %4664 = vmatpush.msrb.mxu0 %v6263_v34  ;;  %3649 = vmatpush.msrb.mxu3 %v5742_v5  ;;  %v6521_v5 = vld [vmem:[%s10260_s3 + $0x1] ss:$0 sm:$0xff]  ;;  %v5732_v34 = vunpack.i.l.bf16 %v10295_v42 }
 0xbf9   : > { %v2591_v13 = vpop.f32.mrf.mxu1 }
 0xbfa   : > { %v2615_v52 = vadd.f32 %v2614_v31, %v2591_v13  ;;  %4665 = vmatpush.msrb.mxu0 %v6262_v7  ;;  %3650 = vmatpush.msrb.mxu3 %v5738_v44  ;;  %v6252_v7 = vunpack.i.l.bf16 %v9334_v12  ;;  %v6499_v44 = vpack.i.bf16 %v6660_v38, %v9290_v25  ;;  %v10298_v13 = vld [vmem:[#allocation48_spill] sm:$0xff]  ;;  %v6247_v38 = vunpack.i.l.bf16 %v9377_v39 }
 0xbfb   : > { %6485 = vrot.lane.b32.xlu1 %v6484_v43, %s7051_s0  ;;  %v2885_v25 = vld [vmem:[#allocation3 + $0x58] sm:$0xf8] }
 0xbfc   : > { %v2638_v15 = vadd.f32 %v2637_v1, %v2615_v52  ;;  %4666 = vmatpush.msrb.mxu0 %v6258_v24  ;;  %3651 = vmatpush.msrb.mxu3 %v5737_v8  ;;  %v5728_v8 = vunpack.i.h.bf16 %v10298_v13  ;;  %v6248_v52 = vunpack.i.h.bf16 %v9377_v39  ;;  %v2910_v39 = vrot.slane %v2885_v25, 3 }
 0xbfd   : > { %v9429_v33 = vpop.permute.xlu1 %6275  ;;  %v2887_v31 = vld [vmem:[#allocation3 + $0x40] sm:$0x7]  ;;  %v9439_v24 = vpop.permute.xlu2 %6310 }
 0xbfe   : > { %v2648_v49 = vmul.f32 %v6520_v29, %v2638_v15  ;;  %4667 = vmatpush.msrb.mxu0 %v6257_v0  ;;  %v2916_v43 = vrot.slane %v2887_v31, 3  ;;  %3652 = vmatpush.msrb.mxu3 %v5733_v35  ;;  %10297 = vst [vmem:[#allocation34_spill] sm:$0xff] %v9439_v24  ;;  %v2807_v0 = vld [vmem:[#allocation3 + $0x30] sm:$0xfc]  ;;  %v2617_v35 = vpop.f32.mrf.mxu2  ;;  %v5727_v31 = vunpack.i.l.bf16 %v10298_v13  ;;  %v6243_v24 = vunpack.i.h.bf16 %v9285_v16  ;;  %v2815_v25 = vld [vmem:[#allocation3 + $0x40] sm:$0x3] }
 0xbff   : > { %v9437_v1 = vpop.permute.xlu0 %6330  ;;  %v3290_v13 = vrot.slane %v9374_v51, 2 }
 0xc00   : > { %10296 = vst [vmem:[#allocation44_spill] sm:$0xff] %v9437_v1  ;;  %v2655_v42 = vadd.f32 %v6521_v5, %v2648_v49  ;;  %4668 = vmatpush.msrb.mxu0 %v6253_v46  ;;  %v2917_v12 = vsel %vm2903_vm15, %v2905_v62, %v2916_v43  ;;  %3653 = vmatpush.msrb.mxu3 %v5732_v34  ;;  %v2640_v49 = vpop.f32.mrf.mxu3  ;;  %v10299_v46 = vld [vmem:[#allocation43_spill] sm:$0xff]  ;;  %v3289_v62 = vrot.slane %v2807_v0, 2  ;;  %v6238_v0 = vunpack.i.h.bf16 %v9308_v54 }
 0xc01   : > { %v2594_v15 = vpop.f32.mrf.mxu1  ;;  %3207 = vmatmul.f32.gmra.mxu3 %v2917_v12  ;;  %v5723_v11 = vunpack.i.h.bf16 %v10299_v46 }
 0xc02   : > { %v2657_v4 = vmax.f32 %v2655_v42, 0.0  ;;  %v2618_v1 = vadd.f32 %v2617_v35, %v2594_v15  ;;  %4669 = vmatpush.msrb.mxu0 %v6252_v7  ;;  %3654 = vmatpush.msrb.mxu3 %v5728_v8  ;;  %v5722_v7 = vunpack.i.l.bf16 %v10299_v46  ;;  %v6242_v8 = vunpack.i.l.bf16 %v9285_v16 }
 0xc03   : > { %6500 = vrot.lane.b32.xlu1 %v6499_v44, %s7051_s0  ;;  %v3291_v16 = vsel %vm3288_vm0, %v3289_v62, %v3290_v13 }
 0xc04   : > { %v9452_v34 = vadd.f32 %v9024_v55, %v2657_v4  ;;  %v2641_v43 = vadd.f32 %v2640_v49, %v2618_v1  ;;  %4670 = vmatpush.msrb.mxu0 %v6248_v52  ;;  %3655 = vmatpush.msrb.mxu3 %v5727_v31  ;;  %v10300_v4 = vld [vmem:[#allocation47_spill] sm:$0xff]  ;;  %v2735_v1 = vpop.f32.mrf.mxu0 }
 0xc05   : > { %v9455_v42 = vpop.permute.xlu1 %6290  ;;  %v5718_v44 = vunpack.i.h.bf16 %v10300_v4  ;;  %v9462_v52 = vpop.permute.xlu2 %6325 }
 0xc06   : > { %2661 = vst [vmem:[#allocation3 + $0x8] sm:$0xff] %v9452_v34  ;;  %v2649_v12 = vmul.f32 %v6520_v29, %v2641_v43  ;;  %4671 = vmatpush.msrb.mxu0 %v6247_v38  ;;  %3656 = vmatpush.msrb.mxu3 %v5723_v11  ;;  %v10100_v55 = vrot.slane %v9452_v34, 3  ;;  %v10302_v29 = vld [vmem:[#allocation65_spill] sm:$0xff]  ;;  %v2781_v38 = vpop.f32.mrf.mxu2 }
 0xc07   : > { %10301 = vst [vmem:[#allocation40_spill] sm:$0xff] %v9462_v52  ;;  %v5828_v15 = vunpack.i.h.bf16 %v10302_v29  ;;  %v5827_v62 = vunpack.i.l.bf16 %v10302_v29 }
 0xc08   : > { %v2656_v35 = vadd.f32 %v6521_v5, %v2649_v12  ;;  %4672 = vmatpush.msrb.mxu0 %v6243_v24  ;;  %3657 = vmatpush.msrb.mxu3 %v5722_v7  ;;  %v2912_v11 = vsel %vm2903_vm15, %v2910_v39, %v10100_v55  ;;  %v9472_v31 = vpop.permute.xlu0 %6345  ;;  %v5717_v5 = vunpack.i.l.bf16 %v10300_v4  ;;  %v6237_v24 = vunpack.i.l.bf16 %v9308_v54  ;;  %v9480_v39 = vld [vmem:[%s10259_s9 + $0x2] ss:$0 sm:$0xff]  ;;  %v4403_v7 = vld [vmem:[#allocation3] sm:$0x80]  ;;  %v10304_v12 = vld [vmem:[#allocation46_spill] sm:$0xff]  ;;  %s5076_s9 = scalar_lea.sflag [#allocation7], %s7337_s15 }
 0xc09   : > { %3333 = vmatmul.f32.vlgmr.msra.gmra.mxu3 %v3291_v16  ;;  %3250 = vmatmul.f32.vlgmr.msra.gmra.mxu1 %v2912_v11  ;;  %10303 = vst [vmem:[#allocation42_spill] sm:$0xff] %v9472_v31  ;;  %v2758_v46 = vpop.f32.mrf.mxu1  ;;  %v5713_v16 = vunpack.i.h.bf16 %v10304_v12  ;;  %v6233_v4 = vunpack.i.h.bf16 %v9355_v30  ;;  %v10309_v31 = vld [vmem:[#allocation83_spill] sm:$0xff] }
 0xc0a   : > { %v2658_v49 = vmax.f32 %v2656_v35, 0.0  ;;  %4673 = vmatpush.msrb.mxu0 %v6242_v8  ;;  %3658 = vmatpush.msrb.mxu3 %v5718_v44  ;;  %v2759_v43 = vadd.f32 %v2758_v46, %v2735_v1  ;;  %v3301_v35 = vrot.slane %v2815_v25, 2  ;;  %v10305_v8 = vld [vmem:[#allocation56_spill] sm:$0xff]  ;;  %v9489_v1 = vld [vmem:[%s10260_s3 + $0x2] ss:$0 sm:$0xff]  ;;  %v6232_v46 = vunpack.i.l.bf16 %v9355_v30  ;;  %s5115_s3 = sshll.u32 %s5112_s14, 4  ;;  %s5116_s3 = int_to_ptr.hbm [resolvable:$true] %s5115_s3 }
 0xc0b   : > { %3692 = vmatpush.msra.mxu1 %v5828_v15  ;;  %v5823_v44 = vunpack.i.h.bf16 %v10305_v8  ;;  %v5712_v15 = vunpack.i.l.bf16 %v10304_v12  ;;  %v5822_v25 = vunpack.i.l.bf16 %v10305_v8  ;;  %v10308_v12 = vld [vmem:[#allocation57_spill] sm:$0xff] }
 0xc0c   : > { %v2660_v54 = vadd.f32 %v9052_v21, %v2658_v49  ;;  %4674 = vmatpush.msrb.mxu0 %v6238_v0  ;;  %3659 = vmatpush.msrb.mxu3 %v5717_v5  ;;  %v2782_v11 = vadd.f32 %v2781_v38, %v2759_v43  ;;  %v4422_v21 = vrot.slane %v4403_v7, 7  ;;  %v10104_v0 = vrot.slane %v9027_v53, 7  ;;  %v10307_v49 = vld [vmem:[#allocation38_spill] sm:$0xff]  ;;  %v6662_v43 = vld [vmem:[%s10163_s22 + $0x198] sm:$0xff] }
 0xc0d   : > { %v9491_v29 = vpop.permute.xlu1 %6305  ;;  %3693 = vmatpush.msra.mxu1 %v5827_v62  ;;  %v9498_v5 = vpop.permute.xlu2 %6340  ;;  %v5908_v62 = vunpack.i.h.bf16 %v10307_v49  ;;  %v3302_v30 = vsel %vm3288_vm0, %v3290_v13, %v3301_v35  ;;  %v6328_v13 = vunpack.i.h.bf16 %v9462_v52  ;;  %v5907_v35 = vunpack.i.l.bf16 %v10307_v49 }
 0xc0e   : > { %2662 = vst [vmem:[#allocation3 + $0x10] sm:$0xff] %v2660_v54  ;;  %4675 = vmatpush.msrb.mxu0 %v6237_v24  ;;  %3660 = vmatpush.msrb.mxu3 %v5713_v16  ;;  %v2792_v38 = vmul.f32 %v9480_v39, %v2782_v11  ;;  %v6661_v24 = vld [vmem:[%s10163_s22] sm:$0xff]  ;;  %v5818_v16 = vunpack.i.h.bf16 %v10308_v12  ;;  %v2738_v54 = vpop.f32.mrf.mxu0  ;;  %v4424_v11 = vsel %vm4418_vm4, %v4422_v21, %v10104_v0  ;;  %v6342_v55 = vunpack.i.l.bf16 %v9498_v5  ;;  %v2784_v49 = vpop.f32.mrf.mxu2  ;;  %v10310_v21 = vld [vmem:[#allocation62_spill] sm:$0xff] }
 0xc0f   : > { %3694 = vmatpush.msra.mxu1 %v5823_v44  ;;  %10306 = vst [vmem:[#allocation32_spill] sm:$0xff] %v9498_v5  ;;  %v6474_v7 = vpack.i.bf16 %v6661_v24, %v6662_v43  ;;  %v5817_v43 = vunpack.i.l.bf16 %v10308_v12  ;;  %v6663_v0 = vld [vmem:[#allocation2 + $0x8] sm:$0xff] }
 0xc10   : > { %4676 = vmatpush.msrb.mxu0 %v6233_v4  ;;  %3661 = vmatpush.msrb.mxu3 %v5712_v15  ;;  %v2799_v8 = vadd.f32 %v9489_v1, %v2792_v38  ;;  %v3409_v4 = vld [vmem:[#allocation3 + $0x30] sm:$0xf0]  ;;  %v2886_v15 = vld [vmem:[#allocation3 + $0x18] sm:$0xf8]  ;;  %v9517_v24 = vpop.permute.xlu0 %6360 }
 0xc11   : > { %3336 = vmatmul.f32.gmra.mxu3 %v3302_v30  ;;  %3695 = vmatpush.msra.mxu1 %v5822_v25  ;;  %v2761_v44 = vpop.f32.mrf.mxu1  ;;  %v4407_v25 = vld [vmem:[#allocation3 + $0x20] sm:$0x7f]  ;;  %v3426_v52 = vrot.slane %v3409_v4, 4 }
 0xc12   : > { %4677 = vmatpush.msrb.mxu0 %v6232_v46  ;;  %3977 = vmatpush.msra.mxu3 %v5908_v62  ;;  %v2801_v38 = vmax.f32 %v2799_v8, 0.0  ;;  %v2762_v30 = vadd.f32 %v2761_v44, %v2738_v54  ;;  %v5903_v46 = vunpack.i.h.bf16 %v10309_v31  ;;  %v5813_v62 = vunpack.i.h.bf16 %v10310_v21 }
 0xc13   : > { %4678 = vmatmul.f32.vlgmr.msrb.gmra.mxu0 %v4424_v11  ;;  %3696 = vmatpush.msra.mxu1 %v5818_v16  ;;  %v2913_v44 = vrot.slane %v2886_v15, 3  ;;  %v5902_v11 = vunpack.i.l.bf16 %v10309_v31  ;;  %v4433_v5 = vrot.slane %v4407_v25, 7  ;;  %v2809_v25 = vld [vmem:[#allocation3 + $0x58] sm:$0xfc] }
 0xc14   : > { %3978 = vmatpush.msra.mxu3 %v5907_v35  ;;  %6475 = vrot.lane.b32.xlu2 %v6474_v7, %s7051_s0  ;;  %v9525_v12 = vadd.f32 %v6663_v0, %v2801_v38  ;;  %v2785_v54 = vadd.f32 %v2784_v49, %v2762_v30  ;;  %v5812_v38 = vunpack.i.l.bf16 %v10310_v21  ;;  %v3428_v30 = vsel %vm3425_vm1, %v3426_v52, %v3427_v45  ;;  %v3413_v49 = vld [vmem:[#allocation3 + $0x40] sm:$0xf]  ;;  %v10314_v21 = vld [vmem:[#allocation54_spill] sm:$0xff] }
 0xc15   : > { %v9527_v8 = vpop.permute.xlu1 %6320  ;;  %v2889_v16 = vld [vmem:[#allocation3 + $0x10] sm:$0x7]  ;;  %3697 = vmatpush.msra.mxu1 %v5817_v43  ;;  %4952 = vmatpush.msra.mxu0 %v6328_v13  ;;  %v9533_v35 = vpop.permute.xlu2 %6355  ;;  %v10312_v43 = vld [vmem:[#allocation68_spill] sm:$0xff]  ;;  %v10313_v13 = vrot.slane %v9452_v34, 3 }
 0xc16   : > { %v2920_v4 = vrot.slane %v2889_v16, 3  ;;  %3979 = vmatpush.msra.mxu3 %v5903_v46  ;;  %2805 = vst [vmem:[#allocation3 + $0x48] sm:$0xff] %v9525_v12  ;;  %v2793_v7 = vmul.f32 %v9480_v39, %v2785_v54  ;;  %v2914_v0 = vrot.slane %v9525_v12, 3  ;;  %v5898_v15 = vunpack.i.h.bf16 %v10312_v43  ;;  %v10315_v54 = vld [vmem:[#allocation64_spill] sm:$0xff] }
 0xc17   : > { %3698 = vmatpush.msra.mxu1 %v5813_v62  ;;  %10311 = vst [vmem:[#allocation69_spill] sm:$0xff] %v9533_v35  ;;  %4953 = vmatpush.msra.mxu0 %v6342_v55  ;;  %v6357_v46 = vunpack.i.l.bf16 %v9533_v35  ;;  %v5808_v62 = vunpack.i.h.bf16 %v10314_v21  ;;  %v5868_v16 = vunpack.i.h.bf16 %v10315_v54  ;;  %v3415_v35 = vld [vmem:[#allocation3 + $0x10] sm:$0xf] }
 0xc18   : > { %v2921_v31 = vsel %vm2903_vm15, %v10313_v13, %v2920_v4  ;;  %3980 = vmatpush.msra.mxu3 %v5902_v11  ;;  %v2800_v39 = vadd.f32 %v9489_v1, %v2793_v7  ;;  %v2915_v55 = vsel %vm2903_vm15, %v2913_v44, %v2914_v0  ;;  %v10316_v4 = vrot.slane %v9027_v53, 7  ;;  %v9557_v53 = vpop.permute.xlu0 %6375 }
 0xc19   : > { %3253 = vmatmul.f32.gmra.mxu1 %v2921_v31  ;;  %3662 = vmatmul.f32.vlgmr.msrb.gmra.mxu3 %v3428_v30  ;;  %v5807_v1 = vunpack.i.l.bf16 %v10314_v21  ;;  %v5897_v11 = vunpack.i.l.bf16 %v10312_v43  ;;  %v5867_v44 = vunpack.i.l.bf16 %v10315_v54  ;;  %v3295_v13 = vrot.slane %v2809_v25, 2  ;;  %v10318_v43 = vld [vmem:[#allocation55_spill] sm:$0xff] }
 0xc1a   : > { %v4434_v52 = vsel %vm4418_vm4, %v10316_v4, %v4433_v5  ;;  %3699 = vmatpush.msra.mxu1 %v5812_v38  ;;  %3981 = vmatpush.msra.mxu3 %v5898_v15  ;;  %v2802_v7 = vmax.f32 %v2800_v39, 0.0  ;;  %v3296_v31 = vrot.slane %v9452_v34, 2  ;;  %v3438_v30 = vrot.slane %v3413_v49, 4  ;;  %v10317_v5 = vld [vmem:[#allocation70_spill] sm:$0xff] }
 0xc1b   : > { %4681 = vmatmul.f32.gmra.mxu0 %v4434_v52  ;;  %3273 = vmatmul.f32.vlgmr.msra.gmra.mxu2 %v2915_v55  ;;  %v5893_v38 = vunpack.i.h.bf16 %v10317_v5  ;;  %v6664_v15 = vld [vmem:[#allocation2 + $0x10] sm:$0xff]  ;;  %v5803_v39 = vunpack.i.h.bf16 %v10318_v43  ;;  %v5802_v25 = vunpack.i.l.bf16 %v10318_v43  ;;  %v6665_v52 = vld [vmem:[%s10163_s22 + $0x118] sm:$0xff] }
 0xc1c   : > { %3700 = vmatpush.msra.mxu1 %v5808_v62  ;;  %3715 = vmatpush.msra.mxu2 %v5868_v16  ;;  %v2804_v4 = vadd.f32 %v6664_v15, %v2802_v7  ;;  %v10319_v55 = vld [vmem:[#allocation66_spill] sm:$0xff]  ;;  %v5892_v62 = vunpack.i.l.bf16 %v10317_v5  ;;  %v3297_v16 = vsel %vm3288_vm0, %v3295_v13, %v3296_v31  ;;  %v10321_v13 = vld [vmem:[#allocation59_spill] sm:$0xff] }
 0xc1d   : > { %v9560_v21 = vpop.permute.xlu1 %6335  ;;  %3982 = vmatpush.msra.mxu3 %v5897_v11  ;;  %4954 = vmatpush.msra.mxu0 %v6357_v46  ;;  %v5863_v54 = vunpack.i.h.bf16 %v10319_v55  ;;  %v9565_v49 = vpop.permute.xlu2 %6370  ;;  %v3439_v46 = vsel %vm3425_vm1, %v3427_v45, %v3438_v30  ;;  %v5862_v11 = vunpack.i.l.bf16 %v10319_v55  ;;  %v2817_v7 = vld [vmem:[#allocation3 + $0x10] sm:$0x3]  ;;  %v5798_v5 = vunpack.i.h.bf16 %v10321_v13  ;;  %v10323_v45 = vld [vmem:[#allocation29_spill] sm:$0xff] }
 0xc1e   : > { %3701 = vmatpush.msra.mxu1 %v5807_v1  ;;  %3716 = vmatpush.msra.mxu2 %v5867_v44  ;;  %2806 = vst [vmem:[#allocation3 + $0x38] sm:$0xff] %v2804_v4  ;;  %v6489_v1 = vpack.i.bf16 %v9263_v10, %v6665_v52  ;;  %v6372_v44 = vunpack.i.l.bf16 %v9565_v49  ;;  %v5858_v30 = vunpack.i.h.bf16 %v10323_v45  ;;  %v5797_v10 = vunpack.i.l.bf16 %v10321_v13 }
 0xc1f   : > { %3983 = vmatpush.msra.mxu3 %v5893_v38  ;;  %10320 = vst [vmem:[#allocation91_spill] sm:$0xff] %v9565_v49  ;;  %v10322_v38 = vld [vmem:[#allocation77_spill] sm:$0xff]  ;;  %v3305_v43 = vrot.slane %v2817_v7, 2 }
 0xc20   : > { %3717 = vmatpush.msra.mxu2 %v5863_v54  ;;  %3702 = vmatpush.msra.mxu1 %v5803_v39  ;;  %v5888_v15 = vunpack.i.h.bf16 %v10322_v38  ;;  %v5887_v4 = vunpack.i.l.bf16 %v10322_v38  ;;  %v5857_v39 = vunpack.i.l.bf16 %v10323_v45  ;;  %v10324_v54 = vld [vmem:[#allocation53_spill] sm:$0xff]  ;;  %v9589_v52 = vpop.permute.xlu0 %6390 }
 0xc21   : > { %3379 = vmatmul.f32.vlgmr.msrb.gmra.mxu1 %v3297_v16  ;;  %3665 = vmatmul.f32.gmra.mxu3 %v3439_v46  ;;  %10326 = vst [vmem:[#allocation74_spill] sm:$0xff] %v9589_v52  ;;  %v3306_v38 = vsel %vm3288_vm0, %v3296_v31, %v3305_v43  ;;  %v2810_v31 = vld [vmem:[#allocation3 + $0x18] sm:$0xfc]  ;;  %v6666_v43 = vld [vmem:[%s10163_s22 + $0x100] sm:$0xff] }
 0xc22   : > { %3984 = vmatpush.msra.mxu3 %v5892_v62  ;;  %3703 = vmatpush.msra.mxu1 %v5802_v25  ;;  %v5793_v25 = vunpack.i.h.bf16 %v10324_v54  ;;  %v10325_v62 = vld [vmem:[#allocation67_spill] sm:$0xff] }
 0xc23   : > { %3718 = vmatpush.msra.mxu2 %v5862_v11  ;;  %6490 = vrot.lane.b32.xlu2 %v6489_v1, %s7051_s0  ;;  %v5883_v16 = vunpack.i.h.bf16 %v10325_v62  ;;  %v10327_v1 = vld [vmem:[#allocation61_spill] sm:$0xff] }
 0xc24   : > { %3985 = vmatpush.msra.mxu3 %v5888_v15  ;;  %3704 = vmatpush.msra.mxu1 %v5798_v5  ;;  %v5853_v11 = vunpack.i.h.bf16 %v10327_v1  ;;  %v5882_v5 = vunpack.i.l.bf16 %v10325_v62  ;;  %v5852_v15 = vunpack.i.l.bf16 %v10327_v1 }
 0xc25   : > { %v9585_v55 = vpop.permute.xlu1 %6350  ;;  %3719 = vmatpush.msra.mxu2 %v5858_v30  ;;  %4955 = vmatpush.msra.mxu0 %v6372_v44  ;;  %v2890_v46 = vld [vmem:[#allocation3 + $0x38] sm:$0x7]  ;;  %v9592_v7 = vpop.permute.xlu2 %6385  ;;  %v5792_v44 = vunpack.i.l.bf16 %v10324_v54  ;;  %v3411_v30 = vld [vmem:[#allocation3 + $0x58] sm:$0xf0]  ;;  %v6667_v54 = vld [vmem:[%s10163_s22 + $0x108] sm:$0xff] }
 0xc26   : > { %3986 = vmatpush.msra.mxu3 %v5887_v4  ;;  %3705 = vmatpush.msra.mxu1 %v5797_v10  ;;  %v2922_v13 = vrot.slane %v2890_v46, 3  ;;  %10328 = vst [vmem:[#allocation78_spill] sm:$0xff] %v9592_v7  ;;  %v10329_v10 = vld [vmem:[#allocation37_spill] sm:$0xff] }
 0xc27   : > { %3720 = vmatpush.msra.mxu2 %v5857_v39  ;;  %v5878_v4 = vunpack.i.h.bf16 %v10329_v10  ;;  %v10330_v39 = vld [vmem:[#allocation89_spill] sm:$0xff]  ;;  %v5877_v1 = vunpack.i.l.bf16 %v10329_v10 }
 0xc28   : > { %3987 = vmatpush.msra.mxu3 %v5883_v16  ;;  %3706 = vmatpush.msra.mxu1 %v5793_v25  ;;  %v2923_v45 = vsel %vm2903_vm15, %v2914_v0, %v2922_v13  ;;  %v5988_v46 = vunpack.i.h.bf16 %v10330_v39  ;;  %v6504_v25 = vpack.i.bf16 %v6666_v43, %v6667_v54  ;;  %v10331_v0 = vld [vmem:[#allocation63_spill] sm:$0xff]  ;;  %v6387_v16 = vunpack.i.l.bf16 %v9592_v7  ;;  %v10333_v54 = vld [vmem:[#allocation92_spill] sm:$0xff] }
 0xc29   : > { %3382 = vmatmul.f32.gmra.mxu1 %v3306_v38  ;;  %3721 = vmatpush.msra.mxu2 %v5853_v11  ;;  %v5848_v62 = vunpack.i.h.bf16 %v10331_v0  ;;  %v5987_v11 = vunpack.i.l.bf16 %v10330_v39  ;;  %v3432_v13 = vrot.slane %v3411_v30, 4  ;;  %v3740_v38 = vld [vmem:[#allocation3 + $0x30] sm:$0xe0]  ;;  %v3298_v43 = vrot.slane %v2810_v31, 2  ;;  %v10334_v30 = vld [vmem:[#allocation30_spill] sm:$0xff] }
 0xc2a   : > { %3276 = vmatmul.f32.gmra.mxu2 %v2923_v45  ;;  %3988 = vmatpush.msra.mxu3 %v5882_v5  ;;  %v3433_v5 = vrot.slane %v9452_v34, 4  ;;  %v5847_v45 = vunpack.i.l.bf16 %v10331_v0  ;;  %v5983_v39 = vunpack.i.h.bf16 %v10333_v54  ;;  %v3758_v0 = vrot.slane %v9374_v51, 5 }
 0xc2b   : > { %3707 = vmatpush.msra.mxu1 %v5792_v44  ;;  %3722 = vmatpush.msra.mxu2 %v5852_v15  ;;  %v3299_v44 = vrot.slane %v9525_v12, 2  ;;  %v10332_v15 = vld [vmem:[#allocation36_spill] sm:$0xff] }
 0xc2c   : > { %3989 = vmatpush.msra.mxu3 %v5878_v4  ;;  %6505 = vrot.lane.b32.xlu2 %v6504_v25, %s7051_s0  ;;  %v5873_v10 = vunpack.i.h.bf16 %v10332_v15  ;;  %v5843_v4 = vunpack.i.h.bf16 %v10334_v30  ;;  %v5872_v31 = vunpack.i.l.bf16 %v10332_v15  ;;  %v9627_v25 = vpop.permute.xlu0 %6405  ;;  %v10337_v15 = vld [vmem:[#allocation97_spill] sm:$0xff]  ;;  %s5096_s0 = sshll.u32 %s7577_s11, 4  ;;  %s6928_s11 = scalar_lea.hbm %s6927_s12, 16  ;;  %s5097_s0 = int_to_ptr.vmem [resolvable:$true] %s5096_s0 }
 0xc2d   : > { %4023 = vmatpush.msrb.mxu1 %v5988_v46  ;;  %v9615_v49 = vpop.permute.xlu1 %6365  ;;  %3723 = vmatpush.msra.mxu2 %v5848_v62  ;;  %v3757_v46 = vrot.slane %v3740_v38, 5  ;;  %v9623_v7 = vpop.permute.xlu2 %6400  ;;  %v3434_v62 = vsel %vm3425_vm1, %v3432_v13, %v3433_v5  ;;  %10336 = vst [vmem:[#allocation39_spill] sm:$0xff] %v9627_v25  ;;  %v3300_v38 = vsel %vm3288_vm0, %v3298_v43, %v3299_v44  ;;  %v5978_v13 = vunpack.i.h.bf16 %v10337_v15  ;;  %v3744_v25 = vld [vmem:[#allocation3 + $0x40] sm:$0x1f]  ;;  %p6929_p1 = scmp.ne.s32.totalorder %s6927_s12, %s6928_s11  ;;  %p6934_p8 = scmp.lt.s32.totalorder %s6932_s2, %s6928_s11 }
 0xc2e   : > { %3990 = vmatpush.msra.mxu3 %v5877_v1  ;;  %10335 = vst [vmem:[#allocation85_spill] sm:$0xff] %v9623_v7  ;;  %4956 = vmatpush.msra.mxu0 %v6387_v16  ;;  %v6402_v1 = vunpack.i.l.bf16 %v9623_v7  ;;  %v2818_v16 = vld [vmem:[#allocation3 + $0x38] sm:$0x3]  ;;  %v10338_v7 = vld [vmem:[#allocation58_spill] sm:$0xff]  ;;  %v5977_v43 = vunpack.i.l.bf16 %v10337_v15 }
 0xc2f   : > { %4024 = vmatpush.msrb.mxu1 %v5987_v11  ;;  %3724 = vmatpush.msra.mxu2 %v5847_v45  ;;  %v5842_v11 = vunpack.i.l.bf16 %v10334_v30  ;;  %v5982_v45 = vunpack.i.l.bf16 %v10333_v54  ;;  %v5838_v30 = vunpack.i.h.bf16 %v10338_v7  ;;  %v3442_v54 = vrot.slane %v3415_v35, 4  ;;  %p6930_p3 = pnand %p6929_p1, %p7306_p0  ;;  %p6935_p7 = por %p6934_p8, %p6933_p13 }
 0xc30   : > { %3991 = vmatpush.msra.mxu3 %v5873_v10  ;;  %v6068_v10 = vunpack.i.h.bf16 %v9062_v41  ;;  %4957 = vmatpush.msra.mxu0 %v6402_v1  ;;  %v10341_v1 = vld [vmem:[#allocation87_spill] sm:$0xff] }
 0xc31   : > { %4025 = vmatpush.msrb.mxu1 %v5983_v39  ;;  %3725 = vmatpush.msra.mxu2 %v5843_v4  ;;  %v3759_v39 = vsel %vm3756_vm2, %v3757_v46, %v3758_v0  ;;  %v6067_v4 = vunpack.i.l.bf16 %v9062_v41  ;;  %v3443_v15 = vsel %vm3425_vm1, %v3433_v5, %v3442_v54  ;;  %v10342_v41 = vld [vmem:[#allocation60_spill] sm:$0xff]  ;;  %p6931_p5 = pneg %p6930_p3 }
 0xc32   : > { %3708 = vmatmul.f32.vlgmr.msra.gmra.mxu1 %v3434_v62  ;;  %3402 = vmatmul.f32.vlgmr.msrb.gmra.mxu2 %v3300_v38  ;;  %v3307_v62 = vrot.slane %v2818_v16, 2  ;;  %v3769_v38 = vrot.slane %v3744_v25, 5  ;;  %v5833_v52 = vunpack.i.h.bf16 %v10342_v41  ;;  %v3412_v25 = vld [vmem:[#allocation3 + $0x18] sm:$0xf0] }
 0xc33   : > { %3992 = vmatpush.msra.mxu3 %v5872_v31  ;;  %4026 = vmatpush.msrb.mxu1 %v5982_v45  ;;  %v5837_v45 = vunpack.i.l.bf16 %v10338_v7  ;;  %v5972_v7 = vunpack.i.l.bf16 %v10341_v1  ;;  %p6936_p9 = pnand %p6935_p7, %p6931_p5 }
 0xc34   : > { %3726 = vmatpush.msra.mxu2 %v5842_v11  ;;  %3993 = vmatmul.f32.vlgmr.msra.gmra.mxu3 %v3759_v39  ;;  %v10339_v11 = vld [vmem:[#allocation105_spill] sm:$0xff]  ;;  %v5973_v39 = vunpack.i.h.bf16 %v10341_v1  ;;  %v3308_v16 = vsel %vm3288_vm0, %v3299_v44, %v3307_v62  ;;  %v3770_v54 = vsel %vm3756_vm2, %v3758_v0, %v3769_v38  ;;  %v10344_v44 = vld [vmem:[#allocation88_spill] sm:$0xff]  ;;  %v6053_v38 = vunpack.i.h.bf16 %v9042_v18 }
 0xc35   : > { %v9639_v31 = vpop.permute.xlu1 %6380  ;;  %4308 = vmatpush.msrb.mxu3 %v6068_v10  ;;  %4027 = vmatpush.msrb.mxu1 %v5978_v13  ;;  %v6063_v46 = vunpack.i.h.bf16 %v10339_v11  ;;  %v9643_v35 = vpop.permute.xlu2 %6415  ;;  %v6062_v13 = vunpack.i.l.bf16 %v10339_v11  ;;  %v5968_v62 = vunpack.i.h.bf16 %v10344_v44 }
 0xc36   : > { %3727 = vmatpush.msra.mxu2 %v5838_v30  ;;  %10340 = vst [vmem:[#allocation90_spill] sm:$0xff] %v9643_v35  ;;  %v9651_v10 = vpop.permute.xlu0 %6420  ;;  %v5832_v30 = vunpack.i.l.bf16 %v10342_v41 }
 0xc37   : > { %4309 = vmatpush.msrb.mxu3 %v6067_v4  ;;  %4028 = vmatpush.msrb.mxu1 %v5977_v43  ;;  %v10343_v43 = vld [vmem:[#allocation107_spill] sm:$0xff]  ;;  %v6417_v4 = vunpack.i.l.bf16 %v9643_v35  ;;  %v10354_v35 = vld [vmem:[#allocation98_spill] sm:$0xff] }
 0xc38   : > { %3728 = vmatpush.msra.mxu2 %v5837_v45  ;;  %v6058_v5 = vunpack.i.h.bf16 %v10343_v43  ;;  %v10345_v45 = vld [vmem:[#allocation101_spill] sm:$0xff] }
 0xc39   : > { %4310 = vmatpush.msrb.mxu3 %v6063_v46  ;;  %4029 = vmatpush.msrb.mxu1 %v5973_v39  ;;  %v6028_v11 = vunpack.i.h.bf16 %v10345_v45  ;;  %v6057_v46 = vunpack.i.l.bf16 %v10343_v43  ;;  %v3435_v39 = vrot.slane %v3412_v25, 4  ;;  %v6027_v0 = vunpack.i.l.bf16 %v10345_v45  ;;  %v10348_v25 = vld [vmem:[#allocation106_spill] sm:$0xff] }
 0xc3a   : > { %3711 = vmatmul.f32.gmra.mxu1 %v3443_v15  ;;  %3405 = vmatmul.f32.gmra.mxu2 %v3308_v16  ;;  %v5967_v15 = vunpack.i.l.bf16 %v10344_v44  ;;  %v6052_v43 = vunpack.i.l.bf16 %v9042_v18  ;;  %v3416_v44 = vld [vmem:[#allocation3 + $0x38] sm:$0xf] }
 0xc3b   : > { %3729 = vmatpush.msra.mxu2 %v5833_v52  ;;  %4311 = vmatpush.msrb.mxu3 %v6062_v13  ;;  %v3436_v52 = vrot.slane %v9525_v12, 4  ;;  %v10347_v13 = vld [vmem:[#allocation94_spill] sm:$0xff]  ;;  %v10351_v18 = vld [vmem:[#allocation96_spill] sm:$0xff] }
 0xc3c   : > { %4030 = vmatpush.msrb.mxu1 %v5972_v7  ;;  %3996 = vmatmul.f32.gmra.mxu3 %v3770_v54  ;;  %v5963_v16 = vunpack.i.h.bf16 %v10347_v13  ;;  %v5962_v54 = vunpack.i.l.bf16 %v10347_v13  ;;  %v3444_v13 = vrot.slane %v3416_v44, 4 }
 0xc3d   : > { %v9660_v1 = vpop.permute.xlu1 %6395  ;;  %3730 = vmatpush.msra.mxu2 %v5832_v30  ;;  %4312 = vmatpush.msrb.mxu3 %v6058_v5  ;;  %v9666_v41 = vpop.permute.xlu2 %6430  ;;  %v6023_v30 = vunpack.i.h.bf16 %v10348_v25  ;;  %v3437_v5 = vsel %vm3425_vm1, %v3435_v39, %v3436_v52  ;;  %v6018_v39 = vunpack.i.h.bf16 %v10351_v18 }
 0xc3e   : > { %4031 = vmatpush.msrb.mxu1 %v5968_v62  ;;  %10346 = vst [vmem:[#allocation73_spill] sm:$0xff] %v9666_v41  ;;  %4958 = vmatpush.msra.mxu0 %v6417_v4  ;;  %v6432_v7 = vunpack.i.l.bf16 %v9666_v41  ;;  %v6022_v4 = vunpack.i.l.bf16 %v10348_v25  ;;  %v10349_v62 = vld [vmem:[#allocation102_spill] sm:$0xff] }
 0xc3f   : > { %4046 = vmatpush.msrb.mxu2 %v6028_v11  ;;  %4313 = vmatpush.msrb.mxu3 %v6057_v46  ;;  %v6048_v45 = vunpack.i.h.bf16 %v10349_v62  ;;  %v10350_v11 = vld [vmem:[#allocation84_spill] sm:$0xff] }
 0xc40   : > { %4032 = vmatpush.msrb.mxu1 %v5967_v15  ;;  %v5958_v46 = vunpack.i.h.bf16 %v10350_v11  ;;  %v9677_v15 = vpop.permute.xlu0 %6435  ;;  %4959 = vmatpush.msra.mxu0 %v6432_v7  ;;  %v5957_v25 = vunpack.i.l.bf16 %v10350_v11  ;;  %v10353_v7 = vld [vmem:[#allocation86_spill] sm:$0xff] }
 0xc41   : > { %4047 = vmatpush.msrb.mxu2 %v6027_v0  ;;  %4314 = vmatpush.msrb.mxu3 %v6053_v38  ;;  %v6047_v0 = vunpack.i.l.bf16 %v10349_v62  ;;  %v3764_v62 = vrot.slane %v9452_v34, 5  ;;  %v5952_v11 = vunpack.i.l.bf16 %v10353_v7 }
 0xc42   : > { %3731 = vmatmul.f32.vlgmr.msra.gmra.mxu2 %v3437_v5  ;;  %4033 = vmatpush.msrb.mxu1 %v5963_v16  ;;  %v3742_v16 = vld [vmem:[#allocation3 + $0x58] sm:$0xe0] }
 0xc43   : > { %4048 = vmatpush.msrb.mxu2 %v6023_v30  ;;  %4315 = vmatpush.msrb.mxu3 %v6052_v43  ;;  %v6017_v30 = vunpack.i.l.bf16 %v10351_v18  ;;  %v10352_v43 = vld [vmem:[#allocation104_spill] sm:$0xff]  ;;  %v3763_v41 = vrot.slane %v3742_v16, 5  ;;  %v6148_v16 = vunpack.i.h.bf16 %v9149_v28 }
 0xc44   : > { %4034 = vmatpush.msrb.mxu1 %v5962_v54  ;;  %v6043_v5 = vunpack.i.h.bf16 %v10352_v43  ;;  %v5953_v54 = vunpack.i.h.bf16 %v10353_v7  ;;  %v6042_v44 = vunpack.i.l.bf16 %v10352_v43  ;;  %v4071_v43 = vld [vmem:[#allocation3 + $0x30] sm:$0xc0]  ;;  %v3746_v7 = vld [vmem:[#allocation3 + $0x10] sm:$0x1f] }
 0xc45   : > { %v9681_v38 = vpop.permute.xlu1 %6410  ;;  %4049 = vmatpush.msrb.mxu2 %v6022_v4  ;;  %4316 = vmatpush.msrb.mxu3 %v6048_v45  ;;  %v6013_v4 = vunpack.i.h.bf16 %v10354_v35  ;;  %v3445_v45 = vsel %vm3425_vm1, %v3436_v52, %v3444_v13  ;;  %v9693_v18 = vpop.permute.xlu2 %6445  ;;  %v10356_v52 = vld [vmem:[#allocation103_spill] sm:$0xff] }
 0xc46   : > { %4035 = vmatpush.msrb.mxu1 %v5958_v46  ;;  %v6012_v46 = vunpack.i.l.bf16 %v10354_v35  ;;  %v6008_v13 = vunpack.i.h.bf16 %v10356_v52 }
 0xc47   : > { %4050 = vmatpush.msrb.mxu2 %v6018_v39  ;;  %4317 = vmatpush.msrb.mxu3 %v6047_v0  ;;  %v10355_v39 = vld [vmem:[#allocation108_spill] sm:$0xff] }
 0xc48   : > { %4036 = vmatpush.msrb.mxu1 %v5957_v25  ;;  %v6038_v0 = vunpack.i.h.bf16 %v10355_v39  ;;  %v3765_v25 = vsel %vm3756_vm2, %v3763_v41, %v3764_v62  ;;  %v6037_v35 = vunpack.i.l.bf16 %v10355_v39  ;;  %v10357_v41 = vld [vmem:[#allocation99_spill] sm:$0xff]  ;;  %v10358_v39 = vld [vmem:[#allocation93_spill] sm:$0xff] }
 0xc49   : > { %4051 = vmatpush.msrb.mxu2 %v6017_v30  ;;  %4318 = vmatpush.msrb.mxu3 %v6043_v5  ;;  %v6147_v5 = vunpack.i.l.bf16 %v9149_v28  ;;  %v3773_v28 = vrot.slane %v3746_v7, 5 }
 0xc4a   : > { %3734 = vmatmul.f32.gmra.mxu2 %v3445_v45  ;;  %4037 = vmatpush.msrb.mxu1 %v5953_v54  ;;  %v9703_v54 = vpop.permute.xlu0 %6450  ;;  %v6143_v45 = vunpack.i.h.bf16 %v9199_v19 }
 0xc4b   : > { %4052 = vmatpush.msrb.mxu2 %v6013_v4  ;;  %4319 = vmatpush.msrb.mxu3 %v6042_v44  ;;  %v6007_v4 = vunpack.i.l.bf16 %v10356_v52  ;;  %v6033_v44 = vunpack.i.h.bf16 %v10357_v41  ;;  %v6002_v52 = vunpack.i.l.bf16 %v10358_v39 }
 0xc4c   : > { %4038 = vmatpush.msrb.mxu1 %v5952_v11  ;;  %v4088_v11 = vrot.slane %v4071_v43, 6 }
 0xc4d   : > { %v9699_v30 = vpop.permute.xlu1 %6425  ;;  %4053 = vmatpush.msrb.mxu2 %v6012_v46  ;;  %4039 = vmatmul.f32.vlgmr.msrb.gmra.mxu1 %v3765_v25  ;;  %v4089_v46 = vrot.slane %v9374_v51, 6  ;;  %v6003_v25 = vunpack.i.h.bf16 %v10358_v39  ;;  %v10359_v51 = vld [vmem:[#allocation95_spill] sm:$0xff]  ;;  %v3743_v39 = vld [vmem:[#allocation3 + $0x18] sm:$0xe0] }
 0xc4e   : > { %4320 = vmatpush.msrb.mxu3 %v6038_v0  ;;  %4354 = vmatpush.msra.mxu1 %v6148_v16  ;;  %v6032_v0 = vunpack.i.l.bf16 %v10357_v41  ;;  %v6142_v16 = vunpack.i.l.bf16 %v9199_v19  ;;  %v3774_v19 = vsel %vm3756_vm2, %v3764_v62, %v3773_v28  ;;  %v6227_v41 = vunpack.i.l.bf16 %v9258_v36 }
 0xc4f   : > { %4054 = vmatpush.msrb.mxu2 %v6008_v13  ;;  %v6228_v13 = vunpack.i.h.bf16 %v9258_v36  ;;  %v4090_v43 = vsel %vm4087_vm3, %v4088_v11, %v4089_v46  ;;  %v4075_v11 = vld [vmem:[#allocation3 + $0x40] sm:$0x3f]  ;;  %v6223_v28 = vunpack.i.h.bf16 %v9282_v32 }
 0xc50   : > { %4321 = vmatpush.msrb.mxu3 %v6037_v35  ;;  %4355 = vmatpush.msra.mxu1 %v6147_v5  ;;  %v5998_v35 = vunpack.i.h.bf16 %v10359_v51  ;;  %v6138_v5 = vunpack.i.h.bf16 %v9094_v26 }
 0xc51   : > { %4055 = vmatpush.msrb.mxu2 %v6007_v4  ;;  %v9720_v4 = vpop.permute.xlu2 %6460 }
 0xc52   : > { %4322 = vmatpush.msrb.mxu3 %v6033_v44  ;;  %4356 = vmatpush.msra.mxu1 %v6143_v45  ;;  %v6452_v45 = vunpack.i.l.bf16 %v9703_v54  ;;  %v9729_v36 = vpop.permute.xlu0 %6465 }
 0xc53   : > { %4056 = vmatpush.msrb.mxu2 %v6003_v25  ;;  %v5997_v25 = vunpack.i.l.bf16 %v10359_v51  ;;  %v3766_v51 = vrot.slane %v3743_v39, 5  ;;  %v6188_v39 = vunpack.i.h.bf16 %v9280_v37 }
 0xc54   : > { %4323 = vmatpush.msrb.mxu3 %v6032_v0  ;;  %4357 = vmatpush.msra.mxu1 %v6142_v16  ;;  %v6137_v0 = vunpack.i.l.bf16 %v9094_v26  ;;  %v10360_v16 = vld [vmem:[#allocation100_spill] sm:$0xff]  ;;  %v3767_v26 = vrot.slane %v9525_v12, 5 }
 0xc55   : > { %v9717_v7 = vpop.permute.xlu1 %6440  ;;  %4057 = vmatpush.msrb.mxu2 %v6002_v52  ;;  %4324 = vmatmul.f32.vlgmr.msrb.gmra.mxu3 %v4090_v43  ;;  %v5993_v62 = vunpack.i.h.bf16 %v10360_v16  ;;  %v6462_v52 = vunpack.i.l.bf16 %v9720_v4  ;;  %v4100_v43 = vrot.slane %v4075_v11, 6 }
 0xc56   : > { %v6442_v44 = vunpack.i.l.bf16 %v9717_v7  ;;  %4639 = vmatpush.msra.mxu3 %v6228_v13  ;;  %4042 = vmatmul.f32.gmra.mxu1 %v3774_v19  ;;  %v6133_v13 = vunpack.i.h.bf16 %v9115_v59  ;;  %v6132_v19 = vunpack.i.l.bf16 %v9115_v59  ;;  %v6127_v59 = vunpack.i.l.bf16 %v9173_v61 }
 0xc57   : > { %4358 = vmatpush.msra.mxu1 %v6138_v5  ;;  %4058 = vmatpush.msrb.mxu2 %v5998_v35  ;;  %v6222_v35 = vunpack.i.l.bf16 %v9282_v32  ;;  %v5992_v5 = vunpack.i.l.bf16 %v10360_v16  ;;  %v4101_v32 = vsel %vm4087_vm3, %v4089_v46, %v4100_v43  ;;  %v6187_v16 = vunpack.i.l.bf16 %v9280_v37 }
 0xc58   : > { %4640 = vmatpush.msra.mxu3 %v6227_v41  ;;  %4960 = vmatpush.msra.mxu0 %v6442_v44  ;;  %v6128_v41 = vunpack.i.h.bf16 %v9173_v61  ;;  %v6218_v44 = vunpack.i.h.bf16 %v9332_v23  ;;  %v6213_v46 = vunpack.i.h.bf16 %v9230_v27  ;;  %v6122_v61 = vunpack.i.l.bf16 %v9069_v56 }
 0xc59   : > { %4359 = vmatpush.msra.mxu1 %v6137_v0  ;;  %4059 = vmatpush.msrb.mxu2 %v5997_v25  ;;  %v6217_v25 = vunpack.i.l.bf16 %v9332_v23  ;;  %v3747_v0 = vld [vmem:[#allocation3 + $0x38] sm:$0x1f]  ;;  %v6212_v23 = vunpack.i.l.bf16 %v9230_v27  ;;  %v6182_v37 = vunpack.i.l.bf16 %v9179_v60  ;;  %v6208_v43 = vunpack.i.h.bf16 %v9254_v3 }
 0xc5a   : > { %4641 = vmatpush.msra.mxu3 %v6223_v28  ;;  %4961 = vmatpush.msra.mxu0 %v6452_v45  ;;  %v3768_v45 = vsel %vm3756_vm2, %v3766_v51, %v3767_v26  ;;  %v6183_v28 = vunpack.i.h.bf16 %v9179_v60  ;;  %v6207_v27 = vunpack.i.l.bf16 %v9254_v3 }
 0xc5b   : > { %4360 = vmatpush.msra.mxu1 %v6133_v13  ;;  %4060 = vmatpush.msrb.mxu2 %v5993_v62  ;;  %v6123_v62 = vunpack.i.h.bf16 %v9069_v56  ;;  %v9750_v13 = vpop.permute.xlu0 %6480 }
 0xc5c   : > { %4642 = vmatpush.msra.mxu3 %v6222_v35  ;;  %4962 = vmatpush.msra.mxu0 %v6462_v52  ;;  %v3775_v52 = vrot.slane %v3747_v0, 5  ;;  %v6118_v35 = vunpack.i.h.bf16 %v9090_v20  ;;  %v6482_v60 = vunpack.i.l.bf16 %v9750_v13 }
 0xc5d   : > { %v9739_v11 = vpop.permute.xlu1 %6455  ;;  %4361 = vmatpush.msra.mxu1 %v6132_v19  ;;  %4061 = vmatpush.msrb.mxu2 %v5992_v5  ;;  %v6178_v5 = vunpack.i.h.bf16 %v9201_v58 }
 0xc5e   : > { %4327 = vmatmul.f32.gmra.mxu3 %v4101_v32  ;;  %4062 = vmatmul.f32.vlgmr.msrb.gmra.mxu2 %v3768_v45  ;;  %v3776_v56 = vsel %vm3756_vm2, %v3767_v26, %v3775_v52  ;;  %v6177_v32 = vunpack.i.l.bf16 %v9201_v58  ;;  %v6203_v45 = vunpack.i.h.bf16 %v9306_v63  ;;  %v6173_v26 = vunpack.i.h.bf16 %v9252_v17 }
 0xc5f   : > { %4643 = vmatpush.msra.mxu3 %v6218_v44  ;;  %4362 = vmatpush.msra.mxu1 %v6128_v41  ;;  %v4073_v41 = vld [vmem:[#allocation3 + $0x58] sm:$0xc0]  ;;  %v6117_v44 = vunpack.i.l.bf16 %v9090_v20  ;;  %v6112_v20 = vunpack.i.l.bf16 %v9147_v14  ;;  %v6172_v58 = vunpack.i.l.bf16 %v9252_v17  ;;  %v4402_v17 = vld [vmem:[#allocation3 + $0x30] sm:$0x80] }
 0xc60   : > { %4377 = vmatpush.msra.mxu2 %v6188_v39  ;;  %v6113_v39 = vunpack.i.h.bf16 %v9147_v14  ;;  %v4094_v3 = vrot.slane %v4073_v41, 6  ;;  %v6292_v41 = vunpack.i.l.bf16 %v9455_v42 }
 0xc61   : > { %4644 = vmatpush.msra.mxu3 %v6217_v25  ;;  %4363 = vmatpush.msra.mxu1 %v6127_v59  ;;  %v4095_v59 = vrot.slane %v9452_v34, 6  ;;  %v6202_v25 = vunpack.i.l.bf16 %v9306_v63  ;;  %v6277_v34 = vunpack.i.l.bf16 %v9429_v33 }
 0xc62   : > { %4378 = vmatpush.msra.mxu2 %v6187_v16  ;;  %v6198_v16 = vunpack.i.h.bf16 %v9205_v9 }
 0xc63   : > { %4645 = vmatpush.msra.mxu3 %v6213_v46  ;;  %4364 = vmatpush.msra.mxu1 %v6123_v62  ;;  %v9773_v0 = vpop.permute.xlu0 %6495  ;;  %v6168_v46 = vunpack.i.h.bf16 %v9153_v22  ;;  %v4096_v14 = vsel %vm4087_vm3, %v4094_v3, %v4095_v59  ;;  %v4406_v3 = vld [vmem:[#allocation3 + $0x40] sm:$0x7f] }
 0xc64   : > { %4379 = vmatpush.msra.mxu2 %v6183_v28  ;;  %v6197_v28 = vunpack.i.l.bf16 %v9205_v9  ;;  %v6497_v52 = vunpack.i.l.bf16 %v9773_v0 }
 0xc65   : > { %4646 = vmatpush.msra.mxu3 %v6212_v23  ;;  %v9756_v51 = vpop.permute.xlu1 %6470  ;;  %4365 = vmatpush.msra.mxu1 %v6122_v61  ;;  %v4077_v61 = vld [vmem:[#allocation3 + $0x10] sm:$0x3f]  ;;  %v6167_v23 = vunpack.i.l.bf16 %v9153_v22 }
 0xc66   : > { %v6472_v19 = vunpack.i.l.bf16 %v9756_v51  ;;  %4380 = vmatpush.msra.mxu2 %v6182_v37  ;;  %v6282_v37 = vunpack.i.l.bf16 %v9390_v50  ;;  %v4104_v22 = vrot.slane %v4077_v61, 6  ;;  %v4098_v61 = vrot.slane %v9525_v12, 6 }
 0xc67   : > { %4647 = vmatpush.msra.mxu3 %v6208_v43  ;;  %4065 = vmatmul.f32.gmra.mxu2 %v3776_v56  ;;  %v6193_v43 = vunpack.i.h.bf16 %v9226_v2  ;;  %v6287_v56 = vunpack.i.l.bf16 %v9363_v6 }
 0xc68   : > { %4366 = vmatpush.msra.mxu1 %v6118_v35  ;;  %4381 = vmatpush.msra.mxu2 %v6178_v5  ;;  %v4419_v35 = vrot.slane %v4402_v17, 7  ;;  %v9787_v5 = vld [vmem:[#allocation3 + $0x50] sm:$0xff]  ;;  %v10363_v17 = vld [vmem:[#allocation45_spill] sm:$0xff] }
 0xc69   : > { %4648 = vmatpush.msra.mxu3 %v6207_v27  ;;  %4963 = vmatpush.msra.mxu0 %v6472_v19  ;;  %v4420_v9 = vrot.slane %v9787_v5, 7  ;;  %v6163_v19 = vunpack.i.h.bf16 %v9175_v40  ;;  %v6192_v27 = vunpack.i.l.bf16 %v9226_v2 }
 0xc6a   : > { %4367 = vmatpush.msra.mxu1 %v6117_v44  ;;  %4382 = vmatpush.msra.mxu2 %v6177_v32 }
 0xc6b   : > { %4649 = vmatpush.msra.mxu3 %v6203_v45  ;;  %4964 = vmatpush.msra.mxu0 %v6482_v60  ;;  %v6162_v60 = vunpack.i.l.bf16 %v9175_v40  ;;  %v4421_v32 = vsel %vm4418_vm4, %v4419_v35, %v4420_v9  ;;  %v6302_v45 = vunpack.i.l.bf16 %v9388_v47  ;;  %v6158_v40 = vunpack.i.h.bf16 %v9224_v48  ;;  %v10365_v35 = vld [vmem:[#allocation44_spill] sm:$0xff] }
 0xc6c   : > { %4368 = vmatpush.msra.mxu1 %v6113_v39  ;;  %4383 = vmatpush.msra.mxu2 %v6173_v26  ;;  %v6297_v39 = vunpack.i.l.bf16 %v9414_v57  ;;  %v4105_v26 = vsel %vm4087_vm3, %v4095_v59, %v4104_v22  ;;  %v10366_v22 = vld [vmem:[#allocation35_spill] sm:$0xff] }
 0xc6d   : > { %4650 = vmatpush.msra.mxu3 %v6202_v25  ;;  %v9776_v62 = vpop.permute.xlu1 %6485  ;;  %v6303_v25 = vunpack.i.h.bf16 %v9388_v47  ;;  %v6669_v47 = vld [vmem:[#allocation3 + $0x68] sm:$0xff] }
 0xc6e   : > { %v6488_v63 = vunpack.i.h.bf16 %v9776_v62  ;;  %4369 = vmatpush.msra.mxu1 %v6112_v20  ;;  %4384 = vmatpush.msra.mxu2 %v6172_v58  ;;  %v6307_v20 = vunpack.i.l.bf16 %v9491_v29  ;;  %v4074_v58 = vld [vmem:[#allocation3 + $0x18] sm:$0xc0] }
 0xc6f   : > { %4370 = vmatmul.f32.vlgmr.msra.gmra.mxu1 %v4096_v14  ;;  %4651 = vmatpush.msra.mxu3 %v6198_v16  ;;  %v6157_v16 = vunpack.i.l.bf16 %v9224_v48  ;;  %v4431_v14 = vrot.slane %v4406_v3, 7  ;;  %v10364_v48 = vld [vmem:[#allocation40_spill] sm:$0xff]  ;;  %v6367_v3 = vunpack.i.l.bf16 %v9615_v49 }
 0xc70   : > { %4685 = vmatpush.msrb.mxu1 %v6277_v34  ;;  %4385 = vmatpush.msra.mxu2 %v6168_v46  ;;  %v10361_v46 = vld [vmem:[#allocation41_spill] sm:$0xff] }
 0xc71   : > { %4652 = vmatpush.msra.mxu3 %v6197_v28  ;;  %4965 = vmatpush.msra.mxu0 %v6488_v63  ;;  %v6317_v34 = vunpack.i.l.bf16 %v10361_v46  ;;  %v10362_v63 = vld [vmem:[#allocation34_spill] sm:$0xff]  ;;  %v6153_v28 = vunpack.i.h.bf16 %v10363_v17 }
 0xc72   : > { %4686 = vmatpush.msrb.mxu1 %v6282_v37  ;;  %4386 = vmatpush.msra.mxu2 %v6167_v23  ;;  %v6312_v59 = vunpack.i.l.bf16 %v10362_v63  ;;  %v6322_v23 = vunpack.i.l.bf16 %v9527_v8  ;;  %v6327_v37 = vunpack.i.l.bf16 %v10364_v48  ;;  %v6397_v48 = vunpack.i.l.bf16 %v9660_v1 }
 0xc73   : > { %4653 = vmatpush.msra.mxu3 %v6193_v43  ;;  %4966 = vmatpush.msra.mxu0 %v6497_v52  ;;  %v4097_v52 = vrot.slane %v4074_v58, 6  ;;  %v6152_v43 = vunpack.i.l.bf16 %v10363_v17  ;;  %v3228_v58 = vpop.f32.mrf.mxu0  ;;  %v10368_v17 = vld [vmem:[#allocation74_spill] sm:$0xff] }
 0xc74   : > { %4687 = vmatpush.msrb.mxu1 %v6287_v56  ;;  %4387 = vmatpush.msra.mxu2 %v6163_v19  ;;  %v6333_v19 = vunpack.i.h.bf16 %v10365_v35  ;;  %v4432_v56 = vsel %vm4418_vm4, %v4420_v9, %v4431_v14  ;;  %v6363_v9 = vunpack.i.h.bf16 %v9517_v24 }
 0xc75   : > { %4654 = vmatpush.msra.mxu3 %v6192_v27  ;;  %v9795_v44 = vpop.permute.xlu1 %6500  ;;  %v6272_v27 = vunpack.i.l.bf16 %v10366_v22  ;;  %v4099_v12 = vsel %vm4087_vm3, %v4097_v52, %v4098_v61 }
 0xc76   : > { %4688 = vmatpush.msrb.mxu1 %v6292_v41  ;;  %v6503_v2 = vunpack.i.h.bf16 %v9795_v44  ;;  %4388 = vmatpush.msra.mxu2 %v6162_v60  ;;  %v6337_v60 = vunpack.i.l.bf16 %v9560_v21  ;;  %v10367_v41 = vld [vmem:[#allocation42_spill] sm:$0xff] }
 0xc77   : > { %4655 = vmatmul.f32.vlgmr.msra.gmra.mxu3 %v4421_v32  ;;  %4373 = vmatmul.f32.gmra.mxu1 %v4105_v26  ;;  %v6348_v32 = vunpack.i.h.bf16 %v10367_v41  ;;  %v3205_v26 = vpop.f32.mrf.mxu3 }
 0xc78   : > { %4929 = vmatpush.msrb.mxu3 %v6302_v45  ;;  %4689 = vmatpush.msrb.mxu1 %v6297_v39  ;;  %v4078_v45 = vld [vmem:[#allocation3 + $0x38] sm:$0x3f]  ;;  %v6273_v39 = vunpack.i.h.bf16 %v10366_v22  ;;  %v3229_v14 = vadd.f32 %v3228_v58, %v3205_v26  ;;  %v6427_v22 = vunpack.i.l.bf16 %v9699_v30 }
 0xc79   : > { %4389 = vmatpush.msra.mxu2 %v6158_v40  ;;  %4967 = vmatpush.msra.mxu0 %v6503_v2  ;;  %v6352_v2 = vunpack.i.l.bf16 %v9585_v55  ;;  %v6278_v40 = vunpack.i.h.bf16 %v9429_v33  ;;  %v6288_v33 = vunpack.i.h.bf16 %v9363_v6  ;;  %v4404_v6 = vld [vmem:[#allocation3 + $0x58] sm:$0x80] }
 0xc7a   : > { %4930 = vmatpush.msrb.mxu3 %v6303_v25  ;;  %4690 = vmatpush.msrb.mxu1 %v6307_v20  ;;  %v4734_v25 = vld [vmem:[#allocation3 + $0x20] sm:$0xff]  ;;  %v4106_v20 = vrot.slane %v4078_v45, 6 }
 0xc7b   : > { %4390 = vmatpush.msra.mxu2 %v6157_v16  ;;  %4968 = vmatmul.f32.vlgmr.msra.gmra.mxu0 %v6669_v47  ;;  %v6378_v16 = vunpack.i.h.bf16 %v9557_v53  ;;  %v10369_v47 = vld [vmem:[#allocation39_spill] sm:$0xff] }
 0xc7c   : > { %4931 = vmatpush.msrb.mxu3 %v6317_v34  ;;  %4691 = vmatpush.msrb.mxu1 %v6312_v59  ;;  %v6283_v34 = vunpack.i.h.bf16 %v9390_v50  ;;  %v6382_v59 = vunpack.i.l.bf16 %v9639_v31  ;;  %v6408_v52 = vunpack.i.h.bf16 %v10369_v47  ;;  %v4107_v50 = vsel %vm4087_vm3, %v4098_v61, %v4106_v20  ;;  %v10371_v20 = vld [vmem:[#allocation69_spill] sm:$0xff] }
 0xc7d   : > { %4391 = vmatpush.msra.mxu2 %v6153_v28  ;;  %v6393_v28 = vunpack.i.h.bf16 %v10368_v17  ;;  %v6428_v61 = vunpack.i.h.bf16 %v9699_v30  ;;  %v10370_v30 = vld [vmem:[#allocation32_spill] sm:$0xff]  ;;  %v6358_v58 = vunpack.i.h.bf16 %v10371_v20 }
 0xc7e   : > { %4932 = vmatpush.msrb.mxu3 %v6327_v37  ;;  %4692 = vmatpush.msrb.mxu1 %v6322_v23  ;;  %v6412_v37 = vunpack.i.l.bf16 %v9681_v38 }
 0xc7f   : > { %4392 = vmatpush.msra.mxu2 %v6152_v43  ;;  %4658 = vmatmul.f32.gmra.mxu3 %v4432_v56  ;;  %v6293_v56 = vunpack.i.h.bf16 %v9455_v42  ;;  %v6448_v42 = vunpack.i.h.bf16 %v9693_v18 }
 0xc80   : > { %4933 = vmatpush.msrb.mxu3 %v6333_v19  ;;  %4393 = vmatmul.f32.vlgmr.msra.gmra.mxu2 %v4099_v12  ;;  %v6423_v19 = vunpack.i.h.bf16 %v9651_v10  ;;  %v4425_v12 = vrot.slane %v4404_v6, 7 }
 0xc81   : > { %4693 = vmatpush.msrb.mxu1 %v6337_v60  ;;  %4708 = vmatpush.msrb.mxu2 %v6272_v27  ;;  %v6438_v27 = vunpack.i.h.bf16 %v9677_v15  ;;  %v6298_v60 = vunpack.i.h.bf16 %v9414_v57  ;;  %v6313_v57 = vunpack.i.h.bf16 %v10362_v63 }
 0xc82   : > { %4934 = vmatpush.msrb.mxu3 %v6348_v32  ;;  %v9841_v32 = vld [vmem:[#allocation3 + $0x8] sm:$0xff] }
 0xc83   : > { %4694 = vmatpush.msrb.mxu1 %v6352_v2  ;;  %4709 = vmatpush.msrb.mxu2 %v6273_v39  ;;  %v4426_v45 = vrot.slane %v9841_v32, 7  ;;  %v6308_v39 = vunpack.i.h.bf16 %v9491_v29  ;;  %v6458_v2 = vunpack.i.h.bf16 %v9739_v11  ;;  %v4408_v29 = vld [vmem:[#allocation3 + $0x10] sm:$0x7f] }
 0xc84   : > { %4935 = vmatpush.msrb.mxu3 %v6363_v9  ;;  %4971 = vmatmul.f32.gmra.mxu0 %v4734_v25  ;;  %v6343_v9 = vunpack.i.h.bf16 %v10370_v30  ;;  %v6323_v25 = vunpack.i.h.bf16 %v9527_v8  ;;  %v3208_v63 = vpop.f32.mrf.mxu3  ;;  %v10373_v8 = vld [vmem:[#allocation78_spill] sm:$0xff] }
 0xc85   : > { %4695 = vmatpush.msrb.mxu1 %v6367_v3  ;;  %4710 = vmatpush.msrb.mxu2 %v6278_v40  ;;  %v4427_v26 = vsel %vm4418_vm4, %v4425_v12, %v4426_v45  ;;  %v9850_v40 = vpop.permute.xlu2 %6475  ;;  %v6468_v3 = vunpack.i.h.bf16 %v9729_v36  ;;  %v6443_v12 = vunpack.i.h.bf16 %v9717_v7  ;;  %v6463_v7 = vunpack.i.h.bf16 %v9720_v4 }
 0xc86   : > { %4936 = vmatpush.msrb.mxu3 %v6378_v16  ;;  %v3251_v23 = vpop.f32.mrf.mxu1  ;;  %v6478_v16 = vunpack.i.h.bf16 %v9850_v40  ;;  %v6347_v4 = vunpack.i.l.bf16 %v10367_v41  ;;  %v6392_v41 = vunpack.i.l.bf16 %v10368_v17 }
 0xc87   : > { %4696 = vmatpush.msrb.mxu1 %v6382_v59  ;;  %4711 = vmatpush.msrb.mxu2 %v6283_v34  ;;  %v9833_v43 = vadd.f32 %v3251_v23, %v3229_v14  ;;  %v6338_v34 = vunpack.i.h.bf16 %v9560_v21  ;;  %v10372_v59 = vld [vmem:[#allocation91_spill] sm:$0xff]  ;;  %v6388_v23 = vunpack.i.h.bf16 %v10373_v8  ;;  %v6422_v8 = vunpack.i.l.bf16 %v9651_v10 }
 0xc88   : > { %4937 = vmatpush.msrb.mxu3 %v6393_v28  ;;  %4396 = vmatmul.f32.gmra.mxu2 %v4107_v50  ;;  %v6373_v14 = vunpack.i.h.bf16 %v10372_v59  ;;  %v3231_v28 = vpop.f32.mrf.mxu0  ;;  %v6368_v50 = vunpack.i.h.bf16 %v9615_v49  ;;  %v6398_v49 = vunpack.i.h.bf16 %v9660_v1  ;;  %v6318_v1 = vunpack.i.h.bf16 %v10361_v46 }
 0xc89   : > { %4697 = vmatpush.msrb.mxu1 %v6397_v48  ;;  %4712 = vmatpush.msrb.mxu2 %v6288_v33  ;;  %v4435_v33 = vrot.slane %v4408_v29, 7  ;;  %v3232_v48 = vadd.f32 %v3231_v28, %v3208_v63  ;;  %v6407_v28 = vunpack.i.l.bf16 %v10369_v47  ;;  %v6447_v47 = vunpack.i.l.bf16 %v9693_v18 }
 0xc8a   : > { %4938 = vmatpush.msrb.mxu3 %v6408_v52  ;;  %v6353_v52 = vunpack.i.h.bf16 %v9585_v55  ;;  %v6383_v55 = vunpack.i.h.bf16 %v9639_v31  ;;  %v6413_v31 = vunpack.i.h.bf16 %v9681_v38  ;;  %v4409_v38 = vld [vmem:[#allocation3 + $0x38] sm:$0x7f]  ;;  %v6457_v10 = vunpack.i.l.bf16 %v9739_v11 }
 0xc8b   : > { %4698 = vmatpush.msrb.mxu1 %v6412_v37  ;;  %4713 = vmatpush.msrb.mxu2 %v6293_v56  ;;  %v4436_v6 = vsel %vm4418_vm4, %v4426_v45, %v4435_v33  ;;  %v9871_v45 = vld [vmem:[#allocation3 + $0x48] sm:$0xff]  ;;  %v4437_v63 = vrot.slane %v4409_v38, 7  ;;  %v6498_v33 = vunpack.i.h.bf16 %v9773_v0  ;;  %v6487_v18 = vunpack.i.l.bf16 %v9776_v62 }
 0xc8c   : > { %4939 = vmatpush.msrb.mxu3 %v6423_v19  ;;  %v10374_v19 = vld [vmem:[#allocation85_spill] sm:$0xff]  ;;  %v3334_v29 = vpop.f32.mrf.mxu3  ;;  %v6502_v11 = vunpack.i.l.bf16 %v9795_v44 }
 0xc8d   : > { %4699 = vmatpush.msrb.mxu1 %v6427_v22  ;;  %4714 = vmatpush.msrb.mxu2 %v6298_v60  ;;  %v6403_v21 = vunpack.i.h.bf16 %v10374_v19  ;;  %v4405_v22 = vld [vmem:[#allocation3 + $0x18] sm:$0x80] }
 0xc8e   : > { %4940 = vmatpush.msrb.mxu3 %v6438_v27  ;;  %v10375_v27 = vld [vmem:[#allocation90_spill] sm:$0xff] }
 0xc8f   : > { %4700 = vmatpush.msrb.mxu1 %v6428_v61  ;;  %4715 = vmatpush.msrb.mxu2 %v6308_v39  ;;  %v6418_v60 = vunpack.i.h.bf16 %v10375_v27  ;;  %v4428_v61 = vrot.slane %v4405_v22, 7  ;;  %v6477_v22 = vunpack.i.l.bf16 %v9850_v40  ;;  %v4736_v40 = vld [vmem:[#allocation3 + $0x38] sm:$0xff] }
 0xc90   : > { %4701 = vmatmul.f32.vlgmr.msrb.gmra.mxu1 %v4427_v26  ;;  %4941 = vmatpush.msrb.mxu3 %v6448_v42  ;;  %v10376_v42 = vld [vmem:[#allocation73_spill] sm:$0xff]  ;;  %v3357_v20 = vpop.f32.mrf.mxu0 }
 0xc91   : > { %4975 = vmatpush.msra.mxu1 %v6343_v9  ;;  %4716 = vmatpush.msrb.mxu2 %v6313_v57  ;;  %v6433_v39 = vunpack.i.h.bf16 %v10376_v42  ;;  %v6453_v57 = vunpack.i.h.bf16 %v9703_v54  ;;  %v4733_v9 = vld [vmem:[#allocation3 + $0x40] sm:$0xff]  ;;  %v6332_v54 = vunpack.i.l.bf16 %v10365_v35 }
 0xc92   : > { %4942 = vmatpush.msrb.mxu3 %v6458_v2  ;;  %v9874_v2 = vpop.permute.xlu2 %6490 }
 0xc93   : > { %4976 = vmatpush.msra.mxu1 %v6358_v58  ;;  %4717 = vmatpush.msrb.mxu2 %v6323_v25  ;;  %v6473_v25 = vunpack.i.h.bf16 %v9756_v51  ;;  %v6483_v58 = vunpack.i.h.bf16 %v9750_v13  ;;  %v6492_v59 = vunpack.i.l.bf16 %v9874_v2 }
 0xc94   : > { %4943 = vmatpush.msrb.mxu3 %v6468_v3 }
 0xc95   : > { %4977 = vmatpush.msra.mxu1 %v6373_v14  ;;  %4718 = vmatpush.msrb.mxu2 %v6338_v34  ;;  %v6362_v34 = vunpack.i.l.bf16 %v9517_v24  ;;  %v6377_v14 = vunpack.i.l.bf16 %v9557_v53 }
 0xc96   : > { %4944 = vmatpush.msrb.mxu3 %v6478_v16  ;;  %v3254_v37 = vpop.f32.mrf.mxu1 }
 0xc97   : > { %4978 = vmatpush.msra.mxu1 %v6388_v23  ;;  %4719 = vmatpush.msrb.mxu2 %v6353_v52  ;;  %v9863_v56 = vadd.f32 %v3254_v37, %v3232_v48  ;;  %v6437_v23 = vunpack.i.l.bf16 %v9677_v15  ;;  %v3337_v48 = vpop.f32.mrf.mxu3 }
 0xc98   : > { %4945 = vmatmul.f32.vlgmr.msrb.gmra.mxu3 %v9787_v5  ;;  %4704 = vmatmul.f32.gmra.mxu1 %v4436_v6  ;;  %v4429_v5 = vrot.slane %v9871_v45, 7  ;;  %v3360_v37 = vpop.f32.mrf.mxu0  ;;  %v6467_v6 = vunpack.i.l.bf16 %v9729_v36 }
 0xc99   : > { %4979 = vmatpush.msra.mxu1 %v6403_v21  ;;  %4720 = vmatpush.msrb.mxu2 %v6368_v50 }
 0xc9a   : > { %v4430_v26 = vsel %vm4418_vm4, %v4428_v61, %v4429_v5  ;;  %v6506_v35 = vpop.permute.xlu2 %6505  ;;  %v4438_v13 = vsel %vm4418_vm4, %v4429_v5, %v4437_v63 }
 0xc9b   : > { %4980 = vmatpush.msra.mxu1 %v6418_v60  ;;  %4721 = vmatpush.msrb.mxu2 %v6383_v55  ;;  %v6507_v24 = vunpack.i.l.bf16 %v6506_v35  ;;  %v6508_v52 = vunpack.i.h.bf16 %v6506_v35  ;;  %v6493_v55 = vunpack.i.h.bf16 %v9874_v2 }
 0xc9d   : > { %4981 = vmatpush.msra.mxu1 %v6433_v39  ;;  %4722 = vmatpush.msrb.mxu2 %v6398_v49 }
 0xc9e   : > { %v3274_v30 = vpop.f32.mrf.mxu2  ;;  %v3380_v16 = vpop.f32.mrf.mxu1 }
 0xc9f   : > { %4982 = vmatpush.msra.mxu1 %v6443_v12  ;;  %4723 = vmatpush.msrb.mxu2 %v6413_v31  ;;  %v3275_v3 = vadd.f32 %v3274_v30, %v9833_v43 }
 0xca0   : > { %4948 = vmatmul.f32.gmra.mxu3 %v4733_v9  ;;  %4724 = vmatmul.f32.vlgmr.msrb.gmra.mxu2 %v4430_v26 }
 0xca1   : > { %4983 = vmatpush.msra.mxu1 %v6453_v57  ;;  %4998 = vmatpush.msra.mxu2 %v6318_v1  ;;  %v3335_v46 = vadd.f32 %v3334_v29, %v3275_v3 }
 0xca3   : > { %4984 = vmatpush.msra.mxu1 %v6463_v7  ;;  %4999 = vmatpush.msra.mxu2 %v6332_v54  ;;  %v3358_v43 = vadd.f32 %v3357_v20, %v3335_v46 }
 0xca5   : > { %4985 = vmatpush.msra.mxu1 %v6473_v25  ;;  %5000 = vmatpush.msra.mxu2 %v6347_v4  ;;  %v3381_v51 = vadd.f32 %v3380_v16, %v3358_v43 }
 0xca6   : > { %v3383_v19 = vpop.f32.mrf.mxu1 }
 0xca7   : > { %4986 = vmatpush.msra.mxu1 %v6483_v58  ;;  %5001 = vmatpush.msra.mxu2 %v6362_v34 }
 0xca8   : > { %4727 = vmatmul.f32.gmra.mxu2 %v4438_v13 }
 0xca9   : > { %4987 = vmatpush.msra.mxu1 %v6492_v59  ;;  %5002 = vmatpush.msra.mxu2 %v6377_v14 }
 0xcab   : > { %4988 = vmatpush.msra.mxu1 %v6498_v33  ;;  %5003 = vmatpush.msra.mxu2 %v6392_v41 }
 0xcad   : > { %4989 = vmatpush.msra.mxu1 %v6507_v24  ;;  %5004 = vmatpush.msra.mxu2 %v6407_v28  ;;  %v3277_v53 = vpop.f32.mrf.mxu2 }
 0xcae   : > { %v3278_v0 = vadd.f32 %v3277_v53, %v9863_v56 }
 0xcaf   : > { %4990 = vmatpush.msra.mxu1 %v6508_v52  ;;  %5005 = vmatpush.msra.mxu2 %v6422_v8 }
 0xcb0   : > { %v3338_v17 = vadd.f32 %v3337_v48, %v3278_v0  ;;  %4991 = vmatmul.f32.vlgmr.msra.gmra.mxu1 %v9841_v32  ;;  %v4735_v32 = vld [vmem:[#allocation3 + $0x10] sm:$0xff] }
 0xcb1   : > { %5006 = vmatpush.msra.mxu2 %v6437_v23 }
 0xcb2   : > { %v3361_v50 = vadd.f32 %v3360_v37, %v3338_v17 }
 0xcb3   : > { %5007 = vmatpush.msra.mxu2 %v6447_v47 }
 0xcb4   : > { %v3384_v21 = vadd.f32 %v3383_v19, %v3361_v50 }
 0xcb5   : > { %5008 = vmatpush.msra.mxu2 %v6457_v10  ;;  %v3403_v15 = vpop.f32.mrf.mxu2 }
 0xcb6   : > { %v9900_v56 = vadd.f32 %v3403_v15, %v3381_v51 }
 0xcb7   : > { %5009 = vmatpush.msra.mxu2 %v6467_v6 }
 0xcb8   : > { %4994 = vmatmul.f32.gmra.mxu1 %v4735_v32 }
 0xcb9   : > { %5010 = vmatpush.msra.mxu2 %v6477_v22 }
 0xcbb   : > { %5011 = vmatpush.msra.mxu2 %v6487_v18 }
 0xcbd   : > { %5012 = vmatpush.msra.mxu2 %v6493_v55  ;;  %v3406_v36 = vpop.f32.mrf.mxu2 }
 0xcbe   : > { %v9906_v27 = vadd.f32 %v3406_v36, %v3384_v21 }
 0xcbf   : > { %5013 = vmatpush.msra.mxu2 %v6502_v11 }
 0xcc0   : > { %5014 = vmatmul.f32.vlgmr.msra.gmra.mxu2 %v9871_v45 }
 0xcc8   : > { %5017 = vmatmul.f32.gmra.mxu2 %v4736_v40 }
 0xcc9   : > { %6939 = shalt.err (!%p6936_p9)
}
 0xcca   : > { %s7052_s1 = smov 128   ;;  %s7053_s29 = smov 8  }
 0xccb   : > { %5423 = dma.vmem_to_hbm [thread:$0]  (%p7306_p0), %s5097_s0, 256, %s5099_s5, %s5076_s9, %s7052_s1, %s7052_s1, %s7053_s29  }
 0xccc   : > { %s5081_s25 = scalar_lea.sflag [#allocation21], %s7337_s15  ;;  %s6954_s10 = sshra.s32 %s5116_s3, 4  ;;  %s6955_s10 = int_to_ptr.hbm [resolvable:$true] %s6954_s10 }
 0xccd   : > { %s6956_s13 = scalar_lea.hbm %s6955_s10, 16  ;;  %s6960_s14 = scalar_lea.hbm %s10378_s6, 32 }
 0xcce   : > { %p6957_p10 = scmp.ne.s32.totalorder %s6955_s10, %s6956_s13  ;;  %p6961_p2 = scmp.lt.s32.totalorder %s6955_s10, %s10378_s6 }
 0xccf   : > { %p6962_p4 = scmp.lt.s32.totalorder %s6960_s14, %s6956_s13 }
 0xcd0   : > { %p6958_p11 = pnand %p6957_p10, %p7306_p0 }
 0xcd1   : > { %p6963_p1 = por %p6962_p4, %p6961_p2 }
 0xcd2   : > { %p6959_p12 = pneg %p6958_p11 }
 0xcd4   : > { %p6964_p3 = pnand %p6963_p1, %p6959_p12 }
 0xcd6   : > { %6967 = shalt.err (!%p6964_p3)
}
 0xcd7   : > { %5424 = dma.vmem_to_hbm [thread:$0]  (%p7306_p0), %s9911_s17, 256, %s5116_s3, %s5081_s25, %s7052_s1, %s7052_s1, %s7053_s29   ;;  %v3663_v62 = vpop.f32.mrf.mxu3  ;;  %v3686_v44 = vpop.f32.mrf.mxu0  ;;  %vm5067_vm8 = vcmask 7168  }
 0xcd8   : > { %v3709_v60 = vpop.f32.mrf.mxu1  ;;  %v3732_v61 = vpop.f32.mrf.mxu2  ;;  %v3687_v59 = vadd.f32 %v3686_v44, %v3663_v62  ;;  %p948_p0 = scmp.lt.s32.totalorder %s7216_s30, 1  ;;  %s10379_s3 = sld [smem:[#allocation132_spill]] }
 0xcda   : > { %v3710_v51 = vadd.f32 %v3709_v60, %v3687_v59  ;;  %v6524_v60 = vld [vmem:[#allocation4] ss:$0 sm:$0xff]  ;;  %s10386_s30 = smov (!%p948_p0, %s7216_s30), 1 }
 0xcdb   : > { %s5383_s24 = sshll.u32 %s10386_s30, 4 }
 0xcdc   : > { %v3733_v14 = vadd.f32 %v3732_v61, %v3710_v51 }
 0xcde   : > { %v3738_v48 = vadd.f32 %v3733_v14, %v9900_v56  ;;  %s952_s0 = scalar_lea.vmem %s10379_s3, %s5383_s24 }
 0xcdf   : > { %v3666_v49 = vpop.f32.mrf.mxu3  ;;  %v3689_v12 = vpop.f32.mrf.mxu0 }
 0xce0   : > { %v3712_v42 = vpop.f32.mrf.mxu1  ;;  %v3735_v45 = vpop.f32.mrf.mxu2  ;;  %v3690_v23 = vadd.f32 %v3689_v12, %v3666_v49 }
 0xce2   : > { %v3713_v50 = vadd.f32 %v3712_v42, %v3690_v23 }
 0xce4   : > { %v3736_v15 = vadd.f32 %v3735_v45, %v3713_v50 }
 0xce6   : > { %v3739_v61 = vadd.f32 %v3736_v15, %v9906_v27 }
 0xce7   : > { %v3994_v39 = vpop.f32.mrf.mxu3  ;;  %v4017_v5 = vpop.f32.mrf.mxu0 }
 0xce8   : > { %v4040_v2 = vpop.f32.mrf.mxu1  ;;  %v4063_v31 = vpop.f32.mrf.mxu2  ;;  %v4018_v35 = vadd.f32 %v4017_v5, %v3994_v39 }
 0xcea   : > { %v4041_v33 = vadd.f32 %v4040_v2, %v4018_v35 }
 0xcec   : > { %v4064_v28 = vadd.f32 %v4063_v31, %v4041_v33 }
 0xcee   : > { %v4069_v10 = vadd.f32 %v4064_v28, %v3738_v48 }
 0xcef   : > { %v3997_v57 = vpop.f32.mrf.mxu3  ;;  %v4020_v30 = vpop.f32.mrf.mxu0 }
 0xcf0   : > { %v4043_v1 = vpop.f32.mrf.mxu1  ;;  %v4066_v9 = vpop.f32.mrf.mxu2  ;;  %v4021_v47 = vadd.f32 %v4020_v30, %v3997_v57 }
 0xcf2   : > { %v4044_v6 = vadd.f32 %v4043_v1, %v4021_v47 }
 0xcf4   : > { %v4067_v11 = vadd.f32 %v4066_v9, %v4044_v6 }
 0xcf6   : > { %v4070_v2 = vadd.f32 %v4067_v11, %v3739_v61 }
 0xcf7   : > { %v4325_v7 = vpop.f32.mrf.mxu3  ;;  %v4348_v26 = vpop.f32.mrf.mxu0 }
 0xcf8   : > { %v4371_v3 = vpop.f32.mrf.mxu1  ;;  %v4349_v13 = vadd.f32 %v4348_v26, %v4325_v7 }
 0xcfa   : > { %v4372_v52 = vadd.f32 %v4371_v3, %v4349_v13 }
 0xcff   : > { %v4328_v38 = vpop.f32.mrf.mxu3  ;;  %v4351_v54 = vpop.f32.mrf.mxu0 }
 0xd00   : > { %v4374_v25 = vpop.f32.mrf.mxu1  ;;  %v4352_v22 = vadd.f32 %v4351_v54, %v4328_v38 }
 0xd02   : > { %v4375_v36 = vadd.f32 %v4374_v25, %v4352_v22 }
 0xd03   : > { %v4394_v29 = vpop.f32.mrf.mxu2 }
 0xd04   : > { %v4395_v17 = vadd.f32 %v4394_v29, %v4372_v52 }
 0xd06   : > { %v4400_v32 = vadd.f32 %v4395_v17, %v4069_v10 }
 0xd07   : > { %v4656_v46 = vpop.f32.mrf.mxu3  ;;  %v4679_v4 = vpop.f32.mrf.mxu0 }
 0xd08   : > { %v4680_v8 = vadd.f32 %v4679_v4, %v4656_v46 }
 0xd0b   : > { %v4397_v20 = vpop.f32.mrf.mxu2 }
 0xd0c   : > { %v4398_v49 = vadd.f32 %v4397_v20, %v4375_v36 }
 0xd0d   : > { %v4702_v58 = vpop.f32.mrf.mxu1 }
 0xd0e   : > { %v4703_v37 = vadd.f32 %v4702_v58, %v4680_v8  ;;  %v4401_v30 = vadd.f32 %v4398_v49, %v4070_v2 }
 0xd0f   : > { %v4659_v43 = vpop.f32.mrf.mxu3  ;;  %v4682_v16 = vpop.f32.mrf.mxu0 }
 0xd10   : > { %v4683_v40 = vadd.f32 %v4682_v16, %v4659_v43 }
 0xd15   : > { %v4705_v34 = vpop.f32.mrf.mxu1 }
 0xd16   : > { %v4706_v12 = vadd.f32 %v4705_v34, %v4683_v40 }
 0xd17   : > { %v4969_v53 = vpop.f32.mrf.mxu0 }
 0xd1b   : > { %v4946_v41 = vpop.f32.mrf.mxu3 }
 0xd1c   : > { %v4970_v19 = vadd.f32 %v4969_v53, %v4946_v41 }
 0xd1f   : > { %v4972_v39 = vpop.f32.mrf.mxu0 }
 0xd23   : > { %v4725_v63 = vpop.f32.mrf.mxu2  ;;  %v4949_v56 = vpop.f32.mrf.mxu3 }
 0xd24   : > { %v4726_v21 = vadd.f32 %v4725_v63, %v4703_v37  ;;  %v4973_v45 = vadd.f32 %v4972_v39, %v4949_v56 }
 0xd26   : > { %v4731_v62 = vadd.f32 %v4726_v21, %v4400_v32 }
 0xd2b   : > { %v4728_v24 = vpop.f32.mrf.mxu2 }
 0xd2c   : > { %v4729_v31 = vadd.f32 %v4728_v24, %v4706_v12 }
 0xd2d   : > { %v4992_v0 = vpop.f32.mrf.mxu1 }
 0xd2e   : > { %v4993_v18 = vadd.f32 %v4992_v0, %v4970_v19  ;;  %v4732_v26 = vadd.f32 %v4729_v31, %v4401_v30 }
 0xd35   : > { %v4995_v5 = vpop.f32.mrf.mxu1 }
 0xd36   : > { %v4996_v1 = vadd.f32 %v4995_v5, %v4973_v45 }
 0xd43   : > { %v5015_v55 = vpop.f32.mrf.mxu2 }
 0xd44   : > { %v5016_v44 = vadd.f32 %v5015_v55, %v4993_v18 }
 0xd46   : > { %v5021_v42 = vadd.f32 %v5016_v44, %v4731_v62 }
 0xd48   : > { %v5027_v57 = vadd.f32 %v6524_v60, %v5021_v42 }
 0xd4a   : > { %v5373_v7 = vmul.f32 -1.442695, %v5027_v57 }
 0xd4b   : > { %v5018_v9 = vpop.f32.mrf.mxu2 }
 0xd4c   : > { %6567 = vpow2.f32 %v5373_v7  ;;  %v5019_v3 = vadd.f32 %v5018_v9, %v4996_v1 }
 0xd4e   : > { %v5022_v29 = vadd.f32 %v5019_v3, %v4732_v26 }
 0xd50   : > { %v5028_v27 = vadd.f32 %v6524_v60, %v5022_v29 }
 0xd52   : > { %v6568_v38 = vpop.eup %6567  ;;  %v5374_v54 = vmul.f32 -1.442695, %v5028_v27 }
 0xd53   : > { %v5035_v25 = vadd.f32 1.0, %v6568_v38 }
 0xd54   : > { %6569 = vpow2.f32 %v5374_v54 }
 0xd55   : > { %6571 = vrcp.f32 %v5035_v25  ;;  %v5048_v43 = vand.u32 2147483648, %v5035_v25  ;;  %v5046_v34 = vand.u32 2147483647, %v5035_v25  ;;  %vm5042_vm6 = vweird.f32 %v5035_v25 }
 0xd57   : > { %v5049_v35 = vor.u32 1.1754944e-38, %v5048_v43  ;;  %vm5047_vm9 = vcmp.eq.f32.partialorder %v5046_v34, 8.507059e+37 }
 0xd5a   : > { %v6570_v46 = vpop.eup %6569 }
 0xd5b   : > { %v6572_v20 = vpop.eup %6571  ;;  %v5036_v4 = vadd.f32 1.0, %v6570_v46 }
 0xd5c   : > { %v5038_v58 = vmul.f32 %v6572_v20, %v5035_v25  ;;  %vm5043_vm5 = vweird.f32 %v6572_v20 }
 0xd5d   : > { %6573 = vrcp.f32 %v5036_v4  ;;  %vm5044_vm7 = vmor %vm5042_vm6, %vm5043_vm5  ;;  %v5063_v24 = vand.u32 2147483648, %v5036_v4  ;;  %v5061_v52 = vand.u32 2147483647, %v5036_v4  ;;  %vm5057_vm11 = vweird.f32 %v5036_v4 }
 0xd5e   : > { %v5039_v63 = vsub.f32 1.0, %v5038_v58 }
 0xd5f   : > { %v5064_v53 = vor.u32 1.1754944e-38, %v5063_v24  ;;  %vm5062_vm13 = vcmp.eq.f32.partialorder %v5061_v52, 8.507059e+37 }
 0xd60   : > { %v5040_v16 = vmul.f32 %v6572_v20, %v5039_v63 }
 0xd62   : > { %v5041_v59 = vadd.f32 %v6572_v20, %v5040_v16 }
 0xd63   : > { %v6574_v51 = vpop.eup %6573 }
 0xd64   : > { %v5045_v14 = vsel %vm5044_vm7, %v6572_v20, %v5041_v59  ;;  %v5053_v33 = vmul.f32 %v6574_v51, %v5036_v4  ;;  %vm5058_vm10 = vweird.f32 %v6574_v51 }
 0xd65   : > { %v5050_v13 = vsel %vm5047_vm9, %v5049_v35, %v5045_v14  ;;  %vm5059_vm12 = vmor %vm5057_vm11, %vm5058_vm10 }
 0xd66   : > { %5068 = vst.msk [vmem:[%s952_s0] sm:$0xff] %vm5067_vm8, %v5050_v13  ;;  %v5054_v41 = vsub.f32 1.0, %v5053_v33 }
 0xd68   : > { %v5055_v28 = vmul.f32 %v6574_v51, %v5054_v41 }
 0xd6a   : > { %v5056_v8 = vadd.f32 %v6574_v51, %v5055_v28 }
 0xd6c   : > { %v5060_v0 = vsel %vm5059_vm12, %v6574_v51, %v5056_v8 }
 0xd6d   : > { %v5065_v23 = vsel %vm5062_vm13, %v5064_v53, %v5060_v0 }
 0xd6e   : > { %5069 = vst.msk [vmem:[%s952_s0 + $0x8] sm:$0xff] %vm5067_vm8, %v5065_v23 }
 0xd6f PF: > { %s5138_s30 = sand.u32 1, %s7014_s7   ;;  %p10380_p5 = scmp.ge.s32.totalorder %s7026_s4, 2 }
 0xd70   : > { %s5139_s17 = scalar_lea.sflag [#allocation7], %s5138_s30 }
 0xd71   : > { %p5454_p13 = pnand %p10380_p5, %p7312_p6 }
 0xd73   : > { %p5455_p8 = pneg %p5454_p13 }
 0xd75   : > { %7005 = dma.done.wait (%p5455_p8), %s5139_s17, 256  }
 0xd76   : > { %7007 = vsyncadd (%p5455_p8), %s5139_s17, 4294967040  ;;  %s5149_s5 = scalar_lea.sflag [#allocation21], %s5138_s30 }
 0xd77   : > { %7009 = dma.done.wait (%p5455_p8), %s5149_s5, 256  }
 0xd78   : > { %7011 = vsyncadd (%p5455_p8), %s5149_s5, 4294967040  ;;  %p49_p7 = scmp.ge.s32.totalorder %s7286_s26, 4   ;;  %s10381_s7 = smov %s7018_s28 }
 0xd79   : > { %s10382_s28 = smov %s7022_s8  ;;  %s10383_s8 = smov %s7298_s18 }
 0xd7a   : > { %s10384_s4 = smov %s7286_s26  ;;  %51 = sbr.rel (!%p49_p7) target bundleno = 38 (0x26), region = 224 }
 0xd7f   :  { %5155 = vsyncpa [#allocation6], 1 }
 0xd80   :  { %5157 = vsyncpa [#allocation6 + $0x1], 1 }
 0xd81   :  { %5158 = vsyncpa [#allocation9], 1 }
 0xd82   :  { %5159 = vsyncpa [#allocation12], 1 }
 0xd83   :  { %5160 = vsyncpa [#allocation15], 1 }
 0xd84   :  { %5161 = vsyncpa [#allocation18], 1 }
 0xd85   :  { %5162 = vsyncpa [#allocation7], 1 }
 0xd86   :  { %5164 = vsyncpa [#allocation7 + $0x1], 1 }
 0xd87   :  { %5165 = vsyncpa [#allocation21], 1 }
 0xd88   :  { %5167 = vsyncpa [#allocation21 + $0x1], 1 }

</bundles_post_ra>
